<compile_context>
chip_gen: v7x
topology: tpu7x:2x2x1
jax: 0.10.0
libtpu: 0.0.40
codegen_flags: <defaults>
</compile_context>

<pallas_src>
import math
import functools

import jax
import jax.numpy as jnp
from jax.experimental import pallas as pl
from jax.experimental.pallas import tpu as pltpu


# ------------------------------ kernel helpers ------------------------------

def _layernorm(y, g, b, eps):
    # y: (T, d) f32, g/b: (1, d) f32
    mean = jnp.mean(y, axis=-1, keepdims=True)
    c = y - mean
    var = jnp.mean(c * c, axis=-1, keepdims=True)
    return c * jax.lax.rsqrt(var + eps) * g + b


def _attention(q, k, v, wo, bo, nhead):
    # q: (Tq, d) f32 (already scaled by 1/sqrt(dh)), k/v: (Tk, d) f32
    # wo: (d, d) bf16, bo: (1, d) f32
    d = q.shape[-1]
    dh = d // nhead
    qb = q.astype(jnp.bfloat16)
    kb = k.astype(jnp.bfloat16)
    vb = v.astype(jnp.bfloat16)
    heads = []
    for h in range(nhead):
        sl = slice(h * dh, (h + 1) * dh)
        # scores: (Tq, Tk) via q_h @ k_h^T (NT dot_general, no explicit transpose)
        s = jax.lax.dot_general(qb[:, sl], kb[:, sl],
                                (((1,), (1,)), ((), ())),
                                preferred_element_type=jnp.float32)
        m = jnp.max(s, axis=-1, keepdims=True)
        e = jnp.exp(s - m)
        p = e * pl.reciprocal(jnp.sum(e, axis=-1, keepdims=True), approx=True)
        heads.append(jnp.dot(p.astype(jnp.bfloat16), vb[:, sl],
                             preferred_element_type=jnp.float32))
    ctx = jnp.concatenate(heads, axis=-1)               # (Tq, d) f32
    return jnp.dot(ctx.astype(jnp.bfloat16), wo,
                   preferred_element_type=jnp.float32) + bo


def _self_attn(x, wqkv, bqkv, wo, bo, nhead, scale):
    # packed QKV projection: one (T, d) @ (d, 3d) matmul
    d = x.shape[-1]
    qkv = jnp.dot(x.astype(jnp.bfloat16), wqkv,
                  preferred_element_type=jnp.float32) + bqkv   # (T, 3d)
    q = qkv[:, :d] * scale
    k = qkv[:, d:2 * d]
    v = qkv[:, 2 * d:]
    return _attention(q, k, v, wo, bo, nhead)


def _cross_attn(xq, xkv, wq, bq, wkv, bkv, wo, bo, nhead, scale):
    d = xq.shape[-1]
    q = (jnp.dot(xq.astype(jnp.bfloat16), wq,
                 preferred_element_type=jnp.float32) + bq) * scale
    kv = jnp.dot(xkv.astype(jnp.bfloat16), wkv,
                 preferred_element_type=jnp.float32) + bkv     # (T, 2d)
    k = kv[:, :d]
    v = kv[:, d:]
    return _attention(q, k, v, wo, bo, nhead)


def _ffn(x, w1, b1, w2, b2):
    # (T, d) -> (T, dim_ff) -> ReLU -> (T, d); intermediate stays in VMEM.
    h = jnp.dot(x.astype(jnp.bfloat16), w1,
                preferred_element_type=jnp.float32) + b1
    h = jnp.maximum(h, 0.0)
    return jnp.dot(h.astype(jnp.bfloat16), w2,
                   preferred_element_type=jnp.float32) + b2


# ------------------------------- fused kernel -------------------------------

def _dtransformer_kernel(
        src_ref,
        pe_ref, in_w_ref, in_b_ref, out_w_ref, out_b_ref,
        e_qkv_w_ref, e_qkv_b_ref, e_out_w_ref, e_out_b_ref,
        e_ff1_w_ref, e_ff1_b_ref, e_ff2_w_ref, e_ff2_b_ref,
        e_ln_g_ref, e_ln_b_ref,
        d_sqkv_w_ref, d_sqkv_b_ref, d_sout_w_ref, d_sout_b_ref,
        d_cq_w_ref, d_cq_b_ref, d_ckv_w_ref, d_ckv_b_ref,
        d_cout_w_ref, d_cout_b_ref,
        d_ff1_w_ref, d_ff1_b_ref, d_ff2_w_ref, d_ff2_b_ref,
        d_ln_g_ref, d_ln_b_ref,
        o_ref, *, nhead, n_enc, n_dec, eps):
    d = in_w_ref.shape[-1]
    scale = 1.0 / math.sqrt(d // nhead)

    # input linear + positional encoding (fused)
    x = src_ref[0]                                           # (T, C) f32
    x = jnp.dot(x.astype(jnp.bfloat16), in_w_ref[...],
                preferred_element_type=jnp.float32) + in_b_ref[...]
    x = x + pe_ref[...]                                      # (T, d) f32

    # encoder (post-norm TransformerEncoderLayer)
    for l in range(n_enc):
        sa = _self_attn(x, e_qkv_w_ref[l], e_qkv_b_ref[l],
                        e_out_w_ref[l], e_out_b_ref[l], nhead, scale)
        x = _layernorm(x + sa, e_ln_g_ref[l, 0], e_ln_b_ref[l, 0], eps)
        ff = _ffn(x, e_ff1_w_ref[l], e_ff1_b_ref[l],
                  e_ff2_w_ref[l], e_ff2_b_ref[l])
        x = _layernorm(x + ff, e_ln_g_ref[l, 1], e_ln_b_ref[l, 1], eps)

    memory = x
    y = memory                                               # tgt = memory

    # decoder (post-norm TransformerDecoderLayer)
    for l in range(n_dec):
        sa = _self_attn(y, d_sqkv_w_ref[l], d_sqkv_b_ref[l],
                        d_sout_w_ref[l], d_sout_b_ref[l], nhead, scale)
        y = _layernorm(y + sa, d_ln_g_ref[l, 0], d_ln_b_ref[l, 0], eps)
        ca = _cross_attn(y, memory,
                         d_cq_w_ref[l], d_cq_b_ref[l],
                         d_ckv_w_ref[l], d_ckv_b_ref[l],
                         d_cout_w_ref[l], d_cout_b_ref[l], nhead, scale)
        y = _layernorm(y + ca, d_ln_g_ref[l, 1], d_ln_b_ref[l, 1], eps)
        ff = _ffn(y, d_ff1_w_ref[l], d_ff1_b_ref[l],
                  d_ff2_w_ref[l], d_ff2_b_ref[l])
        y = _layernorm(y + ff, d_ln_g_ref[l, 2], d_ln_b_ref[l, 2], eps)

    # output linear
    o = jnp.dot(y.astype(jnp.bfloat16), out_w_ref[...],
                preferred_element_type=jnp.float32) + out_b_ref[...]
    o_ref[0] = o


# --------------------------- parameter construction -------------------------

def _linear_init(key, fan_in, fan_out):
    kw, kb = jax.random.split(key)
    bound = 1.0 / math.sqrt(fan_in)
    w = jax.random.uniform(kw, (fan_in, fan_out), jnp.float32, -bound, bound)
    b = jax.random.uniform(kb, (1, fan_out), jnp.float32, -bound, bound)
    return w, b


def _positional_encoding(max_len, d):
    pos = jnp.arange(max_len, dtype=jnp.float32)[:, None]
    div = jnp.exp(jnp.arange(0, d, 2, dtype=jnp.float32)
                  * (-math.log(10000.0) / d))
    ang = pos * div                                    # (max_len, d/2)
    pe = jnp.stack([jnp.sin(ang), jnp.cos(ang)], axis=-1).reshape(max_len, d)
    return pe.astype(jnp.float32)


def init_params(key, num_joints, d, n_enc, n_dec, dim_ff, max_len=5000):
    bf16 = jnp.bfloat16
    n_keys = 2 + 2 * n_enc + 3 * n_dec
    keys = iter(jax.random.split(key, n_keys))
    params = {}

    w, b = _linear_init(next(keys), 3 * num_joints, d)
    params["in_w"], params["in_b"] = w.astype(bf16), b
    w, b = _linear_init(next(keys), d, num_joints)
    params["out_w"], params["out_b"] = w.astype(bf16), b
    params["pe"] = _positional_encoding(max_len, d)

    def attn_block(k):
        kq, kk, kv, ko = jax.random.split(k, 4)
        wq, bq = _linear_init(kq, d, d)
        wk, bk = _linear_init(kk, d, d)
        wv, bv = _linear_init(kv, d, d)
        wo, bo = _linear_init(ko, d, d)
        wqkv = jnp.concatenate([wq, wk, wv], axis=1)   # (d, 3d)
        bqkv = jnp.concatenate([bq, bk, bv], axis=1)   # (1, 3d)
        return wqkv.astype(bf16), bqkv, wo.astype(bf16), bo

    def cross_attn_block(k):
        kq, kk, kv, ko = jax.random.split(k, 4)
        wq, bq = _linear_init(kq, d, d)
        wk, bk = _linear_init(kk, d, d)
        wv, bv = _linear_init(kv, d, d)
        wo, bo = _linear_init(ko, d, d)
        wkv = jnp.concatenate([wk, wv], axis=1)        # (d, 2d)
        bkv = jnp.concatenate([bk, bv], axis=1)        # (1, 2d)
        return wq.astype(bf16), bq, wkv.astype(bf16), bkv, wo.astype(bf16), bo

    def ffn_block(k):
        k1, k2 = jax.random.split(k)
        w1, b1 = _linear_init(k1, d, dim_ff)
        w2, b2 = _linear_init(k2, dim_ff, d)
        return w1.astype(bf16), b1, w2.astype(bf16), b2

    enc = {k: [] for k in ("qkv_w", "qkv_b", "out_w", "out_b",
                           "ff1_w", "ff1_b", "ff2_w", "ff2_b", "ln_g", "ln_b")}
    for _ in range(n_enc):
        wqkv, bqkv, wo, bo = attn_block(next(keys))
        w1, b1, w2, b2 = ffn_block(next(keys))
        enc["qkv_w"].append(wqkv); enc["qkv_b"].append(bqkv)
        enc["out_w"].append(wo);   enc["out_b"].append(bo)
        enc["ff1_w"].append(w1);   enc["ff1_b"].append(b1)
        enc["ff2_w"].append(w2);   enc["ff2_b"].append(b2)
        enc["ln_g"].append(jnp.ones((2, 1, d), jnp.float32))
        enc["ln_b"].append(jnp.zeros((2, 1, d), jnp.float32))
    for k, v in enc.items():
        params["e_" + k] = jnp.stack(v)

    dec = {k: [] for k in ("sqkv_w", "sqkv_b", "sout_w", "sout_b",
                           "cq_w", "cq_b", "ckv_w", "ckv_b", "cout_w", "cout_b",
                           "ff1_w", "ff1_b", "ff2_w", "ff2_b", "ln_g", "ln_b")}
    for _ in range(n_dec):
        wqkv, bqkv, wo, bo = attn_block(next(keys))
        cq_w, cq_b, ckv_w, ckv_b, cout_w, cout_b = cross_attn_block(next(keys))
        w1, b1, w2, b2 = ffn_block(next(keys))
        dec["sqkv_w"].append(wqkv); dec["sqkv_b"].append(bqkv)
        dec["sout_w"].append(wo);   dec["sout_b"].append(bo)
        dec["cq_w"].append(cq_w);   dec["cq_b"].append(cq_b)
        dec["ckv_w"].append(ckv_w); dec["ckv_b"].append(ckv_b)
        dec["cout_w"].append(cout_w); dec["cout_b"].append(cout_b)
        dec["ff1_w"].append(w1);    dec["ff1_b"].append(b1)
        dec["ff2_w"].append(w2);    dec["ff2_b"].append(b2)
        dec["ln_g"].append(jnp.ones((3, 1, d), jnp.float32))
        dec["ln_b"].append(jnp.zeros((3, 1, d), jnp.float32))
    for k, v in dec.items():
        params["d_" + k] = jnp.stack(v)

    return params


# --------------------------------- forward ---------------------------------

def dtransformer_forward(params, src, *, num_joints, nhead, n_enc, n_dec):
    # src: (B, 3*num_joints, T)
    B, C, T = src.shape
    x = jnp.transpose(src, (0, 2, 1))        # (B, T, C) — layout only, outside kernel
    pe = params["pe"][:T]                    # (T, d), broadcast over batch in-kernel

    def const_spec(a):
        nd = a.ndim
        return pl.BlockSpec(a.shape, lambda b, _n=nd: (0,) * _n)

    weight_args = (
        pe, params["in_w"], params["in_b"], params["out_w"], params["out_b"],
        params["e_qkv_w"], params["e_qkv_b"], params["e_out_w"], params["e_out_b"],
        params["e_ff1_w"], params["e_ff1_b"], params["e_ff2_w"], params["e_ff2_b"],
        params["e_ln_g"], params["e_ln_b"],
        params["d_sqkv_w"], params["d_sqkv_b"], params["d_sout_w"], params["d_sout_b"],
        params["d_cq_w"], params["d_cq_b"], params["d_ckv_w"], params["d_ckv_b"],
        params["d_cout_w"], params["d_cout_b"],
        params["d_ff1_w"], params["d_ff1_b"], params["d_ff2_w"], params["d_ff2_b"],
        params["d_ln_g"], params["d_ln_b"],
    )

    in_specs = ([pl.BlockSpec((1, T, C), lambda b: (b, 0, 0))]
                + [const_spec(a) for a in weight_args])

    out = pl.pallas_call(
        functools.partial(_dtransformer_kernel, nhead=nhead,
                          n_enc=n_enc, n_dec=n_dec, eps=1e-5),
        grid=(B,),
        in_specs=in_specs,
        out_specs=pl.BlockSpec((1, T, num_joints), lambda b: (b, 0, 0)),
        out_shape=jax.ShapeDtypeStruct((B, T, num_joints), jnp.float32),
        compiler_params=pltpu.CompilerParams(
            dimension_semantics=("parallel",),     # shards batch over v7x's 2 TCs
            vmem_limit_bytes=32 * 1024 * 1024),
    )(x, *weight_args)

    return jnp.transpose(out, (0, 2, 1))     # (B, num_joints, T) == permute(1,2,0)


# ----------------------------------- main -----------------------------------

if __name__ == "__main__":
    num_joints = 4
    hidden_size = 32
    nhead = 4
    num_encoder_layers = 2
    num_decoder_layers = 2
    dim_feedforward = 2048   # PyTorch TransformerEncoder/DecoderLayer default
    B, T = 2, 8
    assert hidden_size % nhead == 0

    key = jax.random.PRNGKey(0)
    k_param, k_data = jax.random.split(key)
    params = init_params(k_param, num_joints, hidden_size,
                         num_encoder_layers, num_decoder_layers,
                         dim_feedforward)
    src = jax.random.normal(k_data, (B, 3 * num_joints, T), dtype=jnp.float32)

    fwd = jax.jit(functools.partial(
        dtransformer_forward, num_joints=num_joints, nhead=nhead,
        n_enc=num_encoder_layers, n_dec=num_decoder_layers))
    out = jax.block_until_ready(fwd(params, src))

    assert out.shape == (B, num_joints, T), out.shape
    assert bool(jnp.all(jnp.isfinite(out)))
    print("KERNEL_OK")
</pallas_src>

<mosaic_0001>
module attributes {stable_mosaic.version = 11 : i64} {
  func.func @_dtransformer_kernel(%arg0: i32, %arg1: memref<1x8x12xf32, #tpu.memory_space<vmem>>, %arg2: memref<8x32xf32, #tpu.memory_space<vmem>>, %arg3: memref<12x32xbf16, #tpu.memory_space<vmem>>, %arg4: memref<1x32xf32, #tpu.memory_space<vmem>>, %arg5: memref<32x4xbf16, #tpu.memory_space<vmem>>, %arg6: memref<1x4xf32, #tpu.memory_space<vmem>>, %arg7: memref<2x32x96xbf16, #tpu.memory_space<vmem>>, %arg8: memref<2x1x96xf32, #tpu.memory_space<vmem>>, %arg9: memref<2x32x32xbf16, #tpu.memory_space<vmem>>, %arg10: memref<2x1x32xf32, #tpu.memory_space<vmem>>, %arg11: memref<2x32x2048xbf16, #tpu.memory_space<vmem>>, %arg12: memref<2x1x2048xf32, #tpu.memory_space<vmem>>, %arg13: memref<2x2048x32xbf16, #tpu.memory_space<vmem>>, %arg14: memref<2x1x32xf32, #tpu.memory_space<vmem>>, %arg15: memref<2x2x1x32xf32, #tpu.memory_space<vmem>>, %arg16: memref<2x2x1x32xf32, #tpu.memory_space<vmem>>, %arg17: memref<2x32x96xbf16, #tpu.memory_space<vmem>>, %arg18: memref<2x1x96xf32, #tpu.memory_space<vmem>>, %arg19: memref<2x32x32xbf16, #tpu.memory_space<vmem>>, %arg20: memref<2x1x32xf32, #tpu.memory_space<vmem>>, %arg21: memref<2x32x32xbf16, #tpu.memory_space<vmem>>, %arg22: memref<2x1x32xf32, #tpu.memory_space<vmem>>, %arg23: memref<2x32x64xbf16, #tpu.memory_space<vmem>>, %arg24: memref<2x1x64xf32, #tpu.memory_space<vmem>>, %arg25: memref<2x32x32xbf16, #tpu.memory_space<vmem>>, %arg26: memref<2x1x32xf32, #tpu.memory_space<vmem>>, %arg27: memref<2x32x2048xbf16, #tpu.memory_space<vmem>>, %arg28: memref<2x1x2048xf32, #tpu.memory_space<vmem>>, %arg29: memref<2x2048x32xbf16, #tpu.memory_space<vmem>>, %arg30: memref<2x1x32xf32, #tpu.memory_space<vmem>>, %arg31: memref<2x3x1x32xf32, #tpu.memory_space<vmem>>, %arg32: memref<2x3x1x32xf32, #tpu.memory_space<vmem>>, %arg33: memref<1x8x4xf32, #tpu.memory_space<vmem>>) attributes {dimension_semantics = [#tpu.dimension_semantics<parallel>], iteration_bounds = array<i64: 2>, scalar_prefetch = 0 : i64, scratch_operands = 0 : i64, tpu.core_type = #tpu.core_type<tc>, window_params = [{transform_indices = @transform_0, window_bounds = array<i64: 1, 8, 12>}, {pipeline_mode = #tpu.pipeline_mode<synchronous>, transform_indices = @transform_1, window_bounds = array<i64: 8, 32>}, {pipeline_mode = #tpu.pipeline_mode<synchronous>, transform_indices = @transform_2, window_bounds = array<i64: 12, 32>}, {pipeline_mode = #tpu.pipeline_mode<synchronous>, transform_indices = @transform_3, window_bounds = array<i64: 1, 32>}, {pipeline_mode = #tpu.pipeline_mode<synchronous>, transform_indices = @transform_4, window_bounds = array<i64: 32, 4>}, {pipeline_mode = #tpu.pipeline_mode<synchronous>, transform_indices = @transform_5, window_bounds = array<i64: 1, 4>}, {pipeline_mode = #tpu.pipeline_mode<synchronous>, transform_indices = @transform_6, window_bounds = array<i64: 2, 32, 96>}, {pipeline_mode = #tpu.pipeline_mode<synchronous>, transform_indices = @transform_7, window_bounds = array<i64: 2, 1, 96>}, {pipeline_mode = #tpu.pipeline_mode<synchronous>, transform_indices = @transform_8, window_bounds = array<i64: 2, 32, 32>}, {pipeline_mode = #tpu.pipeline_mode<synchronous>, transform_indices = @transform_9, window_bounds = array<i64: 2, 1, 32>}, {pipeline_mode = #tpu.pipeline_mode<synchronous>, transform_indices = @transform_10, window_bounds = array<i64: 2, 32, 2048>}, {pipeline_mode = #tpu.pipeline_mode<synchronous>, transform_indices = @transform_11, window_bounds = array<i64: 2, 1, 2048>}, {pipeline_mode = #tpu.pipeline_mode<synchronous>, transform_indices = @transform_12, window_bounds = array<i64: 2, 2048, 32>}, {pipeline_mode = #tpu.pipeline_mode<synchronous>, transform_indices = @transform_13, window_bounds = array<i64: 2, 1, 32>}, {pipeline_mode = #tpu.pipeline_mode<synchronous>, transform_indices = @transform_14, window_bounds = array<i64: 2, 2, 1, 32>}, {pipeline_mode = #tpu.pipeline_mode<synchronous>, transform_indices = @transform_15, window_bounds = array<i64: 2, 2, 1, 32>}, {pipeline_mode = #tpu.pipeline_mode<synchronous>, transform_indices = @transform_16, window_bounds = array<i64: 2, 32, 96>}, {pipeline_mode = #tpu.pipeline_mode<synchronous>, transform_indices = @transform_17, window_bounds = array<i64: 2, 1, 96>}, {pipeline_mode = #tpu.pipeline_mode<synchronous>, transform_indices = @transform_18, window_bounds = array<i64: 2, 32, 32>}, {pipeline_mode = #tpu.pipeline_mode<synchronous>, transform_indices = @transform_19, window_bounds = array<i64: 2, 1, 32>}, {pipeline_mode = #tpu.pipeline_mode<synchronous>, transform_indices = @transform_20, window_bounds = array<i64: 2, 32, 32>}, {pipeline_mode = #tpu.pipeline_mode<synchronous>, transform_indices = @transform_21, window_bounds = array<i64: 2, 1, 32>}, {pipeline_mode = #tpu.pipeline_mode<synchronous>, transform_indices = @transform_22, window_bounds = array<i64: 2, 32, 64>}, {pipeline_mode = #tpu.pipeline_mode<synchronous>, transform_indices = @transform_23, window_bounds = array<i64: 2, 1, 64>}, {pipeline_mode = #tpu.pipeline_mode<synchronous>, transform_indices = @transform_24, window_bounds = array<i64: 2, 32, 32>}, {pipeline_mode = #tpu.pipeline_mode<synchronous>, transform_indices = @transform_25, window_bounds = array<i64: 2, 1, 32>}, {pipeline_mode = #tpu.pipeline_mode<synchronous>, transform_indices = @transform_26, window_bounds = array<i64: 2, 32, 2048>}, {pipeline_mode = #tpu.pipeline_mode<synchronous>, transform_indices = @transform_27, window_bounds = array<i64: 2, 1, 2048>}, {pipeline_mode = #tpu.pipeline_mode<synchronous>, transform_indices = @transform_28, window_bounds = array<i64: 2, 2048, 32>}, {pipeline_mode = #tpu.pipeline_mode<synchronous>, transform_indices = @transform_29, window_bounds = array<i64: 2, 1, 32>}, {pipeline_mode = #tpu.pipeline_mode<synchronous>, transform_indices = @transform_30, window_bounds = array<i64: 2, 3, 1, 32>}, {pipeline_mode = #tpu.pipeline_mode<synchronous>, transform_indices = @transform_31, window_bounds = array<i64: 2, 3, 1, 32>}, {transform_indices = @transform_32, window_bounds = array<i64: 1, 8, 4>}]} {
    %c0 = arith.constant 0 : index
    %c0_0 = arith.constant 0 : index
    %c0_1 = arith.constant 0 : index
    %0 = vector.load %arg1[%c0, %c0_0, %c0_1] : memref<1x8x12xf32, #tpu.memory_space<vmem>>, vector<1x8x12xf32>
    %1 = vector.shape_cast %0 : vector<1x8x12xf32> to vector<8x12xf32>
    %2 = arith.truncf %1 : vector<8x12xf32> to vector<8x12xbf16>
    %c0_2 = arith.constant 0 : index
    %c0_3 = arith.constant 0 : index
    %3 = vector.load %arg3[%c0_2, %c0_3] : memref<12x32xbf16, #tpu.memory_space<vmem>>, vector<12x32xbf16>
    %cst = arith.constant dense<0.000000e+00> : vector<8x32xf32>
    %4 = tpu.matmul %2, %3, %cst {dimension_numbers = #tpu.dot_dimension_numbers<[1], [0], [0], [1], [0, 0, 1, 1], [], []>} : vector<8x12xbf16>, vector<12x32xbf16>, vector<8x32xf32> -> vector<8x32xf32>
    %c0_4 = arith.constant 0 : index
    %c0_5 = arith.constant 0 : index
    %5 = vector.load %arg4[%c0_4, %c0_5] : memref<1x32xf32, #tpu.memory_space<vmem>>, vector<1x32xf32>
    %6 = vector.broadcast %5 : vector<1x32xf32> to vector<8x32xf32>
    %7 = arith.addf %4, %6 : vector<8x32xf32>
    %c0_6 = arith.constant 0 : index
    %c0_7 = arith.constant 0 : index
    %8 = vector.load %arg2[%c0_6, %c0_7] : memref<8x32xf32, #tpu.memory_space<vmem>>, vector<8x32xf32>
    %9 = arith.addf %7, %8 : vector<8x32xf32>
    %c0_8 = arith.constant 0 : index
    %c0_9 = arith.constant 0 : index
    %c0_10 = arith.constant 0 : index
    %10 = vector.load %arg7[%c0_8, %c0_9, %c0_10] : memref<2x32x96xbf16, #tpu.memory_space<vmem>>, vector<1x32x96xbf16>
    %11 = vector.shape_cast %10 : vector<1x32x96xbf16> to vector<32x96xbf16>
    %c0_11 = arith.constant 0 : index
    %c0_12 = arith.constant 0 : index
    %c0_13 = arith.constant 0 : index
    %12 = vector.load %arg8[%c0_11, %c0_12, %c0_13] : memref<2x1x96xf32, #tpu.memory_space<vmem>>, vector<1x1x96xf32>
    %13 = vector.shape_cast %12 : vector<1x1x96xf32> to vector<1x96xf32>
    %c0_14 = arith.constant 0 : index
    %c0_15 = arith.constant 0 : index
    %c0_16 = arith.constant 0 : index
    %14 = vector.load %arg9[%c0_14, %c0_15, %c0_16] : memref<2x32x32xbf16, #tpu.memory_space<vmem>>, vector<1x32x32xbf16>
    %15 = vector.shape_cast %14 : vector<1x32x32xbf16> to vector<32x32xbf16>
    %c0_17 = arith.constant 0 : index
    %c0_18 = arith.constant 0 : index
    %c0_19 = arith.constant 0 : index
    %16 = vector.load %arg10[%c0_17, %c0_18, %c0_19] : memref<2x1x32xf32, #tpu.memory_space<vmem>>, vector<1x1x32xf32>
    %17 = vector.shape_cast %16 : vector<1x1x32xf32> to vector<1x32xf32>
    %18 = arith.truncf %9 : vector<8x32xf32> to vector<8x32xbf16>
    %cst_20 = arith.constant dense<0.000000e+00> : vector<8x96xf32>
    %19 = tpu.matmul %18, %11, %cst_20 {dimension_numbers = #tpu.dot_dimension_numbers<[1], [0], [0], [1], [0, 0, 1, 1], [], []>} : vector<8x32xbf16>, vector<32x96xbf16>, vector<8x96xf32> -> vector<8x96xf32>
    %20 = vector.broadcast %13 : vector<1x96xf32> to vector<8x96xf32>
    %21 = arith.addf %19, %20 : vector<8x96xf32>
    %22 = vector.extract_strided_slice %21 {offsets = [0, 0], sizes = [8, 32], strides = [1, 1]} : vector<8x96xf32> to vector<8x32xf32>
    %cst_21 = arith.constant 0.353553385 : f32
    %23 = vector.broadcast %cst_21 : f32 to vector<8x32xf32>
    %24 = arith.mulf %22, %23 : vector<8x32xf32>
    %25 = vector.extract_strided_slice %21 {offsets = [0, 32], sizes = [8, 32], strides = [1, 1]} : vector<8x96xf32> to vector<8x32xf32>
    %26 = vector.extract_strided_slice %21 {offsets = [0, 64], sizes = [8, 32], strides = [1, 1]} : vector<8x96xf32> to vector<8x32xf32>
    %27 = arith.truncf %24 : vector<8x32xf32> to vector<8x32xbf16>
    %28 = arith.truncf %25 : vector<8x32xf32> to vector<8x32xbf16>
    %29 = arith.truncf %26 : vector<8x32xf32> to vector<8x32xbf16>
    %30 = vector.extract_strided_slice %27 {offsets = [0, 0], sizes = [8, 8], strides = [1, 1]} : vector<8x32xbf16> to vector<8x8xbf16>
    %31 = vector.extract_strided_slice %28 {offsets = [0, 0], sizes = [8, 8], strides = [1, 1]} : vector<8x32xbf16> to vector<8x8xbf16>
    %cst_22 = arith.constant dense<0.000000e+00> : vector<8x8xf32>
    %32 = tpu.matmul %30, %31, %cst_22 {dimension_numbers = #tpu.dot_dimension_numbers<[1], [1], [0], [0], [0, 0, 1, 0], [], []>} : vector<8x8xbf16>, vector<8x8xbf16>, vector<8x8xf32> -> vector<8x8xf32>
    %cst_23 = arith.constant dense<0xFF800000> : vector<8xf32>
    %33 = vector.multi_reduction <maximumf>, %32, %cst_23 [1] : vector<8x8xf32> to vector<8xf32>
    %34 = vector.shape_cast %33 : vector<8xf32> to vector<8x1xf32>
    %35 = vector.broadcast %34 : vector<8x1xf32> to vector<8x8xf32>
    %36 = arith.subf %32, %35 : vector<8x8xf32>
    %37 = math.exp %36 : vector<8x8xf32>
    %cst_24 = arith.constant dense<0.000000e+00> : vector<8xf32>
    %38 = vector.multi_reduction <add>, %37, %cst_24 [1] : vector<8x8xf32> to vector<8xf32>
    %39 = vector.shape_cast %38 : vector<8xf32> to vector<8x1xf32>
    %40 = tpu.reciprocal %39 {approx = true} : vector<8x1xf32> -> vector<8x1xf32>
    %41 = vector.broadcast %40 : vector<8x1xf32> to vector<8x8xf32>
    %42 = arith.mulf %37, %41 : vector<8x8xf32>
    %43 = arith.truncf %42 : vector<8x8xf32> to vector<8x8xbf16>
    %44 = vector.extract_strided_slice %29 {offsets = [0, 0], sizes = [8, 8], strides = [1, 1]} : vector<8x32xbf16> to vector<8x8xbf16>
    %cst_25 = arith.constant dense<0.000000e+00> : vector<8x8xf32>
    %45 = tpu.matmul %43, %44, %cst_25 {dimension_numbers = #tpu.dot_dimension_numbers<[1], [0], [0], [1], [0, 0, 1, 1], [], []>} : vector<8x8xbf16>, vector<8x8xbf16>, vector<8x8xf32> -> vector<8x8xf32>
    %46 = vector.extract_strided_slice %27 {offsets = [0, 8], sizes = [8, 8], strides = [1, 1]} : vector<8x32xbf16> to vector<8x8xbf16>
    %47 = vector.extract_strided_slice %28 {offsets = [0, 8], sizes = [8, 8], strides = [1, 1]} : vector<8x32xbf16> to vector<8x8xbf16>
    %cst_26 = arith.constant dense<0.000000e+00> : vector<8x8xf32>
    %48 = tpu.matmul %46, %47, %cst_26 {dimension_numbers = #tpu.dot_dimension_numbers<[1], [1], [0], [0], [0, 0, 1, 0], [], []>} : vector<8x8xbf16>, vector<8x8xbf16>, vector<8x8xf32> -> vector<8x8xf32>
    %cst_27 = arith.constant dense<0xFF800000> : vector<8xf32>
    %49 = vector.multi_reduction <maximumf>, %48, %cst_27 [1] : vector<8x8xf32> to vector<8xf32>
    %50 = vector.shape_cast %49 : vector<8xf32> to vector<8x1xf32>
    %51 = vector.broadcast %50 : vector<8x1xf32> to vector<8x8xf32>
    %52 = arith.subf %48, %51 : vector<8x8xf32>
    %53 = math.exp %52 : vector<8x8xf32>
    %cst_28 = arith.constant dense<0.000000e+00> : vector<8xf32>
    %54 = vector.multi_reduction <add>, %53, %cst_28 [1] : vector<8x8xf32> to vector<8xf32>
    %55 = vector.shape_cast %54 : vector<8xf32> to vector<8x1xf32>
    %56 = tpu.reciprocal %55 {approx = true} : vector<8x1xf32> -> vector<8x1xf32>
    %57 = vector.broadcast %56 : vector<8x1xf32> to vector<8x8xf32>
    %58 = arith.mulf %53, %57 : vector<8x8xf32>
    %59 = arith.truncf %58 : vector<8x8xf32> to vector<8x8xbf16>
    %60 = vector.extract_strided_slice %29 {offsets = [0, 8], sizes = [8, 8], strides = [1, 1]} : vector<8x32xbf16> to vector<8x8xbf16>
    %cst_29 = arith.constant dense<0.000000e+00> : vector<8x8xf32>
    %61 = tpu.matmul %59, %60, %cst_29 {dimension_numbers = #tpu.dot_dimension_numbers<[1], [0], [0], [1], [0, 0, 1, 1], [], []>} : vector<8x8xbf16>, vector<8x8xbf16>, vector<8x8xf32> -> vector<8x8xf32>
    %62 = vector.extract_strided_slice %27 {offsets = [0, 16], sizes = [8, 8], strides = [1, 1]} : vector<8x32xbf16> to vector<8x8xbf16>
    %63 = vector.extract_strided_slice %28 {offsets = [0, 16], sizes = [8, 8], strides = [1, 1]} : vector<8x32xbf16> to vector<8x8xbf16>
    %cst_30 = arith.constant dense<0.000000e+00> : vector<8x8xf32>
    %64 = tpu.matmul %62, %63, %cst_30 {dimension_numbers = #tpu.dot_dimension_numbers<[1], [1], [0], [0], [0, 0, 1, 0], [], []>} : vector<8x8xbf16>, vector<8x8xbf16>, vector<8x8xf32> -> vector<8x8xf32>
    %cst_31 = arith.constant dense<0xFF800000> : vector<8xf32>
    %65 = vector.multi_reduction <maximumf>, %64, %cst_31 [1] : vector<8x8xf32> to vector<8xf32>
    %66 = vector.shape_cast %65 : vector<8xf32> to vector<8x1xf32>
    %67 = vector.broadcast %66 : vector<8x1xf32> to vector<8x8xf32>
    %68 = arith.subf %64, %67 : vector<8x8xf32>
    %69 = math.exp %68 : vector<8x8xf32>
    %cst_32 = arith.constant dense<0.000000e+00> : vector<8xf32>
    %70 = vector.multi_reduction <add>, %69, %cst_32 [1] : vector<8x8xf32> to vector<8xf32>
    %71 = vector.shape_cast %70 : vector<8xf32> to vector<8x1xf32>
    %72 = tpu.reciprocal %71 {approx = true} : vector<8x1xf32> -> vector<8x1xf32>
    %73 = vector.broadcast %72 : vector<8x1xf32> to vector<8x8xf32>
    %74 = arith.mulf %69, %73 : vector<8x8xf32>
    %75 = arith.truncf %74 : vector<8x8xf32> to vector<8x8xbf16>
    %76 = vector.extract_strided_slice %29 {offsets = [0, 16], sizes = [8, 8], strides = [1, 1]} : vector<8x32xbf16> to vector<8x8xbf16>
    %cst_33 = arith.constant dense<0.000000e+00> : vector<8x8xf32>
    %77 = tpu.matmul %75, %76, %cst_33 {dimension_numbers = #tpu.dot_dimension_numbers<[1], [0], [0], [1], [0, 0, 1, 1], [], []>} : vector<8x8xbf16>, vector<8x8xbf16>, vector<8x8xf32> -> vector<8x8xf32>
    %78 = vector.extract_strided_slice %27 {offsets = [0, 24], sizes = [8, 8], strides = [1, 1]} : vector<8x32xbf16> to vector<8x8xbf16>
    %79 = vector.extract_strided_slice %28 {offsets = [0, 24], sizes = [8, 8], strides = [1, 1]} : vector<8x32xbf16> to vector<8x8xbf16>
    %cst_34 = arith.constant dense<0.000000e+00> : vector<8x8xf32>
    %80 = tpu.matmul %78, %79, %cst_34 {dimension_numbers = #tpu.dot_dimension_numbers<[1], [1], [0], [0], [0, 0, 1, 0], [], []>} : vector<8x8xbf16>, vector<8x8xbf16>, vector<8x8xf32> -> vector<8x8xf32>
    %cst_35 = arith.constant dense<0xFF800000> : vector<8xf32>
    %81 = vector.multi_reduction <maximumf>, %80, %cst_35 [1] : vector<8x8xf32> to vector<8xf32>
    %82 = vector.shape_cast %81 : vector<8xf32> to vector<8x1xf32>
    %83 = vector.broadcast %82 : vector<8x1xf32> to vector<8x8xf32>
    %84 = arith.subf %80, %83 : vector<8x8xf32>
    %85 = math.exp %84 : vector<8x8xf32>
    %cst_36 = arith.constant dense<0.000000e+00> : vector<8xf32>
    %86 = vector.multi_reduction <add>, %85, %cst_36 [1] : vector<8x8xf32> to vector<8xf32>
    %87 = vector.shape_cast %86 : vector<8xf32> to vector<8x1xf32>
    %88 = tpu.reciprocal %87 {approx = true} : vector<8x1xf32> -> vector<8x1xf32>
    %89 = vector.broadcast %88 : vector<8x1xf32> to vector<8x8xf32>
    %90 = arith.mulf %85, %89 : vector<8x8xf32>
    %91 = arith.truncf %90 : vector<8x8xf32> to vector<8x8xbf16>
    %92 = vector.extract_strided_slice %29 {offsets = [0, 24], sizes = [8, 8], strides = [1, 1]} : vector<8x32xbf16> to vector<8x8xbf16>
    %cst_37 = arith.constant dense<0.000000e+00> : vector<8x8xf32>
    %93 = tpu.matmul %91, %92, %cst_37 {dimension_numbers = #tpu.dot_dimension_numbers<[1], [0], [0], [1], [0, 0, 1, 1], [], []>} : vector<8x8xbf16>, vector<8x8xbf16>, vector<8x8xf32> -> vector<8x8xf32>
    %94 = tpu.concatenate %45, %61, %77, %93 in 1 : vector<8x8xf32>, vector<8x8xf32>, vector<8x8xf32>, vector<8x8xf32> -> vector<8x32xf32>
    %95 = arith.truncf %94 : vector<8x32xf32> to vector<8x32xbf16>
    %cst_38 = arith.constant dense<0.000000e+00> : vector<8x32xf32>
    %96 = tpu.matmul %95, %15, %cst_38 {dimension_numbers = #tpu.dot_dimension_numbers<[1], [0], [0], [1], [0, 0, 1, 1], [], []>} : vector<8x32xbf16>, vector<32x32xbf16>, vector<8x32xf32> -> vector<8x32xf32>
    %97 = vector.broadcast %17 : vector<1x32xf32> to vector<8x32xf32>
    %98 = arith.addf %96, %97 : vector<8x32xf32>
    %99 = arith.addf %9, %98 : vector<8x32xf32>
    %c0_39 = arith.constant 0 : index
    %c0_40 = arith.constant 0 : index
    %c0_41 = arith.constant 0 : index
    %c0_42 = arith.constant 0 : index
    %100 = vector.load %arg15[%c0_39, %c0_40, %c0_41, %c0_42] : memref<2x2x1x32xf32, #tpu.memory_space<vmem>>, vector<1x1x1x32xf32>
    %101 = vector.shape_cast %100 : vector<1x1x1x32xf32> to vector<1x32xf32>
    %c0_43 = arith.constant 0 : index
    %c0_44 = arith.constant 0 : index
    %c0_45 = arith.constant 0 : index
    %c0_46 = arith.constant 0 : index
    %102 = vector.load %arg16[%c0_43, %c0_44, %c0_45, %c0_46] : memref<2x2x1x32xf32, #tpu.memory_space<vmem>>, vector<1x1x1x32xf32>
    %103 = vector.shape_cast %102 : vector<1x1x1x32xf32> to vector<1x32xf32>
    %cst_47 = arith.constant dense<0.000000e+00> : vector<8xf32>
    %104 = vector.multi_reduction <add>, %99, %cst_47 [1] : vector<8x32xf32> to vector<8xf32>
    %105 = vector.shape_cast %104 : vector<8xf32> to vector<8x1xf32>
    %cst_48 = arith.constant 3.200000e+01 : f32
    %106 = vector.broadcast %cst_48 : f32 to vector<8x1xf32>
    %107 = arith.divf %105, %106 : vector<8x1xf32>
    %108 = vector.broadcast %107 : vector<8x1xf32> to vector<8x32xf32>
    %109 = arith.subf %99, %108 : vector<8x32xf32>
    %110 = arith.mulf %109, %109 : vector<8x32xf32>
    %cst_49 = arith.constant dense<0.000000e+00> : vector<8xf32>
    %111 = vector.multi_reduction <add>, %110, %cst_49 [1] : vector<8x32xf32> to vector<8xf32>
    %112 = vector.shape_cast %111 : vector<8xf32> to vector<8x1xf32>
    %cst_50 = arith.constant 3.200000e+01 : f32
    %113 = vector.broadcast %cst_50 : f32 to vector<8x1xf32>
    %114 = arith.divf %112, %113 : vector<8x1xf32>
    %cst_51 = arith.constant 9.99999974E-6 : f32
    %115 = vector.broadcast %cst_51 : f32 to vector<8x1xf32>
    %116 = arith.addf %114, %115 : vector<8x1xf32>
    %117 = math.rsqrt %116 : vector<8x1xf32>
    %118 = vector.broadcast %117 : vector<8x1xf32> to vector<8x32xf32>
    %119 = arith.mulf %109, %118 : vector<8x32xf32>
    %120 = vector.broadcast %101 : vector<1x32xf32> to vector<8x32xf32>
    %121 = arith.mulf %119, %120 : vector<8x32xf32>
    %122 = vector.broadcast %103 : vector<1x32xf32> to vector<8x32xf32>
    %123 = arith.addf %121, %122 : vector<8x32xf32>
    %c0_52 = arith.constant 0 : index
    %c0_53 = arith.constant 0 : index
    %c0_54 = arith.constant 0 : index
    %124 = vector.load %arg11[%c0_52, %c0_53, %c0_54] : memref<2x32x2048xbf16, #tpu.memory_space<vmem>>, vector<1x32x2048xbf16>
    %125 = vector.shape_cast %124 : vector<1x32x2048xbf16> to vector<32x2048xbf16>
    %c0_55 = arith.constant 0 : index
    %c0_56 = arith.constant 0 : index
    %c0_57 = arith.constant 0 : index
    %126 = vector.load %arg12[%c0_55, %c0_56, %c0_57] : memref<2x1x2048xf32, #tpu.memory_space<vmem>>, vector<1x1x2048xf32>
    %127 = vector.shape_cast %126 : vector<1x1x2048xf32> to vector<1x2048xf32>
    %c0_58 = arith.constant 0 : index
    %c0_59 = arith.constant 0 : index
    %c0_60 = arith.constant 0 : index
    %128 = vector.load %arg13[%c0_58, %c0_59, %c0_60] : memref<2x2048x32xbf16, #tpu.memory_space<vmem>>, vector<1x2048x32xbf16>
    %129 = vector.shape_cast %128 : vector<1x2048x32xbf16> to vector<2048x32xbf16>
    %c0_61 = arith.constant 0 : index
    %c0_62 = arith.constant 0 : index
    %c0_63 = arith.constant 0 : index
    %130 = vector.load %arg14[%c0_61, %c0_62, %c0_63] : memref<2x1x32xf32, #tpu.memory_space<vmem>>, vector<1x1x32xf32>
    %131 = vector.shape_cast %130 : vector<1x1x32xf32> to vector<1x32xf32>
    %132 = arith.truncf %123 : vector<8x32xf32> to vector<8x32xbf16>
    %cst_64 = arith.constant dense<0.000000e+00> : vector<8x2048xf32>
    %133 = tpu.matmul %132, %125, %cst_64 {dimension_numbers = #tpu.dot_dimension_numbers<[1], [0], [0], [1], [0, 0, 1, 1], [], []>} : vector<8x32xbf16>, vector<32x2048xbf16>, vector<8x2048xf32> -> vector<8x2048xf32>
    %134 = vector.broadcast %127 : vector<1x2048xf32> to vector<8x2048xf32>
    %135 = arith.addf %133, %134 : vector<8x2048xf32>
    %cst_65 = arith.constant 0.000000e+00 : f32
    %136 = vector.broadcast %cst_65 : f32 to vector<8x2048xf32>
    %137 = arith.maximumf %135, %136 : vector<8x2048xf32>
    %138 = arith.truncf %137 : vector<8x2048xf32> to vector<8x2048xbf16>
    %cst_66 = arith.constant dense<0.000000e+00> : vector<8x32xf32>
    %139 = tpu.matmul %138, %129, %cst_66 {dimension_numbers = #tpu.dot_dimension_numbers<[1], [0], [0], [1], [0, 0, 1, 1], [], []>} : vector<8x2048xbf16>, vector<2048x32xbf16>, vector<8x32xf32> -> vector<8x32xf32>
    %140 = vector.broadcast %131 : vector<1x32xf32> to vector<8x32xf32>
    %141 = arith.addf %139, %140 : vector<8x32xf32>
    %142 = arith.addf %123, %141 : vector<8x32xf32>
    %c0_67 = arith.constant 0 : index
    %c1 = arith.constant 1 : index
    %c0_68 = arith.constant 0 : index
    %c0_69 = arith.constant 0 : index
    %143 = vector.load %arg15[%c0_67, %c1, %c0_68, %c0_69] : memref<2x2x1x32xf32, #tpu.memory_space<vmem>>, vector<1x1x1x32xf32>
    %144 = vector.shape_cast %143 : vector<1x1x1x32xf32> to vector<1x32xf32>
    %c0_70 = arith.constant 0 : index
    %c1_71 = arith.constant 1 : index
    %c0_72 = arith.constant 0 : index
    %c0_73 = arith.constant 0 : index
    %145 = vector.load %arg16[%c0_70, %c1_71, %c0_72, %c0_73] : memref<2x2x1x32xf32, #tpu.memory_space<vmem>>, vector<1x1x1x32xf32>
    %146 = vector.shape_cast %145 : vector<1x1x1x32xf32> to vector<1x32xf32>
    %cst_74 = arith.constant dense<0.000000e+00> : vector<8xf32>
    %147 = vector.multi_reduction <add>, %142, %cst_74 [1] : vector<8x32xf32> to vector<8xf32>
    %148 = vector.shape_cast %147 : vector<8xf32> to vector<8x1xf32>
    %cst_75 = arith.constant 3.200000e+01 : f32
    %149 = vector.broadcast %cst_75 : f32 to vector<8x1xf32>
    %150 = arith.divf %148, %149 : vector<8x1xf32>
    %151 = vector.broadcast %150 : vector<8x1xf32> to vector<8x32xf32>
    %152 = arith.subf %142, %151 : vector<8x32xf32>
    %153 = arith.mulf %152, %152 : vector<8x32xf32>
    %cst_76 = arith.constant dense<0.000000e+00> : vector<8xf32>
    %154 = vector.multi_reduction <add>, %153, %cst_76 [1] : vector<8x32xf32> to vector<8xf32>
    %155 = vector.shape_cast %154 : vector<8xf32> to vector<8x1xf32>
    %cst_77 = arith.constant 3.200000e+01 : f32
    %156 = vector.broadcast %cst_77 : f32 to vector<8x1xf32>
    %157 = arith.divf %155, %156 : vector<8x1xf32>
    %cst_78 = arith.constant 9.99999974E-6 : f32
    %158 = vector.broadcast %cst_78 : f32 to vector<8x1xf32>
    %159 = arith.addf %157, %158 : vector<8x1xf32>
    %160 = math.rsqrt %159 : vector<8x1xf32>
    %161 = vector.broadcast %160 : vector<8x1xf32> to vector<8x32xf32>
    %162 = arith.mulf %152, %161 : vector<8x32xf32>
    %163 = vector.broadcast %144 : vector<1x32xf32> to vector<8x32xf32>
    %164 = arith.mulf %162, %163 : vector<8x32xf32>
    %165 = vector.broadcast %146 : vector<1x32xf32> to vector<8x32xf32>
    %166 = arith.addf %164, %165 : vector<8x32xf32>
    %c1_79 = arith.constant 1 : index
    %c0_80 = arith.constant 0 : index
    %c0_81 = arith.constant 0 : index
    %167 = vector.load %arg7[%c1_79, %c0_80, %c0_81] : memref<2x32x96xbf16, #tpu.memory_space<vmem>>, vector<1x32x96xbf16>
    %168 = vector.shape_cast %167 : vector<1x32x96xbf16> to vector<32x96xbf16>
    %c1_82 = arith.constant 1 : index
    %c0_83 = arith.constant 0 : index
    %c0_84 = arith.constant 0 : index
    %169 = vector.load %arg8[%c1_82, %c0_83, %c0_84] : memref<2x1x96xf32, #tpu.memory_space<vmem>>, vector<1x1x96xf32>
    %170 = vector.shape_cast %169 : vector<1x1x96xf32> to vector<1x96xf32>
    %c1_85 = arith.constant 1 : index
    %c0_86 = arith.constant 0 : index
    %c0_87 = arith.constant 0 : index
    %171 = vector.load %arg9[%c1_85, %c0_86, %c0_87] : memref<2x32x32xbf16, #tpu.memory_space<vmem>>, vector<1x32x32xbf16>
    %172 = vector.shape_cast %171 : vector<1x32x32xbf16> to vector<32x32xbf16>
    %c1_88 = arith.constant 1 : index
    %c0_89 = arith.constant 0 : index
    %c0_90 = arith.constant 0 : index
    %173 = vector.load %arg10[%c1_88, %c0_89, %c0_90] : memref<2x1x32xf32, #tpu.memory_space<vmem>>, vector<1x1x32xf32>
    %174 = vector.shape_cast %173 : vector<1x1x32xf32> to vector<1x32xf32>
    %175 = arith.truncf %166 : vector<8x32xf32> to vector<8x32xbf16>
    %cst_91 = arith.constant dense<0.000000e+00> : vector<8x96xf32>
    %176 = tpu.matmul %175, %168, %cst_91 {dimension_numbers = #tpu.dot_dimension_numbers<[1], [0], [0], [1], [0, 0, 1, 1], [], []>} : vector<8x32xbf16>, vector<32x96xbf16>, vector<8x96xf32> -> vector<8x96xf32>
    %177 = vector.broadcast %170 : vector<1x96xf32> to vector<8x96xf32>
    %178 = arith.addf %176, %177 : vector<8x96xf32>
    %179 = vector.extract_strided_slice %178 {offsets = [0, 0], sizes = [8, 32], strides = [1, 1]} : vector<8x96xf32> to vector<8x32xf32>
    %cst_92 = arith.constant 0.353553385 : f32
    %180 = vector.broadcast %cst_92 : f32 to vector<8x32xf32>
    %181 = arith.mulf %179, %180 : vector<8x32xf32>
    %182 = vector.extract_strided_slice %178 {offsets = [0, 32], sizes = [8, 32], strides = [1, 1]} : vector<8x96xf32> to vector<8x32xf32>
    %183 = vector.extract_strided_slice %178 {offsets = [0, 64], sizes = [8, 32], strides = [1, 1]} : vector<8x96xf32> to vector<8x32xf32>
    %184 = arith.truncf %181 : vector<8x32xf32> to vector<8x32xbf16>
    %185 = arith.truncf %182 : vector<8x32xf32> to vector<8x32xbf16>
    %186 = arith.truncf %183 : vector<8x32xf32> to vector<8x32xbf16>
    %187 = vector.extract_strided_slice %184 {offsets = [0, 0], sizes = [8, 8], strides = [1, 1]} : vector<8x32xbf16> to vector<8x8xbf16>
    %188 = vector.extract_strided_slice %185 {offsets = [0, 0], sizes = [8, 8], strides = [1, 1]} : vector<8x32xbf16> to vector<8x8xbf16>
    %cst_93 = arith.constant dense<0.000000e+00> : vector<8x8xf32>
    %189 = tpu.matmul %187, %188, %cst_93 {dimension_numbers = #tpu.dot_dimension_numbers<[1], [1], [0], [0], [0, 0, 1, 0], [], []>} : vector<8x8xbf16>, vector<8x8xbf16>, vector<8x8xf32> -> vector<8x8xf32>
    %cst_94 = arith.constant dense<0xFF800000> : vector<8xf32>
    %190 = vector.multi_reduction <maximumf>, %189, %cst_94 [1] : vector<8x8xf32> to vector<8xf32>
    %191 = vector.shape_cast %190 : vector<8xf32> to vector<8x1xf32>
    %192 = vector.broadcast %191 : vector<8x1xf32> to vector<8x8xf32>
    %193 = arith.subf %189, %192 : vector<8x8xf32>
    %194 = math.exp %193 : vector<8x8xf32>
    %cst_95 = arith.constant dense<0.000000e+00> : vector<8xf32>
    %195 = vector.multi_reduction <add>, %194, %cst_95 [1] : vector<8x8xf32> to vector<8xf32>
    %196 = vector.shape_cast %195 : vector<8xf32> to vector<8x1xf32>
    %197 = tpu.reciprocal %196 {approx = true} : vector<8x1xf32> -> vector<8x1xf32>
    %198 = vector.broadcast %197 : vector<8x1xf32> to vector<8x8xf32>
    %199 = arith.mulf %194, %198 : vector<8x8xf32>
    %200 = arith.truncf %199 : vector<8x8xf32> to vector<8x8xbf16>
    %201 = vector.extract_strided_slice %186 {offsets = [0, 0], sizes = [8, 8], strides = [1, 1]} : vector<8x32xbf16> to vector<8x8xbf16>
    %cst_96 = arith.constant dense<0.000000e+00> : vector<8x8xf32>
    %202 = tpu.matmul %200, %201, %cst_96 {dimension_numbers = #tpu.dot_dimension_numbers<[1], [0], [0], [1], [0, 0, 1, 1], [], []>} : vector<8x8xbf16>, vector<8x8xbf16>, vector<8x8xf32> -> vector<8x8xf32>
    %203 = vector.extract_strided_slice %184 {offsets = [0, 8], sizes = [8, 8], strides = [1, 1]} : vector<8x32xbf16> to vector<8x8xbf16>
    %204 = vector.extract_strided_slice %185 {offsets = [0, 8], sizes = [8, 8], strides = [1, 1]} : vector<8x32xbf16> to vector<8x8xbf16>
    %cst_97 = arith.constant dense<0.000000e+00> : vector<8x8xf32>
    %205 = tpu.matmul %203, %204, %cst_97 {dimension_numbers = #tpu.dot_dimension_numbers<[1], [1], [0], [0], [0, 0, 1, 0], [], []>} : vector<8x8xbf16>, vector<8x8xbf16>, vector<8x8xf32> -> vector<8x8xf32>
    %cst_98 = arith.constant dense<0xFF800000> : vector<8xf32>
    %206 = vector.multi_reduction <maximumf>, %205, %cst_98 [1] : vector<8x8xf32> to vector<8xf32>
    %207 = vector.shape_cast %206 : vector<8xf32> to vector<8x1xf32>
    %208 = vector.broadcast %207 : vector<8x1xf32> to vector<8x8xf32>
    %209 = arith.subf %205, %208 : vector<8x8xf32>
    %210 = math.exp %209 : vector<8x8xf32>
    %cst_99 = arith.constant dense<0.000000e+00> : vector<8xf32>
    %211 = vector.multi_reduction <add>, %210, %cst_99 [1] : vector<8x8xf32> to vector<8xf32>
    %212 = vector.shape_cast %211 : vector<8xf32> to vector<8x1xf32>
    %213 = tpu.reciprocal %212 {approx = true} : vector<8x1xf32> -> vector<8x1xf32>
    %214 = vector.broadcast %213 : vector<8x1xf32> to vector<8x8xf32>
    %215 = arith.mulf %210, %214 : vector<8x8xf32>
    %216 = arith.truncf %215 : vector<8x8xf32> to vector<8x8xbf16>
    %217 = vector.extract_strided_slice %186 {offsets = [0, 8], sizes = [8, 8], strides = [1, 1]} : vector<8x32xbf16> to vector<8x8xbf16>
    %cst_100 = arith.constant dense<0.000000e+00> : vector<8x8xf32>
    %218 = tpu.matmul %216, %217, %cst_100 {dimension_numbers = #tpu.dot_dimension_numbers<[1], [0], [0], [1], [0, 0, 1, 1], [], []>} : vector<8x8xbf16>, vector<8x8xbf16>, vector<8x8xf32> -> vector<8x8xf32>
    %219 = vector.extract_strided_slice %184 {offsets = [0, 16], sizes = [8, 8], strides = [1, 1]} : vector<8x32xbf16> to vector<8x8xbf16>
    %220 = vector.extract_strided_slice %185 {offsets = [0, 16], sizes = [8, 8], strides = [1, 1]} : vector<8x32xbf16> to vector<8x8xbf16>
    %cst_101 = arith.constant dense<0.000000e+00> : vector<8x8xf32>
    %221 = tpu.matmul %219, %220, %cst_101 {dimension_numbers = #tpu.dot_dimension_numbers<[1], [1], [0], [0], [0, 0, 1, 0], [], []>} : vector<8x8xbf16>, vector<8x8xbf16>, vector<8x8xf32> -> vector<8x8xf32>
    %cst_102 = arith.constant dense<0xFF800000> : vector<8xf32>
    %222 = vector.multi_reduction <maximumf>, %221, %cst_102 [1] : vector<8x8xf32> to vector<8xf32>
    %223 = vector.shape_cast %222 : vector<8xf32> to vector<8x1xf32>
    %224 = vector.broadcast %223 : vector<8x1xf32> to vector<8x8xf32>
    %225 = arith.subf %221, %224 : vector<8x8xf32>
    %226 = math.exp %225 : vector<8x8xf32>
    %cst_103 = arith.constant dense<0.000000e+00> : vector<8xf32>
    %227 = vector.multi_reduction <add>, %226, %cst_103 [1] : vector<8x8xf32> to vector<8xf32>
    %228 = vector.shape_cast %227 : vector<8xf32> to vector<8x1xf32>
    %229 = tpu.reciprocal %228 {approx = true} : vector<8x1xf32> -> vector<8x1xf32>
    %230 = vector.broadcast %229 : vector<8x1xf32> to vector<8x8xf32>
    %231 = arith.mulf %226, %230 : vector<8x8xf32>
    %232 = arith.truncf %231 : vector<8x8xf32> to vector<8x8xbf16>
    %233 = vector.extract_strided_slice %186 {offsets = [0, 16], sizes = [8, 8], strides = [1, 1]} : vector<8x32xbf16> to vector<8x8xbf16>
    %cst_104 = arith.constant dense<0.000000e+00> : vector<8x8xf32>
    %234 = tpu.matmul %232, %233, %cst_104 {dimension_numbers = #tpu.dot_dimension_numbers<[1], [0], [0], [1], [0, 0, 1, 1], [], []>} : vector<8x8xbf16>, vector<8x8xbf16>, vector<8x8xf32> -> vector<8x8xf32>
    %235 = vector.extract_strided_slice %184 {offsets = [0, 24], sizes = [8, 8], strides = [1, 1]} : vector<8x32xbf16> to vector<8x8xbf16>
    %236 = vector.extract_strided_slice %185 {offsets = [0, 24], sizes = [8, 8], strides = [1, 1]} : vector<8x32xbf16> to vector<8x8xbf16>
    %cst_105 = arith.constant dense<0.000000e+00> : vector<8x8xf32>
    %237 = tpu.matmul %235, %236, %cst_105 {dimension_numbers = #tpu.dot_dimension_numbers<[1], [1], [0], [0], [0, 0, 1, 0], [], []>} : vector<8x8xbf16>, vector<8x8xbf16>, vector<8x8xf32> -> vector<8x8xf32>
    %cst_106 = arith.constant dense<0xFF800000> : vector<8xf32>
    %238 = vector.multi_reduction <maximumf>, %237, %cst_106 [1] : vector<8x8xf32> to vector<8xf32>
    %239 = vector.shape_cast %238 : vector<8xf32> to vector<8x1xf32>
    %240 = vector.broadcast %239 : vector<8x1xf32> to vector<8x8xf32>
    %241 = arith.subf %237, %240 : vector<8x8xf32>
    %242 = math.exp %241 : vector<8x8xf32>
    %cst_107 = arith.constant dense<0.000000e+00> : vector<8xf32>
    %243 = vector.multi_reduction <add>, %242, %cst_107 [1] : vector<8x8xf32> to vector<8xf32>
    %244 = vector.shape_cast %243 : vector<8xf32> to vector<8x1xf32>
    %245 = tpu.reciprocal %244 {approx = true} : vector<8x1xf32> -> vector<8x1xf32>
    %246 = vector.broadcast %245 : vector<8x1xf32> to vector<8x8xf32>
    %247 = arith.mulf %242, %246 : vector<8x8xf32>
    %248 = arith.truncf %247 : vector<8x8xf32> to vector<8x8xbf16>
    %249 = vector.extract_strided_slice %186 {offsets = [0, 24], sizes = [8, 8], strides = [1, 1]} : vector<8x32xbf16> to vector<8x8xbf16>
    %cst_108 = arith.constant dense<0.000000e+00> : vector<8x8xf32>
    %250 = tpu.matmul %248, %249, %cst_108 {dimension_numbers = #tpu.dot_dimension_numbers<[1], [0], [0], [1], [0, 0, 1, 1], [], []>} : vector<8x8xbf16>, vector<8x8xbf16>, vector<8x8xf32> -> vector<8x8xf32>
    %251 = tpu.concatenate %202, %218, %234, %250 in 1 : vector<8x8xf32>, vector<8x8xf32>, vector<8x8xf32>, vector<8x8xf32> -> vector<8x32xf32>
    %252 = arith.truncf %251 : vector<8x32xf32> to vector<8x32xbf16>
    %cst_109 = arith.constant dense<0.000000e+00> : vector<8x32xf32>
    %253 = tpu.matmul %252, %172, %cst_109 {dimension_numbers = #tpu.dot_dimension_numbers<[1], [0], [0], [1], [0, 0, 1, 1], [], []>} : vector<8x32xbf16>, vector<32x32xbf16>, vector<8x32xf32> -> vector<8x32xf32>
    %254 = vector.broadcast %174 : vector<1x32xf32> to vector<8x32xf32>
    %255 = arith.addf %253, %254 : vector<8x32xf32>
    %256 = arith.addf %166, %255 : vector<8x32xf32>
    %c1_110 = arith.constant 1 : index
    %c0_111 = arith.constant 0 : index
    %c0_112 = arith.constant 0 : index
    %c0_113 = arith.constant 0 : index
    %257 = vector.load %arg15[%c1_110, %c0_111, %c0_112, %c0_113] : memref<2x2x1x32xf32, #tpu.memory_space<vmem>>, vector<1x1x1x32xf32>
    %258 = vector.shape_cast %257 : vector<1x1x1x32xf32> to vector<1x32xf32>
    %c1_114 = arith.constant 1 : index
    %c0_115 = arith.constant 0 : index
    %c0_116 = arith.constant 0 : index
    %c0_117 = arith.constant 0 : index
    %259 = vector.load %arg16[%c1_114, %c0_115, %c0_116, %c0_117] : memref<2x2x1x32xf32, #tpu.memory_space<vmem>>, vector<1x1x1x32xf32>
    %260 = vector.shape_cast %259 : vector<1x1x1x32xf32> to vector<1x32xf32>
    %cst_118 = arith.constant dense<0.000000e+00> : vector<8xf32>
    %261 = vector.multi_reduction <add>, %256, %cst_118 [1] : vector<8x32xf32> to vector<8xf32>
    %262 = vector.shape_cast %261 : vector<8xf32> to vector<8x1xf32>
    %cst_119 = arith.constant 3.200000e+01 : f32
    %263 = vector.broadcast %cst_119 : f32 to vector<8x1xf32>
    %264 = arith.divf %262, %263 : vector<8x1xf32>
    %265 = vector.broadcast %264 : vector<8x1xf32> to vector<8x32xf32>
    %266 = arith.subf %256, %265 : vector<8x32xf32>
    %267 = arith.mulf %266, %266 : vector<8x32xf32>
    %cst_120 = arith.constant dense<0.000000e+00> : vector<8xf32>
    %268 = vector.multi_reduction <add>, %267, %cst_120 [1] : vector<8x32xf32> to vector<8xf32>
    %269 = vector.shape_cast %268 : vector<8xf32> to vector<8x1xf32>
    %cst_121 = arith.constant 3.200000e+01 : f32
    %270 = vector.broadcast %cst_121 : f32 to vector<8x1xf32>
    %271 = arith.divf %269, %270 : vector<8x1xf32>
    %cst_122 = arith.constant 9.99999974E-6 : f32
    %272 = vector.broadcast %cst_122 : f32 to vector<8x1xf32>
    %273 = arith.addf %271, %272 : vector<8x1xf32>
    %274 = math.rsqrt %273 : vector<8x1xf32>
    %275 = vector.broadcast %274 : vector<8x1xf32> to vector<8x32xf32>
    %276 = arith.mulf %266, %275 : vector<8x32xf32>
    %277 = vector.broadcast %258 : vector<1x32xf32> to vector<8x32xf32>
    %278 = arith.mulf %276, %277 : vector<8x32xf32>
    %279 = vector.broadcast %260 : vector<1x32xf32> to vector<8x32xf32>
    %280 = arith.addf %278, %279 : vector<8x32xf32>
    %c1_123 = arith.constant 1 : index
    %c0_124 = arith.constant 0 : index
    %c0_125 = arith.constant 0 : index
    %281 = vector.load %arg11[%c1_123, %c0_124, %c0_125] : memref<2x32x2048xbf16, #tpu.memory_space<vmem>>, vector<1x32x2048xbf16>
    %282 = vector.shape_cast %281 : vector<1x32x2048xbf16> to vector<32x2048xbf16>
    %c1_126 = arith.constant 1 : index
    %c0_127 = arith.constant 0 : index
    %c0_128 = arith.constant 0 : index
    %283 = vector.load %arg12[%c1_126, %c0_127, %c0_128] : memref<2x1x2048xf32, #tpu.memory_space<vmem>>, vector<1x1x2048xf32>
    %284 = vector.shape_cast %283 : vector<1x1x2048xf32> to vector<1x2048xf32>
    %c1_129 = arith.constant 1 : index
    %c0_130 = arith.constant 0 : index
    %c0_131 = arith.constant 0 : index
    %285 = vector.load %arg13[%c1_129, %c0_130, %c0_131] : memref<2x2048x32xbf16, #tpu.memory_space<vmem>>, vector<1x2048x32xbf16>
    %286 = vector.shape_cast %285 : vector<1x2048x32xbf16> to vector<2048x32xbf16>
    %c1_132 = arith.constant 1 : index
    %c0_133 = arith.constant 0 : index
    %c0_134 = arith.constant 0 : index
    %287 = vector.load %arg14[%c1_132, %c0_133, %c0_134] : memref<2x1x32xf32, #tpu.memory_space<vmem>>, vector<1x1x32xf32>
    %288 = vector.shape_cast %287 : vector<1x1x32xf32> to vector<1x32xf32>
    %289 = arith.truncf %280 : vector<8x32xf32> to vector<8x32xbf16>
    %cst_135 = arith.constant dense<0.000000e+00> : vector<8x2048xf32>
    %290 = tpu.matmul %289, %282, %cst_135 {dimension_numbers = #tpu.dot_dimension_numbers<[1], [0], [0], [1], [0, 0, 1, 1], [], []>} : vector<8x32xbf16>, vector<32x2048xbf16>, vector<8x2048xf32> -> vector<8x2048xf32>
    %291 = vector.broadcast %284 : vector<1x2048xf32> to vector<8x2048xf32>
    %292 = arith.addf %290, %291 : vector<8x2048xf32>
    %cst_136 = arith.constant 0.000000e+00 : f32
    %293 = vector.broadcast %cst_136 : f32 to vector<8x2048xf32>
    %294 = arith.maximumf %292, %293 : vector<8x2048xf32>
    %295 = arith.truncf %294 : vector<8x2048xf32> to vector<8x2048xbf16>
    %cst_137 = arith.constant dense<0.000000e+00> : vector<8x32xf32>
    %296 = tpu.matmul %295, %286, %cst_137 {dimension_numbers = #tpu.dot_dimension_numbers<[1], [0], [0], [1], [0, 0, 1, 1], [], []>} : vector<8x2048xbf16>, vector<2048x32xbf16>, vector<8x32xf32> -> vector<8x32xf32>
    %297 = vector.broadcast %288 : vector<1x32xf32> to vector<8x32xf32>
    %298 = arith.addf %296, %297 : vector<8x32xf32>
    %299 = arith.addf %280, %298 : vector<8x32xf32>
    %c1_138 = arith.constant 1 : index
    %c1_139 = arith.constant 1 : index
    %c0_140 = arith.constant 0 : index
    %c0_141 = arith.constant 0 : index
    %300 = vector.load %arg15[%c1_138, %c1_139, %c0_140, %c0_141] : memref<2x2x1x32xf32, #tpu.memory_space<vmem>>, vector<1x1x1x32xf32>
    %301 = vector.shape_cast %300 : vector<1x1x1x32xf32> to vector<1x32xf32>
    %c1_142 = arith.constant 1 : index
    %c1_143 = arith.constant 1 : index
    %c0_144 = arith.constant 0 : index
    %c0_145 = arith.constant 0 : index
    %302 = vector.load %arg16[%c1_142, %c1_143, %c0_144, %c0_145] : memref<2x2x1x32xf32, #tpu.memory_space<vmem>>, vector<1x1x1x32xf32>
    %303 = vector.shape_cast %302 : vector<1x1x1x32xf32> to vector<1x32xf32>
    %cst_146 = arith.constant dense<0.000000e+00> : vector<8xf32>
    %304 = vector.multi_reduction <add>, %299, %cst_146 [1] : vector<8x32xf32> to vector<8xf32>
    %305 = vector.shape_cast %304 : vector<8xf32> to vector<8x1xf32>
    %cst_147 = arith.constant 3.200000e+01 : f32
    %306 = vector.broadcast %cst_147 : f32 to vector<8x1xf32>
    %307 = arith.divf %305, %306 : vector<8x1xf32>
    %308 = vector.broadcast %307 : vector<8x1xf32> to vector<8x32xf32>
    %309 = arith.subf %299, %308 : vector<8x32xf32>
    %310 = arith.mulf %309, %309 : vector<8x32xf32>
    %cst_148 = arith.constant dense<0.000000e+00> : vector<8xf32>
    %311 = vector.multi_reduction <add>, %310, %cst_148 [1] : vector<8x32xf32> to vector<8xf32>
    %312 = vector.shape_cast %311 : vector<8xf32> to vector<8x1xf32>
    %cst_149 = arith.constant 3.200000e+01 : f32
    %313 = vector.broadcast %cst_149 : f32 to vector<8x1xf32>
    %314 = arith.divf %312, %313 : vector<8x1xf32>
    %cst_150 = arith.constant 9.99999974E-6 : f32
    %315 = vector.broadcast %cst_150 : f32 to vector<8x1xf32>
    %316 = arith.addf %314, %315 : vector<8x1xf32>
    %317 = math.rsqrt %316 : vector<8x1xf32>
    %318 = vector.broadcast %317 : vector<8x1xf32> to vector<8x32xf32>
    %319 = arith.mulf %309, %318 : vector<8x32xf32>
    %320 = vector.broadcast %301 : vector<1x32xf32> to vector<8x32xf32>
    %321 = arith.mulf %319, %320 : vector<8x32xf32>
    %322 = vector.broadcast %303 : vector<1x32xf32> to vector<8x32xf32>
    %323 = arith.addf %321, %322 : vector<8x32xf32>
    %c0_151 = arith.constant 0 : index
    %c0_152 = arith.constant 0 : index
    %c0_153 = arith.constant 0 : index
    %324 = vector.load %arg17[%c0_151, %c0_152, %c0_153] : memref<2x32x96xbf16, #tpu.memory_space<vmem>>, vector<1x32x96xbf16>
    %325 = vector.shape_cast %324 : vector<1x32x96xbf16> to vector<32x96xbf16>
    %c0_154 = arith.constant 0 : index
    %c0_155 = arith.constant 0 : index
    %c0_156 = arith.constant 0 : index
    %326 = vector.load %arg18[%c0_154, %c0_155, %c0_156] : memref<2x1x96xf32, #tpu.memory_space<vmem>>, vector<1x1x96xf32>
    %327 = vector.shape_cast %326 : vector<1x1x96xf32> to vector<1x96xf32>
    %c0_157 = arith.constant 0 : index
    %c0_158 = arith.constant 0 : index
    %c0_159 = arith.constant 0 : index
    %328 = vector.load %arg19[%c0_157, %c0_158, %c0_159] : memref<2x32x32xbf16, #tpu.memory_space<vmem>>, vector<1x32x32xbf16>
    %329 = vector.shape_cast %328 : vector<1x32x32xbf16> to vector<32x32xbf16>
    %c0_160 = arith.constant 0 : index
    %c0_161 = arith.constant 0 : index
    %c0_162 = arith.constant 0 : index
    %330 = vector.load %arg20[%c0_160, %c0_161, %c0_162] : memref<2x1x32xf32, #tpu.memory_space<vmem>>, vector<1x1x32xf32>
    %331 = vector.shape_cast %330 : vector<1x1x32xf32> to vector<1x32xf32>
    %332 = arith.truncf %323 : vector<8x32xf32> to vector<8x32xbf16>
    %cst_163 = arith.constant dense<0.000000e+00> : vector<8x96xf32>
    %333 = tpu.matmul %332, %325, %cst_163 {dimension_numbers = #tpu.dot_dimension_numbers<[1], [0], [0], [1], [0, 0, 1, 1], [], []>} : vector<8x32xbf16>, vector<32x96xbf16>, vector<8x96xf32> -> vector<8x96xf32>
    %334 = vector.broadcast %327 : vector<1x96xf32> to vector<8x96xf32>
    %335 = arith.addf %333, %334 : vector<8x96xf32>
    %336 = vector.extract_strided_slice %335 {offsets = [0, 0], sizes = [8, 32], strides = [1, 1]} : vector<8x96xf32> to vector<8x32xf32>
    %cst_164 = arith.constant 0.353553385 : f32
    %337 = vector.broadcast %cst_164 : f32 to vector<8x32xf32>
    %338 = arith.mulf %336, %337 : vector<8x32xf32>
    %339 = vector.extract_strided_slice %335 {offsets = [0, 32], sizes = [8, 32], strides = [1, 1]} : vector<8x96xf32> to vector<8x32xf32>
    %340 = vector.extract_strided_slice %335 {offsets = [0, 64], sizes = [8, 32], strides = [1, 1]} : vector<8x96xf32> to vector<8x32xf32>
    %341 = arith.truncf %338 : vector<8x32xf32> to vector<8x32xbf16>
    %342 = arith.truncf %339 : vector<8x32xf32> to vector<8x32xbf16>
    %343 = arith.truncf %340 : vector<8x32xf32> to vector<8x32xbf16>
    %344 = vector.extract_strided_slice %341 {offsets = [0, 0], sizes = [8, 8], strides = [1, 1]} : vector<8x32xbf16> to vector<8x8xbf16>
    %345 = vector.extract_strided_slice %342 {offsets = [0, 0], sizes = [8, 8], strides = [1, 1]} : vector<8x32xbf16> to vector<8x8xbf16>
    %cst_165 = arith.constant dense<0.000000e+00> : vector<8x8xf32>
    %346 = tpu.matmul %344, %345, %cst_165 {dimension_numbers = #tpu.dot_dimension_numbers<[1], [1], [0], [0], [0, 0, 1, 0], [], []>} : vector<8x8xbf16>, vector<8x8xbf16>, vector<8x8xf32> -> vector<8x8xf32>
    %cst_166 = arith.constant dense<0xFF800000> : vector<8xf32>
    %347 = vector.multi_reduction <maximumf>, %346, %cst_166 [1] : vector<8x8xf32> to vector<8xf32>
    %348 = vector.shape_cast %347 : vector<8xf32> to vector<8x1xf32>
    %349 = vector.broadcast %348 : vector<8x1xf32> to vector<8x8xf32>
    %350 = arith.subf %346, %349 : vector<8x8xf32>
    %351 = math.exp %350 : vector<8x8xf32>
    %cst_167 = arith.constant dense<0.000000e+00> : vector<8xf32>
    %352 = vector.multi_reduction <add>, %351, %cst_167 [1] : vector<8x8xf32> to vector<8xf32>
    %353 = vector.shape_cast %352 : vector<8xf32> to vector<8x1xf32>
    %354 = tpu.reciprocal %353 {approx = true} : vector<8x1xf32> -> vector<8x1xf32>
    %355 = vector.broadcast %354 : vector<8x1xf32> to vector<8x8xf32>
    %356 = arith.mulf %351, %355 : vector<8x8xf32>
    %357 = arith.truncf %356 : vector<8x8xf32> to vector<8x8xbf16>
    %358 = vector.extract_strided_slice %343 {offsets = [0, 0], sizes = [8, 8], strides = [1, 1]} : vector<8x32xbf16> to vector<8x8xbf16>
    %cst_168 = arith.constant dense<0.000000e+00> : vector<8x8xf32>
    %359 = tpu.matmul %357, %358, %cst_168 {dimension_numbers = #tpu.dot_dimension_numbers<[1], [0], [0], [1], [0, 0, 1, 1], [], []>} : vector<8x8xbf16>, vector<8x8xbf16>, vector<8x8xf32> -> vector<8x8xf32>
    %360 = vector.extract_strided_slice %341 {offsets = [0, 8], sizes = [8, 8], strides = [1, 1]} : vector<8x32xbf16> to vector<8x8xbf16>
    %361 = vector.extract_strided_slice %342 {offsets = [0, 8], sizes = [8, 8], strides = [1, 1]} : vector<8x32xbf16> to vector<8x8xbf16>
    %cst_169 = arith.constant dense<0.000000e+00> : vector<8x8xf32>
    %362 = tpu.matmul %360, %361, %cst_169 {dimension_numbers = #tpu.dot_dimension_numbers<[1], [1], [0], [0], [0, 0, 1, 0], [], []>} : vector<8x8xbf16>, vector<8x8xbf16>, vector<8x8xf32> -> vector<8x8xf32>
    %cst_170 = arith.constant dense<0xFF800000> : vector<8xf32>
    %363 = vector.multi_reduction <maximumf>, %362, %cst_170 [1] : vector<8x8xf32> to vector<8xf32>
    %364 = vector.shape_cast %363 : vector<8xf32> to vector<8x1xf32>
    %365 = vector.broadcast %364 : vector<8x1xf32> to vector<8x8xf32>
    %366 = arith.subf %362, %365 : vector<8x8xf32>
    %367 = math.exp %366 : vector<8x8xf32>
    %cst_171 = arith.constant dense<0.000000e+00> : vector<8xf32>
    %368 = vector.multi_reduction <add>, %367, %cst_171 [1] : vector<8x8xf32> to vector<8xf32>
    %369 = vector.shape_cast %368 : vector<8xf32> to vector<8x1xf32>
    %370 = tpu.reciprocal %369 {approx = true} : vector<8x1xf32> -> vector<8x1xf32>
    %371 = vector.broadcast %370 : vector<8x1xf32> to vector<8x8xf32>
    %372 = arith.mulf %367, %371 : vector<8x8xf32>
    %373 = arith.truncf %372 : vector<8x8xf32> to vector<8x8xbf16>
    %374 = vector.extract_strided_slice %343 {offsets = [0, 8], sizes = [8, 8], strides = [1, 1]} : vector<8x32xbf16> to vector<8x8xbf16>
    %cst_172 = arith.constant dense<0.000000e+00> : vector<8x8xf32>
    %375 = tpu.matmul %373, %374, %cst_172 {dimension_numbers = #tpu.dot_dimension_numbers<[1], [0], [0], [1], [0, 0, 1, 1], [], []>} : vector<8x8xbf16>, vector<8x8xbf16>, vector<8x8xf32> -> vector<8x8xf32>
    %376 = vector.extract_strided_slice %341 {offsets = [0, 16], sizes = [8, 8], strides = [1, 1]} : vector<8x32xbf16> to vector<8x8xbf16>
    %377 = vector.extract_strided_slice %342 {offsets = [0, 16], sizes = [8, 8], strides = [1, 1]} : vector<8x32xbf16> to vector<8x8xbf16>
    %cst_173 = arith.constant dense<0.000000e+00> : vector<8x8xf32>
    %378 = tpu.matmul %376, %377, %cst_173 {dimension_numbers = #tpu.dot_dimension_numbers<[1], [1], [0], [0], [0, 0, 1, 0], [], []>} : vector<8x8xbf16>, vector<8x8xbf16>, vector<8x8xf32> -> vector<8x8xf32>
    %cst_174 = arith.constant dense<0xFF800000> : vector<8xf32>
    %379 = vector.multi_reduction <maximumf>, %378, %cst_174 [1] : vector<8x8xf32> to vector<8xf32>
    %380 = vector.shape_cast %379 : vector<8xf32> to vector<8x1xf32>
    %381 = vector.broadcast %380 : vector<8x1xf32> to vector<8x8xf32>
    %382 = arith.subf %378, %381 : vector<8x8xf32>
    %383 = math.exp %382 : vector<8x8xf32>
    %cst_175 = arith.constant dense<0.000000e+00> : vector<8xf32>
    %384 = vector.multi_reduction <add>, %383, %cst_175 [1] : vector<8x8xf32> to vector<8xf32>
    %385 = vector.shape_cast %384 : vector<8xf32> to vector<8x1xf32>
    %386 = tpu.reciprocal %385 {approx = true} : vector<8x1xf32> -> vector<8x1xf32>
    %387 = vector.broadcast %386 : vector<8x1xf32> to vector<8x8xf32>
    %388 = arith.mulf %383, %387 : vector<8x8xf32>
    %389 = arith.truncf %388 : vector<8x8xf32> to vector<8x8xbf16>
    %390 = vector.extract_strided_slice %343 {offsets = [0, 16], sizes = [8, 8], strides = [1, 1]} : vector<8x32xbf16> to vector<8x8xbf16>
    %cst_176 = arith.constant dense<0.000000e+00> : vector<8x8xf32>
    %391 = tpu.matmul %389, %390, %cst_176 {dimension_numbers = #tpu.dot_dimension_numbers<[1], [0], [0], [1], [0, 0, 1, 1], [], []>} : vector<8x8xbf16>, vector<8x8xbf16>, vector<8x8xf32> -> vector<8x8xf32>
    %392 = vector.extract_strided_slice %341 {offsets = [0, 24], sizes = [8, 8], strides = [1, 1]} : vector<8x32xbf16> to vector<8x8xbf16>
    %393 = vector.extract_strided_slice %342 {offsets = [0, 24], sizes = [8, 8], strides = [1, 1]} : vector<8x32xbf16> to vector<8x8xbf16>
    %cst_177 = arith.constant dense<0.000000e+00> : vector<8x8xf32>
    %394 = tpu.matmul %392, %393, %cst_177 {dimension_numbers = #tpu.dot_dimension_numbers<[1], [1], [0], [0], [0, 0, 1, 0], [], []>} : vector<8x8xbf16>, vector<8x8xbf16>, vector<8x8xf32> -> vector<8x8xf32>
    %cst_178 = arith.constant dense<0xFF800000> : vector<8xf32>
    %395 = vector.multi_reduction <maximumf>, %394, %cst_178 [1] : vector<8x8xf32> to vector<8xf32>
    %396 = vector.shape_cast %395 : vector<8xf32> to vector<8x1xf32>
    %397 = vector.broadcast %396 : vector<8x1xf32> to vector<8x8xf32>
    %398 = arith.subf %394, %397 : vector<8x8xf32>
    %399 = math.exp %398 : vector<8x8xf32>
    %cst_179 = arith.constant dense<0.000000e+00> : vector<8xf32>
    %400 = vector.multi_reduction <add>, %399, %cst_179 [1] : vector<8x8xf32> to vector<8xf32>
    %401 = vector.shape_cast %400 : vector<8xf32> to vector<8x1xf32>
    %402 = tpu.reciprocal %401 {approx = true} : vector<8x1xf32> -> vector<8x1xf32>
    %403 = vector.broadcast %402 : vector<8x1xf32> to vector<8x8xf32>
    %404 = arith.mulf %399, %403 : vector<8x8xf32>
    %405 = arith.truncf %404 : vector<8x8xf32> to vector<8x8xbf16>
    %406 = vector.extract_strided_slice %343 {offsets = [0, 24], sizes = [8, 8], strides = [1, 1]} : vector<8x32xbf16> to vector<8x8xbf16>
    %cst_180 = arith.constant dense<0.000000e+00> : vector<8x8xf32>
    %407 = tpu.matmul %405, %406, %cst_180 {dimension_numbers = #tpu.dot_dimension_numbers<[1], [0], [0], [1], [0, 0, 1, 1], [], []>} : vector<8x8xbf16>, vector<8x8xbf16>, vector<8x8xf32> -> vector<8x8xf32>
    %408 = tpu.concatenate %359, %375, %391, %407 in 1 : vector<8x8xf32>, vector<8x8xf32>, vector<8x8xf32>, vector<8x8xf32> -> vector<8x32xf32>
    %409 = arith.truncf %408 : vector<8x32xf32> to vector<8x32xbf16>
    %cst_181 = arith.constant dense<0.000000e+00> : vector<8x32xf32>
    %410 = tpu.matmul %409, %329, %cst_181 {dimension_numbers = #tpu.dot_dimension_numbers<[1], [0], [0], [1], [0, 0, 1, 1], [], []>} : vector<8x32xbf16>, vector<32x32xbf16>, vector<8x32xf32> -> vector<8x32xf32>
    %411 = vector.broadcast %331 : vector<1x32xf32> to vector<8x32xf32>
    %412 = arith.addf %410, %411 : vector<8x32xf32>
    %413 = arith.addf %323, %412 : vector<8x32xf32>
    %c0_182 = arith.constant 0 : index
    %c0_183 = arith.constant 0 : index
    %c0_184 = arith.constant 0 : index
    %c0_185 = arith.constant 0 : index
    %414 = vector.load %arg31[%c0_182, %c0_183, %c0_184, %c0_185] : memref<2x3x1x32xf32, #tpu.memory_space<vmem>>, vector<1x1x1x32xf32>
    %415 = vector.shape_cast %414 : vector<1x1x1x32xf32> to vector<1x32xf32>
    %c0_186 = arith.constant 0 : index
    %c0_187 = arith.constant 0 : index
    %c0_188 = arith.constant 0 : index
    %c0_189 = arith.constant 0 : index
    %416 = vector.load %arg32[%c0_186, %c0_187, %c0_188, %c0_189] : memref<2x3x1x32xf32, #tpu.memory_space<vmem>>, vector<1x1x1x32xf32>
    %417 = vector.shape_cast %416 : vector<1x1x1x32xf32> to vector<1x32xf32>
    %cst_190 = arith.constant dense<0.000000e+00> : vector<8xf32>
    %418 = vector.multi_reduction <add>, %413, %cst_190 [1] : vector<8x32xf32> to vector<8xf32>
    %419 = vector.shape_cast %418 : vector<8xf32> to vector<8x1xf32>
    %cst_191 = arith.constant 3.200000e+01 : f32
    %420 = vector.broadcast %cst_191 : f32 to vector<8x1xf32>
    %421 = arith.divf %419, %420 : vector<8x1xf32>
    %422 = vector.broadcast %421 : vector<8x1xf32> to vector<8x32xf32>
    %423 = arith.subf %413, %422 : vector<8x32xf32>
    %424 = arith.mulf %423, %423 : vector<8x32xf32>
    %cst_192 = arith.constant dense<0.000000e+00> : vector<8xf32>
    %425 = vector.multi_reduction <add>, %424, %cst_192 [1] : vector<8x32xf32> to vector<8xf32>
    %426 = vector.shape_cast %425 : vector<8xf32> to vector<8x1xf32>
    %cst_193 = arith.constant 3.200000e+01 : f32
    %427 = vector.broadcast %cst_193 : f32 to vector<8x1xf32>
    %428 = arith.divf %426, %427 : vector<8x1xf32>
    %cst_194 = arith.constant 9.99999974E-6 : f32
    %429 = vector.broadcast %cst_194 : f32 to vector<8x1xf32>
    %430 = arith.addf %428, %429 : vector<8x1xf32>
    %431 = math.rsqrt %430 : vector<8x1xf32>
    %432 = vector.broadcast %431 : vector<8x1xf32> to vector<8x32xf32>
    %433 = arith.mulf %423, %432 : vector<8x32xf32>
    %434 = vector.broadcast %415 : vector<1x32xf32> to vector<8x32xf32>
    %435 = arith.mulf %433, %434 : vector<8x32xf32>
    %436 = vector.broadcast %417 : vector<1x32xf32> to vector<8x32xf32>
    %437 = arith.addf %435, %436 : vector<8x32xf32>
    %c0_195 = arith.constant 0 : index
    %c0_196 = arith.constant 0 : index
    %c0_197 = arith.constant 0 : index
    %438 = vector.load %arg21[%c0_195, %c0_196, %c0_197] : memref<2x32x32xbf16, #tpu.memory_space<vmem>>, vector<1x32x32xbf16>
    %439 = vector.shape_cast %438 : vector<1x32x32xbf16> to vector<32x32xbf16>
    %c0_198 = arith.constant 0 : index
    %c0_199 = arith.constant 0 : index
    %c0_200 = arith.constant 0 : index
    %440 = vector.load %arg22[%c0_198, %c0_199, %c0_200] : memref<2x1x32xf32, #tpu.memory_space<vmem>>, vector<1x1x32xf32>
    %441 = vector.shape_cast %440 : vector<1x1x32xf32> to vector<1x32xf32>
    %c0_201 = arith.constant 0 : index
    %c0_202 = arith.constant 0 : index
    %c0_203 = arith.constant 0 : index
    %442 = vector.load %arg23[%c0_201, %c0_202, %c0_203] : memref<2x32x64xbf16, #tpu.memory_space<vmem>>, vector<1x32x64xbf16>
    %443 = vector.shape_cast %442 : vector<1x32x64xbf16> to vector<32x64xbf16>
    %c0_204 = arith.constant 0 : index
    %c0_205 = arith.constant 0 : index
    %c0_206 = arith.constant 0 : index
    %444 = vector.load %arg24[%c0_204, %c0_205, %c0_206] : memref<2x1x64xf32, #tpu.memory_space<vmem>>, vector<1x1x64xf32>
    %445 = vector.shape_cast %444 : vector<1x1x64xf32> to vector<1x64xf32>
    %c0_207 = arith.constant 0 : index
    %c0_208 = arith.constant 0 : index
    %c0_209 = arith.constant 0 : index
    %446 = vector.load %arg25[%c0_207, %c0_208, %c0_209] : memref<2x32x32xbf16, #tpu.memory_space<vmem>>, vector<1x32x32xbf16>
    %447 = vector.shape_cast %446 : vector<1x32x32xbf16> to vector<32x32xbf16>
    %c0_210 = arith.constant 0 : index
    %c0_211 = arith.constant 0 : index
    %c0_212 = arith.constant 0 : index
    %448 = vector.load %arg26[%c0_210, %c0_211, %c0_212] : memref<2x1x32xf32, #tpu.memory_space<vmem>>, vector<1x1x32xf32>
    %449 = vector.shape_cast %448 : vector<1x1x32xf32> to vector<1x32xf32>
    %450 = arith.truncf %437 : vector<8x32xf32> to vector<8x32xbf16>
    %cst_213 = arith.constant dense<0.000000e+00> : vector<8x32xf32>
    %451 = tpu.matmul %450, %439, %cst_213 {dimension_numbers = #tpu.dot_dimension_numbers<[1], [0], [0], [1], [0, 0, 1, 1], [], []>} : vector<8x32xbf16>, vector<32x32xbf16>, vector<8x32xf32> -> vector<8x32xf32>
    %452 = vector.broadcast %441 : vector<1x32xf32> to vector<8x32xf32>
    %453 = arith.addf %451, %452 : vector<8x32xf32>
    %cst_214 = arith.constant 0.353553385 : f32
    %454 = vector.broadcast %cst_214 : f32 to vector<8x32xf32>
    %455 = arith.mulf %453, %454 : vector<8x32xf32>
    %456 = arith.truncf %323 : vector<8x32xf32> to vector<8x32xbf16>
    %cst_215 = arith.constant dense<0.000000e+00> : vector<8x64xf32>
    %457 = tpu.matmul %456, %443, %cst_215 {dimension_numbers = #tpu.dot_dimension_numbers<[1], [0], [0], [1], [0, 0, 1, 1], [], []>} : vector<8x32xbf16>, vector<32x64xbf16>, vector<8x64xf32> -> vector<8x64xf32>
    %458 = vector.broadcast %445 : vector<1x64xf32> to vector<8x64xf32>
    %459 = arith.addf %457, %458 : vector<8x64xf32>
    %460 = vector.extract_strided_slice %459 {offsets = [0, 0], sizes = [8, 32], strides = [1, 1]} : vector<8x64xf32> to vector<8x32xf32>
    %461 = vector.extract_strided_slice %459 {offsets = [0, 32], sizes = [8, 32], strides = [1, 1]} : vector<8x64xf32> to vector<8x32xf32>
    %462 = arith.truncf %455 : vector<8x32xf32> to vector<8x32xbf16>
    %463 = arith.truncf %460 : vector<8x32xf32> to vector<8x32xbf16>
    %464 = arith.truncf %461 : vector<8x32xf32> to vector<8x32xbf16>
    %465 = vector.extract_strided_slice %462 {offsets = [0, 0], sizes = [8, 8], strides = [1, 1]} : vector<8x32xbf16> to vector<8x8xbf16>
    %466 = vector.extract_strided_slice %463 {offsets = [0, 0], sizes = [8, 8], strides = [1, 1]} : vector<8x32xbf16> to vector<8x8xbf16>
    %cst_216 = arith.constant dense<0.000000e+00> : vector<8x8xf32>
    %467 = tpu.matmul %465, %466, %cst_216 {dimension_numbers = #tpu.dot_dimension_numbers<[1], [1], [0], [0], [0, 0, 1, 0], [], []>} : vector<8x8xbf16>, vector<8x8xbf16>, vector<8x8xf32> -> vector<8x8xf32>
    %cst_217 = arith.constant dense<0xFF800000> : vector<8xf32>
    %468 = vector.multi_reduction <maximumf>, %467, %cst_217 [1] : vector<8x8xf32> to vector<8xf32>
    %469 = vector.shape_cast %468 : vector<8xf32> to vector<8x1xf32>
    %470 = vector.broadcast %469 : vector<8x1xf32> to vector<8x8xf32>
    %471 = arith.subf %467, %470 : vector<8x8xf32>
    %472 = math.exp %471 : vector<8x8xf32>
    %cst_218 = arith.constant dense<0.000000e+00> : vector<8xf32>
    %473 = vector.multi_reduction <add>, %472, %cst_218 [1] : vector<8x8xf32> to vector<8xf32>
    %474 = vector.shape_cast %473 : vector<8xf32> to vector<8x1xf32>
    %475 = tpu.reciprocal %474 {approx = true} : vector<8x1xf32> -> vector<8x1xf32>
    %476 = vector.broadcast %475 : vector<8x1xf32> to vector<8x8xf32>
    %477 = arith.mulf %472, %476 : vector<8x8xf32>
    %478 = arith.truncf %477 : vector<8x8xf32> to vector<8x8xbf16>
    %479 = vector.extract_strided_slice %464 {offsets = [0, 0], sizes = [8, 8], strides = [1, 1]} : vector<8x32xbf16> to vector<8x8xbf16>
    %cst_219 = arith.constant dense<0.000000e+00> : vector<8x8xf32>
    %480 = tpu.matmul %478, %479, %cst_219 {dimension_numbers = #tpu.dot_dimension_numbers<[1], [0], [0], [1], [0, 0, 1, 1], [], []>} : vector<8x8xbf16>, vector<8x8xbf16>, vector<8x8xf32> -> vector<8x8xf32>
    %481 = vector.extract_strided_slice %462 {offsets = [0, 8], sizes = [8, 8], strides = [1, 1]} : vector<8x32xbf16> to vector<8x8xbf16>
    %482 = vector.extract_strided_slice %463 {offsets = [0, 8], sizes = [8, 8], strides = [1, 1]} : vector<8x32xbf16> to vector<8x8xbf16>
    %cst_220 = arith.constant dense<0.000000e+00> : vector<8x8xf32>
    %483 = tpu.matmul %481, %482, %cst_220 {dimension_numbers = #tpu.dot_dimension_numbers<[1], [1], [0], [0], [0, 0, 1, 0], [], []>} : vector<8x8xbf16>, vector<8x8xbf16>, vector<8x8xf32> -> vector<8x8xf32>
    %cst_221 = arith.constant dense<0xFF800000> : vector<8xf32>
    %484 = vector.multi_reduction <maximumf>, %483, %cst_221 [1] : vector<8x8xf32> to vector<8xf32>
    %485 = vector.shape_cast %484 : vector<8xf32> to vector<8x1xf32>
    %486 = vector.broadcast %485 : vector<8x1xf32> to vector<8x8xf32>
    %487 = arith.subf %483, %486 : vector<8x8xf32>
    %488 = math.exp %487 : vector<8x8xf32>
    %cst_222 = arith.constant dense<0.000000e+00> : vector<8xf32>
    %489 = vector.multi_reduction <add>, %488, %cst_222 [1] : vector<8x8xf32> to vector<8xf32>
    %490 = vector.shape_cast %489 : vector<8xf32> to vector<8x1xf32>
    %491 = tpu.reciprocal %490 {approx = true} : vector<8x1xf32> -> vector<8x1xf32>
    %492 = vector.broadcast %491 : vector<8x1xf32> to vector<8x8xf32>
    %493 = arith.mulf %488, %492 : vector<8x8xf32>
    %494 = arith.truncf %493 : vector<8x8xf32> to vector<8x8xbf16>
    %495 = vector.extract_strided_slice %464 {offsets = [0, 8], sizes = [8, 8], strides = [1, 1]} : vector<8x32xbf16> to vector<8x8xbf16>
    %cst_223 = arith.constant dense<0.000000e+00> : vector<8x8xf32>
    %496 = tpu.matmul %494, %495, %cst_223 {dimension_numbers = #tpu.dot_dimension_numbers<[1], [0], [0], [1], [0, 0, 1, 1], [], []>} : vector<8x8xbf16>, vector<8x8xbf16>, vector<8x8xf32> -> vector<8x8xf32>
    %497 = vector.extract_strided_slice %462 {offsets = [0, 16], sizes = [8, 8], strides = [1, 1]} : vector<8x32xbf16> to vector<8x8xbf16>
    %498 = vector.extract_strided_slice %463 {offsets = [0, 16], sizes = [8, 8], strides = [1, 1]} : vector<8x32xbf16> to vector<8x8xbf16>
    %cst_224 = arith.constant dense<0.000000e+00> : vector<8x8xf32>
    %499 = tpu.matmul %497, %498, %cst_224 {dimension_numbers = #tpu.dot_dimension_numbers<[1], [1], [0], [0], [0, 0, 1, 0], [], []>} : vector<8x8xbf16>, vector<8x8xbf16>, vector<8x8xf32> -> vector<8x8xf32>
    %cst_225 = arith.constant dense<0xFF800000> : vector<8xf32>
    %500 = vector.multi_reduction <maximumf>, %499, %cst_225 [1] : vector<8x8xf32> to vector<8xf32>
    %501 = vector.shape_cast %500 : vector<8xf32> to vector<8x1xf32>
    %502 = vector.broadcast %501 : vector<8x1xf32> to vector<8x8xf32>
    %503 = arith.subf %499, %502 : vector<8x8xf32>
    %504 = math.exp %503 : vector<8x8xf32>
    %cst_226 = arith.constant dense<0.000000e+00> : vector<8xf32>
    %505 = vector.multi_reduction <add>, %504, %cst_226 [1] : vector<8x8xf32> to vector<8xf32>
    %506 = vector.shape_cast %505 : vector<8xf32> to vector<8x1xf32>
    %507 = tpu.reciprocal %506 {approx = true} : vector<8x1xf32> -> vector<8x1xf32>
    %508 = vector.broadcast %507 : vector<8x1xf32> to vector<8x8xf32>
    %509 = arith.mulf %504, %508 : vector<8x8xf32>
    %510 = arith.truncf %509 : vector<8x8xf32> to vector<8x8xbf16>
    %511 = vector.extract_strided_slice %464 {offsets = [0, 16], sizes = [8, 8], strides = [1, 1]} : vector<8x32xbf16> to vector<8x8xbf16>
    %cst_227 = arith.constant dense<0.000000e+00> : vector<8x8xf32>
    %512 = tpu.matmul %510, %511, %cst_227 {dimension_numbers = #tpu.dot_dimension_numbers<[1], [0], [0], [1], [0, 0, 1, 1], [], []>} : vector<8x8xbf16>, vector<8x8xbf16>, vector<8x8xf32> -> vector<8x8xf32>
    %513 = vector.extract_strided_slice %462 {offsets = [0, 24], sizes = [8, 8], strides = [1, 1]} : vector<8x32xbf16> to vector<8x8xbf16>
    %514 = vector.extract_strided_slice %463 {offsets = [0, 24], sizes = [8, 8], strides = [1, 1]} : vector<8x32xbf16> to vector<8x8xbf16>
    %cst_228 = arith.constant dense<0.000000e+00> : vector<8x8xf32>
    %515 = tpu.matmul %513, %514, %cst_228 {dimension_numbers = #tpu.dot_dimension_numbers<[1], [1], [0], [0], [0, 0, 1, 0], [], []>} : vector<8x8xbf16>, vector<8x8xbf16>, vector<8x8xf32> -> vector<8x8xf32>
    %cst_229 = arith.constant dense<0xFF800000> : vector<8xf32>
    %516 = vector.multi_reduction <maximumf>, %515, %cst_229 [1] : vector<8x8xf32> to vector<8xf32>
    %517 = vector.shape_cast %516 : vector<8xf32> to vector<8x1xf32>
    %518 = vector.broadcast %517 : vector<8x1xf32> to vector<8x8xf32>
    %519 = arith.subf %515, %518 : vector<8x8xf32>
    %520 = math.exp %519 : vector<8x8xf32>
    %cst_230 = arith.constant dense<0.000000e+00> : vector<8xf32>
    %521 = vector.multi_reduction <add>, %520, %cst_230 [1] : vector<8x8xf32> to vector<8xf32>
    %522 = vector.shape_cast %521 : vector<8xf32> to vector<8x1xf32>
    %523 = tpu.reciprocal %522 {approx = true} : vector<8x1xf32> -> vector<8x1xf32>
    %524 = vector.broadcast %523 : vector<8x1xf32> to vector<8x8xf32>
    %525 = arith.mulf %520, %524 : vector<8x8xf32>
    %526 = arith.truncf %525 : vector<8x8xf32> to vector<8x8xbf16>
    %527 = vector.extract_strided_slice %464 {offsets = [0, 24], sizes = [8, 8], strides = [1, 1]} : vector<8x32xbf16> to vector<8x8xbf16>
    %cst_231 = arith.constant dense<0.000000e+00> : vector<8x8xf32>
    %528 = tpu.matmul %526, %527, %cst_231 {dimension_numbers = #tpu.dot_dimension_numbers<[1], [0], [0], [1], [0, 0, 1, 1], [], []>} : vector<8x8xbf16>, vector<8x8xbf16>, vector<8x8xf32> -> vector<8x8xf32>
    %529 = tpu.concatenate %480, %496, %512, %528 in 1 : vector<8x8xf32>, vector<8x8xf32>, vector<8x8xf32>, vector<8x8xf32> -> vector<8x32xf32>
    %530 = arith.truncf %529 : vector<8x32xf32> to vector<8x32xbf16>
    %cst_232 = arith.constant dense<0.000000e+00> : vector<8x32xf32>
    %531 = tpu.matmul %530, %447, %cst_232 {dimension_numbers = #tpu.dot_dimension_numbers<[1], [0], [0], [1], [0, 0, 1, 1], [], []>} : vector<8x32xbf16>, vector<32x32xbf16>, vector<8x32xf32> -> vector<8x32xf32>
    %532 = vector.broadcast %449 : vector<1x32xf32> to vector<8x32xf32>
    %533 = arith.addf %531, %532 : vector<8x32xf32>
    %534 = arith.addf %437, %533 : vector<8x32xf32>
    %c0_233 = arith.constant 0 : index
    %c1_234 = arith.constant 1 : index
    %c0_235 = arith.constant 0 : index
    %c0_236 = arith.constant 0 : index
    %535 = vector.load %arg31[%c0_233, %c1_234, %c0_235, %c0_236] : memref<2x3x1x32xf32, #tpu.memory_space<vmem>>, vector<1x1x1x32xf32>
    %536 = vector.shape_cast %535 : vector<1x1x1x32xf32> to vector<1x32xf32>
    %c0_237 = arith.constant 0 : index
    %c1_238 = arith.constant 1 : index
    %c0_239 = arith.constant 0 : index
    %c0_240 = arith.constant 0 : index
    %537 = vector.load %arg32[%c0_237, %c1_238, %c0_239, %c0_240] : memref<2x3x1x32xf32, #tpu.memory_space<vmem>>, vector<1x1x1x32xf32>
    %538 = vector.shape_cast %537 : vector<1x1x1x32xf32> to vector<1x32xf32>
    %cst_241 = arith.constant dense<0.000000e+00> : vector<8xf32>
    %539 = vector.multi_reduction <add>, %534, %cst_241 [1] : vector<8x32xf32> to vector<8xf32>
    %540 = vector.shape_cast %539 : vector<8xf32> to vector<8x1xf32>
    %cst_242 = arith.constant 3.200000e+01 : f32
    %541 = vector.broadcast %cst_242 : f32 to vector<8x1xf32>
    %542 = arith.divf %540, %541 : vector<8x1xf32>
    %543 = vector.broadcast %542 : vector<8x1xf32> to vector<8x32xf32>
    %544 = arith.subf %534, %543 : vector<8x32xf32>
    %545 = arith.mulf %544, %544 : vector<8x32xf32>
    %cst_243 = arith.constant dense<0.000000e+00> : vector<8xf32>
    %546 = vector.multi_reduction <add>, %545, %cst_243 [1] : vector<8x32xf32> to vector<8xf32>
    %547 = vector.shape_cast %546 : vector<8xf32> to vector<8x1xf32>
    %cst_244 = arith.constant 3.200000e+01 : f32
    %548 = vector.broadcast %cst_244 : f32 to vector<8x1xf32>
    %549 = arith.divf %547, %548 : vector<8x1xf32>
    %cst_245 = arith.constant 9.99999974E-6 : f32
    %550 = vector.broadcast %cst_245 : f32 to vector<8x1xf32>
    %551 = arith.addf %549, %550 : vector<8x1xf32>
    %552 = math.rsqrt %551 : vector<8x1xf32>
    %553 = vector.broadcast %552 : vector<8x1xf32> to vector<8x32xf32>
    %554 = arith.mulf %544, %553 : vector<8x32xf32>
    %555 = vector.broadcast %536 : vector<1x32xf32> to vector<8x32xf32>
    %556 = arith.mulf %554, %555 : vector<8x32xf32>
    %557 = vector.broadcast %538 : vector<1x32xf32> to vector<8x32xf32>
    %558 = arith.addf %556, %557 : vector<8x32xf32>
    %c0_246 = arith.constant 0 : index
    %c0_247 = arith.constant 0 : index
    %c0_248 = arith.constant 0 : index
    %559 = vector.load %arg27[%c0_246, %c0_247, %c0_248] : memref<2x32x2048xbf16, #tpu.memory_space<vmem>>, vector<1x32x2048xbf16>
    %560 = vector.shape_cast %559 : vector<1x32x2048xbf16> to vector<32x2048xbf16>
    %c0_249 = arith.constant 0 : index
    %c0_250 = arith.constant 0 : index
    %c0_251 = arith.constant 0 : index
    %561 = vector.load %arg28[%c0_249, %c0_250, %c0_251] : memref<2x1x2048xf32, #tpu.memory_space<vmem>>, vector<1x1x2048xf32>
    %562 = vector.shape_cast %561 : vector<1x1x2048xf32> to vector<1x2048xf32>
    %c0_252 = arith.constant 0 : index
    %c0_253 = arith.constant 0 : index
    %c0_254 = arith.constant 0 : index
    %563 = vector.load %arg29[%c0_252, %c0_253, %c0_254] : memref<2x2048x32xbf16, #tpu.memory_space<vmem>>, vector<1x2048x32xbf16>
    %564 = vector.shape_cast %563 : vector<1x2048x32xbf16> to vector<2048x32xbf16>
    %c0_255 = arith.constant 0 : index
    %c0_256 = arith.constant 0 : index
    %c0_257 = arith.constant 0 : index
    %565 = vector.load %arg30[%c0_255, %c0_256, %c0_257] : memref<2x1x32xf32, #tpu.memory_space<vmem>>, vector<1x1x32xf32>
    %566 = vector.shape_cast %565 : vector<1x1x32xf32> to vector<1x32xf32>
    %567 = arith.truncf %558 : vector<8x32xf32> to vector<8x32xbf16>
    %cst_258 = arith.constant dense<0.000000e+00> : vector<8x2048xf32>
    %568 = tpu.matmul %567, %560, %cst_258 {dimension_numbers = #tpu.dot_dimension_numbers<[1], [0], [0], [1], [0, 0, 1, 1], [], []>} : vector<8x32xbf16>, vector<32x2048xbf16>, vector<8x2048xf32> -> vector<8x2048xf32>
    %569 = vector.broadcast %562 : vector<1x2048xf32> to vector<8x2048xf32>
    %570 = arith.addf %568, %569 : vector<8x2048xf32>
    %cst_259 = arith.constant 0.000000e+00 : f32
    %571 = vector.broadcast %cst_259 : f32 to vector<8x2048xf32>
    %572 = arith.maximumf %570, %571 : vector<8x2048xf32>
    %573 = arith.truncf %572 : vector<8x2048xf32> to vector<8x2048xbf16>
    %cst_260 = arith.constant dense<0.000000e+00> : vector<8x32xf32>
    %574 = tpu.matmul %573, %564, %cst_260 {dimension_numbers = #tpu.dot_dimension_numbers<[1], [0], [0], [1], [0, 0, 1, 1], [], []>} : vector<8x2048xbf16>, vector<2048x32xbf16>, vector<8x32xf32> -> vector<8x32xf32>
    %575 = vector.broadcast %566 : vector<1x32xf32> to vector<8x32xf32>
    %576 = arith.addf %574, %575 : vector<8x32xf32>
    %577 = arith.addf %558, %576 : vector<8x32xf32>
    %c0_261 = arith.constant 0 : index
    %c2 = arith.constant 2 : index
    %c0_262 = arith.constant 0 : index
    %c0_263 = arith.constant 0 : index
    %578 = vector.load %arg31[%c0_261, %c2, %c0_262, %c0_263] : memref<2x3x1x32xf32, #tpu.memory_space<vmem>>, vector<1x1x1x32xf32>
    %579 = vector.shape_cast %578 : vector<1x1x1x32xf32> to vector<1x32xf32>
    %c0_264 = arith.constant 0 : index
    %c2_265 = arith.constant 2 : index
    %c0_266 = arith.constant 0 : index
    %c0_267 = arith.constant 0 : index
    %580 = vector.load %arg32[%c0_264, %c2_265, %c0_266, %c0_267] : memref<2x3x1x32xf32, #tpu.memory_space<vmem>>, vector<1x1x1x32xf32>
    %581 = vector.shape_cast %580 : vector<1x1x1x32xf32> to vector<1x32xf32>
    %cst_268 = arith.constant dense<0.000000e+00> : vector<8xf32>
    %582 = vector.multi_reduction <add>, %577, %cst_268 [1] : vector<8x32xf32> to vector<8xf32>
    %583 = vector.shape_cast %582 : vector<8xf32> to vector<8x1xf32>
    %cst_269 = arith.constant 3.200000e+01 : f32
    %584 = vector.broadcast %cst_269 : f32 to vector<8x1xf32>
    %585 = arith.divf %583, %584 : vector<8x1xf32>
    %586 = vector.broadcast %585 : vector<8x1xf32> to vector<8x32xf32>
    %587 = arith.subf %577, %586 : vector<8x32xf32>
    %588 = arith.mulf %587, %587 : vector<8x32xf32>
    %cst_270 = arith.constant dense<0.000000e+00> : vector<8xf32>
    %589 = vector.multi_reduction <add>, %588, %cst_270 [1] : vector<8x32xf32> to vector<8xf32>
    %590 = vector.shape_cast %589 : vector<8xf32> to vector<8x1xf32>
    %cst_271 = arith.constant 3.200000e+01 : f32
    %591 = vector.broadcast %cst_271 : f32 to vector<8x1xf32>
    %592 = arith.divf %590, %591 : vector<8x1xf32>
    %cst_272 = arith.constant 9.99999974E-6 : f32
    %593 = vector.broadcast %cst_272 : f32 to vector<8x1xf32>
    %594 = arith.addf %592, %593 : vector<8x1xf32>
    %595 = math.rsqrt %594 : vector<8x1xf32>
    %596 = vector.broadcast %595 : vector<8x1xf32> to vector<8x32xf32>
    %597 = arith.mulf %587, %596 : vector<8x32xf32>
    %598 = vector.broadcast %579 : vector<1x32xf32> to vector<8x32xf32>
    %599 = arith.mulf %597, %598 : vector<8x32xf32>
    %600 = vector.broadcast %581 : vector<1x32xf32> to vector<8x32xf32>
    %601 = arith.addf %599, %600 : vector<8x32xf32>
    %c1_273 = arith.constant 1 : index
    %c0_274 = arith.constant 0 : index
    %c0_275 = arith.constant 0 : index
    %602 = vector.load %arg17[%c1_273, %c0_274, %c0_275] : memref<2x32x96xbf16, #tpu.memory_space<vmem>>, vector<1x32x96xbf16>
    %603 = vector.shape_cast %602 : vector<1x32x96xbf16> to vector<32x96xbf16>
    %c1_276 = arith.constant 1 : index
    %c0_277 = arith.constant 0 : index
    %c0_278 = arith.constant 0 : index
    %604 = vector.load %arg18[%c1_276, %c0_277, %c0_278] : memref<2x1x96xf32, #tpu.memory_space<vmem>>, vector<1x1x96xf32>
    %605 = vector.shape_cast %604 : vector<1x1x96xf32> to vector<1x96xf32>
    %c1_279 = arith.constant 1 : index
    %c0_280 = arith.constant 0 : index
    %c0_281 = arith.constant 0 : index
    %606 = vector.load %arg19[%c1_279, %c0_280, %c0_281] : memref<2x32x32xbf16, #tpu.memory_space<vmem>>, vector<1x32x32xbf16>
    %607 = vector.shape_cast %606 : vector<1x32x32xbf16> to vector<32x32xbf16>
    %c1_282 = arith.constant 1 : index
    %c0_283 = arith.constant 0 : index
    %c0_284 = arith.constant 0 : index
    %608 = vector.load %arg20[%c1_282, %c0_283, %c0_284] : memref<2x1x32xf32, #tpu.memory_space<vmem>>, vector<1x1x32xf32>
    %609 = vector.shape_cast %608 : vector<1x1x32xf32> to vector<1x32xf32>
    %610 = arith.truncf %601 : vector<8x32xf32> to vector<8x32xbf16>
    %cst_285 = arith.constant dense<0.000000e+00> : vector<8x96xf32>
    %611 = tpu.matmul %610, %603, %cst_285 {dimension_numbers = #tpu.dot_dimension_numbers<[1], [0], [0], [1], [0, 0, 1, 1], [], []>} : vector<8x32xbf16>, vector<32x96xbf16>, vector<8x96xf32> -> vector<8x96xf32>
    %612 = vector.broadcast %605 : vector<1x96xf32> to vector<8x96xf32>
    %613 = arith.addf %611, %612 : vector<8x96xf32>
    %614 = vector.extract_strided_slice %613 {offsets = [0, 0], sizes = [8, 32], strides = [1, 1]} : vector<8x96xf32> to vector<8x32xf32>
    %cst_286 = arith.constant 0.353553385 : f32
    %615 = vector.broadcast %cst_286 : f32 to vector<8x32xf32>
    %616 = arith.mulf %614, %615 : vector<8x32xf32>
    %617 = vector.extract_strided_slice %613 {offsets = [0, 32], sizes = [8, 32], strides = [1, 1]} : vector<8x96xf32> to vector<8x32xf32>
    %618 = vector.extract_strided_slice %613 {offsets = [0, 64], sizes = [8, 32], strides = [1, 1]} : vector<8x96xf32> to vector<8x32xf32>
    %619 = arith.truncf %616 : vector<8x32xf32> to vector<8x32xbf16>
    %620 = arith.truncf %617 : vector<8x32xf32> to vector<8x32xbf16>
    %621 = arith.truncf %618 : vector<8x32xf32> to vector<8x32xbf16>
    %622 = vector.extract_strided_slice %619 {offsets = [0, 0], sizes = [8, 8], strides = [1, 1]} : vector<8x32xbf16> to vector<8x8xbf16>
    %623 = vector.extract_strided_slice %620 {offsets = [0, 0], sizes = [8, 8], strides = [1, 1]} : vector<8x32xbf16> to vector<8x8xbf16>
    %cst_287 = arith.constant dense<0.000000e+00> : vector<8x8xf32>
    %624 = tpu.matmul %622, %623, %cst_287 {dimension_numbers = #tpu.dot_dimension_numbers<[1], [1], [0], [0], [0, 0, 1, 0], [], []>} : vector<8x8xbf16>, vector<8x8xbf16>, vector<8x8xf32> -> vector<8x8xf32>
    %cst_288 = arith.constant dense<0xFF800000> : vector<8xf32>
    %625 = vector.multi_reduction <maximumf>, %624, %cst_288 [1] : vector<8x8xf32> to vector<8xf32>
    %626 = vector.shape_cast %625 : vector<8xf32> to vector<8x1xf32>
    %627 = vector.broadcast %626 : vector<8x1xf32> to vector<8x8xf32>
    %628 = arith.subf %624, %627 : vector<8x8xf32>
    %629 = math.exp %628 : vector<8x8xf32>
    %cst_289 = arith.constant dense<0.000000e+00> : vector<8xf32>
    %630 = vector.multi_reduction <add>, %629, %cst_289 [1] : vector<8x8xf32> to vector<8xf32>
    %631 = vector.shape_cast %630 : vector<8xf32> to vector<8x1xf32>
    %632 = tpu.reciprocal %631 {approx = true} : vector<8x1xf32> -> vector<8x1xf32>
    %633 = vector.broadcast %632 : vector<8x1xf32> to vector<8x8xf32>
    %634 = arith.mulf %629, %633 : vector<8x8xf32>
    %635 = arith.truncf %634 : vector<8x8xf32> to vector<8x8xbf16>
    %636 = vector.extract_strided_slice %621 {offsets = [0, 0], sizes = [8, 8], strides = [1, 1]} : vector<8x32xbf16> to vector<8x8xbf16>
    %cst_290 = arith.constant dense<0.000000e+00> : vector<8x8xf32>
    %637 = tpu.matmul %635, %636, %cst_290 {dimension_numbers = #tpu.dot_dimension_numbers<[1], [0], [0], [1], [0, 0, 1, 1], [], []>} : vector<8x8xbf16>, vector<8x8xbf16>, vector<8x8xf32> -> vector<8x8xf32>
    %638 = vector.extract_strided_slice %619 {offsets = [0, 8], sizes = [8, 8], strides = [1, 1]} : vector<8x32xbf16> to vector<8x8xbf16>
    %639 = vector.extract_strided_slice %620 {offsets = [0, 8], sizes = [8, 8], strides = [1, 1]} : vector<8x32xbf16> to vector<8x8xbf16>
    %cst_291 = arith.constant dense<0.000000e+00> : vector<8x8xf32>
    %640 = tpu.matmul %638, %639, %cst_291 {dimension_numbers = #tpu.dot_dimension_numbers<[1], [1], [0], [0], [0, 0, 1, 0], [], []>} : vector<8x8xbf16>, vector<8x8xbf16>, vector<8x8xf32> -> vector<8x8xf32>
    %cst_292 = arith.constant dense<0xFF800000> : vector<8xf32>
    %641 = vector.multi_reduction <maximumf>, %640, %cst_292 [1] : vector<8x8xf32> to vector<8xf32>
    %642 = vector.shape_cast %641 : vector<8xf32> to vector<8x1xf32>
    %643 = vector.broadcast %642 : vector<8x1xf32> to vector<8x8xf32>
    %644 = arith.subf %640, %643 : vector<8x8xf32>
    %645 = math.exp %644 : vector<8x8xf32>
    %cst_293 = arith.constant dense<0.000000e+00> : vector<8xf32>
    %646 = vector.multi_reduction <add>, %645, %cst_293 [1] : vector<8x8xf32> to vector<8xf32>
    %647 = vector.shape_cast %646 : vector<8xf32> to vector<8x1xf32>
    %648 = tpu.reciprocal %647 {approx = true} : vector<8x1xf32> -> vector<8x1xf32>
    %649 = vector.broadcast %648 : vector<8x1xf32> to vector<8x8xf32>
    %650 = arith.mulf %645, %649 : vector<8x8xf32>
    %651 = arith.truncf %650 : vector<8x8xf32> to vector<8x8xbf16>
    %652 = vector.extract_strided_slice %621 {offsets = [0, 8], sizes = [8, 8], strides = [1, 1]} : vector<8x32xbf16> to vector<8x8xbf16>
    %cst_294 = arith.constant dense<0.000000e+00> : vector<8x8xf32>
    %653 = tpu.matmul %651, %652, %cst_294 {dimension_numbers = #tpu.dot_dimension_numbers<[1], [0], [0], [1], [0, 0, 1, 1], [], []>} : vector<8x8xbf16>, vector<8x8xbf16>, vector<8x8xf32> -> vector<8x8xf32>
    %654 = vector.extract_strided_slice %619 {offsets = [0, 16], sizes = [8, 8], strides = [1, 1]} : vector<8x32xbf16> to vector<8x8xbf16>
    %655 = vector.extract_strided_slice %620 {offsets = [0, 16], sizes = [8, 8], strides = [1, 1]} : vector<8x32xbf16> to vector<8x8xbf16>
    %cst_295 = arith.constant dense<0.000000e+00> : vector<8x8xf32>
    %656 = tpu.matmul %654, %655, %cst_295 {dimension_numbers = #tpu.dot_dimension_numbers<[1], [1], [0], [0], [0, 0, 1, 0], [], []>} : vector<8x8xbf16>, vector<8x8xbf16>, vector<8x8xf32> -> vector<8x8xf32>
    %cst_296 = arith.constant dense<0xFF800000> : vector<8xf32>
    %657 = vector.multi_reduction <maximumf>, %656, %cst_296 [1] : vector<8x8xf32> to vector<8xf32>
    %658 = vector.shape_cast %657 : vector<8xf32> to vector<8x1xf32>
    %659 = vector.broadcast %658 : vector<8x1xf32> to vector<8x8xf32>
    %660 = arith.subf %656, %659 : vector<8x8xf32>
    %661 = math.exp %660 : vector<8x8xf32>
    %cst_297 = arith.constant dense<0.000000e+00> : vector<8xf32>
    %662 = vector.multi_reduction <add>, %661, %cst_297 [1] : vector<8x8xf32> to vector<8xf32>
    %663 = vector.shape_cast %662 : vector<8xf32> to vector<8x1xf32>
    %664 = tpu.reciprocal %663 {approx = true} : vector<8x1xf32> -> vector<8x1xf32>
    %665 = vector.broadcast %664 : vector<8x1xf32> to vector<8x8xf32>
    %666 = arith.mulf %661, %665 : vector<8x8xf32>
    %667 = arith.truncf %666 : vector<8x8xf32> to vector<8x8xbf16>
    %668 = vector.extract_strided_slice %621 {offsets = [0, 16], sizes = [8, 8], strides = [1, 1]} : vector<8x32xbf16> to vector<8x8xbf16>
    %cst_298 = arith.constant dense<0.000000e+00> : vector<8x8xf32>
    %669 = tpu.matmul %667, %668, %cst_298 {dimension_numbers = #tpu.dot_dimension_numbers<[1], [0], [0], [1], [0, 0, 1, 1], [], []>} : vector<8x8xbf16>, vector<8x8xbf16>, vector<8x8xf32> -> vector<8x8xf32>
    %670 = vector.extract_strided_slice %619 {offsets = [0, 24], sizes = [8, 8], strides = [1, 1]} : vector<8x32xbf16> to vector<8x8xbf16>
    %671 = vector.extract_strided_slice %620 {offsets = [0, 24], sizes = [8, 8], strides = [1, 1]} : vector<8x32xbf16> to vector<8x8xbf16>
    %cst_299 = arith.constant dense<0.000000e+00> : vector<8x8xf32>
    %672 = tpu.matmul %670, %671, %cst_299 {dimension_numbers = #tpu.dot_dimension_numbers<[1], [1], [0], [0], [0, 0, 1, 0], [], []>} : vector<8x8xbf16>, vector<8x8xbf16>, vector<8x8xf32> -> vector<8x8xf32>
    %cst_300 = arith.constant dense<0xFF800000> : vector<8xf32>
    %673 = vector.multi_reduction <maximumf>, %672, %cst_300 [1] : vector<8x8xf32> to vector<8xf32>
    %674 = vector.shape_cast %673 : vector<8xf32> to vector<8x1xf32>
    %675 = vector.broadcast %674 : vector<8x1xf32> to vector<8x8xf32>
    %676 = arith.subf %672, %675 : vector<8x8xf32>
    %677 = math.exp %676 : vector<8x8xf32>
    %cst_301 = arith.constant dense<0.000000e+00> : vector<8xf32>
    %678 = vector.multi_reduction <add>, %677, %cst_301 [1] : vector<8x8xf32> to vector<8xf32>
    %679 = vector.shape_cast %678 : vector<8xf32> to vector<8x1xf32>
    %680 = tpu.reciprocal %679 {approx = true} : vector<8x1xf32> -> vector<8x1xf32>
    %681 = vector.broadcast %680 : vector<8x1xf32> to vector<8x8xf32>
    %682 = arith.mulf %677, %681 : vector<8x8xf32>
    %683 = arith.truncf %682 : vector<8x8xf32> to vector<8x8xbf16>
    %684 = vector.extract_strided_slice %621 {offsets = [0, 24], sizes = [8, 8], strides = [1, 1]} : vector<8x32xbf16> to vector<8x8xbf16>
    %cst_302 = arith.constant dense<0.000000e+00> : vector<8x8xf32>
    %685 = tpu.matmul %683, %684, %cst_302 {dimension_numbers = #tpu.dot_dimension_numbers<[1], [0], [0], [1], [0, 0, 1, 1], [], []>} : vector<8x8xbf16>, vector<8x8xbf16>, vector<8x8xf32> -> vector<8x8xf32>
    %686 = tpu.concatenate %637, %653, %669, %685 in 1 : vector<8x8xf32>, vector<8x8xf32>, vector<8x8xf32>, vector<8x8xf32> -> vector<8x32xf32>
    %687 = arith.truncf %686 : vector<8x32xf32> to vector<8x32xbf16>
    %cst_303 = arith.constant dense<0.000000e+00> : vector<8x32xf32>
    %688 = tpu.matmul %687, %607, %cst_303 {dimension_numbers = #tpu.dot_dimension_numbers<[1], [0], [0], [1], [0, 0, 1, 1], [], []>} : vector<8x32xbf16>, vector<32x32xbf16>, vector<8x32xf32> -> vector<8x32xf32>
    %689 = vector.broadcast %609 : vector<1x32xf32> to vector<8x32xf32>
    %690 = arith.addf %688, %689 : vector<8x32xf32>
    %691 = arith.addf %601, %690 : vector<8x32xf32>
    %c1_304 = arith.constant 1 : index
    %c0_305 = arith.constant 0 : index
    %c0_306 = arith.constant 0 : index
    %c0_307 = arith.constant 0 : index
    %692 = vector.load %arg31[%c1_304, %c0_305, %c0_306, %c0_307] : memref<2x3x1x32xf32, #tpu.memory_space<vmem>>, vector<1x1x1x32xf32>
    %693 = vector.shape_cast %692 : vector<1x1x1x32xf32> to vector<1x32xf32>
    %c1_308 = arith.constant 1 : index
    %c0_309 = arith.constant 0 : index
    %c0_310 = arith.constant 0 : index
    %c0_311 = arith.constant 0 : index
    %694 = vector.load %arg32[%c1_308, %c0_309, %c0_310, %c0_311] : memref<2x3x1x32xf32, #tpu.memory_space<vmem>>, vector<1x1x1x32xf32>
    %695 = vector.shape_cast %694 : vector<1x1x1x32xf32> to vector<1x32xf32>
    %cst_312 = arith.constant dense<0.000000e+00> : vector<8xf32>
    %696 = vector.multi_reduction <add>, %691, %cst_312 [1] : vector<8x32xf32> to vector<8xf32>
    %697 = vector.shape_cast %696 : vector<8xf32> to vector<8x1xf32>
    %cst_313 = arith.constant 3.200000e+01 : f32
    %698 = vector.broadcast %cst_313 : f32 to vector<8x1xf32>
    %699 = arith.divf %697, %698 : vector<8x1xf32>
    %700 = vector.broadcast %699 : vector<8x1xf32> to vector<8x32xf32>
    %701 = arith.subf %691, %700 : vector<8x32xf32>
    %702 = arith.mulf %701, %701 : vector<8x32xf32>
    %cst_314 = arith.constant dense<0.000000e+00> : vector<8xf32>
    %703 = vector.multi_reduction <add>, %702, %cst_314 [1] : vector<8x32xf32> to vector<8xf32>
    %704 = vector.shape_cast %703 : vector<8xf32> to vector<8x1xf32>
    %cst_315 = arith.constant 3.200000e+01 : f32
    %705 = vector.broadcast %cst_315 : f32 to vector<8x1xf32>
    %706 = arith.divf %704, %705 : vector<8x1xf32>
    %cst_316 = arith.constant 9.99999974E-6 : f32
    %707 = vector.broadcast %cst_316 : f32 to vector<8x1xf32>
    %708 = arith.addf %706, %707 : vector<8x1xf32>
    %709 = math.rsqrt %708 : vector<8x1xf32>
    %710 = vector.broadcast %709 : vector<8x1xf32> to vector<8x32xf32>
    %711 = arith.mulf %701, %710 : vector<8x32xf32>
    %712 = vector.broadcast %693 : vector<1x32xf32> to vector<8x32xf32>
    %713 = arith.mulf %711, %712 : vector<8x32xf32>
    %714 = vector.broadcast %695 : vector<1x32xf32> to vector<8x32xf32>
    %715 = arith.addf %713, %714 : vector<8x32xf32>
    %c1_317 = arith.constant 1 : index
    %c0_318 = arith.constant 0 : index
    %c0_319 = arith.constant 0 : index
    %716 = vector.load %arg21[%c1_317, %c0_318, %c0_319] : memref<2x32x32xbf16, #tpu.memory_space<vmem>>, vector<1x32x32xbf16>
    %717 = vector.shape_cast %716 : vector<1x32x32xbf16> to vector<32x32xbf16>
    %c1_320 = arith.constant 1 : index
    %c0_321 = arith.constant 0 : index
    %c0_322 = arith.constant 0 : index
    %718 = vector.load %arg22[%c1_320, %c0_321, %c0_322] : memref<2x1x32xf32, #tpu.memory_space<vmem>>, vector<1x1x32xf32>
    %719 = vector.shape_cast %718 : vector<1x1x32xf32> to vector<1x32xf32>
    %c1_323 = arith.constant 1 : index
    %c0_324 = arith.constant 0 : index
    %c0_325 = arith.constant 0 : index
    %720 = vector.load %arg23[%c1_323, %c0_324, %c0_325] : memref<2x32x64xbf16, #tpu.memory_space<vmem>>, vector<1x32x64xbf16>
    %721 = vector.shape_cast %720 : vector<1x32x64xbf16> to vector<32x64xbf16>
    %c1_326 = arith.constant 1 : index
    %c0_327 = arith.constant 0 : index
    %c0_328 = arith.constant 0 : index
    %722 = vector.load %arg24[%c1_326, %c0_327, %c0_328] : memref<2x1x64xf32, #tpu.memory_space<vmem>>, vector<1x1x64xf32>
    %723 = vector.shape_cast %722 : vector<1x1x64xf32> to vector<1x64xf32>
    %c1_329 = arith.constant 1 : index
    %c0_330 = arith.constant 0 : index
    %c0_331 = arith.constant 0 : index
    %724 = vector.load %arg25[%c1_329, %c0_330, %c0_331] : memref<2x32x32xbf16, #tpu.memory_space<vmem>>, vector<1x32x32xbf16>
    %725 = vector.shape_cast %724 : vector<1x32x32xbf16> to vector<32x32xbf16>
    %c1_332 = arith.constant 1 : index
    %c0_333 = arith.constant 0 : index
    %c0_334 = arith.constant 0 : index
    %726 = vector.load %arg26[%c1_332, %c0_333, %c0_334] : memref<2x1x32xf32, #tpu.memory_space<vmem>>, vector<1x1x32xf32>
    %727 = vector.shape_cast %726 : vector<1x1x32xf32> to vector<1x32xf32>
    %728 = arith.truncf %715 : vector<8x32xf32> to vector<8x32xbf16>
    %cst_335 = arith.constant dense<0.000000e+00> : vector<8x32xf32>
    %729 = tpu.matmul %728, %717, %cst_335 {dimension_numbers = #tpu.dot_dimension_numbers<[1], [0], [0], [1], [0, 0, 1, 1], [], []>} : vector<8x32xbf16>, vector<32x32xbf16>, vector<8x32xf32> -> vector<8x32xf32>
    %730 = vector.broadcast %719 : vector<1x32xf32> to vector<8x32xf32>
    %731 = arith.addf %729, %730 : vector<8x32xf32>
    %cst_336 = arith.constant 0.353553385 : f32
    %732 = vector.broadcast %cst_336 : f32 to vector<8x32xf32>
    %733 = arith.mulf %731, %732 : vector<8x32xf32>
    %734 = arith.truncf %323 : vector<8x32xf32> to vector<8x32xbf16>
    %cst_337 = arith.constant dense<0.000000e+00> : vector<8x64xf32>
    %735 = tpu.matmul %734, %721, %cst_337 {dimension_numbers = #tpu.dot_dimension_numbers<[1], [0], [0], [1], [0, 0, 1, 1], [], []>} : vector<8x32xbf16>, vector<32x64xbf16>, vector<8x64xf32> -> vector<8x64xf32>
    %736 = vector.broadcast %723 : vector<1x64xf32> to vector<8x64xf32>
    %737 = arith.addf %735, %736 : vector<8x64xf32>
    %738 = vector.extract_strided_slice %737 {offsets = [0, 0], sizes = [8, 32], strides = [1, 1]} : vector<8x64xf32> to vector<8x32xf32>
    %739 = vector.extract_strided_slice %737 {offsets = [0, 32], sizes = [8, 32], strides = [1, 1]} : vector<8x64xf32> to vector<8x32xf32>
    %740 = arith.truncf %733 : vector<8x32xf32> to vector<8x32xbf16>
    %741 = arith.truncf %738 : vector<8x32xf32> to vector<8x32xbf16>
    %742 = arith.truncf %739 : vector<8x32xf32> to vector<8x32xbf16>
    %743 = vector.extract_strided_slice %740 {offsets = [0, 0], sizes = [8, 8], strides = [1, 1]} : vector<8x32xbf16> to vector<8x8xbf16>
    %744 = vector.extract_strided_slice %741 {offsets = [0, 0], sizes = [8, 8], strides = [1, 1]} : vector<8x32xbf16> to vector<8x8xbf16>
    %cst_338 = arith.constant dense<0.000000e+00> : vector<8x8xf32>
    %745 = tpu.matmul %743, %744, %cst_338 {dimension_numbers = #tpu.dot_dimension_numbers<[1], [1], [0], [0], [0, 0, 1, 0], [], []>} : vector<8x8xbf16>, vector<8x8xbf16>, vector<8x8xf32> -> vector<8x8xf32>
    %cst_339 = arith.constant dense<0xFF800000> : vector<8xf32>
    %746 = vector.multi_reduction <maximumf>, %745, %cst_339 [1] : vector<8x8xf32> to vector<8xf32>
    %747 = vector.shape_cast %746 : vector<8xf32> to vector<8x1xf32>
    %748 = vector.broadcast %747 : vector<8x1xf32> to vector<8x8xf32>
    %749 = arith.subf %745, %748 : vector<8x8xf32>
    %750 = math.exp %749 : vector<8x8xf32>
    %cst_340 = arith.constant dense<0.000000e+00> : vector<8xf32>
    %751 = vector.multi_reduction <add>, %750, %cst_340 [1] : vector<8x8xf32> to vector<8xf32>
    %752 = vector.shape_cast %751 : vector<8xf32> to vector<8x1xf32>
    %753 = tpu.reciprocal %752 {approx = true} : vector<8x1xf32> -> vector<8x1xf32>
    %754 = vector.broadcast %753 : vector<8x1xf32> to vector<8x8xf32>
    %755 = arith.mulf %750, %754 : vector<8x8xf32>
    %756 = arith.truncf %755 : vector<8x8xf32> to vector<8x8xbf16>
    %757 = vector.extract_strided_slice %742 {offsets = [0, 0], sizes = [8, 8], strides = [1, 1]} : vector<8x32xbf16> to vector<8x8xbf16>
    %cst_341 = arith.constant dense<0.000000e+00> : vector<8x8xf32>
    %758 = tpu.matmul %756, %757, %cst_341 {dimension_numbers = #tpu.dot_dimension_numbers<[1], [0], [0], [1], [0, 0, 1, 1], [], []>} : vector<8x8xbf16>, vector<8x8xbf16>, vector<8x8xf32> -> vector<8x8xf32>
    %759 = vector.extract_strided_slice %740 {offsets = [0, 8], sizes = [8, 8], strides = [1, 1]} : vector<8x32xbf16> to vector<8x8xbf16>
    %760 = vector.extract_strided_slice %741 {offsets = [0, 8], sizes = [8, 8], strides = [1, 1]} : vector<8x32xbf16> to vector<8x8xbf16>
    %cst_342 = arith.constant dense<0.000000e+00> : vector<8x8xf32>
    %761 = tpu.matmul %759, %760, %cst_342 {dimension_numbers = #tpu.dot_dimension_numbers<[1], [1], [0], [0], [0, 0, 1, 0], [], []>} : vector<8x8xbf16>, vector<8x8xbf16>, vector<8x8xf32> -> vector<8x8xf32>
    %cst_343 = arith.constant dense<0xFF800000> : vector<8xf32>
    %762 = vector.multi_reduction <maximumf>, %761, %cst_343 [1] : vector<8x8xf32> to vector<8xf32>
    %763 = vector.shape_cast %762 : vector<8xf32> to vector<8x1xf32>
    %764 = vector.broadcast %763 : vector<8x1xf32> to vector<8x8xf32>
    %765 = arith.subf %761, %764 : vector<8x8xf32>
    %766 = math.exp %765 : vector<8x8xf32>
    %cst_344 = arith.constant dense<0.000000e+00> : vector<8xf32>
    %767 = vector.multi_reduction <add>, %766, %cst_344 [1] : vector<8x8xf32> to vector<8xf32>
    %768 = vector.shape_cast %767 : vector<8xf32> to vector<8x1xf32>
    %769 = tpu.reciprocal %768 {approx = true} : vector<8x1xf32> -> vector<8x1xf32>
    %770 = vector.broadcast %769 : vector<8x1xf32> to vector<8x8xf32>
    %771 = arith.mulf %766, %770 : vector<8x8xf32>
    %772 = arith.truncf %771 : vector<8x8xf32> to vector<8x8xbf16>
    %773 = vector.extract_strided_slice %742 {offsets = [0, 8], sizes = [8, 8], strides = [1, 1]} : vector<8x32xbf16> to vector<8x8xbf16>
    %cst_345 = arith.constant dense<0.000000e+00> : vector<8x8xf32>
    %774 = tpu.matmul %772, %773, %cst_345 {dimension_numbers = #tpu.dot_dimension_numbers<[1], [0], [0], [1], [0, 0, 1, 1], [], []>} : vector<8x8xbf16>, vector<8x8xbf16>, vector<8x8xf32> -> vector<8x8xf32>
    %775 = vector.extract_strided_slice %740 {offsets = [0, 16], sizes = [8, 8], strides = [1, 1]} : vector<8x32xbf16> to vector<8x8xbf16>
    %776 = vector.extract_strided_slice %741 {offsets = [0, 16], sizes = [8, 8], strides = [1, 1]} : vector<8x32xbf16> to vector<8x8xbf16>
    %cst_346 = arith.constant dense<0.000000e+00> : vector<8x8xf32>
    %777 = tpu.matmul %775, %776, %cst_346 {dimension_numbers = #tpu.dot_dimension_numbers<[1], [1], [0], [0], [0, 0, 1, 0], [], []>} : vector<8x8xbf16>, vector<8x8xbf16>, vector<8x8xf32> -> vector<8x8xf32>
    %cst_347 = arith.constant dense<0xFF800000> : vector<8xf32>
    %778 = vector.multi_reduction <maximumf>, %777, %cst_347 [1] : vector<8x8xf32> to vector<8xf32>
    %779 = vector.shape_cast %778 : vector<8xf32> to vector<8x1xf32>
    %780 = vector.broadcast %779 : vector<8x1xf32> to vector<8x8xf32>
    %781 = arith.subf %777, %780 : vector<8x8xf32>
    %782 = math.exp %781 : vector<8x8xf32>
    %cst_348 = arith.constant dense<0.000000e+00> : vector<8xf32>
    %783 = vector.multi_reduction <add>, %782, %cst_348 [1] : vector<8x8xf32> to vector<8xf32>
    %784 = vector.shape_cast %783 : vector<8xf32> to vector<8x1xf32>
    %785 = tpu.reciprocal %784 {approx = true} : vector<8x1xf32> -> vector<8x1xf32>
    %786 = vector.broadcast %785 : vector<8x1xf32> to vector<8x8xf32>
    %787 = arith.mulf %782, %786 : vector<8x8xf32>
    %788 = arith.truncf %787 : vector<8x8xf32> to vector<8x8xbf16>
    %789 = vector.extract_strided_slice %742 {offsets = [0, 16], sizes = [8, 8], strides = [1, 1]} : vector<8x32xbf16> to vector<8x8xbf16>
    %cst_349 = arith.constant dense<0.000000e+00> : vector<8x8xf32>
    %790 = tpu.matmul %788, %789, %cst_349 {dimension_numbers = #tpu.dot_dimension_numbers<[1], [0], [0], [1], [0, 0, 1, 1], [], []>} : vector<8x8xbf16>, vector<8x8xbf16>, vector<8x8xf32> -> vector<8x8xf32>
    %791 = vector.extract_strided_slice %740 {offsets = [0, 24], sizes = [8, 8], strides = [1, 1]} : vector<8x32xbf16> to vector<8x8xbf16>
    %792 = vector.extract_strided_slice %741 {offsets = [0, 24], sizes = [8, 8], strides = [1, 1]} : vector<8x32xbf16> to vector<8x8xbf16>
    %cst_350 = arith.constant dense<0.000000e+00> : vector<8x8xf32>
    %793 = tpu.matmul %791, %792, %cst_350 {dimension_numbers = #tpu.dot_dimension_numbers<[1], [1], [0], [0], [0, 0, 1, 0], [], []>} : vector<8x8xbf16>, vector<8x8xbf16>, vector<8x8xf32> -> vector<8x8xf32>
    %cst_351 = arith.constant dense<0xFF800000> : vector<8xf32>
    %794 = vector.multi_reduction <maximumf>, %793, %cst_351 [1] : vector<8x8xf32> to vector<8xf32>
    %795 = vector.shape_cast %794 : vector<8xf32> to vector<8x1xf32>
    %796 = vector.broadcast %795 : vector<8x1xf32> to vector<8x8xf32>
    %797 = arith.subf %793, %796 : vector<8x8xf32>
    %798 = math.exp %797 : vector<8x8xf32>
    %cst_352 = arith.constant dense<0.000000e+00> : vector<8xf32>
    %799 = vector.multi_reduction <add>, %798, %cst_352 [1] : vector<8x8xf32> to vector<8xf32>
    %800 = vector.shape_cast %799 : vector<8xf32> to vector<8x1xf32>
    %801 = tpu.reciprocal %800 {approx = true} : vector<8x1xf32> -> vector<8x1xf32>
    %802 = vector.broadcast %801 : vector<8x1xf32> to vector<8x8xf32>
    %803 = arith.mulf %798, %802 : vector<8x8xf32>
    %804 = arith.truncf %803 : vector<8x8xf32> to vector<8x8xbf16>
    %805 = vector.extract_strided_slice %742 {offsets = [0, 24], sizes = [8, 8], strides = [1, 1]} : vector<8x32xbf16> to vector<8x8xbf16>
    %cst_353 = arith.constant dense<0.000000e+00> : vector<8x8xf32>
    %806 = tpu.matmul %804, %805, %cst_353 {dimension_numbers = #tpu.dot_dimension_numbers<[1], [0], [0], [1], [0, 0, 1, 1], [], []>} : vector<8x8xbf16>, vector<8x8xbf16>, vector<8x8xf32> -> vector<8x8xf32>
    %807 = tpu.concatenate %758, %774, %790, %806 in 1 : vector<8x8xf32>, vector<8x8xf32>, vector<8x8xf32>, vector<8x8xf32> -> vector<8x32xf32>
    %808 = arith.truncf %807 : vector<8x32xf32> to vector<8x32xbf16>
    %cst_354 = arith.constant dense<0.000000e+00> : vector<8x32xf32>
    %809 = tpu.matmul %808, %725, %cst_354 {dimension_numbers = #tpu.dot_dimension_numbers<[1], [0], [0], [1], [0, 0, 1, 1], [], []>} : vector<8x32xbf16>, vector<32x32xbf16>, vector<8x32xf32> -> vector<8x32xf32>
    %810 = vector.broadcast %727 : vector<1x32xf32> to vector<8x32xf32>
    %811 = arith.addf %809, %810 : vector<8x32xf32>
    %812 = arith.addf %715, %811 : vector<8x32xf32>
    %c1_355 = arith.constant 1 : index
    %c1_356 = arith.constant 1 : index
    %c0_357 = arith.constant 0 : index
    %c0_358 = arith.constant 0 : index
    %813 = vector.load %arg31[%c1_355, %c1_356, %c0_357, %c0_358] : memref<2x3x1x32xf32, #tpu.memory_space<vmem>>, vector<1x1x1x32xf32>
    %814 = vector.shape_cast %813 : vector<1x1x1x32xf32> to vector<1x32xf32>
    %c1_359 = arith.constant 1 : index
    %c1_360 = arith.constant 1 : index
    %c0_361 = arith.constant 0 : index
    %c0_362 = arith.constant 0 : index
    %815 = vector.load %arg32[%c1_359, %c1_360, %c0_361, %c0_362] : memref<2x3x1x32xf32, #tpu.memory_space<vmem>>, vector<1x1x1x32xf32>
    %816 = vector.shape_cast %815 : vector<1x1x1x32xf32> to vector<1x32xf32>
    %cst_363 = arith.constant dense<0.000000e+00> : vector<8xf32>
    %817 = vector.multi_reduction <add>, %812, %cst_363 [1] : vector<8x32xf32> to vector<8xf32>
    %818 = vector.shape_cast %817 : vector<8xf32> to vector<8x1xf32>
    %cst_364 = arith.constant 3.200000e+01 : f32
    %819 = vector.broadcast %cst_364 : f32 to vector<8x1xf32>
    %820 = arith.divf %818, %819 : vector<8x1xf32>
    %821 = vector.broadcast %820 : vector<8x1xf32> to vector<8x32xf32>
    %822 = arith.subf %812, %821 : vector<8x32xf32>
    %823 = arith.mulf %822, %822 : vector<8x32xf32>
    %cst_365 = arith.constant dense<0.000000e+00> : vector<8xf32>
    %824 = vector.multi_reduction <add>, %823, %cst_365 [1] : vector<8x32xf32> to vector<8xf32>
    %825 = vector.shape_cast %824 : vector<8xf32> to vector<8x1xf32>
    %cst_366 = arith.constant 3.200000e+01 : f32
    %826 = vector.broadcast %cst_366 : f32 to vector<8x1xf32>
    %827 = arith.divf %825, %826 : vector<8x1xf32>
    %cst_367 = arith.constant 9.99999974E-6 : f32
    %828 = vector.broadcast %cst_367 : f32 to vector<8x1xf32>
    %829 = arith.addf %827, %828 : vector<8x1xf32>
    %830 = math.rsqrt %829 : vector<8x1xf32>
    %831 = vector.broadcast %830 : vector<8x1xf32> to vector<8x32xf32>
    %832 = arith.mulf %822, %831 : vector<8x32xf32>
    %833 = vector.broadcast %814 : vector<1x32xf32> to vector<8x32xf32>
    %834 = arith.mulf %832, %833 : vector<8x32xf32>
    %835 = vector.broadcast %816 : vector<1x32xf32> to vector<8x32xf32>
    %836 = arith.addf %834, %835 : vector<8x32xf32>
    %c1_368 = arith.constant 1 : index
    %c0_369 = arith.constant 0 : index
    %c0_370 = arith.constant 0 : index
    %837 = vector.load %arg27[%c1_368, %c0_369, %c0_370] : memref<2x32x2048xbf16, #tpu.memory_space<vmem>>, vector<1x32x2048xbf16>
    %838 = vector.shape_cast %837 : vector<1x32x2048xbf16> to vector<32x2048xbf16>
    %c1_371 = arith.constant 1 : index
    %c0_372 = arith.constant 0 : index
    %c0_373 = arith.constant 0 : index
    %839 = vector.load %arg28[%c1_371, %c0_372, %c0_373] : memref<2x1x2048xf32, #tpu.memory_space<vmem>>, vector<1x1x2048xf32>
    %840 = vector.shape_cast %839 : vector<1x1x2048xf32> to vector<1x2048xf32>
    %c1_374 = arith.constant 1 : index
    %c0_375 = arith.constant 0 : index
    %c0_376 = arith.constant 0 : index
    %841 = vector.load %arg29[%c1_374, %c0_375, %c0_376] : memref<2x2048x32xbf16, #tpu.memory_space<vmem>>, vector<1x2048x32xbf16>
    %842 = vector.shape_cast %841 : vector<1x2048x32xbf16> to vector<2048x32xbf16>
    %c1_377 = arith.constant 1 : index
    %c0_378 = arith.constant 0 : index
    %c0_379 = arith.constant 0 : index
    %843 = vector.load %arg30[%c1_377, %c0_378, %c0_379] : memref<2x1x32xf32, #tpu.memory_space<vmem>>, vector<1x1x32xf32>
    %844 = vector.shape_cast %843 : vector<1x1x32xf32> to vector<1x32xf32>
    %845 = arith.truncf %836 : vector<8x32xf32> to vector<8x32xbf16>
    %cst_380 = arith.constant dense<0.000000e+00> : vector<8x2048xf32>
    %846 = tpu.matmul %845, %838, %cst_380 {dimension_numbers = #tpu.dot_dimension_numbers<[1], [0], [0], [1], [0, 0, 1, 1], [], []>} : vector<8x32xbf16>, vector<32x2048xbf16>, vector<8x2048xf32> -> vector<8x2048xf32>
    %847 = vector.broadcast %840 : vector<1x2048xf32> to vector<8x2048xf32>
    %848 = arith.addf %846, %847 : vector<8x2048xf32>
    %cst_381 = arith.constant 0.000000e+00 : f32
    %849 = vector.broadcast %cst_381 : f32 to vector<8x2048xf32>
    %850 = arith.maximumf %848, %849 : vector<8x2048xf32>
    %851 = arith.truncf %850 : vector<8x2048xf32> to vector<8x2048xbf16>
    %cst_382 = arith.constant dense<0.000000e+00> : vector<8x32xf32>
    %852 = tpu.matmul %851, %842, %cst_382 {dimension_numbers = #tpu.dot_dimension_numbers<[1], [0], [0], [1], [0, 0, 1, 1], [], []>} : vector<8x2048xbf16>, vector<2048x32xbf16>, vector<8x32xf32> -> vector<8x32xf32>
    %853 = vector.broadcast %844 : vector<1x32xf32> to vector<8x32xf32>
    %854 = arith.addf %852, %853 : vector<8x32xf32>
    %855 = arith.addf %836, %854 : vector<8x32xf32>
    %c1_383 = arith.constant 1 : index
    %c2_384 = arith.constant 2 : index
    %c0_385 = arith.constant 0 : index
    %c0_386 = arith.constant 0 : index
    %856 = vector.load %arg31[%c1_383, %c2_384, %c0_385, %c0_386] : memref<2x3x1x32xf32, #tpu.memory_space<vmem>>, vector<1x1x1x32xf32>
    %857 = vector.shape_cast %856 : vector<1x1x1x32xf32> to vector<1x32xf32>
    %c1_387 = arith.constant 1 : index
    %c2_388 = arith.constant 2 : index
    %c0_389 = arith.constant 0 : index
    %c0_390 = arith.constant 0 : index
    %858 = vector.load %arg32[%c1_387, %c2_388, %c0_389, %c0_390] : memref<2x3x1x32xf32, #tpu.memory_space<vmem>>, vector<1x1x1x32xf32>
    %859 = vector.shape_cast %858 : vector<1x1x1x32xf32> to vector<1x32xf32>
    %cst_391 = arith.constant dense<0.000000e+00> : vector<8xf32>
    %860 = vector.multi_reduction <add>, %855, %cst_391 [1] : vector<8x32xf32> to vector<8xf32>
    %861 = vector.shape_cast %860 : vector<8xf32> to vector<8x1xf32>
    %cst_392 = arith.constant 3.200000e+01 : f32
    %862 = vector.broadcast %cst_392 : f32 to vector<8x1xf32>
    %863 = arith.divf %861, %862 : vector<8x1xf32>
    %864 = vector.broadcast %863 : vector<8x1xf32> to vector<8x32xf32>
    %865 = arith.subf %855, %864 : vector<8x32xf32>
    %866 = arith.mulf %865, %865 : vector<8x32xf32>
    %cst_393 = arith.constant dense<0.000000e+00> : vector<8xf32>
    %867 = vector.multi_reduction <add>, %866, %cst_393 [1] : vector<8x32xf32> to vector<8xf32>
    %868 = vector.shape_cast %867 : vector<8xf32> to vector<8x1xf32>
    %cst_394 = arith.constant 3.200000e+01 : f32
    %869 = vector.broadcast %cst_394 : f32 to vector<8x1xf32>
    %870 = arith.divf %868, %869 : vector<8x1xf32>
    %cst_395 = arith.constant 9.99999974E-6 : f32
    %871 = vector.broadcast %cst_395 : f32 to vector<8x1xf32>
    %872 = arith.addf %870, %871 : vector<8x1xf32>
    %873 = math.rsqrt %872 : vector<8x1xf32>
    %874 = vector.broadcast %873 : vector<8x1xf32> to vector<8x32xf32>
    %875 = arith.mulf %865, %874 : vector<8x32xf32>
    %876 = vector.broadcast %857 : vector<1x32xf32> to vector<8x32xf32>
    %877 = arith.mulf %875, %876 : vector<8x32xf32>
    %878 = vector.broadcast %859 : vector<1x32xf32> to vector<8x32xf32>
    %879 = arith.addf %877, %878 : vector<8x32xf32>
    %880 = arith.truncf %879 : vector<8x32xf32> to vector<8x32xbf16>
    %c0_396 = arith.constant 0 : index
    %c0_397 = arith.constant 0 : index
    %881 = vector.load %arg5[%c0_396, %c0_397] : memref<32x4xbf16, #tpu.memory_space<vmem>>, vector<32x4xbf16>
    %cst_398 = arith.constant dense<0.000000e+00> : vector<8x4xf32>
    %882 = tpu.matmul %880, %881, %cst_398 {dimension_numbers = #tpu.dot_dimension_numbers<[1], [0], [0], [1], [0, 0, 1, 1], [], []>} : vector<8x32xbf16>, vector<32x4xbf16>, vector<8x4xf32> -> vector<8x4xf32>
    %c0_399 = arith.constant 0 : index
    %c0_400 = arith.constant 0 : index
    %883 = vector.load %arg6[%c0_399, %c0_400] : memref<1x4xf32, #tpu.memory_space<vmem>>, vector<1x4xf32>
    %884 = vector.broadcast %883 : vector<1x4xf32> to vector<8x4xf32>
    %885 = arith.addf %882, %884 : vector<8x4xf32>
    %c0_401 = arith.constant 0 : index
    %c0_402 = arith.constant 0 : index
    %c0_403 = arith.constant 0 : index
    %886 = vector.load %arg33[%c0_401, %c0_402, %c0_403] : memref<1x8x4xf32, #tpu.memory_space<vmem>>, vector<1x8x4xf32>
    %887 = vector.shape_cast %886 : vector<1x8x4xf32> to vector<8x4xf32>
    %888 = vector.shape_cast %885 : vector<8x4xf32> to vector<1x8x4xf32>
    tpu.vector_store %arg33[%c0_401, %c0_402, %c0_403], %888 {strides = array<i32>} : memref<1x8x4xf32, #tpu.memory_space<vmem>>, vector<1x8x4xf32>,
    return
  }
  func.func @transform_0(%arg0: i32) -> (i32, i32, i32) {
    %c0_i32 = arith.constant 0 : i32
    %c0_i32_0 = arith.constant 0 : i32
    %c0_i32_1 = arith.constant 0 : i32
    return %arg0, %c0_i32, %c0_i32_0 : i32, i32, i32
  }
  func.func @transform_1(%arg0: i32) -> (i32, i32) {
    %c0_i32 = arith.constant 0 : i32
    %c0_i32_0 = arith.constant 0 : i32
    %c0_i32_1 = arith.constant 0 : i32
    return %c0_i32, %c0_i32_0 : i32, i32
  }
  func.func @transform_2(%arg0: i32) -> (i32, i32) {
    %c0_i32 = arith.constant 0 : i32
    %c0_i32_0 = arith.constant 0 : i32
    %c0_i32_1 = arith.constant 0 : i32
    return %c0_i32, %c0_i32_0 : i32, i32
  }
  func.func @transform_3(%arg0: i32) -> (i32, i32) {
    %c0_i32 = arith.constant 0 : i32
    %c0_i32_0 = arith.constant 0 : i32
    %c0_i32_1 = arith.constant 0 : i32
    return %c0_i32, %c0_i32_0 : i32, i32
  }
  func.func @transform_4(%arg0: i32) -> (i32, i32) {
    %c0_i32 = arith.constant 0 : i32
    %c0_i32_0 = arith.constant 0 : i32
    %c0_i32_1 = arith.constant 0 : i32
    return %c0_i32, %c0_i32_0 : i32, i32
  }
  func.func @transform_5(%arg0: i32) -> (i32, i32) {
    %c0_i32 = arith.constant 0 : i32
    %c0_i32_0 = arith.constant 0 : i32
    %c0_i32_1 = arith.constant 0 : i32
    return %c0_i32, %c0_i32_0 : i32, i32
  }
  func.func @transform_6(%arg0: i32) -> (i32, i32, i32) {
    %c0_i32 = arith.constant 0 : i32
    %c0_i32_0 = arith.constant 0 : i32
    %c0_i32_1 = arith.constant 0 : i32
    %c0_i32_2 = arith.constant 0 : i32
    return %c0_i32, %c0_i32_0, %c0_i32_1 : i32, i32, i32
  }
  func.func @transform_7(%arg0: i32) -> (i32, i32, i32) {
    %c0_i32 = arith.constant 0 : i32
    %c0_i32_0 = arith.constant 0 : i32
    %c0_i32_1 = arith.constant 0 : i32
    %c0_i32_2 = arith.constant 0 : i32
    return %c0_i32, %c0_i32_0, %c0_i32_1 : i32, i32, i32
  }
  func.func @transform_8(%arg0: i32) -> (i32, i32, i32) {
    %c0_i32 = arith.constant 0 : i32
    %c0_i32_0 = arith.constant 0 : i32
    %c0_i32_1 = arith.constant 0 : i32
    %c0_i32_2 = arith.constant 0 : i32
    return %c0_i32, %c0_i32_0, %c0_i32_1 : i32, i32, i32
  }
  func.func @transform_9(%arg0: i32) -> (i32, i32, i32) {
    %c0_i32 = arith.constant 0 : i32
    %c0_i32_0 = arith.constant 0 : i32
    %c0_i32_1 = arith.constant 0 : i32
    %c0_i32_2 = arith.constant 0 : i32
    return %c0_i32, %c0_i32_0, %c0_i32_1 : i32, i32, i32
  }
  func.func @transform_10(%arg0: i32) -> (i32, i32, i32) {
    %c0_i32 = arith.constant 0 : i32
    %c0_i32_0 = arith.constant 0 : i32
    %c0_i32_1 = arith.constant 0 : i32
    %c0_i32_2 = arith.constant 0 : i32
    return %c0_i32, %c0_i32_0, %c0_i32_1 : i32, i32, i32
  }
  func.func @transform_11(%arg0: i32) -> (i32, i32, i32) {
    %c0_i32 = arith.constant 0 : i32
    %c0_i32_0 = arith.constant 0 : i32
    %c0_i32_1 = arith.constant 0 : i32
    %c0_i32_2 = arith.constant 0 : i32
    return %c0_i32, %c0_i32_0, %c0_i32_1 : i32, i32, i32
  }
  func.func @transform_12(%arg0: i32) -> (i32, i32, i32) {
    %c0_i32 = arith.constant 0 : i32
    %c0_i32_0 = arith.constant 0 : i32
    %c0_i32_1 = arith.constant 0 : i32
    %c0_i32_2 = arith.constant 0 : i32
    return %c0_i32, %c0_i32_0, %c0_i32_1 : i32, i32, i32
  }
  func.func @transform_13(%arg0: i32) -> (i32, i32, i32) {
    %c0_i32 = arith.constant 0 : i32
    %c0_i32_0 = arith.constant 0 : i32
    %c0_i32_1 = arith.constant 0 : i32
    %c0_i32_2 = arith.constant 0 : i32
    return %c0_i32, %c0_i32_0, %c0_i32_1 : i32, i32, i32
  }
  func.func @transform_14(%arg0: i32) -> (i32, i32, i32, i32) {
    %c0_i32 = arith.constant 0 : i32
    %c0_i32_0 = arith.constant 0 : i32
    %c0_i32_1 = arith.constant 0 : i32
    %c0_i32_2 = arith.constant 0 : i32
    %c0_i32_3 = arith.constant 0 : i32
    return %c0_i32, %c0_i32_0, %c0_i32_1, %c0_i32_2 : i32, i32, i32, i32
  }
  func.func @transform_15(%arg0: i32) -> (i32, i32, i32, i32) {
    %c0_i32 = arith.constant 0 : i32
    %c0_i32_0 = arith.constant 0 : i32
    %c0_i32_1 = arith.constant 0 : i32
    %c0_i32_2 = arith.constant 0 : i32
    %c0_i32_3 = arith.constant 0 : i32
    return %c0_i32, %c0_i32_0, %c0_i32_1, %c0_i32_2 : i32, i32, i32, i32
  }
  func.func @transform_16(%arg0: i32) -> (i32, i32, i32) {
    %c0_i32 = arith.constant 0 : i32
    %c0_i32_0 = arith.constant 0 : i32
    %c0_i32_1 = arith.constant 0 : i32
    %c0_i32_2 = arith.constant 0 : i32
    return %c0_i32, %c0_i32_0, %c0_i32_1 : i32, i32, i32
  }
  func.func @transform_17(%arg0: i32) -> (i32, i32, i32) {
    %c0_i32 = arith.constant 0 : i32
    %c0_i32_0 = arith.constant 0 : i32
    %c0_i32_1 = arith.constant 0 : i32
    %c0_i32_2 = arith.constant 0 : i32
    return %c0_i32, %c0_i32_0, %c0_i32_1 : i32, i32, i32
  }
  func.func @transform_18(%arg0: i32) -> (i32, i32, i32) {
    %c0_i32 = arith.constant 0 : i32
    %c0_i32_0 = arith.constant 0 : i32
    %c0_i32_1 = arith.constant 0 : i32
    %c0_i32_2 = arith.constant 0 : i32
    return %c0_i32, %c0_i32_0, %c0_i32_1 : i32, i32, i32
  }
  func.func @transform_19(%arg0: i32) -> (i32, i32, i32) {
    %c0_i32 = arith.constant 0 : i32
    %c0_i32_0 = arith.constant 0 : i32
    %c0_i32_1 = arith.constant 0 : i32
    %c0_i32_2 = arith.constant 0 : i32
    return %c0_i32, %c0_i32_0, %c0_i32_1 : i32, i32, i32
  }
  func.func @transform_20(%arg0: i32) -> (i32, i32, i32) {
    %c0_i32 = arith.constant 0 : i32
    %c0_i32_0 = arith.constant 0 : i32
    %c0_i32_1 = arith.constant 0 : i32
    %c0_i32_2 = arith.constant 0 : i32
    return %c0_i32, %c0_i32_0, %c0_i32_1 : i32, i32, i32
  }
  func.func @transform_21(%arg0: i32) -> (i32, i32, i32) {
    %c0_i32 = arith.constant 0 : i32
    %c0_i32_0 = arith.constant 0 : i32
    %c0_i32_1 = arith.constant 0 : i32
    %c0_i32_2 = arith.constant 0 : i32
    return %c0_i32, %c0_i32_0, %c0_i32_1 : i32, i32, i32
  }
  func.func @transform_22(%arg0: i32) -> (i32, i32, i32) {
    %c0_i32 = arith.constant 0 : i32
    %c0_i32_0 = arith.constant 0 : i32
    %c0_i32_1 = arith.constant 0 : i32
    %c0_i32_2 = arith.constant 0 : i32
    return %c0_i32, %c0_i32_0, %c0_i32_1 : i32, i32, i32
  }
  func.func @transform_23(%arg0: i32) -> (i32, i32, i32) {
    %c0_i32 = arith.constant 0 : i32
    %c0_i32_0 = arith.constant 0 : i32
    %c0_i32_1 = arith.constant 0 : i32
    %c0_i32_2 = arith.constant 0 : i32
    return %c0_i32, %c0_i32_0, %c0_i32_1 : i32, i32, i32
  }
  func.func @transform_24(%arg0: i32) -> (i32, i32, i32) {
    %c0_i32 = arith.constant 0 : i32
    %c0_i32_0 = arith.constant 0 : i32
    %c0_i32_1 = arith.constant 0 : i32
    %c0_i32_2 = arith.constant 0 : i32
    return %c0_i32, %c0_i32_0, %c0_i32_1 : i32, i32, i32
  }
  func.func @transform_25(%arg0: i32) -> (i32, i32, i32) {
    %c0_i32 = arith.constant 0 : i32
    %c0_i32_0 = arith.constant 0 : i32
    %c0_i32_1 = arith.constant 0 : i32
    %c0_i32_2 = arith.constant 0 : i32
    return %c0_i32, %c0_i32_0, %c0_i32_1 : i32, i32, i32
  }
  func.func @transform_26(%arg0: i32) -> (i32, i32, i32) {
    %c0_i32 = arith.constant 0 : i32
    %c0_i32_0 = arith.constant 0 : i32
    %c0_i32_1 = arith.constant 0 : i32
    %c0_i32_2 = arith.constant 0 : i32
    return %c0_i32, %c0_i32_0, %c0_i32_1 : i32, i32, i32
  }
  func.func @transform_27(%arg0: i32) -> (i32, i32, i32) {
    %c0_i32 = arith.constant 0 : i32
    %c0_i32_0 = arith.constant 0 : i32
    %c0_i32_1 = arith.constant 0 : i32
    %c0_i32_2 = arith.constant 0 : i32
    return %c0_i32, %c0_i32_0, %c0_i32_1 : i32, i32, i32
  }
  func.func @transform_28(%arg0: i32) -> (i32, i32, i32) {
    %c0_i32 = arith.constant 0 : i32
    %c0_i32_0 = arith.constant 0 : i32
    %c0_i32_1 = arith.constant 0 : i32
    %c0_i32_2 = arith.constant 0 : i32
    return %c0_i32, %c0_i32_0, %c0_i32_1 : i32, i32, i32
  }
  func.func @transform_29(%arg0: i32) -> (i32, i32, i32) {
    %c0_i32 = arith.constant 0 : i32
    %c0_i32_0 = arith.constant 0 : i32
    %c0_i32_1 = arith.constant 0 : i32
    %c0_i32_2 = arith.constant 0 : i32
    return %c0_i32, %c0_i32_0, %c0_i32_1 : i32, i32, i32
  }
  func.func @transform_30(%arg0: i32) -> (i32, i32, i32, i32) {
    %c0_i32 = arith.constant 0 : i32
    %c0_i32_0 = arith.constant 0 : i32
    %c0_i32_1 = arith.constant 0 : i32
    %c0_i32_2 = arith.constant 0 : i32
    %c0_i32_3 = arith.constant 0 : i32
    return %c0_i32, %c0_i32_0, %c0_i32_1, %c0_i32_2 : i32, i32, i32, i32
  }
  func.func @transform_31(%arg0: i32) -> (i32, i32, i32, i32) {
    %c0_i32 = arith.constant 0 : i32
    %c0_i32_0 = arith.constant 0 : i32
    %c0_i32_1 = arith.constant 0 : i32
    %c0_i32_2 = arith.constant 0 : i32
    %c0_i32_3 = arith.constant 0 : i32
    return %c0_i32, %c0_i32_0, %c0_i32_1, %c0_i32_2 : i32, i32, i32, i32
  }
  func.func @transform_32(%arg0: i32) -> (i32, i32, i32) {
    %c0_i32 = arith.constant 0 : i32
    %c0_i32_0 = arith.constant 0 : i32
    %c0_i32_1 = arith.constant 0 : i32
    return %arg0, %c0_i32, %c0_i32_0 : i32, i32, i32
  }
}

</mosaic_0001>

<bundles_post_ra>
// kernel: dtransformer_forward.1
= control target key start
LH: loop header
LB: loop body
LE: loop exit
PB: predicated region body
PF: predicated region fallthrough
CT: control target
= control target key end

     0   :  { %s16619_s6 = smov 1   ;;  %s16620_s10 = smov 2   ;;  %s18549_s0 = inlined_call_operand.smem [shape: u32[33], index: -1, kind: input, shape index: {}] }
   0x1   :  { %s16676_s5 = sld [smem:[%s18549_s0]]   ;;  %s16621_s14 = smov 3  }
   0x2   :  { %s16681_s9 = sld [smem:[%s18549_s0 + %s16619_s6]]   ;;  %s16622_s18 = smov 4  }
   0x3   :  { %s16686_s13 = sld [smem:[%s18549_s0 + %s16620_s10]]   ;;  %s16623_s22 = smov 5  }
   0x4   :  { %s16691_s17 = sld [smem:[%s18549_s0 + %s16621_s14]]   ;;  %s16624_s26 = smov 6  }
   0x5   :  { %s16696_s21 = sld [smem:[%s18549_s0 + %s16622_s18]]   ;;  %s16625_s30 = smov 7  }
   0x6   :  { %s16701_s25 = sld [smem:[%s18549_s0 + %s16623_s22]]   ;;  %s16626_s4 = smov 8  }
   0x7   :  { %18605 = sst [smem:[#allocation2_spill]] %s16676_s5  ;;  %s16627_s10 = smov 9  }
   0x8   :  { %18606 = sst [smem:[#allocation3_spill]] %s16681_s9  ;;  %s16628_s15 = smov 10  }
   0x9   :  { %18607 = sst [smem:[#allocation4_spill]] %s16686_s13  ;;  %s16629_s20 = smov 11  }
   0xa   :  { %18608 = sst [smem:[#allocation5_spill]] %s16691_s17  ;;  %s16631_s1 = smov 13  }
   0xb   :  { %18609 = sst [smem:[#allocation6_spill]] %s16696_s21  ;;  %s16632_s7 = smov 14  }
   0xc   :  { %18610 = sst [smem:[#allocation7_spill]] %s16701_s25  ;;  %s16634_s22 = smov 16  }
   0xd   :  { %s16706_s29 = sld [smem:[%s18549_s0 + %s16624_s26]]   ;;  %s16630_s26 = smov 12  }
   0xe   :  { %s16711_s3 = sld [smem:[%s18549_s0 + %s16625_s30]]   ;;  %s16635_s28 = smov 17  }
   0xf   :  { %s16716_s8 = sld [smem:[%s18549_s0 + %s16626_s4]]  }
  0x10   :  { %s16721_s14 = sld [smem:[%s18549_s0 + %s16627_s10]]  }
  0x11   :  { %s16726_s19 = sld [smem:[%s18549_s0 + %s16628_s15]]   ;;  %s16633_s15 = smov 15  }
  0x12   :  { %s16731_s24 = sld [smem:[%s18549_s0 + %s16629_s20]]  }
  0x13   :  { %18611 = sst [smem:[#allocation8_spill]] %s16706_s29 }
  0x14   :  { %18612 = sst [smem:[#allocation9_spill]] %s16711_s3 }
  0x15   :  { %18613 = sst [smem:[#allocation10_spill]] %s16716_s8 }
  0x16   :  { %18614 = sst [smem:[#allocation11_spill]] %s16721_s14 }
  0x17   :  { %18615 = sst [smem:[#allocation12_spill]] %s16726_s19 }
  0x18   :  { %18616 = sst [smem:[#allocation13_spill]] %s16731_s24 }
  0x19   :  { %s16736_s30 = sld [smem:[%s18549_s0 + %s16630_s26]]  }
  0x1a   :  { %s16741_s6 = sld [smem:[%s18549_s0 + %s16631_s1]]  }
  0x1b   :  { %s16746_s12 = sld [smem:[%s18549_s0 + %s16632_s7]]   ;;  %s16636_s7 = smov 18  }
  0x1c   :  { %s16751_s20 = sld [smem:[%s18549_s0 + %s16633_s15]]   ;;  %s16637_s15 = smov 19  }
  0x1d   :  { %s16756_s27 = sld [smem:[%s18549_s0 + %s16634_s22]]   ;;  %s16638_s22 = smov 20  }
  0x1e   :  { %s16761_s4 = sld [smem:[%s18549_s0 + %s16635_s28]]   ;;  %s16639_s28 = smov 21  }
  0x1f   :  { %18617 = sst [smem:[#allocation14_spill]] %s16736_s30 }
  0x20   :  { %18618 = sst [smem:[#allocation15_spill]] %s16741_s6 }
  0x21   :  { %18619 = sst [smem:[#allocation16_spill]] %s16746_s12 }
  0x22   :  { %18620 = sst [smem:[#allocation17_spill]] %s16751_s20 }
  0x23   :  { %18621 = sst [smem:[#allocation18_spill]] %s16756_s27 }
  0x24   :  { %18622 = sst [smem:[#allocation19_spill]] %s16761_s4 }
  0x25   :  { %s16766_s25 = sld [smem:[%s18549_s0 + %s16636_s7]]   ;;  %s16640_s7 = smov 22  }
  0x26   :  { %s16771_s21 = sld [smem:[%s18549_s0 + %s16637_s15]]   ;;  %s16641_s15 = smov 23  }
  0x27   :  { %s16776_s27 = sld [smem:[%s18549_s0 + %s16638_s22]]   ;;  %s16642_s22 = smov 24  }
  0x28   :  { %s16781_s4 = sld [smem:[%s18549_s0 + %s16639_s28]]   ;;  %s16643_s28 = smov 25  }
  0x2b   :  { %18623 = sst [smem:[#allocation20_spill]] %s16766_s25 }
  0x2c   :  { %18624 = sst [smem:[#allocation21_spill]] %s16771_s21 }
  0x2d   :  { %18625 = sst [smem:[#allocation22_spill]] %s16776_s27 }
  0x2e   :  { %18626 = sst [smem:[#allocation23_spill]] %s16781_s4 }
  0x2f   :  { %s16786_s25 = sld [smem:[%s18549_s0 + %s16640_s7]]   ;;  %s16644_s7 = smov 26  }
  0x30   :  { %s16791_s21 = sld [smem:[%s18549_s0 + %s16641_s15]]   ;;  %s16645_s15 = smov 27  }
  0x31   :  { %s16796_s27 = sld [smem:[%s18549_s0 + %s16642_s22]]   ;;  %s16646_s22 = smov 28  }
  0x32   :  { %s16801_s4 = sld [smem:[%s18549_s0 + %s16643_s28]]   ;;  %s16647_s28 = smov 29  }
  0x35   :  { %18627 = sst [smem:[#allocation24_spill]] %s16786_s25 }
  0x36   :  { %18628 = sst [smem:[#allocation25_spill]] %s16791_s21 }
  0x37   :  { %18629 = sst [smem:[#allocation26_spill]] %s16796_s27 }
  0x38   :  { %18630 = sst [smem:[#allocation27_spill]] %s16801_s4 }
  0x39   :  { %s16806_s25 = sld [smem:[%s18549_s0 + %s16644_s7]]   ;;  %s16648_s7 = smov 30  }
  0x3a   :  { %s16811_s21 = sld [smem:[%s18549_s0 + %s16645_s15]]   ;;  %s16649_s15 = smov 31  }
  0x3b   :  { %s16816_s27 = sld [smem:[%s18549_s0 + %s16646_s22]]   ;;  %s16650_s22 = smov 32  }
  0x3c   :  { %s16821_s4 = sld [smem:[%s18549_s0 + %s16647_s28]]   ;;  %s16838_s28 = smov 0  }
  0x3f   :  { %18631 = sst [smem:[#allocation28_spill]] %s16806_s25 }
  0x40   :  { %18632 = sst [smem:[#allocation29_spill]] %s16811_s21 }
  0x41   :  { %18633 = sst [smem:[#allocation30_spill]] %s16816_s27 }
  0x42   :  { %s16826_s25 = sld [smem:[%s18549_s0 + %s16648_s7]]  }
  0x43   :  { %s16831_s21 = sld [smem:[%s18549_s0 + %s16649_s15]]  }
  0x44   :  { %s16836_s27 = sld [smem:[%s18549_s0 + %s16650_s22]]  }
  0x4a   :  { %18634 = sst [smem:[#allocation31_spill]] %s16836_s27 }
  0x4b LB: > { %s18635_s30 = sld [smem:[#allocation14_spill]]  ;;  %s18636_s29 = sld [smem:[#allocation8_spill]]  ;;  %s16617_s28 = sphi %s16838_s28, %s75_s28  }
  0x4c   : > { %s18637_s24 = sld [smem:[#allocation13_spill]]  ;;  %s18638_s20 = sld [smem:[#allocation17_spill]] }
  0x4d   : > { %s18639_s19 = sld [smem:[#allocation12_spill]]  ;;  %s18640_s14 = sld [smem:[#allocation11_spill]] }
  0x4e   : > { %s18641_s12 = sld [smem:[#allocation16_spill]]  ;;  %s18642_s8 = sld [smem:[#allocation10_spill]] }
  0x4f   : > { %s18643_s6 = sld [smem:[#allocation15_spill]]  ;;  %s18644_s3 = sld [smem:[#allocation9_spill]] }
  0x50   : > { %18645 = sst [smem:[#allocation32_spill]] %s16617_s28  ;;  %s13185_s1 = sadd.s32 4294967295, %s16617_s28  }
  0x51   : > { %p13189_p0 = scmp.ge.s32.totalorder %s16617_s28, 1  ;;  %p894_p1 = scmp.lt.s32.totalorder %s16617_s28, 3 }
  0x53   : > { %p895_p2 = pnand %p13189_p0, %p894_p1 }
  0x55   : > { %898 = sbr.rel (%p895_p2) target bundleno = 14626 (0x3922), region = 148 }
  0x5c   : > { %vm1003_vm0 = vcmask 1045504   ;;  %s18646_s13 = sld [smem:[#allocation4_spill]]  ;;  %s18647_s5 = sld [smem:[#allocation2_spill]]  ;;  %v16651_v0 = vmov 0.0   ;;  %vm16652_vm1 = vmmov 0   ;;  %vm999_vm2 = vcmask 97280  }
  0x5d   : > { %15481 = vmatprep.subr.bf16.mxu0 %v16651_v0  ;;  %p974_p3 = scmp.lt.s32.totalorder %s13185_s1, 1  ;;  %15487 = vmatprep.subr.bf16.mxu1 %v16651_v0  ;;  %s18649_s17 = sld [smem:[#allocation5_spill]]  ;;  %v15953_v5 = vld [vmem:[%s18636_s29] sm:$0xff]   ;;  %v15954_v6 = vld [vmem:[%s18636_s29 + $0x8] sm:$0xff]   ;;  %vm1078_vm3 = vcmask 261120   ;;  %vm1128_vm4 = vcmask 64512  }
  0x5e   : > { %15483 = vmatprep.mubr.msk.bf16.mxu0 %vm16652_vm1, %v16651_v0  ;;  %15491 = vmatprep.mubr.msk.bf16.mxu1 %vm16652_vm1, %v16651_v0  ;;  %s18650_s9 = sld [smem:[#allocation3_spill]]  ;;  %v13195_v16 = vld [vmem:[%s18644_s3] ss:$0 sm:$0xff]  ;;  %s18588_s7 = smov 96   ;;  %vm1192_vm5 = vcmask 1043456   ;;  %vm1580_vm6 = vcmask 130048  }
  0x5f   : > { %s18687_s1 = smov (!%p974_p3, %s13185_s1), 1  ;;  %15488 = vmatpush3.bf16.msra.mxu1 %v15953_v5  ;;  %s18592_s10 = smov 120   ;;  %vm1582_vm7 = vcmask 195584   ;;  %vm13098_vm8 = vcmask 31744  }
  0x60   : > { %18648 = sst [smem:[#allocation33_spill]] %s18687_s1  ;;  %s18564_s0 = sshll.u32 %s18687_s1, 3  ;;  %15489 = vmatprep.subr.bf16.mxu1 %v16651_v0 }
  0x61   : > { %s18586_s11 = smov 88   ;;  %s18573_s15 = smov 80  }
  0x62   : > { %v15952_v1 = vld [vmem:[%s18646_s13] sm:$0x3f]   ;;  %s977_s2 = scalar_lea.vmem %s18647_s5, %s18564_s0  ;;  %s18590_s16 = smov 112  }
  0x63   : > { %v1005_v2 = vsel %vm1003_vm0, %v15952_v1, 0  ;;  %v983_v3 = vld [vmem:[%s977_s2] sm:$0xff]  ;;  %15490 = vmatpush3.bf16.msra.mxu1 %v15954_v6  ;;  %s18571_s18 = smov 72   ;;  %s18575_s22 = smov 104  }
  0x64   : > { %15482 = vmatpush3.bf16.msra.mxu0 %v1005_v2  ;;  %v984_v4 = vpack.c.bf16 %v983_v3, %v983_v3  ;;  %15501 = vmatprep.subr.bf16.mxu1 %v16651_v0  ;;  %v13192_v7 = vld [vmem:[%s18649_s17] ss:$0 sm:$0xff]  ;;  %s18583_s23 = smov 56   ;;  %s18569_s26 = smov 64  }
  0x65   : > { %15495 = vmatprep.subr.bf16.mxu0 %v16651_v0  ;;  %v1047_v9 = vld [vmem:[%s18650_s9] sm:$0xff]  ;;  %s18567_s2 = smov 40   ;;  %s18565_s0 = smov 48  }
  0x66   : > { %s18663_s5 = sld [smem:[#allocation24_spill]]  ;;  %s18666_s9 = sld [smem:[#allocation25_spill]] }
  0x67   : > { %15484 = vmatmul.mubr.msk.bf16.vlgmr.msra.gmra.mrb[0].mxu0 %vm999_vm2, %v984_v4  ;;  %s18668_s13 = smov 120   ;;  %s18670_s17 = sld [smem:[#allocation23_spill]] }
  0x68   : > { %15497 = vmatprep.mubr.msk.bf16.mxu0 %vm16652_vm1, %v16651_v0  ;;  %s18676_s28 = sld [smem:[#allocation30_spill]] }
  0x6e   : > { %s18677_s27 = smov %s18676_s28 }
 0x13a   : > { %v1041_v8 = vpop.f32.mrb[0].mxu0 }
 0x13b   : > { %v1042_v10 = vadd.f32 %v13192_v7, %v1041_v8  ;;  %v15485_v11 = vpop.f32.mrb[1].mxu0 }
 0x13c   : > { %v1044_v12 = vpop.f32.mrb[2].mxu0 }
 0x13d   : > { %v16868_v13 = vadd.f32 %v1047_v9, %v1042_v10  ;;  %v15486_v14 = vpop.f32.mrb[3].mxu0 }
 0x13f   : > { %v1059_v15 = vpack.c.bf16 %v16868_v13, %v16868_v13 }
 0x141   : > { %15492 = vmatmul.mubr.msk.bf16.vlgmr.msra.gmra.mrb[0].mxu1 %vm1078_vm3, %v1059_v15 }
 0x142   : > { %15503 = vmatprep.mubr.msk.bf16.mxu1 %vm16652_vm1, %v16651_v0 }
 0x214   : > { %v1116_v17 = vpop.f32.mrb[0].mxu1 }
 0x215   : > { %v1117_v18 = vadd.f32 %v13195_v16, %v1116_v17  ;;  %v15493_v19 = vpop.f32.mrb[1].mxu1 }
 0x216   : > { %v1119_v20 = vpop.f32.mrb[2].mxu1 }
 0x217   : > { %v1122_v21 = vmul.f32 0.35355338, %v1117_v18  ;;  %v16876_v22 = vpack.c.bf16 %v1117_v18, %v1117_v18  ;;  %v15494_v23 = vpop.f32.mrb[3].mxu1 }
 0x219   : > { %v1123_v24 = vpack.c.bf16 %v1122_v21, %v1122_v21  ;;  %1126 = vrot.lane.b32.xlu0 %v16876_v22, %s18588_s7 }
 0x21b   : > { %1237 = vrot.lane.b32.xlu1 %v1123_v24, %s18592_s10 }
 0x21d   : > { %1239 = vrot.lane.b32.xlu0 %v16876_v22, %s18586_s11 }
 0x21f   : > { %1349 = vrot.lane.b32.xlu1 %v16876_v22, %s18573_s15 }
 0x221   : > { %1347 = vrot.lane.b32.xlu0 %v1123_v24, %s18590_s16 }
 0x223   : > { %1459 = vrot.lane.b32.xlu1 %v16876_v22, %s18571_s18 }
 0x225   : > { %1457 = vrot.lane.b32.xlu0 %v1123_v24, %s18575_s22 }
 0x28b   : > { %v1127_v25 = vpop.permute.xlu0 %1126 }
 0x28c   : > { %v1133_v26 = vsel %vm1128_vm4, %v1127_v25, 0 }
 0x28d   : > { %15496 = vmatpush3.bf16.xpose.msra.mxu0 %v1133_v26  ;;  %v1238_v28 = vpop.permute.xlu1 %1237 }
 0x28e   : > { %15507 = vmatprep.subr.bf16.mxu0 %v16651_v0 }
 0x28f   : > { %v1240_v27 = vpop.permute.xlu0 %1239 }
 0x290   : > { %v1245_v29 = vsel %vm1128_vm4, %v1240_v27, 0 }
 0x291   : > { %v1350_v30 = vpop.permute.xlu1 %1349 }
 0x292   : > { %v1355_v31 = vsel %vm1128_vm4, %v1350_v30, 0 }
 0x293   : > { %v1348_v33 = vpop.permute.xlu0 %1347 }
 0x294   : > { %15498 = vmatmul.mubr.msk.bf16.vlgmr.msra.gmra.mrb[4].mxu0 %vm1128_vm4, %v1123_v24 }
 0x295   : > { %15508 = vmatpush3.bf16.xpose.msra.mxu0 %v1245_v29  ;;  %15509 = vmatprep.mubr.msk.bf16.mxu0 %vm16652_vm1, %v16651_v0  ;;  %v1460_v32 = vpop.permute.xlu1 %1459 }
 0x296   : > { %15519 = vmatprep.subr.bf16.mxu0 %v16651_v0  ;;  %v1465_v34 = vsel %vm1128_vm4, %v1460_v32, 0 }
 0x297   : > { %v1458_v35 = vpop.permute.xlu0 %1457 }
 0x29c   : > { %15510 = vmatmul.mubr.msk.bf16.vlgmr.msra.gmra.mrb[8].mxu0 %vm1128_vm4, %v1238_v28 }
 0x29d   : > { %15520 = vmatpush3.bf16.xpose.msra.mxu0 %v1355_v31  ;;  %15521 = vmatprep.mubr.msk.bf16.mxu0 %vm16652_vm1, %v16651_v0 }
 0x29e   : > { %15531 = vmatprep.subr.bf16.mxu0 %v16651_v0 }
 0x2a4   : > { %15522 = vmatmul.mubr.msk.bf16.vlgmr.msra.gmra.mrb[12].mxu0 %vm1128_vm4, %v1348_v33 }
 0x2a5   : > { %15532 = vmatpush3.bf16.xpose.msra.mxu0 %v1465_v34  ;;  %15533 = vmatprep.mubr.msk.bf16.mxu0 %vm16652_vm1, %v16651_v0 }
 0x2a6   : > { %15543 = vmatprep.subr.bf16.mxu0 %v16651_v0 }
 0x2ac   : > { %15534 = vmatmul.mubr.msk.bf16.vlgmr.msra.gmra.mrb[16].mxu0 %vm1128_vm4, %v1458_v35 }
 0x2ad   : > { %15547 = vmatprep.mubr.msk.bf16.mxu0 %vm16652_vm1, %v16651_v0 }
 0x367   : > { %v1169_v36 = vpop.f32.mrb[4].mxu0 }
 0x368   : > { %v15499_v37 = vpop.f32.mrb[5].mxu0  ;;  %v1175_v38 = vsel %vm1128_vm4, %v1169_v36, -inf }
 0x369   : > { %1176 = vmax.xlane.f32.xlu1 %v1175_v38  ;;  %v1172_v39 = vpop.f32.mrb[6].mxu0 }
 0x36a   : > { %v15500_v40 = vpop.f32.mrb[7].mxu0 }
 0x36f   : > { %v1281_v41 = vpop.f32.mrb[8].mxu0 }
 0x370   : > { %v15511_v42 = vpop.f32.mrb[9].mxu0  ;;  %v1287_v43 = vsel %vm1128_vm4, %v1281_v41, -inf }
 0x371   : > { %1288 = vmax.xlane.f32.xlu0 %v1287_v43  ;;  %v1284_v44 = vpop.f32.mrb[10].mxu0 }
 0x372   : > { %v15512_v45 = vpop.f32.mrb[11].mxu0 }
 0x377   : > { %v1391_v46 = vpop.f32.mrb[12].mxu0 }
 0x378   : > { %v15523_v47 = vpop.f32.mrb[13].mxu0  ;;  %v1397_v48 = vsel %vm1128_vm4, %v1391_v46, -inf }
 0x379   : > { %1398 = vmax.xlane.f32.xlu0 %v1397_v48  ;;  %v1394_v49 = vpop.f32.mrb[14].mxu0  ;;  %v15956_v47 = vld [vmem:[%s18642_s8 + $0x8] sm:$0xff]  }
 0x37a   : > { %v15524_v50 = vpop.f32.mrb[15].mxu0 }
 0x37f   : > { %v1501_v51 = vpop.f32.mrb[16].mxu0 }
 0x380   : > { %v15535_v52 = vpop.f32.mrb[17].mxu0  ;;  %v1507_v53 = vsel %vm1128_vm4, %v1501_v51, -inf }
 0x381   : > { %1508 = vmax.xlane.f32.xlu1 %v1507_v53  ;;  %v1504_v54 = vpop.f32.mrb[18].mxu0 }
 0x382   : > { %v15536_v55 = vpop.f32.mrb[19].mxu0 }
 0x3f6   : > { %v1177_v56 = vpop.xlane.xlu1 %1176 }
 0x3f7   : > { %v1178_v57 = vsub.f32 %v1169_v36, %v1177_v56 }
 0x3f9   : > { %v1179_v58 = vmul.f32 1.442695, %v1178_v57 }
 0x3fb   : > { %16495 = vpow2.f32 %v1179_v58 }
 0x3fe   : > { %v1289_v59 = vpop.xlane.xlu0 %1288 }
 0x3ff   : > { %v1290_v60 = vsub.f32 %v1281_v41, %v1289_v59 }
 0x401   : > { %v1291_v61 = vmul.f32 1.442695, %v1290_v60 }
 0x403   : > { %16497 = vpow2.f32 %v1291_v61 }
 0x405   : > { %v16496_v62 = vpop.eup %16495 }
 0x406   : > { %v1399_v63 = vpop.xlane.xlu0 %1398  ;;  %v1181_v1 = vsel %vm1128_vm4, %v16496_v62, 0.0 }
 0x407   : > { %v1400_v2 = vsub.f32 %v1391_v46, %v1399_v63  ;;  %1182 = vadd.xlane.f32.xlu0 %v1181_v1  ;;  %v15955_v46 = vld [vmem:[%s18642_s8] sm:$0xff]  }
 0x408   : > { %15544 = vmatpush3.bf16.msra.mxu0 %v15955_v46  ;;  %v13207_v63 = vld [vmem:[%s18640_s14] ss:$0 sm:$0xff]  ;;  %v1695_v46 = vld [vmem:[%s18639_s19 + $0x90] sm:$0xff] }
 0x409   : > { %v1401_v3 = vmul.f32 1.442695, %v1400_v2  ;;  %15545 = vmatprep.subr.bf16.mxu0 %v16651_v0 }
 0x40b   : > { %16499 = vpow2.f32 %v1401_v3 }
 0x40c   : > { %15546 = vmatpush3.bf16.msra.mxu0 %v15956_v47  ;;  %v1703_v47 = vld [vmem:[%s18639_s19 + $0xd0] sm:$0xff] }
 0x40d   : > { %v16498_v4 = vpop.eup %16497 }
 0x40e   : > { %v1293_v5 = vsel %vm1128_vm4, %v16498_v4, 0.0  ;;  %v1509_v8 = vpop.xlane.xlu1 %1508 }
 0x40f   : > { %1294 = vadd.xlane.f32.xlu1 %v1293_v5  ;;  %v1510_v9 = vsub.f32 %v1501_v51, %v1509_v8 }
 0x411   : > { %v1511_v10 = vmul.f32 1.442695, %v1510_v9 }
 0x413   : > { %16501 = vpow2.f32 %v1511_v10 }
 0x415   : > { %v16500_v6 = vpop.eup %16499 }
 0x416   : > { %v1403_v7 = vsel %vm1128_vm4, %v16500_v6, 0.0 }
 0x417   : > { %1404 = vadd.xlane.f32.xlu0 %v1403_v7 }
 0x41d   : > { %v16502_v11 = vpop.eup %16501 }
 0x41e   : > { %v1513_v12 = vsel %vm1128_vm4, %v16502_v11, 0.0 }
 0x420   : > { %1299 = vrot.lane.b32.xlu1 %v16876_v22, %s18583_s23 }
 0x42d   : > { %1187 = vrot.lane.b32.xlu0 %v16876_v22, %s18569_s26  ;;  %s18577_s26 = smov 24  }
 0x431   : > { %1519 = vrot.lane.b32.xlu0 %v16876_v22, %s18567_s2  ;;  %s18579_s2 = smov 16  }
 0x444   : > { %1514 = vadd.xlane.f32.xlu1 %v1513_v12 }
 0x455   : > { %1409 = vrot.lane.b32.xlu1 %v16876_v22, %s18565_s0  ;;  %s18581_s0 = smov 8  }
 0x494   : > { %v1183_v14 = vpop.xlane.xlu0 %1182 }
 0x495   : > { %16503 = vrcp.f32 %v1183_v14  ;;  %v1677_v14 = vld [vmem:[%s18639_s19] sm:$0xff] }
 0x49c   : > { %v1295_v15 = vpop.xlane.xlu1 %1294 }
 0x49d   : > { %16505 = vrcp.f32 %v1295_v15  ;;  %v1685_v15 = vld [vmem:[%s18639_s19 + $0x40] sm:$0xff] }
 0x49f   : > { %v16504_v16 = vpop.eup %16503 }
 0x4a0   : > { %v1185_v18 = vmul.f32 %v16504_v16, %v16496_v62  ;;  %v1300_v21 = vpop.permute.xlu1 %1299  ;;  %v1678_v16 = vld [vmem:[%s18639_s19 + $0x8] sm:$0xff] }
 0x4a1   : > { %v1305_v25 = vsel %vm1192_vm5, %v1300_v21, 0  ;;  %v1693_v21 = vld [vmem:[%s18639_s19 + $0x80] sm:$0xff] }
 0x4a2   : > { %v1186_v23 = vpack.c.bf16 %v1185_v18, %v1185_v18  ;;  %v1686_v18 = vld [vmem:[%s18639_s19 + $0x48] sm:$0xff] }
 0x4a4   : > { %v1405_v17 = vpop.xlane.xlu0 %1404 }
 0x4a5   : > { %16507 = vrcp.f32 %v1405_v17  ;;  %v13214_v17 = vcombine.high %v1677_v14, %v1685_v15 }
 0x4a7   : > { %v16506_v24 = vpop.eup %16505 }
 0x4a8   : > { %v1188_v19 = vpop.permute.xlu0 %1187  ;;  %v1297_v22 = vmul.f32 %v16506_v24, %v16498_v4  ;;  %v1694_v24 = vld [vmem:[%s18639_s19 + $0x88] sm:$0xff] }
 0x4a9   : > { %v1194_v20 = vsel %vm1192_vm5, %v1188_v19, 0  ;;  %v13215_v19 = vcombine.low %v1678_v16, %v1686_v18 }
 0x4aa   : > { %15502 = vmatpush3.bf16.msra.mxu1 %v1194_v20  ;;  %v1298_v26 = vpack.c.bf16 %v1297_v22, %v1297_v22  ;;  %v13216_v20 = vcombine.high %v1678_v16, %v1686_v18  ;;  %v1702_v22 = vld [vmem:[%s18639_s19 + $0xc8] sm:$0xff]  ;;  %v1699_v16 = vld [vmem:[%s18639_s19 + $0xb0] sm:$0xff]  ;;  %v1700_v18 = vld [vmem:[%s18639_s19 + $0xb8] sm:$0xff] }
 0x4ab   : > { %15513 = vmatprep.subr.bf16.mxu1 %v16651_v0 }
 0x4ac   : > { %v1520_v32 = vpop.permute.xlu0 %1519  ;;  %2255 = vmatprep.subr.bf16.mxu0 %v13216_v20 }
 0x4ad   : > { %15504 = vmatmul.mubr.msk.bf16.vlgmr.msra.gmra.mrb[4].mxu1 %vm1128_vm4, %v1186_v23  ;;  %v1525_v34 = vsel %vm1192_vm5, %v1520_v32, 0  ;;  %v1701_v23 = vld [vmem:[%s18639_s19 + $0xc0] sm:$0xff] }
 0x4ae   : > { %15514 = vmatpush3.bf16.msra.mxu1 %v1305_v25  ;;  %15515 = vmatprep.mubr.msk.bf16.mxu1 %vm16652_vm1, %v16651_v0  ;;  %v13230_v25 = vcombine.high %v1693_v21, %v1701_v23 }
 0x4af   : > { %15525 = vmatprep.subr.bf16.mxu1 %v16651_v0  ;;  %v16508_v27 = vpop.eup %16507 }
 0x4b0   : > { %v1407_v29 = vmul.f32 %v16508_v27, %v16500_v6  ;;  %v13231_v27 = vcombine.low %v1694_v24, %v1702_v22 }
 0x4b2   : > { %v1408_v33 = vpack.c.bf16 %v1407_v29, %v1407_v29  ;;  %v1679_v29 = vld [vmem:[%s18639_s19 + $0x10] sm:$0xff] }
 0x4b5   : > { %15516 = vmatmul.mubr.msk.bf16.vlgmr.msra.gmra.mrb[8].mxu1 %vm1128_vm4, %v1298_v26  ;;  %v13229_v26 = vcombine.low %v1693_v21, %v1701_v23 }
 0x4b6   : > { %15527 = vmatprep.mubr.msk.bf16.mxu1 %vm16652_vm1, %v16651_v0 }
 0x4d1   : > { %v1515_v28 = vpop.xlane.xlu1 %1514 }
 0x4d2   : > { %16509 = vrcp.f32 %v1515_v28  ;;  %v13232_v28 = vcombine.high %v1694_v24, %v1702_v22  ;;  %v15957_v22 = vld [vmem:[%s18635_s30 + $0x40] sm:$0xff]  }
 0x4d5   : > { %v1410_v30 = vpop.permute.xlu1 %1409 }
 0x4d6   : > { %v1415_v31 = vsel %vm1192_vm5, %v1410_v30, 0  ;;  %v1687_v30 = vld [vmem:[%s18639_s19 + $0x50] sm:$0xff] }
 0x4d7   : > { %15526 = vmatpush3.bf16.msra.mxu1 %v1415_v31  ;;  %v1680_v31 = vld [vmem:[%s18639_s19 + $0x18] sm:$0xff]  ;;  %v13218_v32 = vcombine.high %v1679_v29, %v1687_v30 }
 0x4d8   : > { %15537 = vmatprep.subr.bf16.mxu1 %v16651_v0 }
 0x4da   : > { %15528 = vmatmul.mubr.msk.bf16.vlgmr.msra.gmra.mrb[12].mxu1 %vm1128_vm4, %v1408_v33  ;;  %v1688_v33 = vld [vmem:[%s18639_s19 + $0x58] sm:$0xff] }
 0x4db   : > { %15538 = vmatpush3.bf16.msra.mxu1 %v1525_v34  ;;  %15539 = vmatprep.mubr.msk.bf16.mxu1 %vm16652_vm1, %v16651_v0  ;;  %v16667_v34 = vmov 0  }
 0x4dc   : > { %v16510_v35 = vpop.eup %16509  ;;  %2214 = vmatprep.subr.bf16.mxu1 %v13214_v17  ;;  %v1707_v17 = vld [vmem:[%s18639_s19 + $0xf0] sm:$0xff] }
 0x4dd   : > { %v1517_v36 = vmul.f32 %v16510_v35, %v16502_v11  ;;  %v13217_v35 = vcombine.low %v1679_v29, %v1687_v30  ;;  %v13242_v21 = vcombine.high %v1699_v16, %v1707_v17  ;;  %v13241_v24 = vcombine.low %v1699_v16, %v1707_v17  ;;  %v15961_v29 = vld [vmem:[%s18635_s30 + $0x48] sm:$0xff]  }
 0x4de   : > { %v15962_v30 = vld [vmem:[%s18635_s30 + $0xc8] sm:$0xff]  }
 0x4df   : > { %v1518_v37 = vpack.c.bf16 %v1517_v36, %v1517_v36  ;;  %v13219_v36 = vcombine.low %v1680_v31, %v1688_v33 }
 0x4e2   : > { %15540 = vmatmul.mubr.msk.bf16.vlgmr.msra.gmra.mrb[16].mxu1 %vm1128_vm4, %v1518_v37  ;;  %v13220_v37 = vcombine.high %v1680_v31, %v1688_v33  ;;  %v15963_v31 = vld [vmem:[%s18635_s30 + $0x8] sm:$0xff]   ;;  %v15965_v33 = vld [vmem:[%s18635_s30 + $0x50] sm:$0xff]  }
 0x4e3   : > { %2246 = vmatprep.mubr.bf16.mxu1 %v16667_v34 }
 0x580   : > { %v1230_v38 = vpop.f32.mrb[4].mxu1 }
 0x581   : > { %v15505_v39 = vpop.f32.mrb[5].mxu1 }
 0x582   : > { %v1233_v40 = vpop.f32.mrb[6].mxu1 }
 0x583   : > { %v15506_v41 = vpop.f32.mrb[7].mxu1 }
 0x588   : > { %v1341_v42 = vpop.f32.mrb[8].mxu1 }
 0x589   : > { %1568 = vrot.lane.b32.xlu1 %v1341_v42, %s18581_s0  ;;  %v15517_v43 = vpop.f32.mrb[9].mxu1  ;;  %v13211_v42 = vld [vmem:[%s18641_s12] ss:$0 sm:$0xff] }
 0x58a   : > { %v1344_v44 = vpop.f32.mrb[10].mxu1 }
 0x58b   : > { %v15518_v45 = vpop.f32.mrb[11].mxu1  ;;  %v13212_v44 = vld [vmem:[%s18638_s20] ss:$0 sm:$0xff] }
 0x5ad   : > { %v1451_v48 = vpop.f32.mrb[12].mxu1 }
 0x5ae   : > { %1572 = vrot.lane.b32.xlu0 %v1451_v48, %s18579_s2  ;;  %v15529_v49 = vpop.f32.mrb[13].mxu1  ;;  %v1696_v48 = vld [vmem:[%s18639_s19 + $0x98] sm:$0xff] }
 0x5af   : > { %v1454_v50 = vpop.f32.mrb[14].mxu1  ;;  %v1704_v49 = vld [vmem:[%s18639_s19 + $0xd8] sm:$0xff] }
 0x5b0   : > { %v15530_v51 = vpop.f32.mrb[15].mxu1 }
 0x5b5   : > { %v1561_v52 = vpop.f32.mrb[16].mxu1 }
 0x5b6   : > { %1576 = vrot.lane.b32.xlu1 %v1561_v52, %s18577_s26  ;;  %v15541_v53 = vpop.f32.mrb[17].mxu1  ;;  %v13234_v52 = vcombine.high %v1695_v46, %v1703_v47 }
 0x5b7   : > { %v1564_v54 = vpop.f32.mrb[18].mxu1  ;;  %v13236_v53 = vcombine.high %v1696_v48, %v1704_v49 }
 0x5b8   : > { %v15542_v55 = vpop.f32.mrb[19].mxu1  ;;  %v1681_v54 = vld [vmem:[%s18639_s19 + $0x20] sm:$0xff] }
 0x5b9   : > { %v1689_v55 = vld [vmem:[%s18639_s19 + $0x60] sm:$0xff] }
 0x5fb   : > { %v1569_v56 = vpop.permute.xlu1 %1568 }
 0x5fc   : > { %v1579_v58 = vsel %vm1128_vm4, %v1230_v38, %v1569_v56  ;;  %v1682_v56 = vld [vmem:[%s18639_s19 + $0x28] sm:$0xff] }
 0x620   : > { %v1573_v57 = vpop.permute.xlu0 %1572 }
 0x621   : > { %v1581_v59 = vsel %vm1580_vm6, %v1579_v58, %v1573_v57  ;;  %v1690_v57 = vld [vmem:[%s18639_s19 + $0x68] sm:$0xff]  ;;  %v13233_v58 = vcombine.low %v1695_v46, %v1703_v47 }
 0x622   : > { %v15977_v46 = vld [vmem:[%s18635_s30 + $0x68] sm:$0xff]  }
 0x623   : > { %v15978_v47 = vld [vmem:[%s18635_s30 + $0xe8] sm:$0xff]  }
 0x628   : > { %v1577_v60 = vpop.permute.xlu1 %1576 }
 0x629   : > { %v1583_v61 = vsel %vm1582_vm7, %v1581_v59, %v1577_v60  ;;  %v13235_v59 = vcombine.low %v1696_v48, %v1704_v49  ;;  %v13222_v60 = vcombine.high %v1681_v54, %v1689_v55  ;;  %v15979_v48 = vld [vmem:[%s18635_s30 + $0x28] sm:$0xff]  }
 0x62a   : > { %v1584_v62 = vpack.c.bf16 %v1583_v61, %v1583_v61  ;;  %v13224_v61 = vcombine.high %v1682_v56, %v1690_v57  ;;  %v15980_v49 = vld [vmem:[%s18635_s30 + $0xa8] sm:$0xff]  }
 0x62c   : > { %15548 = vmatmul.mubr.msk.bf16.vlgmr.msra.gmra.mrb[20].mxu0 %vm1078_vm3, %v1584_v62  ;;  %v1697_v62 = vld [vmem:[%s18639_s19 + $0xa0] sm:$0xff] }
 0x62d   : > { %2256 = vmatpush1.bf16.msra.mxu0 %v13215_v19  ;;  %2287 = vmatprep.mubr.bf16.mxu0 %v16667_v34 }
 0x62e   : > { %2257 = vmatprep.subr.bf16.mxu0 %v13232_v28  ;;  %v15960_v28 = vld [vmem:[%s18635_s30 + $0x80] sm:$0xff]  }
 0x631   : > { %2258 = vmatpush1.bf16.msra.mxu0 %v13231_v27  ;;  %v15959_v27 = vld [vmem:[%s18635_s30] sm:$0xff]  }
 0x632   : > { %2337 = vmatprep.subr.bf16.mxu0 %v13220_v37  ;;  %v15968_v37 = vld [vmem:[%s18635_s30 + $0x90] sm:$0xff]  }
 0x6ff   : > { %v1640_v1 = vpop.f32.mrb[20].mxu0 }
 0x700   : > { %v1641_v2 = vadd.f32 %v13207_v63, %v1640_v1  ;;  %v15549_v3 = vpop.f32.mrb[21].mxu0  ;;  %v1705_v63 = vld [vmem:[%s18639_s19 + $0xe0] sm:$0xff]  ;;  %v1698_v1 = vld [vmem:[%s18639_s19 + $0xa8] sm:$0xff] }
 0x701   : > { %v1643_v4 = vpop.f32.mrb[22].mxu0  ;;  %v13221_v3 = vcombine.low %v1681_v54, %v1689_v55  ;;  %v15984_v54 = vld [vmem:[%s18635_s30 + $0xb0] sm:$0xff]   ;;  %v15985_v55 = vld [vmem:[%s18635_s30 + $0x78] sm:$0xff]  }
 0x702   : > { %v15550_v5 = vpop.f32.mrb[23].mxu0  ;;  %v1646_v6 = vadd.f32 %v1641_v2, %v16868_v13  ;;  %v13213_v13 = vcombine.low %v1677_v14, %v1685_v15  ;;  %v1706_v2 = vld [vmem:[%s18639_s19 + $0xe8] sm:$0xff]  ;;  %v13223_v4 = vcombine.low %v1682_v56, %v1690_v57  ;;  %v15986_v56 = vld [vmem:[%s18635_s30 + $0xf8] sm:$0xff]  }
 0x703   : > { %v13238_v5 = vcombine.high %v1697_v62, %v1705_v63  ;;  %v15987_v57 = vld [vmem:[%s18635_s30 + $0x38] sm:$0xff]  }
 0x704   : > { %v1649_v7 = vsel %vm1078_vm3, %v1646_v6, 0.0  ;;  %2215 = vmatpush1.bf16.msra.mxu1 %v13213_v13  ;;  %v1708_v13 = vld [vmem:[%s18639_s19 + $0xf8] sm:$0xff] }
 0x705   : > { %1650 = vadd.xlane.f32.xlu0 %v1649_v7  ;;  %2216 = vmatprep.subr.bf16.mxu1 %v13230_v25  ;;  %v1683_v7 = vld [vmem:[%s18639_s19 + $0x30] sm:$0xff]  ;;  %v13244_v23 = vcombine.high %v1700_v18, %v1708_v13  ;;  %v13243_v25 = vcombine.low %v1700_v18, %v1708_v13 }
 0x708   : > { %2217 = vmatpush1.bf16.msra.mxu1 %v13229_v26  ;;  %v15958_v26 = vld [vmem:[%s18635_s30 + $0xc0] sm:$0xff]  }
 0x709   : > { %2296 = vmatprep.subr.bf16.mxu1 %v13218_v32  ;;  %v15964_v32 = vld [vmem:[%s18635_s30 + $0x88] sm:$0xff]  }
 0x792   : > { %v1651_v8 = vpop.xlane.xlu0 %1650 }
 0x793   : > { %v1653_v9 = vmul.f32 0.03125, %v1651_v8  ;;  %v1691_v8 = vld [vmem:[%s18639_s19 + $0x70] sm:$0xff] }
 0x794   : > { %v13226_v14 = vcombine.high %v1683_v7, %v1691_v8  ;;  %v13225_v19 = vcombine.low %v1683_v7, %v1691_v8 }
 0x795   : > { %v1654_v10 = vsub.f32 %v1646_v6, %v1653_v9  ;;  %v13240_v6 = vcombine.high %v1698_v1, %v1706_v2  ;;  %v1684_v9 = vld [vmem:[%s18639_s19 + $0x38] sm:$0xff] }
 0x797   : > { %v1655_v11 = vmul.f32 %v1654_v10, %v1654_v10 }
 0x799   : > { %v1656_v12 = vsel %vm1078_vm3, %v1655_v11, 0.0  ;;  %v13237_v11 = vcombine.low %v1697_v62, %v1705_v63 }
 0x79a   : > { %1657 = vadd.xlane.f32.xlu1 %v1656_v12  ;;  %v13239_v12 = vcombine.low %v1698_v1, %v1706_v2  ;;  %v17063_v2 = vld [vmem:[%s18637_s24] sm:$0xff] }
 0x827   : > { %v1658_v38 = vpop.xlane.xlu1 %1657 }
 0x828   : > { %v1659_v39 = vmul.f32 0.03125, %v1658_v38  ;;  %v15969_v38 = vld [vmem:[%s18635_s30 + $0x58] sm:$0xff]  }
 0x82a   : > { %v1660_v40 = vadd.f32 1e-05, %v1659_v39  ;;  %v15970_v39 = vld [vmem:[%s18635_s30 + $0xd8] sm:$0xff]  }
 0x82c   : > { %16511 = vrsqrt.f32 %v1660_v40  ;;  %v15971_v40 = vld [vmem:[%s18635_s30 + $0x18] sm:$0xff]  }
 0x836   : > { %v16512_v41 = vpop.eup %16511 }
 0x837   : > { %v1662_v43 = vmul.f32 %v16512_v41, %v1654_v10  ;;  %v1692_v10 = vld [vmem:[%s18639_s19 + $0x78] sm:$0xff] }
 0x838   : > { %v13228_v15 = vcombine.high %v1684_v9, %v1692_v10  ;;  %v13227_v20 = vcombine.low %v1684_v9, %v1692_v10  ;;  %v15972_v41 = vld [vmem:[%s18635_s30 + $0x98] sm:$0xff]  }
 0x839   : > { %v1669_v45 = vmul.f32 %v13211_v42, %v1662_v43  ;;  %v15973_v42 = vld [vmem:[%s18635_s30 + $0x60] sm:$0xff]  }
 0x83a   : > { %v15974_v43 = vld [vmem:[%s18635_s30 + $0xe0] sm:$0xff]  }
 0x83b   : > { %v16976_v50 = vadd.f32 %v13212_v44, %v1669_v45  ;;  %v15975_v44 = vld [vmem:[%s18635_s30 + $0x20] sm:$0xff]  }
 0x83c   : > { %v15976_v45 = vld [vmem:[%s18635_s30 + $0xa0] sm:$0xff]  }
 0x83d   : > { %v16980_v51 = vpack.c.bf16 %v16976_v50, %v16976_v50 }
 0x83f   : > { %13245 = vmatmul.mubr.msk.bf16.vlgmr.msra.gmra.mrb[20].mxu1 %vm1078_vm3, %v16980_v51  ;;  %13246 = vmatmul.mubr.msk.bf16.vlgmr.msra.gmra.mrb[24].mxu0 %vm1078_vm3, %v16980_v51 }
 0x840   : > { %2297 = vmatpush1.bf16.msra.mxu1 %v13217_v35  ;;  %2338 = vmatpush1.bf16.msra.mxu0 %v13219_v36  ;;  %v15966_v35 = vld [vmem:[%s18635_s30 + $0xd0] sm:$0xff]  }
 0x841   : > { %2298 = vmatprep.subr.bf16.mxu1 %v13234_v52  ;;  %2339 = vmatprep.subr.bf16.mxu0 %v13236_v53  ;;  %v15967_v36 = vld [vmem:[%s18635_s30 + $0x10] sm:$0xff]  }
 0x842   : > { %2328 = vmatprep.mubr.bf16.mxu1 %v16667_v34  ;;  %2369 = vmatprep.mubr.bf16.mxu0 %v16667_v34  ;;  %v15982_v52 = vld [vmem:[%s18635_s30 + $0xf0] sm:$0xff]  }
 0x843   : > { %v15983_v53 = vld [vmem:[%s18635_s30 + $0x30] sm:$0xff]  }
 0x844   : > { %2299 = vmatpush1.bf16.msra.mxu1 %v13233_v58  ;;  %2340 = vmatpush1.bf16.msra.mxu0 %v13235_v59  ;;  %v15988_v58 = vld [vmem:[%s18635_s30 + $0xb8] sm:$0xff]   ;;  %v15989_v59 = vld [vmem:[%s18635_s30 + $0x140] sm:$0xff]  }
 0x845   : > { %2378 = vmatprep.subr.bf16.mxu1 %v13222_v60  ;;  %2419 = vmatprep.subr.bf16.mxu0 %v13224_v61  ;;  %v15990_v60 = vld [vmem:[%s18635_s30 + $0x1c0] sm:$0xff]   ;;  %v1971_v61 = vlaneseq }
 0x847   : > { %13247 = vmatmul.mubr.msk.bf16.vlgmr.msra.gmra.mrb[24].mxu1 %vm1078_vm3, %v16980_v51  ;;  %13248 = vmatmul.mubr.msk.bf16.vlgmr.msra.gmra.mrb[28].mxu0 %vm1078_vm3, %v16980_v51  ;;  %v17054_v62 = vshrl.u32 %v1971_v61, 7 }
 0x848   : > { %2379 = vmatpush1.bf16.msra.mxu1 %v13221_v3  ;;  %2420 = vmatpush1.bf16.msra.mxu0 %v13223_v4 }
 0x849   : > { %2380 = vmatprep.subr.bf16.mxu1 %v13238_v5  ;;  %2421 = vmatprep.subr.bf16.mxu0 %v13240_v6  ;;  %v17057_v63 = vsub.s32 0, %v17054_v62  ;;  %v17060_v1 = vsub.s32 2, %v17054_v62  ;;  %v17066_v3 = vsub.s32 1, %v17054_v62  ;;  %v17069_v4 = vsub.s32 3, %v17054_v62 }
 0x84a   : > { %2410 = vmatprep.mubr.bf16.mxu1 %v16667_v34  ;;  %2451 = vmatprep.mubr.bf16.mxu0 %v16667_v34 }
 0x84b   : > { %v1974_v5 = vrot.slane %v17063_v2, %v17057_v63  ;;  %v1982_v6 = vrot.slane %v17063_v2, %v17060_v1  ;;  %v1978_v7 = vrot.slane %v17063_v2, %v17066_v3  ;;  %v1986_v8 = vrot.slane %v17063_v2, %v17069_v4 }
 0x84c   : > { %2381 = vmatpush1.bf16.msra.mxu1 %v13237_v11  ;;  %2422 = vmatpush1.bf16.msra.mxu0 %v13239_v12 }
 0x84d   : > { %2460 = vmatprep.subr.bf16.mxu1 %v13226_v14  ;;  %2501 = vmatprep.subr.bf16.mxu0 %v13228_v15 }
 0x84f   : > { %13249 = vmatmul.mubr.msk.bf16.vlgmr.msra.gmra.mrb[28].mxu1 %vm1078_vm3, %v16980_v51  ;;  %13250 = vmatmul.mubr.msk.bf16.vlgmr.msra.gmra.mrb[32].mxu0 %vm1078_vm3, %v16980_v51 }
 0x850   : > { %2461 = vmatpush1.bf16.msra.mxu1 %v13225_v19  ;;  %2502 = vmatpush1.bf16.msra.mxu0 %v13227_v20  ;;  %v17080_v19 = vsub.s32 5, %v17054_v62  ;;  %v17083_v20 = vsub.s32 7, %v17054_v62 }
 0x851   : > { %2462 = vmatprep.subr.bf16.mxu1 %v13242_v21  ;;  %2503 = vmatprep.subr.bf16.mxu0 %v13244_v23 }
 0x852   : > { %2492 = vmatprep.mubr.bf16.mxu1 %v16667_v34  ;;  %2533 = vmatprep.mubr.bf16.mxu0 %v16667_v34 }
 0x854   : > { %2463 = vmatpush1.bf16.msra.mxu1 %v13241_v24  ;;  %2504 = vmatpush1.bf16.msra.mxu0 %v13243_v25 }
 0x855   : > { %14658 = vmatprep.subr.bf16.mxu1 %v15957_v22  ;;  %14680 = vmatprep.subr.bf16.mxu0 %v15958_v26 }
 0x857   : > { %13251 = vmatmul.mubr.msk.bf16.vlgmr.msra.gmra.mrb[32].mxu1 %vm1078_vm3, %v16980_v51  ;;  %13252 = vmatmul.mubr.msk.bf16.vlgmr.msra.gmra.mrb[36].mxu0 %vm1078_vm3, %v16980_v51  ;;  %v15981_v51 = vld [vmem:[%s18635_s30 + $0x70] sm:$0xff]  }
 0x858   : > { %14659 = vmatpush3.bf16.msra.mxu1 %v15959_v27  ;;  %14681 = vmatpush3.bf16.msra.mxu0 %v15960_v28 }
 0x859   : > { %14660 = vmatprep.subr.bf16.mxu1 %v15961_v29  ;;  %14682 = vmatprep.subr.bf16.mxu0 %v15962_v30  ;;  %v1994_v29 = vrot.slane %v17063_v2, %v17080_v19  ;;  %v2002_v30 = vrot.slane %v17063_v2, %v17083_v20 }
 0x85c   : > { %14661 = vmatpush3.bf16.msra.mxu1 %v15963_v31  ;;  %14683 = vmatpush3.bf16.msra.mxu0 %v15964_v32  ;;  %v15991_v31 = vld [vmem:[%s18635_s30 + $0x100] sm:$0xff]  }
 0x85d   : > { %14662 = vmatprep.subr.bf16.mxu1 %v15965_v33  ;;  %14684 = vmatprep.subr.bf16.mxu0 %v15966_v35  ;;  %v15992_v32 = vld [vmem:[%s18635_s30 + $0x180] sm:$0xff]  }
 0x860   : > { %14663 = vmatpush3.bf16.msra.mxu1 %v15967_v36  ;;  %14685 = vmatpush3.bf16.msra.mxu0 %v15968_v37  ;;  %v15993_v36 = vld [vmem:[%s18635_s30 + $0x148] sm:$0xff]  }
 0x861   : > { %14664 = vmatprep.subr.bf16.mxu1 %v15969_v38  ;;  %14686 = vmatprep.subr.bf16.mxu0 %v15970_v39  ;;  %v15994_v37 = vld [vmem:[%s18635_s30 + $0x1c8] sm:$0xff]  }
 0x864   : > { %14665 = vmatpush3.bf16.msra.mxu1 %v15971_v40  ;;  %14687 = vmatpush3.bf16.msra.mxu0 %v15972_v41 }
 0x865   : > { %14666 = vmatprep.subr.bf16.mxu1 %v15973_v42  ;;  %14688 = vmatprep.subr.bf16.mxu0 %v15974_v43 }
 0x868   : > { %14667 = vmatpush3.bf16.msra.mxu1 %v15975_v44  ;;  %14689 = vmatpush3.bf16.msra.mxu0 %v15976_v45 }
 0x869   : > { %14668 = vmatprep.subr.bf16.mxu1 %v15977_v46  ;;  %14690 = vmatprep.subr.bf16.mxu0 %v15978_v47  ;;  %v15995_v46 = vld [vmem:[%s18635_s30 + $0x108] sm:$0xff]  }
 0x86a   : > { %v15996_v47 = vld [vmem:[%s18635_s30 + $0x188] sm:$0xff]  }
 0x86c   : > { %14669 = vmatpush3.bf16.msra.mxu1 %v15979_v48  ;;  %14691 = vmatpush3.bf16.msra.mxu0 %v15980_v49 }
 0x86d   : > { %14670 = vmatprep.subr.bf16.mxu1 %v15981_v51  ;;  %14692 = vmatprep.subr.bf16.mxu0 %v15982_v52  ;;  %v15997_v51 = vld [vmem:[%s18635_s30 + $0x150] sm:$0xff]  }
 0x86e   : > { %v15998_v52 = vld [vmem:[%s18635_s30 + $0x1d0] sm:$0xff]  }
 0x870   : > { %14671 = vmatpush3.bf16.msra.mxu1 %v15983_v53  ;;  %14693 = vmatpush3.bf16.msra.mxu0 %v15984_v54 }
 0x871   : > { %14672 = vmatprep.subr.bf16.mxu1 %v15985_v55  ;;  %14694 = vmatprep.subr.bf16.mxu0 %v15986_v56 }
 0x874   : > { %14673 = vmatpush3.bf16.msra.mxu1 %v15987_v57  ;;  %14695 = vmatpush3.bf16.msra.mxu0 %v15988_v58  ;;  %v15999_v57 = vld [vmem:[%s18635_s30 + $0x110] sm:$0xff]  }
 0x875   : > { %14702 = vmatprep.subr.bf16.mxu1 %v15989_v59  ;;  %14724 = vmatprep.subr.bf16.mxu0 %v15990_v60  ;;  %v16000_v58 = vld [vmem:[%s18635_s30 + $0x190] sm:$0xff]   ;;  %v16001_v59 = vld [vmem:[%s18635_s30 + $0x158] sm:$0xff]  }
 0x876   : > { %v16002_v60 = vld [vmem:[%s18635_s30 + $0x1d8] sm:$0xff]  }
 0x912   : > { %v2248_v9 = vpop.f32.mrb[20].mxu1  ;;  %v2289_v10 = vpop.f32.mrb[24].mxu0 }
 0x913   : > { %v2249_v11 = vadd.f32 %v2248_v9, %v1974_v5  ;;  %v2290_v12 = vadd.f32 %v2289_v10, %v1982_v6  ;;  %v2250_v14 = vpop.f32.mrb[21].mxu1  ;;  %v2291_v15 = vpop.f32.mrb[25].mxu0  ;;  %v16003_v10 = vld [vmem:[%s18635_s30 + $0x118] sm:$0xff]  }
 0x914   : > { %v2251_v16 = vadd.f32 %v2250_v14, %v1978_v7  ;;  %v2292_v17 = vadd.f32 %v2291_v15, %v1986_v8  ;;  %v2252_v18 = vpop.f32.mrb[22].mxu1  ;;  %v2293_v13 = vpop.f32.mrb[26].mxu0 }
 0x915   : > { %v2542_v21 = vmax.f32 %v2249_v11, 0.0  ;;  %v2544_v23 = vmax.f32 %v2290_v12, 0.0  ;;  %v2253_v24 = vpop.f32.mrb[23].mxu1  ;;  %v2294_v25 = vpop.f32.mrb[27].mxu0  ;;  %v16004_v11 = vld [vmem:[%s18635_s30 + $0x198] sm:$0xff]   ;;  %v17112_v12 = vsub.s32 6, %v17054_v62 }
 0x916   : > { %v2543_v22 = vmax.f32 %v2251_v16, 0.0  ;;  %v2545_v26 = vmax.f32 %v2292_v17, 0.0  ;;  %v16005_v16 = vld [vmem:[%s18635_s30 + $0x160] sm:$0xff]   ;;  %v17117_v18 = vld [vmem:[%s18637_s24 + $0x8] sm:$0xff]  ;;  %v17124_v24 = vsub.s32 4, %v17054_v62 }
 0x917   : > { %v2558_v33 = vpack.c.bf16 %v2542_v21, %v2542_v21  ;;  %v2560_v35 = vpack.c.bf16 %v2544_v23, %v2544_v23  ;;  %v16006_v17 = vld [vmem:[%s18635_s30 + $0x1e0] sm:$0xff]   ;;  %v2030_v13 = vrot.slane %v17117_v18, %v17112_v12  ;;  %v16009_v25 = vld [vmem:[%s18635_s30 + $0x168] sm:$0xff]  }
 0x918   : > { %v2559_v27 = vpack.c.bf16 %v2543_v22, %v2543_v22  ;;  %v2561_v28 = vpack.c.bf16 %v2545_v26, %v2545_v26  ;;  %v16007_v21 = vld [vmem:[%s18635_s30 + $0x120] sm:$0xff]   ;;  %v16010_v22 = vld [vmem:[%s18635_s30 + $0x1e8] sm:$0xff]  }
 0x919   : > { %v16008_v23 = vld [vmem:[%s18635_s30 + $0x1a0] sm:$0xff]  }
 0x91a   : > { %v17093_v38 = vpop.f32.mrb[24].mxu1  ;;  %v17095_v39 = vpop.f32.mrb[28].mxu0  ;;  %3380 = vmatprep.mubr.bf16.mxu1 %v2559_v27  ;;  %3420 = vmatprep.mubr.bf16.mxu0 %v2561_v28 }
 0x91b   : > { %v2332_v40 = vpop.f32.mrb[25].mxu1  ;;  %v2373_v41 = vpop.f32.mrb[29].mxu0  ;;  %3381 = vmatmul.mubr.bf16.vlgmr.msra.gmra.mrb[36].mxu1 %v2558_v33  ;;  %3421 = vmatmul.mubr.bf16.vlgmr.msra.gmra.mrb[40].mxu0 %v2560_v35  ;;  %v16012_v33 = vld [vmem:[%s18635_s30 + $0x1a8] sm:$0xff]   ;;  %v1990_v35 = vrot.slane %v17063_v2, %v17124_v24 }
 0x91c   : > { %v2333_v42 = vadd.f32 %v2332_v40, %v1994_v29  ;;  %v2374_v43 = vadd.f32 %v2373_v41, %v2002_v30  ;;  %14703 = vmatpush3.bf16.msra.mxu1 %v15991_v31  ;;  %14725 = vmatpush3.bf16.msra.mxu0 %v15992_v32  ;;  %v2334_v44 = vpop.f32.mrb[26].mxu1  ;;  %v2375_v45 = vpop.f32.mrb[30].mxu0  ;;  %v16011_v32 = vld [vmem:[%s18635_s30 + $0x128] sm:$0xff]   ;;  %v16013_v41 = vld [vmem:[%s18635_s30 + $0x170] sm:$0xff]  }
 0x91d   : > { %v2335_v48 = vpop.f32.mrb[27].mxu1  ;;  %v2376_v49 = vpop.f32.mrb[31].mxu0  ;;  %14704 = vmatprep.subr.bf16.mxu1 %v15993_v36  ;;  %14726 = vmatprep.subr.bf16.mxu0 %v15994_v37  ;;  %v1998_v36 = vrot.slane %v17063_v2, %v17112_v12  ;;  %v2018_v44 = vrot.slane %v17117_v18, %v17069_v4  ;;  %v16015_v45 = vld [vmem:[%s18635_s30 + $0x130] sm:$0xff]  }
 0x91e   : > { %v2547_v53 = vmax.f32 %v2333_v42, 0.0  ;;  %v2549_v54 = vmax.f32 %v2374_v43, 0.0  ;;  %v16014_v42 = vld [vmem:[%s18635_s30 + $0x1f0] sm:$0xff]   ;;  %v2010_v43 = vrot.slane %v17117_v18, %v17066_v3  ;;  %v16017_v48 = vld [vmem:[%s18635_s30 + $0x178] sm:$0xff]  }
 0x91f   : > { %v16016_v2 = vld [vmem:[%s18635_s30 + $0x1b0] sm:$0xff]   ;;  %v16018_v49 = vld [vmem:[%s18635_s30 + $0x1f8] sm:$0xff]  }
 0x920   : > { %v2563_v55 = vpack.c.bf16 %v2547_v53, %v2547_v53  ;;  %v2565_v56 = vpack.c.bf16 %v2549_v54, %v2549_v54  ;;  %14705 = vmatpush3.bf16.msra.mxu1 %v15995_v46  ;;  %14727 = vmatpush3.bf16.msra.mxu0 %v15996_v47  ;;  %v2331_v46 = vadd.f32 %v17093_v38, %v1990_v35  ;;  %v16019_v53 = vld [vmem:[%s18635_s30 + $0x138] sm:$0xff]   ;;  %v16021_v38 = vld [vmem:[%s18635_s30 + $0x240] sm:$0xff]   ;;  %v16041_v35 = vld [vmem:[%s18635_s30 + $0x268] sm:$0xff]  }
 0x921   : > { %14706 = vmatprep.subr.bf16.mxu1 %v15997_v51  ;;  %14728 = vmatprep.subr.bf16.mxu0 %v15998_v52  ;;  %v2372_v47 = vadd.f32 %v17095_v39, %v1998_v36  ;;  %v16020_v54 = vld [vmem:[%s18635_s30 + $0x1b8] sm:$0xff]   ;;  %v16022_v39 = vld [vmem:[%s18635_s30 + $0x2c0] sm:$0xff]   ;;  %v16042_v36 = vld [vmem:[%s18635_s30 + $0x2e8] sm:$0xff]  }
 0x922   : > { %v17105_v61 = vpop.f32.mrb[28].mxu1  ;;  %v17107_v5 = vpop.f32.mrb[32].mxu0  ;;  %3460 = vmatprep.mubr.bf16.mxu1 %v2563_v55  ;;  %3500 = vmatprep.mubr.bf16.mxu0 %v2565_v56  ;;  %v2546_v55 = vmax.f32 %v2331_v46, 0.0  ;;  %v16047_v46 = vld [vmem:[%s18635_s30 + $0x230] sm:$0xff]  }
 0x923   : > { %v2414_v6 = vpop.f32.mrb[29].mxu1  ;;  %v2455_v7 = vpop.f32.mrb[33].mxu0  ;;  %v2548_v56 = vmax.f32 %v2372_v47, 0.0 }
 0x924   : > { %14707 = vmatpush3.bf16.msra.mxu1 %v15999_v57  ;;  %14729 = vmatpush3.bf16.msra.mxu0 %v16000_v58  ;;  %v2416_v8 = vpop.f32.mrb[30].mxu1  ;;  %v2457_v9 = vpop.f32.mrb[34].mxu0  ;;  %v2415_v51 = vadd.f32 %v2414_v6, %v2010_v43  ;;  %v2456_v52 = vadd.f32 %v2455_v7, %v2018_v44  ;;  %v16024_v7 = vld [vmem:[%s18635_s30 + $0x280] sm:$0xff]   ;;  %v2014_v43 = vrot.slane %v17117_v18, %v17060_v1  ;;  %v16046_v44 = vld [vmem:[%s18635_s30 + $0x2f0] sm:$0xff]  }
 0x925   : > { %v2417_v14 = vpop.f32.mrb[31].mxu1  ;;  %v2458_v15 = vpop.f32.mrb[35].mxu0  ;;  %14708 = vmatprep.subr.bf16.mxu1 %v16001_v59  ;;  %14730 = vmatprep.subr.bf16.mxu0 %v16002_v60  ;;  %v16023_v59 = vld [vmem:[%s18635_s30 + $0x200] sm:$0xff]   ;;  %v2562_v60 = vpack.c.bf16 %v2546_v55, %v2546_v55  ;;  %v2564_v6 = vpack.c.bf16 %v2548_v56, %v2548_v56  ;;  %v16025_v9 = vld [vmem:[%s18635_s30 + $0x248] sm:$0xff]   ;;  %v16051_v55 = vld [vmem:[%s18635_s30 + $0x238] sm:$0xff]  }
 0x926   : > { %v2551_v57 = vmax.f32 %v2415_v51, 0.0  ;;  %v2553_v58 = vmax.f32 %v2456_v52, 0.0  ;;  %v16027_v14 = vld [vmem:[%s18635_s30 + $0x208] sm:$0xff]   ;;  %v2454_v51 = vadd.f32 %v17107_v5, %v2014_v43  ;;  %v16050_v52 = vld [vmem:[%s18635_s30 + $0x2f8] sm:$0xff]   ;;  %v16054_v5 = vld [vmem:[%s18635_s30 + $0x3c0] sm:$0xff]  }
 0x927   : > { %v16028_v15 = vld [vmem:[%s18635_s30 + $0x288] sm:$0xff]  }
 0x928   : > { %14709 = vmatpush3.bf16.msra.mxu1 %v16003_v10  ;;  %14731 = vmatpush3.bf16.msra.mxu0 %v16004_v11  ;;  %v2567_v8 = vpack.c.bf16 %v2551_v57, %v2551_v57  ;;  %v16026_v10 = vld [vmem:[%s18635_s30 + $0x2c8] sm:$0xff]   ;;  %v2569_v11 = vpack.c.bf16 %v2553_v58, %v2553_v58 }
 0x929   : > { %14710 = vmatprep.subr.bf16.mxu1 %v16005_v16  ;;  %14732 = vmatprep.subr.bf16.mxu0 %v16006_v17  ;;  %v16029_v16 = vld [vmem:[%s18635_s30 + $0x250] sm:$0xff]  }
 0x92a   : > { %v17128_v26 = vpop.f32.mrb[32].mxu1  ;;  %v2535_v27 = vpop.f32.mrb[36].mxu0  ;;  %v16030_v17 = vld [vmem:[%s18635_s30 + $0x2d0] sm:$0xff]  }
 0x92b   : > { %v17130_v28 = vadd.f32 %v2535_v27, %v2030_v13  ;;  %v17132_v29 = vpop.f32.mrb[33].mxu1  ;;  %v17134_v30 = vpop.f32.mrb[37].mxu0  ;;  %v16031_v13 = vld [vmem:[%s18635_s30 + $0x210] sm:$0xff]   ;;  %v16036_v27 = vld [vmem:[%s18635_s30 + $0x298] sm:$0xff]  }
 0x92c   : > { %14711 = vmatpush3.bf16.msra.mxu1 %v16007_v21  ;;  %14733 = vmatpush3.bf16.msra.mxu0 %v16008_v23  ;;  %v2498_v31 = vpop.f32.mrb[34].mxu1  ;;  %v2539_v62 = vpop.f32.mrb[38].mxu0  ;;  %v16032_v21 = vld [vmem:[%s18635_s30 + $0x290] sm:$0xff]   ;;  %v16033_v23 = vld [vmem:[%s18635_s30 + $0x258] sm:$0xff]  }
 0x92d   : > { %v2499_v37 = vpop.f32.mrb[35].mxu1  ;;  %v2540_v40 = vpop.f32.mrb[39].mxu0  ;;  %14712 = vmatprep.subr.bf16.mxu1 %v16009_v25  ;;  %14734 = vmatprep.subr.bf16.mxu0 %v16010_v22  ;;  %v16034_v25 = vld [vmem:[%s18635_s30 + $0x2d8] sm:$0xff]   ;;  %v16037_v31 = vld [vmem:[%s18635_s30 + $0x260] sm:$0xff]  }
 0x92e   : > { %v16035_v22 = vld [vmem:[%s18635_s30 + $0x218] sm:$0xff]   ;;  %v16038_v62 = vld [vmem:[%s18635_s30 + $0x2e0] sm:$0xff]   ;;  %v16043_v37 = vld [vmem:[%s18635_s30 + $0x228] sm:$0xff]   ;;  %v2006_v40 = vrot.slane %v17117_v18, %v17057_v63 }
 0x930   : > { %14713 = vmatpush3.bf16.msra.mxu1 %v16011_v32  ;;  %14735 = vmatpush3.bf16.msra.mxu0 %v16012_v33  ;;  %v16039_v32 = vld [vmem:[%s18635_s30 + $0x220] sm:$0xff]   ;;  %v2413_v47 = vadd.f32 %v17105_v61, %v2006_v40  ;;  %v16052_v61 = vld [vmem:[%s18635_s30 + $0x2b8] sm:$0xff]   ;;  %v16077_v40 = vld [vmem:[%s18635_s30 + $0x370] sm:$0xff]  }
 0x931   : > { %14714 = vmatprep.subr.bf16.mxu1 %v16013_v41  ;;  %14736 = vmatprep.subr.bf16.mxu0 %v16014_v42  ;;  %v16040_v33 = vld [vmem:[%s18635_s30 + $0x2a0] sm:$0xff]   ;;  %v16044_v41 = vld [vmem:[%s18635_s30 + $0x2a8] sm:$0xff]   ;;  %v16045_v42 = vld [vmem:[%s18635_s30 + $0x270] sm:$0xff]  }
 0x932   : > { %v2550_v56 = vmax.f32 %v2413_v47, 0.0  ;;  %v16084_v47 = vld [vmem:[%s18635_s30 + $0x3b8] sm:$0xff]  }
 0x934   : > { %14715 = vmatpush3.bf16.msra.mxu1 %v16015_v45  ;;  %14737 = vmatpush3.bf16.msra.mxu0 %v16016_v2  ;;  %v2026_v45 = vrot.slane %v17117_v18, %v17080_v19  ;;  %v2034_v2 = vrot.slane %v17117_v18, %v17083_v20 }
 0x935   : > { %14716 = vmatprep.subr.bf16.mxu1 %v16017_v48  ;;  %14738 = vmatprep.subr.bf16.mxu0 %v16018_v49  ;;  %v16048_v48 = vld [vmem:[%s18635_s30 + $0x2b0] sm:$0xff]   ;;  %v16049_v49 = vld [vmem:[%s18635_s30 + $0x278] sm:$0xff]  }
 0x938   : > { %14717 = vmatpush3.bf16.msra.mxu1 %v16019_v53  ;;  %14739 = vmatpush3.bf16.msra.mxu0 %v16020_v54  ;;  %v2497_v53 = vadd.f32 %v17132_v29, %v2026_v45  ;;  %v2538_v54 = vadd.f32 %v17134_v30, %v2034_v2  ;;  %v16055_v29 = vld [vmem:[%s18635_s30 + $0x300] sm:$0xff]   ;;  %v16081_v45 = vld [vmem:[%s18635_s30 + $0x378] sm:$0xff]  }
 0x939   : > { %14746 = vmatprep.subr.bf16.mxu1 %v16021_v38  ;;  %14768 = vmatprep.subr.bf16.mxu0 %v16022_v39  ;;  %v16053_v38 = vld [vmem:[%s18635_s30 + $0x340] sm:$0xff]   ;;  %v2552_v39 = vmax.f32 %v2454_v51, 0.0  ;;  %v16082_v2 = vld [vmem:[%s18635_s30 + $0x3f8] sm:$0xff]  }
 0x93a   : > { %v2555_v57 = vmax.f32 %v2497_v53, 0.0  ;;  %v2557_v58 = vmax.f32 %v2538_v54, 0.0  ;;  %v16056_v30 = vld [vmem:[%s18635_s30 + $0x380] sm:$0xff]  }
 0x93b   : > { %3461 = vmatmul.mubr.bf16.vlgmr.msra.gmra.mrb[40].mxu1 %v2562_v60  ;;  %3501 = vmatmul.mubr.bf16.vlgmr.msra.gmra.mrb[44].mxu0 %v2564_v6  ;;  %v2568_v60 = vpack.c.bf16 %v2552_v39, %v2552_v39  ;;  %v16057_v6 = vld [vmem:[%s18635_s30 + $0x348] sm:$0xff]  }
 0x93c   : > { %14747 = vmatpush3.bf16.msra.mxu1 %v16023_v59  ;;  %3540 = vmatprep.mubr.bf16.mxu1 %v2567_v8  ;;  %v2566_v59 = vpack.c.bf16 %v2550_v56, %v2550_v56  ;;  %v16058_v8 = vld [vmem:[%s18635_s30 + $0x3c8] sm:$0xff]  }
 0x93d   : > { %14769 = vmatpush3.bf16.msra.mxu0 %v16024_v7  ;;  %3580 = vmatprep.mubr.bf16.mxu0 %v2569_v11  ;;  %v2571_v7 = vpack.c.bf16 %v2555_v57, %v2555_v57  ;;  %v16060_v11 = vld [vmem:[%s18635_s30 + $0x388] sm:$0xff]  }
 0x93e   : > { %14748 = vmatprep.subr.bf16.mxu1 %v16025_v9  ;;  %14770 = vmatprep.subr.bf16.mxu0 %v16026_v10  ;;  %v2573_v9 = vpack.c.bf16 %v2557_v58, %v2557_v58  ;;  %v16059_v10 = vld [vmem:[%s18635_s30 + $0x308] sm:$0xff]  }
 0x940   : > { %14749 = vmatpush3.bf16.msra.mxu1 %v16027_v14  ;;  %v16061_v14 = vld [vmem:[%s18635_s30 + $0x350] sm:$0xff]  }
 0x941   : > { %14771 = vmatpush3.bf16.msra.mxu0 %v16028_v15  ;;  %14750 = vmatprep.subr.bf16.mxu1 %v16029_v16  ;;  %v16062_v15 = vld [vmem:[%s18635_s30 + $0x3d0] sm:$0xff]  }
 0x942   : > { %14772 = vmatprep.subr.bf16.mxu0 %v16030_v17  ;;  %v16063_v16 = vld [vmem:[%s18635_s30 + $0x310] sm:$0xff]  }
 0x943   : > { %v16064_v17 = vld [vmem:[%s18635_s30 + $0x390] sm:$0xff]  }
 0x944   : > { %14751 = vmatpush3.bf16.msra.mxu1 %v16031_v13  ;;  %v16065_v13 = vld [vmem:[%s18635_s30 + $0x358] sm:$0xff]  }
 0x945   : > { %14773 = vmatpush3.bf16.msra.mxu0 %v16032_v21  ;;  %14752 = vmatprep.subr.bf16.mxu1 %v16033_v23  ;;  %v16066_v21 = vld [vmem:[%s18635_s30 + $0x3d8] sm:$0xff]  }
 0x946   : > { %14774 = vmatprep.subr.bf16.mxu0 %v16034_v25  ;;  %v16067_v23 = vld [vmem:[%s18635_s30 + $0x318] sm:$0xff]  }
 0x947   : > { %v16068_v25 = vld [vmem:[%s18635_s30 + $0x398] sm:$0xff]  }
 0x948   : > { %14753 = vmatpush3.bf16.msra.mxu1 %v16035_v22  ;;  %v16069_v22 = vld [vmem:[%s18635_s30 + $0x360] sm:$0xff]  }
 0x949   : > { %14775 = vmatpush3.bf16.msra.mxu0 %v16036_v27  ;;  %14754 = vmatprep.subr.bf16.mxu1 %v16037_v31  ;;  %v16070_v27 = vld [vmem:[%s18635_s30 + $0x3e0] sm:$0xff]  }
 0x94a   : > { %14776 = vmatprep.subr.bf16.mxu0 %v16038_v62  ;;  %v16071_v31 = vld [vmem:[%s18635_s30 + $0x320] sm:$0xff]  }
 0x94b   : > { %v16072_v62 = vld [vmem:[%s18635_s30 + $0x3a0] sm:$0xff]  }
 0x94c   : > { %14755 = vmatpush3.bf16.msra.mxu1 %v16039_v32  ;;  %v16073_v32 = vld [vmem:[%s18635_s30 + $0x368] sm:$0xff]  }
 0x94d   : > { %14777 = vmatpush3.bf16.msra.mxu0 %v16040_v33  ;;  %14756 = vmatprep.subr.bf16.mxu1 %v16041_v35  ;;  %v16074_v33 = vld [vmem:[%s18635_s30 + $0x3e8] sm:$0xff]  }
 0x94e   : > { %14778 = vmatprep.subr.bf16.mxu0 %v16042_v36  ;;  %v16075_v35 = vld [vmem:[%s18635_s30 + $0x328] sm:$0xff]   ;;  %v2022_v36 = vrot.slane %v17117_v18, %v17124_v24  ;;  %v16083_v18 = vld [vmem:[%s18635_s30 + $0x338] sm:$0xff]  }
 0x950   : > { %14757 = vmatpush3.bf16.msra.mxu1 %v16043_v37  ;;  %v16076_v37 = vld [vmem:[%s18635_s30 + $0x3a8] sm:$0xff]   ;;  %v2495_v43 = vadd.f32 %v17128_v26, %v2022_v36 }
 0x951   : > { %14779 = vmatpush3.bf16.msra.mxu0 %v16044_v41  ;;  %14758 = vmatprep.subr.bf16.mxu1 %v16045_v42  ;;  %v16078_v41 = vld [vmem:[%s18635_s30 + $0x3f0] sm:$0xff]  }
 0x952   : > { %14780 = vmatprep.subr.bf16.mxu0 %v16046_v44  ;;  %v16079_v42 = vld [vmem:[%s18635_s30 + $0x330] sm:$0xff]  }
 0x953   : > { %v16080_v44 = vld [vmem:[%s18635_s30 + $0x3b0] sm:$0xff]  }
 0x954   : > { %14759 = vmatpush3.bf16.msra.mxu1 %v16047_v46  ;;  %v2554_v46 = vmax.f32 %v2495_v43, 0.0 }
 0x955   : > { %14781 = vmatpush3.bf16.msra.mxu0 %v16048_v48  ;;  %14760 = vmatprep.subr.bf16.mxu1 %v16049_v49  ;;  %v2556_v48 = vmax.f32 %v17130_v28, 0.0  ;;  %v13253_v28 = vld [vmem:[%s18643_s6] ss:$0 sm:$0xff] }
 0x956   : > { %14782 = vmatprep.subr.bf16.mxu0 %v16050_v52  ;;  %v2570_v49 = vpack.c.bf16 %v2554_v46, %v2554_v46 }
 0x957   : > { %v2572_v26 = vpack.c.bf16 %v2556_v48, %v2556_v48 }
 0x958   : > { %14761 = vmatpush3.bf16.msra.mxu1 %v16051_v55 }
 0x959   : > { %14783 = vmatpush3.bf16.msra.mxu0 %v16052_v61  ;;  %14790 = vmatprep.subr.bf16.mxu1 %v16053_v38 }
 0x95a   : > { %14812 = vmatprep.subr.bf16.mxu0 %v16054_v5 }
 0x95b   : > { %3541 = vmatmul.mubr.bf16.vlgmr.msra.gmra.mrb[44].mxu1 %v2566_v59 }
 0x95c   : > { %3581 = vmatmul.mubr.bf16.vlgmr.msra.gmra.mrb[48].mxu0 %v2568_v60  ;;  %14791 = vmatpush3.bf16.msra.mxu1 %v16055_v29 }
 0x95d   : > { %3620 = vmatprep.mubr.bf16.mxu1 %v2571_v7  ;;  %14813 = vmatpush3.bf16.msra.mxu0 %v16056_v30 }
 0x95e   : > { %3660 = vmatprep.mubr.bf16.mxu0 %v2573_v9  ;;  %14792 = vmatprep.subr.bf16.mxu1 %v16057_v6 }
 0x95f   : > { %14814 = vmatprep.subr.bf16.mxu0 %v16058_v8 }
 0x960   : > { %14793 = vmatpush3.bf16.msra.mxu1 %v16059_v10 }
 0x961   : > { %14815 = vmatpush3.bf16.msra.mxu0 %v16060_v11  ;;  %14794 = vmatprep.subr.bf16.mxu1 %v16061_v14 }
 0x962   : > { %14816 = vmatprep.subr.bf16.mxu0 %v16062_v15 }
 0x964   : > { %14795 = vmatpush3.bf16.msra.mxu1 %v16063_v16 }
 0x965   : > { %14817 = vmatpush3.bf16.msra.mxu0 %v16064_v17  ;;  %14796 = vmatprep.subr.bf16.mxu1 %v16065_v13 }
 0x966   : > { %14818 = vmatprep.subr.bf16.mxu0 %v16066_v21 }
 0x968   : > { %14797 = vmatpush3.bf16.msra.mxu1 %v16067_v23 }
 0x969   : > { %14819 = vmatpush3.bf16.msra.mxu0 %v16068_v25  ;;  %14798 = vmatprep.subr.bf16.mxu1 %v16069_v22 }
 0x96a   : > { %14820 = vmatprep.subr.bf16.mxu0 %v16070_v27 }
 0x96c   : > { %14799 = vmatpush3.bf16.msra.mxu1 %v16071_v31 }
 0x96d   : > { %14821 = vmatpush3.bf16.msra.mxu0 %v16072_v62  ;;  %14800 = vmatprep.subr.bf16.mxu1 %v16073_v32 }
 0x96e   : > { %14822 = vmatprep.subr.bf16.mxu0 %v16074_v33 }
 0x970   : > { %14801 = vmatpush3.bf16.msra.mxu1 %v16075_v35 }
 0x971   : > { %14823 = vmatpush3.bf16.msra.mxu0 %v16076_v37  ;;  %14802 = vmatprep.subr.bf16.mxu1 %v16077_v40 }
 0x972   : > { %14824 = vmatprep.subr.bf16.mxu0 %v16078_v41 }
 0x974   : > { %14803 = vmatpush3.bf16.msra.mxu1 %v16079_v42 }
 0x975   : > { %14825 = vmatpush3.bf16.msra.mxu0 %v16080_v44  ;;  %14804 = vmatprep.subr.bf16.mxu1 %v16081_v45 }
 0x976   : > { %14826 = vmatprep.subr.bf16.mxu0 %v16082_v2 }
 0x978   : > { %14805 = vmatpush3.bf16.msra.mxu1 %v16083_v18 }
 0x979   : > { %14827 = vmatpush3.bf16.msra.mxu0 %v16084_v47  ;;  %15551 = vmatprep.subr.bf16.mxu1 %v16651_v0 }
 0x97a   : > { %15559 = vmatprep.subr.bf16.mxu0 %v16651_v0 }
 0x97b   : > { %3621 = vmatmul.mubr.bf16.vlgmr.msra.gmra.mrb[48].mxu1 %v2570_v49 }
 0x97c   : > { %3661 = vmatmul.mubr.bf16.vlgmr.msra.gmra.mrb[52].mxu0 %v2572_v26  ;;  %15555 = vmatprep.mubr.msk.bf16.mxu1 %vm16652_vm1, %v16651_v0 }
 0x97d   : > { %15561 = vmatprep.mubr.msk.bf16.mxu0 %vm16652_vm1, %v16651_v0 }
 0x9ee   : > { %v14674_v51 = vpop.f32.mrb[36].mxu1  ;;  %v14696_v52 = vpop.f32.mrb[40].mxu0 }
 0x9ef   : > { %v14675_v53 = vpop.f32.mrb[37].mxu1  ;;  %v14697_v54 = vpop.f32.mrb[41].mxu0 }
 0x9f0   : > { %v14676_v55 = vadd.f32 %v14675_v53, %v14674_v51  ;;  %v14698_v56 = vadd.f32 %v14697_v54, %v14696_v52  ;;  %v14677_v61 = vpop.f32.mrb[38].mxu1  ;;  %v14699_v38 = vpop.f32.mrb[42].mxu0  ;;  %v16085_v53 = vld [vmem:[%s18636_s29 + $0x10] sm:$0xff]   ;;  %v16086_v54 = vld [vmem:[%s18636_s29 + $0x18] sm:$0xff]   ;;  %s18674_s29 = sld [smem:[#allocation27_spill]] }
 0x9f1   : > { %v14678_v39 = vpop.f32.mrb[39].mxu1  ;;  %v14700_v5 = vpop.f32.mrb[43].mxu0  ;;  %15552 = vmatpush3.bf16.msra.mxu1 %v16085_v53  ;;  %v13384_v38 = vld [vmem:[%s18641_s12 + $0x1] ss:$0 sm:$0xff] }
 0x9f2   : > { %v3383_v57 = vadd.f32 %v14676_v55, %v13253_v28  ;;  %15553 = vmatprep.subr.bf16.mxu1 %v16651_v0  ;;  %v13385_v5 = vld [vmem:[%s18638_s20 + $0x1] ss:$0 sm:$0xff] }
 0x9f4   : > { %v3423_v58 = vadd.f32 %v14698_v56, %v3383_v57 }
 0x9f5   : > { %15554 = vmatpush3.bf16.msra.mxu1 %v16086_v54 }
 0x9f6   : > { %15565 = vmatprep.subr.bf16.mxu1 %v16651_v0 }
 0xa0e   : > { %v14718_v29 = vpop.f32.mrb[40].mxu1  ;;  %v14740_v59 = vpop.f32.mrb[44].mxu0 }
 0xa0f   : > { %v14719_v30 = vpop.f32.mrb[41].mxu1  ;;  %v14741_v60 = vpop.f32.mrb[45].mxu0 }
 0xa10   : > { %v14720_v6 = vadd.f32 %v14719_v30, %v14718_v29  ;;  %v14742_v7 = vadd.f32 %v14741_v60, %v14740_v59  ;;  %v14721_v8 = vpop.f32.mrb[42].mxu1  ;;  %v14743_v9 = vpop.f32.mrb[46].mxu0  ;;  %v13396_v59 = vld [vmem:[%s18644_s3 + $0x1] ss:$0 sm:$0xff]  ;;  %s18658_s3 = smov 72  }
 0xa11   : > { %v14722_v10 = vpop.f32.mrb[43].mxu1  ;;  %v14744_v11 = vpop.f32.mrb[47].mxu0 }
 0xa12   : > { %v3463_v14 = vadd.f32 %v14720_v6, %v3423_v58 }
 0xa14   : > { %v3503_v15 = vadd.f32 %v14742_v7, %v3463_v14 }
 0xa2e   : > { %v14762_v16 = vpop.f32.mrb[44].mxu1 }
 0xa2f   : > { %v14784_v17 = vpop.f32.mrb[48].mxu0  ;;  %v14763_v13 = vpop.f32.mrb[45].mxu1 }
 0xa30   : > { %v14764_v21 = vadd.f32 %v14763_v13, %v14762_v16  ;;  %v14785_v23 = vpop.f32.mrb[49].mxu0  ;;  %v14765_v25 = vpop.f32.mrb[46].mxu1 }
 0xa31   : > { %v14786_v22 = vadd.f32 %v14785_v23, %v14784_v17  ;;  %v14787_v27 = vpop.f32.mrb[50].mxu0  ;;  %v14766_v31 = vpop.f32.mrb[47].mxu1 }
 0xa32   : > { %v3543_v62 = vadd.f32 %v14764_v21, %v3503_v15  ;;  %v14788_v32 = vpop.f32.mrb[51].mxu0 }
 0xa34   : > { %v3583_v33 = vadd.f32 %v14786_v22, %v3543_v62 }
 0xa4e   : > { %v14806_v35 = vpop.f32.mrb[48].mxu1 }
 0xa4f   : > { %v14828_v36 = vpop.f32.mrb[52].mxu0  ;;  %v14807_v37 = vpop.f32.mrb[49].mxu1 }
 0xa50   : > { %v14808_v40 = vadd.f32 %v14807_v37, %v14806_v35  ;;  %v14829_v41 = vpop.f32.mrb[53].mxu0  ;;  %v14809_v42 = vpop.f32.mrb[50].mxu1 }
 0xa51   : > { %v14830_v43 = vadd.f32 %v14829_v41, %v14828_v36  ;;  %v14831_v44 = vpop.f32.mrb[54].mxu0  ;;  %v14810_v45 = vpop.f32.mrb[51].mxu1 }
 0xa52   : > { %v3623_v2 = vadd.f32 %v14808_v40, %v3583_v33  ;;  %v14832_v18 = vpop.f32.mrb[55].mxu0 }
 0xa54   : > { %v3663_v46 = vadd.f32 %v14830_v43, %v3623_v2 }
 0xa56   : > { %v3668_v47 = vadd.f32 %v3663_v46, %v16976_v50 }
 0xa58   : > { %v3673_v48 = vsel %vm1078_vm3, %v3668_v47, 0.0 }
 0xa59   : > { %3674 = vadd.xlane.f32.xlu0 %v3673_v48 }
 0xae6   : > { %v3675_v49 = vpop.xlane.xlu0 %3674 }
 0xae7   : > { %v3676_v26 = vmul.f32 0.03125, %v3675_v49 }
 0xae9   : > { %v3677_v51 = vsub.f32 %v3668_v47, %v3676_v26 }
 0xaeb   : > { %v3678_v52 = vmul.f32 %v3677_v51, %v3677_v51 }
 0xaed   : > { %v3679_v28 = vsel %vm1078_vm3, %v3678_v52, 0.0 }
 0xaee   : > { %3680 = vadd.xlane.f32.xlu0 %v3679_v28 }
 0xb7b   : > { %v3681_v50 = vpop.xlane.xlu0 %3680 }
 0xb7c   : > { %v3682_v55 = vmul.f32 0.03125, %v3681_v50 }
 0xb7e   : > { %v3683_v56 = vadd.f32 1e-05, %v3682_v55 }
 0xb80   : > { %16513 = vrsqrt.f32 %v3683_v56 }
 0xb8a   : > { %v16514_v61 = vpop.eup %16513 }
 0xb8b   : > { %v3685_v39 = vmul.f32 %v16514_v61, %v3677_v51 }
 0xb8d   : > { %v3692_v57 = vmul.f32 %v13384_v38, %v3685_v39 }
 0xb8f   : > { %v17252_v58 = vadd.f32 %v13385_v5, %v3692_v57 }
 0xb91   : > { %v3714_v29 = vpack.c.bf16 %v17252_v58, %v17252_v58 }
 0xb93   : > { %15556 = vmatmul.mubr.msk.bf16.vlgmr.msra.gmra.mrb[52].mxu1 %vm1078_vm3, %v3714_v29 }
 0xb94   : > { %15567 = vmatprep.mubr.msk.bf16.mxu1 %vm16652_vm1, %v16651_v0 }
 0xc66   : > { %v3770_v30 = vpop.f32.mrb[52].mxu1 }
 0xc67   : > { %v3771_v60 = vadd.f32 %v13396_v59, %v3770_v30  ;;  %v15557_v6 = vpop.f32.mrb[53].mxu1 }
 0xc68   : > { %v3773_v7 = vpop.f32.mrb[54].mxu1 }
 0xc69   : > { %v3776_v8 = vmul.f32 0.35355338, %v3771_v60  ;;  %v17260_v9 = vpack.c.bf16 %v3771_v60, %v3771_v60  ;;  %v15558_v10 = vpop.f32.mrb[55].mxu1 }
 0xc6b   : > { %3891 = vrot.lane.b32.xlu0 %v17260_v9, %s18586_s11  ;;  %3780 = vrot.lane.b32.xlu1 %v17260_v9, %s18588_s7  ;;  %v3777_v11 = vpack.c.bf16 %v3776_v8, %v3776_v8 }
 0xc6f   : > { %3999 = vrot.lane.b32.xlu0 %v3777_v11, %s18590_s16  ;;  %3889 = vrot.lane.b32.xlu1 %v3777_v11, %s18592_s10 }
 0xc73   : > { %4109 = vrot.lane.b32.xlu0 %v3777_v11, %s18575_s22  ;;  %4001 = vrot.lane.b32.xlu1 %v17260_v9, %s18573_s15  ;;  %s18652_s15 = smov 40   ;;  %s18653_s22 = smov 48  }
 0xc77   : > { %4111 = vrot.lane.b32.xlu1 %v17260_v9, %s18571_s18  ;;  %s18651_s18 = smov 64  }
 0xcdd   : > { %v3781_v14 = vpop.permute.xlu1 %3780  ;;  %v3892_v16 = vpop.permute.xlu0 %3891 }
 0xcde   : > { %v3786_v15 = vsel %vm1128_vm4, %v3781_v14, 0  ;;  %v3897_v13 = vsel %vm1128_vm4, %v3892_v16, 0 }
 0xcdf   : > { %15560 = vmatpush3.bf16.xpose.msra.mxu0 %v3786_v15 }
 0xce0   : > { %15571 = vmatprep.subr.bf16.mxu0 %v16651_v0 }
 0xce1   : > { %v3890_v17 = vpop.permute.xlu1 %3889  ;;  %v4000_v22 = vpop.permute.xlu0 %3999 }
 0xce5   : > { %v4002_v21 = vpop.permute.xlu1 %4001  ;;  %v4110_v31 = vpop.permute.xlu0 %4109 }
 0xce6   : > { %15562 = vmatmul.mubr.msk.bf16.vlgmr.msra.gmra.mrb[56].mxu0 %vm1128_vm4, %v3777_v11  ;;  %v4007_v23 = vsel %vm1128_vm4, %v4002_v21, 0 }
 0xce7   : > { %15572 = vmatpush3.bf16.xpose.msra.mxu0 %v3897_v13  ;;  %15573 = vmatprep.mubr.msk.bf16.mxu0 %vm16652_vm1, %v16651_v0 }
 0xce8   : > { %15583 = vmatprep.subr.bf16.mxu0 %v16651_v0 }
 0xce9   : > { %v4112_v25 = vpop.permute.xlu1 %4111 }
 0xcea   : > { %v4117_v27 = vsel %vm1128_vm4, %v4112_v25, 0 }
 0xcee   : > { %15574 = vmatmul.mubr.msk.bf16.vlgmr.msra.gmra.mrb[60].mxu0 %vm1128_vm4, %v3890_v17 }
 0xcef   : > { %15584 = vmatpush3.bf16.xpose.msra.mxu0 %v4007_v23  ;;  %15585 = vmatprep.mubr.msk.bf16.mxu0 %vm16652_vm1, %v16651_v0 }
 0xcf0   : > { %15595 = vmatprep.subr.bf16.mxu0 %v16651_v0 }
 0xcf6   : > { %15586 = vmatmul.mubr.msk.bf16.vlgmr.msra.gmra.mrb[64].mxu0 %vm1128_vm4, %v4000_v22 }
 0xcf7   : > { %15596 = vmatpush3.bf16.xpose.msra.mxu0 %v4117_v27  ;;  %15597 = vmatprep.mubr.msk.bf16.mxu0 %vm16652_vm1, %v16651_v0 }
 0xcf8   : > { %15607 = vmatprep.subr.bf16.mxu0 %v16651_v0 }
 0xcfe   : > { %15598 = vmatmul.mubr.msk.bf16.vlgmr.msra.gmra.mrb[68].mxu0 %vm1128_vm4, %v4110_v31 }
 0xcff   : > { %15611 = vmatprep.mubr.msk.bf16.mxu0 %vm16652_vm1, %v16651_v0 }
 0xdb9   : > { %v3822_v62 = vpop.f32.mrb[56].mxu0 }
 0xdba   : > { %v15563_v32 = vpop.f32.mrb[57].mxu0  ;;  %v3828_v33 = vsel %vm1128_vm4, %v3822_v62, -inf }
 0xdbb   : > { %3829 = vmax.xlane.f32.xlu1 %v3828_v33  ;;  %v3825_v35 = vpop.f32.mrb[58].mxu0 }
 0xdbc   : > { %v15564_v36 = vpop.f32.mrb[59].mxu0 }
 0xdc1   : > { %v3933_v37 = vpop.f32.mrb[60].mxu0 }
 0xdc2   : > { %v15575_v40 = vpop.f32.mrb[61].mxu0  ;;  %v3939_v41 = vsel %vm1128_vm4, %v3933_v37, -inf }
 0xdc3   : > { %3940 = vmax.xlane.f32.xlu0 %v3939_v41  ;;  %v3936_v42 = vpop.f32.mrb[62].mxu0 }
 0xdc4   : > { %v15576_v43 = vpop.f32.mrb[63].mxu0 }
 0xdc9   : > { %v4043_v44 = vpop.f32.mrb[64].mxu0 }
 0xdca   : > { %v15587_v45 = vpop.f32.mrb[65].mxu0  ;;  %v4049_v2 = vsel %vm1128_vm4, %v4043_v44, -inf }
 0xdcb   : > { %4050 = vmax.xlane.f32.xlu0 %v4049_v2  ;;  %v4046_v18 = vpop.f32.mrb[66].mxu0 }
 0xdcc   : > { %v15588_v46 = vpop.f32.mrb[67].mxu0 }
 0xdd1   : > { %v4153_v47 = vpop.f32.mrb[68].mxu0 }
 0xdd2   : > { %v15599_v48 = vpop.f32.mrb[69].mxu0  ;;  %v4159_v49 = vsel %vm1128_vm4, %v4153_v47, -inf }
 0xdd3   : > { %4160 = vmax.xlane.f32.xlu1 %v4159_v49  ;;  %v4156_v26 = vpop.f32.mrb[70].mxu0 }
 0xdd4   : > { %v15600_v51 = vpop.f32.mrb[71].mxu0 }
 0xdd5   : > { %v16087_v51 = vld [vmem:[%s18642_s8 + $0x10] sm:$0xff]  }
 0xdd6   : > { %15608 = vmatpush3.bf16.msra.mxu0 %v16087_v51 }
 0xdd7   : > { %15609 = vmatprep.subr.bf16.mxu0 %v16651_v0 }
 0xe48   : > { %v3830_v52 = vpop.xlane.xlu1 %3829 }
 0xe49   : > { %v3831_v28 = vsub.f32 %v3822_v62, %v3830_v52  ;;  %v16088_v52 = vld [vmem:[%s18642_s8 + $0x18] sm:$0xff]   ;;  %s18665_s8 = sld [smem:[#allocation21_spill]] }
 0xe4a   : > { %15610 = vmatpush3.bf16.msra.mxu0 %v16088_v52 }
 0xe4b   : > { %v3832_v53 = vmul.f32 1.442695, %v3831_v28 }
 0xe4d   : > { %16515 = vpow2.f32 %v3832_v53 }
 0xe50   : > { %v3941_v54 = vpop.xlane.xlu0 %3940 }
 0xe51   : > { %v3942_v50 = vsub.f32 %v3933_v37, %v3941_v54 }
 0xe53   : > { %v3943_v55 = vmul.f32 1.442695, %v3942_v50 }
 0xe55   : > { %16517 = vpow2.f32 %v3943_v55 }
 0xe57   : > { %v16516_v56 = vpop.eup %16515 }
 0xe58   : > { %v4051_v61 = vpop.xlane.xlu0 %4050  ;;  %v3834_v38 = vsel %vm1128_vm4, %v16516_v56, 0.0 }
 0xe59   : > { %v4052_v39 = vsub.f32 %v4043_v44, %v4051_v61  ;;  %3835 = vadd.xlane.f32.xlu0 %v3834_v38 }
 0xe5b   : > { %v4053_v5 = vmul.f32 1.442695, %v4052_v39 }
 0xe5d   : > { %16519 = vpow2.f32 %v4053_v5 }
 0xe5f   : > { %v16518_v57 = vpop.eup %16517 }
 0xe60   : > { %v3945_v29 = vsel %vm1128_vm4, %v16518_v57, 0.0  ;;  %v4161_v60 = vpop.xlane.xlu1 %4160 }
 0xe61   : > { %3946 = vadd.xlane.f32.xlu1 %v3945_v29  ;;  %v4162_v6 = vsub.f32 %v4153_v47, %v4161_v60 }
 0xe63   : > { %v4163_v7 = vmul.f32 1.442695, %v4162_v6  ;;  %v13408_v6 = vld [vmem:[%s18640_s14 + $0x1] ss:$0 sm:$0xff]  ;;  %s18669_s14 = smov 112  }
 0xe65   : > { %16521 = vpow2.f32 %v4163_v7 }
 0xe67   : > { %v16520_v59 = vpop.eup %16519 }
 0xe68   : > { %v4055_v30 = vsel %vm1128_vm4, %v16520_v59, 0.0 }
 0xe69   : > { %4056 = vadd.xlane.f32.xlu0 %v4055_v30 }
 0xe6f   : > { %v16522_v8 = vpop.eup %16521 }
 0xe70   : > { %v4165_v10 = vsel %vm1128_vm4, %v16522_v8, 0.0 }
 0xe72   : > { %3951 = vrot.lane.b32.xlu1 %v17260_v9, %s18583_s23  ;;  %s18657_s23 = smov 80  }
 0xe7f   : > { %3840 = vrot.lane.b32.xlu0 %v17260_v9, %s18651_s18 }
 0xe83   : > { %4171 = vrot.lane.b32.xlu0 %v17260_v9, %s18652_s15 }
 0xe96   : > { %4166 = vadd.xlane.f32.xlu1 %v4165_v10 }
 0xea7   : > { %4061 = vrot.lane.b32.xlu1 %v17260_v9, %s18653_s22 }
 0xee6   : > { %v3836_v11 = vpop.xlane.xlu0 %3835 }
 0xee7   : > { %16523 = vrcp.f32 %v3836_v11 }
 0xeee   : > { %v3947_v14 = vpop.xlane.xlu1 %3946 }
 0xeef   : > { %16525 = vrcp.f32 %v3947_v14 }
 0xef1   : > { %v16524_v15 = vpop.eup %16523 }
 0xef2   : > { %v3838_v17 = vmul.f32 %v16524_v15, %v16516_v56  ;;  %v3952_v23 = vpop.permute.xlu1 %3951 }
 0xef3   : > { %v3957_v27 = vsel %vm1192_vm5, %v3952_v23, 0 }
 0xef4   : > { %v3839_v25 = vpack.c.bf16 %v3838_v17, %v3838_v17 }
 0xef6   : > { %v4057_v16 = vpop.xlane.xlu0 %4056 }
 0xef7   : > { %16527 = vrcp.f32 %v4057_v16 }
 0xef9   : > { %v16526_v22 = vpop.eup %16525 }
 0xefa   : > { %v3841_v13 = vpop.permute.xlu0 %3840  ;;  %v3949_v9 = vmul.f32 %v16526_v22, %v16518_v57  ;;  %v13416_v22 = vld [vmem:[%s18639_s19 + $0x100] sm:$0xff] }
 0xefb   : > { %v3846_v21 = vsel %vm1192_vm5, %v3841_v13, 0 }
 0xefc   : > { %15566 = vmatpush3.bf16.msra.mxu1 %v3846_v21  ;;  %v3950_v31 = vpack.c.bf16 %v3949_v9, %v3949_v9  ;;  %v13417_v9 = vld [vmem:[%s18639_s19 + $0x108] sm:$0xff] }
 0xefd   : > { %15577 = vmatprep.subr.bf16.mxu1 %v16651_v0 }
 0xefe   : > { %v4172_v37 = vpop.permute.xlu0 %4171 }
 0xeff   : > { %15568 = vmatmul.mubr.msk.bf16.vlgmr.msra.gmra.mrb[56].mxu1 %vm1128_vm4, %v3839_v25  ;;  %v4177_v41 = vsel %vm1192_vm5, %v4172_v37, 0  ;;  %v13433_v37 = vld [vmem:[%s18639_s19 + $0x188] sm:$0xff] }
 0xf00   : > { %15578 = vmatpush3.bf16.msra.mxu1 %v3957_v27  ;;  %15579 = vmatprep.mubr.msk.bf16.mxu1 %vm16652_vm1, %v16651_v0  ;;  %v13424_v27 = vld [vmem:[%s18639_s19 + $0x140] sm:$0xff] }
 0xf01   : > { %15589 = vmatprep.subr.bf16.mxu1 %v16651_v0  ;;  %v16528_v62 = vpop.eup %16527 }
 0xf02   : > { %v4059_v33 = vmul.f32 %v16528_v62, %v16520_v59  ;;  %v13425_v62 = vld [vmem:[%s18639_s19 + $0x148] sm:$0xff] }
 0xf04   : > { %v4060_v40 = vpack.c.bf16 %v4059_v33, %v4059_v33  ;;  %v13710_v33 = vcombine.high %v13417_v9, %v13425_v62 }
 0xf06   : > { %4910 = vmatprep.subr.bf16.mxu0 %v13710_v33 }
 0xf07   : > { %15580 = vmatmul.mubr.msk.bf16.vlgmr.msra.gmra.mrb[60].mxu1 %vm1128_vm4, %v3950_v31  ;;  %v13708_v31 = vcombine.high %v13416_v22, %v13424_v27 }
 0xf08   : > { %15591 = vmatprep.mubr.msk.bf16.mxu1 %vm16652_vm1, %v16651_v0 }
 0xf23   : > { %v4167_v32 = vpop.xlane.xlu1 %4166 }
 0xf24   : > { %16529 = vrcp.f32 %v4167_v32  ;;  %v13709_v32 = vcombine.low %v13417_v9, %v13425_v62  ;;  %v13422_v9 = vld [vmem:[%s18639_s19 + $0x130] sm:$0xff]  ;;  %v13423_v62 = vld [vmem:[%s18639_s19 + $0x138] sm:$0xff] }
 0xf27   : > { %v4062_v35 = vpop.permute.xlu1 %4061 }
 0xf28   : > { %v4067_v36 = vsel %vm1192_vm5, %v4062_v35, 0  ;;  %v13432_v35 = vld [vmem:[%s18639_s19 + $0x180] sm:$0xff] }
 0xf29   : > { %15590 = vmatpush3.bf16.msra.mxu1 %v4067_v36  ;;  %v13440_v36 = vld [vmem:[%s18639_s19 + $0x1c0] sm:$0xff] }
 0xf2a   : > { %15601 = vmatprep.subr.bf16.mxu1 %v16651_v0 }
 0xf2c   : > { %15592 = vmatmul.mubr.msk.bf16.vlgmr.msra.gmra.mrb[64].mxu1 %vm1128_vm4, %v4060_v40  ;;  %v13724_v40 = vcombine.high %v13432_v35, %v13440_v36 }
 0xf2d   : > { %15602 = vmatpush3.bf16.msra.mxu1 %v4177_v41  ;;  %15603 = vmatprep.mubr.msk.bf16.mxu1 %vm16652_vm1, %v16651_v0  ;;  %v13441_v41 = vld [vmem:[%s18639_s19 + $0x1c8] sm:$0xff] }
 0xf2e   : > { %v16530_v42 = vpop.eup %16529  ;;  %4869 = vmatprep.subr.bf16.mxu1 %v13708_v31  ;;  %v13430_v31 = vld [vmem:[%s18639_s19 + $0x170] sm:$0xff] }
 0xf2f   : > { %v4169_v43 = vmul.f32 %v16530_v42, %v16522_v8  ;;  %v13723_v42 = vcombine.low %v13432_v35, %v13440_v36  ;;  %v13720_v35 = vcombine.high %v13422_v9, %v13430_v31 }
 0xf31   : > { %v4170_v44 = vpack.c.bf16 %v4169_v43, %v4169_v43  ;;  %v13725_v43 = vcombine.low %v13433_v37, %v13441_v41 }
 0xf34   : > { %15604 = vmatmul.mubr.msk.bf16.vlgmr.msra.gmra.mrb[68].mxu1 %vm1128_vm4, %v4170_v44  ;;  %v13726_v44 = vcombine.high %v13433_v37, %v13441_v41  ;;  %v13438_v37 = vld [vmem:[%s18639_s19 + $0x1b0] sm:$0xff]  ;;  %v13439_v41 = vld [vmem:[%s18639_s19 + $0x1b8] sm:$0xff] }
 0xf35   : > { %4901 = vmatprep.mubr.bf16.mxu1 %v16667_v34 }
 0xfd2   : > { %v3882_v45 = vpop.f32.mrb[56].mxu1 }
 0xfd3   : > { %v15569_v2 = vpop.f32.mrb[57].mxu1 }
 0xfd4   : > { %v3885_v18 = vpop.f32.mrb[58].mxu1  ;;  %v13426_v2 = vld [vmem:[%s18639_s19 + $0x150] sm:$0xff] }
 0xfd5   : > { %v15570_v46 = vpop.f32.mrb[59].mxu1  ;;  %v13419_v18 = vld [vmem:[%s18639_s19 + $0x118] sm:$0xff] }
 0xfda   : > { %v3993_v47 = vpop.f32.mrb[60].mxu1 }
 0xfdb   : > { %4220 = vrot.lane.b32.xlu1 %v3993_v47, %s18581_s0  ;;  %v15581_v48 = vpop.f32.mrb[61].mxu1  ;;  %s18656_s0 = smov 104  }
 0xfdc   : > { %v3996_v49 = vpop.f32.mrb[62].mxu1  ;;  %v13427_v48 = vld [vmem:[%s18639_s19 + $0x158] sm:$0xff] }
 0xfdd   : > { %v15582_v26 = vpop.f32.mrb[63].mxu1  ;;  %v13713_v49 = vcombine.low %v13419_v18, %v13427_v48 }
 0xfde   : > { %v13714_v26 = vcombine.high %v13419_v18, %v13427_v48  ;;  %v16090_v48 = vld [vmem:[%s18635_s30 + $0x4c0] sm:$0xff]  }
 0xfff   : > { %v4103_v28 = vpop.f32.mrb[64].mxu1 }
0x1000   : > { %4224 = vrot.lane.b32.xlu0 %v4103_v28, %s18579_s2  ;;  %v15593_v53 = vpop.f32.mrb[65].mxu1  ;;  %s18655_s2 = sld [smem:[#allocation19_spill]] }
0x1001   : > { %v4106_v54 = vpop.f32.mrb[66].mxu1 }
0x1002   : > { %v15594_v50 = vpop.f32.mrb[67].mxu1  ;;  %v13414_v54 = vld [vmem:[%s18641_s12 + $0x2] ss:$0 sm:$0xff] }
0x1007   : > { %v4213_v55 = vpop.f32.mrb[68].mxu1 }
0x1008   : > { %4228 = vrot.lane.b32.xlu1 %v4213_v55, %s18577_s26  ;;  %v15605_v56 = vpop.f32.mrb[69].mxu1  ;;  %v13415_v55 = vld [vmem:[%s18638_s20 + $0x2] ss:$0 sm:$0xff]  ;;  %s18654_s26 = sld [smem:[#allocation18_spill]] }
0x1009   : > { %v4216_v61 = vpop.f32.mrb[70].mxu1 }
0x100a   : > { %v15606_v38 = vpop.f32.mrb[71].mxu1  ;;  %v13434_v61 = vld [vmem:[%s18639_s19 + $0x190] sm:$0xff] }
0x100b   : > { %v13442_v38 = vld [vmem:[%s18639_s19 + $0x1d0] sm:$0xff] }
0x104d   : > { %v4221_v39 = vpop.permute.xlu1 %4220 }
0x104e   : > { %v4231_v57 = vsel %vm1128_vm4, %v3882_v45, %v4221_v39  ;;  %v13418_v45 = vld [vmem:[%s18639_s19 + $0x110] sm:$0xff]  ;;  %v13435_v39 = vld [vmem:[%s18639_s19 + $0x198] sm:$0xff] }
0x104f   : > { %v13711_v46 = vcombine.low %v13418_v45, %v13426_v2  ;;  %v13712_v47 = vcombine.high %v13418_v45, %v13426_v2 }
0x1072   : > { %v4225_v5 = vpop.permute.xlu0 %4224 }
0x1073   : > { %v4232_v29 = vsel %vm1580_vm6, %v4231_v57, %v4225_v5  ;;  %v13443_v5 = vld [vmem:[%s18639_s19 + $0x1d8] sm:$0xff] }
0x107a   : > { %v4229_v59 = vpop.permute.xlu1 %4228 }
0x107b   : > { %v4233_v30 = vsel %vm1582_vm7, %v4232_v29, %v4229_v59  ;;  %v13728_v59 = vcombine.high %v13434_v61, %v13442_v38 }
0x107c   : > { %v4234_v60 = vpack.c.bf16 %v4233_v30, %v4233_v30  ;;  %v13730_v30 = vcombine.high %v13435_v39, %v13443_v5 }
0x107e   : > { %15612 = vmatmul.mubr.msk.bf16.vlgmr.msra.gmra.mrb[72].mxu0 %vm1078_vm3, %v4234_v60  ;;  %v13420_v60 = vld [vmem:[%s18639_s19 + $0x120] sm:$0xff] }
0x107f   : > { %4942 = vmatprep.mubr.bf16.mxu0 %v16667_v34  ;;  %4911 = vmatpush1.bf16.msra.mxu0 %v13709_v32 }
0x1080   : > { %4912 = vmatprep.subr.bf16.mxu0 %v13726_v44 }
0x1083   : > { %4913 = vmatpush1.bf16.msra.mxu0 %v13725_v43  ;;  %v13719_v43 = vcombine.low %v13422_v9, %v13430_v31 }
0x1084   : > { %4992 = vmatprep.subr.bf16.mxu0 %v13714_v26  ;;  %v16092_v26 = vld [vmem:[%s18635_s30 + $0x480] sm:$0xff]  }
0x1151   : > { %v4290_v7 = vpop.f32.mrb[72].mxu0 }
0x1152   : > { %v4291_v8 = vadd.f32 %v13408_v6, %v4290_v7  ;;  %v15613_v10 = vpop.f32.mrb[73].mxu0  ;;  %v13428_v6 = vld [vmem:[%s18639_s19 + $0x160] sm:$0xff]  ;;  %v13421_v7 = vld [vmem:[%s18639_s19 + $0x128] sm:$0xff] }
0x1153   : > { %v4293_v11 = vpop.f32.mrb[74].mxu0  ;;  %v13727_v10 = vcombine.low %v13434_v61, %v13442_v38  ;;  %v16101_v61 = vld [vmem:[%s18635_s30 + $0x458] sm:$0xff]  }
0x1154   : > { %v15614_v14 = vpop.f32.mrb[75].mxu0  ;;  %v4296_v15 = vadd.f32 %v4291_v8, %v17252_v58  ;;  %v13707_v58 = vcombine.low %v13416_v22, %v13424_v27  ;;  %v13429_v8 = vld [vmem:[%s18639_s19 + $0x168] sm:$0xff]  ;;  %v13729_v11 = vcombine.low %v13435_v39, %v13443_v5  ;;  %v16102_v38 = vld [vmem:[%s18635_s30 + $0x4d8] sm:$0xff]  }
0x1155   : > { %v13716_v14 = vcombine.high %v13420_v60, %v13428_v6  ;;  %v16103_v39 = vld [vmem:[%s18635_s30 + $0x418] sm:$0xff]  }
0x1156   : > { %v4301_v16 = vsel %vm1078_vm3, %v4296_v15, 0.0  ;;  %4870 = vmatpush1.bf16.msra.mxu1 %v13707_v58  ;;  %v13431_v58 = vld [vmem:[%s18639_s19 + $0x178] sm:$0xff] }
0x1157   : > { %4302 = vadd.xlane.f32.xlu0 %v4301_v16  ;;  %4871 = vmatprep.subr.bf16.mxu1 %v13724_v40  ;;  %v13436_v16 = vld [vmem:[%s18639_s19 + $0x1a0] sm:$0xff]  ;;  %v13722_v36 = vcombine.high %v13423_v62, %v13431_v58  ;;  %v13446_v40 = vld [vmem:[%s18639_s19 + $0x1f0] sm:$0xff]  ;;  %v13721_v44 = vcombine.low %v13423_v62, %v13431_v58  ;;  %v16104_v5 = vld [vmem:[%s18635_s30 + $0x498] sm:$0xff]  }
0x1158   : > { %v13736_v45 = vcombine.high %v13438_v37, %v13446_v40  ;;  %v13735_v18 = vcombine.low %v13438_v37, %v13446_v40 }
0x115a   : > { %4872 = vmatpush1.bf16.msra.mxu1 %v13723_v42  ;;  %v13447_v42 = vld [vmem:[%s18639_s19 + $0x1f8] sm:$0xff] }
0x115b   : > { %4951 = vmatprep.subr.bf16.mxu1 %v13712_v47  ;;  %v13738_v2 = vcombine.high %v13439_v41, %v13447_v42  ;;  %v16089_v47 = vld [vmem:[%s18635_s30 + $0x440] sm:$0xff]  }
0x11e4   : > { %v4303_v17 = vpop.xlane.xlu0 %4302 }
0x11e5   : > { %v4304_v13 = vmul.f32 0.03125, %v4303_v17  ;;  %v13444_v17 = vld [vmem:[%s18639_s19 + $0x1e0] sm:$0xff] }
0x11e6   : > { %v13732_v22 = vcombine.high %v13436_v16, %v13444_v17  ;;  %v13731_v32 = vcombine.low %v13436_v16, %v13444_v17  ;;  %v16116_v16 = vld [vmem:[%s18635_s30 + $0x4b0] sm:$0xff]   ;;  %v16117_v17 = vld [vmem:[%s18635_s30 + $0x478] sm:$0xff]  }
0x11e7   : > { %v4305_v21 = vsub.f32 %v4296_v15, %v4304_v13  ;;  %v13718_v15 = vcombine.high %v13421_v7, %v13429_v8  ;;  %v13437_v13 = vld [vmem:[%s18639_s19 + $0x1a8] sm:$0xff] }
0x11e9   : > { %v4306_v23 = vmul.f32 %v4305_v21, %v4305_v21 }
0x11eb   : > { %v4307_v25 = vsel %vm1078_vm3, %v4306_v23, 0.0  ;;  %v13715_v23 = vcombine.low %v13420_v60, %v13428_v6  ;;  %v16108_v60 = vld [vmem:[%s18635_s30 + $0x4a0] sm:$0xff]   ;;  %v16109_v6 = vld [vmem:[%s18635_s30 + $0x468] sm:$0xff]  }
0x11ec   : > { %4308 = vadd.xlane.f32.xlu1 %v4307_v25  ;;  %v13717_v25 = vcombine.low %v13421_v7, %v13429_v8  ;;  %v16110_v7 = vld [vmem:[%s18635_s30 + $0x4e8] sm:$0xff]  }
0x11ed   : > { %v16111_v8 = vld [vmem:[%s18635_s30 + $0x428] sm:$0xff]  }
0x1279   : > { %v4309_v51 = vpop.xlane.xlu1 %4308 }
0x127a   : > { %v4310_v52 = vmul.f32 0.03125, %v4309_v51  ;;  %v16093_v51 = vld [vmem:[%s18635_s30 + $0x448] sm:$0xff]  }
0x127c   : > { %v4311_v28 = vadd.f32 1e-05, %v4310_v52  ;;  %v16094_v52 = vld [vmem:[%s18635_s30 + $0x4c8] sm:$0xff]  }
0x127e   : > { %16531 = vrsqrt.f32 %v4311_v28  ;;  %v16095_v28 = vld [vmem:[%s18635_s30 + $0x408] sm:$0xff]  }
0x1288   : > { %v16532_v53 = vpop.eup %16531 }
0x1289   : > { %v4313_v50 = vmul.f32 %v16532_v53, %v4305_v21  ;;  %v13445_v21 = vld [vmem:[%s18639_s19 + $0x1e8] sm:$0xff]  ;;  %s18671_s19 = smov 96  }
0x128a   : > { %v13734_v27 = vcombine.high %v13437_v13, %v13445_v21  ;;  %v13733_v33 = vcombine.low %v13437_v13, %v13445_v21  ;;  %v16096_v53 = vld [vmem:[%s18635_s30 + $0x488] sm:$0xff]   ;;  %v16118_v13 = vld [vmem:[%s18635_s30 + $0x4f8] sm:$0xff]  }
0x128b   : > { %v4320_v56 = vmul.f32 %v13414_v54, %v4313_v50  ;;  %v16097_v54 = vld [vmem:[%s18635_s30 + $0x450] sm:$0xff]   ;;  %v16119_v21 = vld [vmem:[%s18635_s30 + $0x438] sm:$0xff]  }
0x128c   : > { %v16098_v50 = vld [vmem:[%s18635_s30 + $0x4d0] sm:$0xff]  }
0x128d   : > { %v17360_v57 = vadd.f32 %v13415_v55, %v4320_v56  ;;  %v16099_v55 = vld [vmem:[%s18635_s30 + $0x410] sm:$0xff]  }
0x128e   : > { %v16100_v56 = vld [vmem:[%s18635_s30 + $0x490] sm:$0xff]  }
0x128f   : > { %v17364_v29 = vpack.c.bf16 %v17360_v57, %v17360_v57 }
0x1291   : > { %13739 = vmatmul.mubr.msk.bf16.vlgmr.msra.gmra.mrb[72].mxu1 %vm1078_vm3, %v17364_v29  ;;  %13740 = vmatmul.mubr.msk.bf16.vlgmr.msra.gmra.mrb[76].mxu0 %vm1078_vm3, %v17364_v29 }
0x1292   : > { %4952 = vmatpush1.bf16.msra.mxu1 %v13711_v46  ;;  %4993 = vmatpush1.bf16.msra.mxu0 %v13713_v49  ;;  %v13737_v46 = vcombine.low %v13439_v41, %v13447_v42  ;;  %v16091_v49 = vld [vmem:[%s18635_s30 + $0x400] sm:$0xff]  }
0x1293   : > { %4953 = vmatprep.subr.bf16.mxu1 %v13728_v59  ;;  %4994 = vmatprep.subr.bf16.mxu0 %v13730_v30  ;;  %v16106_v59 = vld [vmem:[%s18635_s30 + $0x4e0] sm:$0xff]  }
0x1294   : > { %4983 = vmatprep.mubr.bf16.mxu1 %v16667_v34  ;;  %5024 = vmatprep.mubr.bf16.mxu0 %v16667_v34  ;;  %v16107_v30 = vld [vmem:[%s18635_s30 + $0x420] sm:$0xff]  }
0x1296   : > { %4954 = vmatpush1.bf16.msra.mxu1 %v13727_v10  ;;  %4995 = vmatpush1.bf16.msra.mxu0 %v13729_v11  ;;  %v16112_v10 = vld [vmem:[%s18635_s30 + $0x4a8] sm:$0xff]   ;;  %v16113_v11 = vld [vmem:[%s18635_s30 + $0x470] sm:$0xff]  }
0x1297   : > { %5033 = vmatprep.subr.bf16.mxu1 %v13716_v14  ;;  %5074 = vmatprep.subr.bf16.mxu0 %v13718_v15  ;;  %v16114_v14 = vld [vmem:[%s18635_s30 + $0x4f0] sm:$0xff]  }
0x1298   : > { %v16115_v15 = vld [vmem:[%s18635_s30 + $0x430] sm:$0xff]  }
0x1299   : > { %13741 = vmatmul.mubr.msk.bf16.vlgmr.msra.gmra.mrb[76].mxu1 %vm1078_vm3, %v17364_v29  ;;  %13742 = vmatmul.mubr.msk.bf16.vlgmr.msra.gmra.mrb[80].mxu0 %vm1078_vm3, %v17364_v29 }
0x129a   : > { %5034 = vmatpush1.bf16.msra.mxu1 %v13715_v23  ;;  %5075 = vmatpush1.bf16.msra.mxu0 %v13717_v25  ;;  %v16120_v23 = vld [vmem:[%s18635_s30 + $0x4b8] sm:$0xff]   ;;  %v16121_v25 = vld [vmem:[%s18635_s30 + $0x540] sm:$0xff]  }
0x129b   : > { %5035 = vmatprep.subr.bf16.mxu1 %v13732_v22  ;;  %5076 = vmatprep.subr.bf16.mxu0 %v13734_v27  ;;  %v16122_v22 = vld [vmem:[%s18635_s30 + $0x5c0] sm:$0xff]   ;;  %v17439_v27 = vld [vmem:[%s18637_s24 + $0x10] sm:$0xff] }
0x129c   : > { %5065 = vmatprep.mubr.bf16.mxu1 %v16667_v34  ;;  %5106 = vmatprep.mubr.bf16.mxu0 %v16667_v34  ;;  %v4629_v9 = vrot.slane %v17439_v27, %v17057_v63  ;;  %v4637_v31 = vrot.slane %v17439_v27, %v17060_v1  ;;  %v4633_v62 = vrot.slane %v17439_v27, %v17066_v3 }
0x129d   : > { %v4641_v58 = vrot.slane %v17439_v27, %v17069_v4 }
0x129e   : > { %5036 = vmatpush1.bf16.msra.mxu1 %v13731_v32  ;;  %5077 = vmatpush1.bf16.msra.mxu0 %v13733_v33 }
0x129f   : > { %5115 = vmatprep.subr.bf16.mxu1 %v13720_v35  ;;  %5156 = vmatprep.subr.bf16.mxu0 %v13722_v36 }
0x12a1   : > { %13743 = vmatmul.mubr.msk.bf16.vlgmr.msra.gmra.mrb[80].mxu1 %vm1078_vm3, %v17364_v29  ;;  %13744 = vmatmul.mubr.msk.bf16.vlgmr.msra.gmra.mrb[84].mxu0 %vm1078_vm3, %v17364_v29 }
0x12a2   : > { %5116 = vmatpush1.bf16.msra.mxu1 %v13719_v43  ;;  %5157 = vmatpush1.bf16.msra.mxu0 %v13721_v44 }
0x12a3   : > { %5117 = vmatprep.subr.bf16.mxu1 %v13736_v45  ;;  %5158 = vmatprep.subr.bf16.mxu0 %v13738_v2 }
0x12a4   : > { %5147 = vmatprep.mubr.bf16.mxu1 %v16667_v34  ;;  %5188 = vmatprep.mubr.bf16.mxu0 %v16667_v34 }
0x12a6   : > { %5118 = vmatpush1.bf16.msra.mxu1 %v13735_v18  ;;  %5159 = vmatpush1.bf16.msra.mxu0 %v13737_v46 }
0x12a7   : > { %14856 = vmatprep.subr.bf16.mxu1 %v16089_v47  ;;  %14878 = vmatprep.subr.bf16.mxu0 %v16090_v48 }
0x12a9   : > { %13745 = vmatmul.mubr.msk.bf16.vlgmr.msra.gmra.mrb[84].mxu1 %vm1078_vm3, %v17364_v29  ;;  %13746 = vmatmul.mubr.msk.bf16.vlgmr.msra.gmra.mrb[88].mxu0 %vm1078_vm3, %v17364_v29  ;;  %v16105_v29 = vld [vmem:[%s18635_s30 + $0x460] sm:$0xff]  }
0x12aa   : > { %14857 = vmatpush3.bf16.msra.mxu1 %v16091_v49  ;;  %14879 = vmatpush3.bf16.msra.mxu0 %v16092_v26 }
0x12ab   : > { %14858 = vmatprep.subr.bf16.mxu1 %v16093_v51  ;;  %14880 = vmatprep.subr.bf16.mxu0 %v16094_v52  ;;  %v4649_v51 = vrot.slane %v17439_v27, %v17080_v19  ;;  %v4657_v52 = vrot.slane %v17439_v27, %v17083_v20 }
0x12ae   : > { %14859 = vmatpush3.bf16.msra.mxu1 %v16095_v28  ;;  %14881 = vmatpush3.bf16.msra.mxu0 %v16096_v53  ;;  %v16123_v28 = vld [vmem:[%s18635_s30 + $0x500] sm:$0xff]  }
0x12af   : > { %14860 = vmatprep.subr.bf16.mxu1 %v16097_v54  ;;  %14882 = vmatprep.subr.bf16.mxu0 %v16098_v50  ;;  %v16124_v53 = vld [vmem:[%s18635_s30 + $0x580] sm:$0xff]  }
0x12b2   : > { %14861 = vmatpush3.bf16.msra.mxu1 %v16099_v55  ;;  %14883 = vmatpush3.bf16.msra.mxu0 %v16100_v56  ;;  %v16125_v55 = vld [vmem:[%s18635_s30 + $0x548] sm:$0xff]  }
0x12b3   : > { %14862 = vmatprep.subr.bf16.mxu1 %v16101_v61  ;;  %14884 = vmatprep.subr.bf16.mxu0 %v16102_v38  ;;  %v16126_v56 = vld [vmem:[%s18635_s30 + $0x5c8] sm:$0xff]  }
0x12b6   : > { %14863 = vmatpush3.bf16.msra.mxu1 %v16103_v39  ;;  %14885 = vmatpush3.bf16.msra.mxu0 %v16104_v5 }
0x12b7   : > { %14864 = vmatprep.subr.bf16.mxu1 %v16105_v29  ;;  %14886 = vmatprep.subr.bf16.mxu0 %v16106_v59 }
0x12ba   : > { %14865 = vmatpush3.bf16.msra.mxu1 %v16107_v30  ;;  %14887 = vmatpush3.bf16.msra.mxu0 %v16108_v60 }
0x12bb   : > { %14866 = vmatprep.subr.bf16.mxu1 %v16109_v6  ;;  %14888 = vmatprep.subr.bf16.mxu0 %v16110_v7  ;;  %v16127_v6 = vld [vmem:[%s18635_s30 + $0x508] sm:$0xff]  }
0x12bc   : > { %v16128_v7 = vld [vmem:[%s18635_s30 + $0x588] sm:$0xff]  }
0x12be   : > { %14867 = vmatpush3.bf16.msra.mxu1 %v16111_v8  ;;  %14889 = vmatpush3.bf16.msra.mxu0 %v16112_v10 }
0x12bf   : > { %14868 = vmatprep.subr.bf16.mxu1 %v16113_v11  ;;  %14890 = vmatprep.subr.bf16.mxu0 %v16114_v14  ;;  %v16129_v11 = vld [vmem:[%s18635_s30 + $0x550] sm:$0xff]  }
0x12c0   : > { %v16130_v14 = vld [vmem:[%s18635_s30 + $0x5d0] sm:$0xff]  }
0x12c2   : > { %14869 = vmatpush3.bf16.msra.mxu1 %v16115_v15  ;;  %14891 = vmatpush3.bf16.msra.mxu0 %v16116_v16 }
0x12c3   : > { %14870 = vmatprep.subr.bf16.mxu1 %v16117_v17  ;;  %14892 = vmatprep.subr.bf16.mxu0 %v16118_v13 }
0x12c6   : > { %14871 = vmatpush3.bf16.msra.mxu1 %v16119_v21  ;;  %14893 = vmatpush3.bf16.msra.mxu0 %v16120_v23  ;;  %v16131_v21 = vld [vmem:[%s18635_s30 + $0x510] sm:$0xff]  }
0x12c7   : > { %14900 = vmatprep.subr.bf16.mxu1 %v16121_v25  ;;  %14922 = vmatprep.subr.bf16.mxu0 %v16122_v22  ;;  %v16132_v23 = vld [vmem:[%s18635_s30 + $0x590] sm:$0xff]   ;;  %v16133_v25 = vld [vmem:[%s18635_s30 + $0x558] sm:$0xff]  }
0x12c8   : > { %v16134_v22 = vld [vmem:[%s18635_s30 + $0x5d8] sm:$0xff]  }
0x1364   : > { %v4903_v32 = vpop.f32.mrb[72].mxu1  ;;  %v4944_v33 = vpop.f32.mrb[76].mxu0 }
0x1365   : > { %v4904_v35 = vadd.f32 %v4903_v32, %v4629_v9  ;;  %v4945_v36 = vadd.f32 %v4944_v33, %v4637_v31  ;;  %v4905_v37 = vpop.f32.mrb[73].mxu1  ;;  %v4946_v40 = vpop.f32.mrb[77].mxu0 }
0x1366   : > { %v4906_v41 = vadd.f32 %v4905_v37, %v4633_v62  ;;  %v4947_v42 = vadd.f32 %v4946_v40, %v4641_v58  ;;  %v4907_v43 = vpop.f32.mrb[74].mxu1  ;;  %v4948_v44 = vpop.f32.mrb[78].mxu0 }
0x1367   : > { %v5197_v45 = vmax.f32 %v4904_v35, 0.0  ;;  %v5199_v2 = vmax.f32 %v4945_v36, 0.0  ;;  %v4908_v18 = vpop.f32.mrb[75].mxu1  ;;  %v4949_v46 = vpop.f32.mrb[79].mxu0  ;;  %v16135_v35 = vld [vmem:[%s18635_s30 + $0x518] sm:$0xff]  }
0x1368   : > { %v5198_v47 = vmax.f32 %v4906_v41, 0.0  ;;  %v5200_v48 = vmax.f32 %v4947_v42, 0.0  ;;  %v16136_v36 = vld [vmem:[%s18635_s30 + $0x598] sm:$0xff]   ;;  %v16137_v41 = vld [vmem:[%s18635_s30 + $0x560] sm:$0xff]   ;;  %v16141_v18 = vld [vmem:[%s18635_s30 + $0x568] sm:$0xff]  }
0x1369   : > { %v5213_v54 = vpack.c.bf16 %v5197_v45, %v5197_v45  ;;  %v5215_v50 = vpack.c.bf16 %v5199_v2, %v5199_v2  ;;  %v16138_v42 = vld [vmem:[%s18635_s30 + $0x5e0] sm:$0xff]   ;;  %v17478_v43 = vld [vmem:[%s18637_s24 + $0x18] sm:$0xff]  ;;  %v16142_v46 = vld [vmem:[%s18635_s30 + $0x5e8] sm:$0xff]   ;;  %s18673_s24 = sld [smem:[#allocation26_spill]] }
0x136a   : > { %v5214_v49 = vpack.c.bf16 %v5198_v47, %v5198_v47  ;;  %v5216_v26 = vpack.c.bf16 %v5200_v48, %v5200_v48  ;;  %v4685_v44 = vrot.slane %v17478_v43, %v17112_v12  ;;  %v16139_v45 = vld [vmem:[%s18635_s30 + $0x520] sm:$0xff]  }
0x136b   : > { %v16140_v2 = vld [vmem:[%s18635_s30 + $0x5a0] sm:$0xff]  }
0x136c   : > { %v17457_v61 = vpop.f32.mrb[76].mxu1  ;;  %v17459_v38 = vpop.f32.mrb[80].mxu0  ;;  %6035 = vmatprep.mubr.bf16.mxu1 %v5214_v49  ;;  %6075 = vmatprep.mubr.bf16.mxu0 %v5216_v26 }
0x136d   : > { %v4987_v39 = vpop.f32.mrb[77].mxu1  ;;  %v5028_v5 = vpop.f32.mrb[81].mxu0  ;;  %6036 = vmatmul.mubr.bf16.vlgmr.msra.gmra.mrb[88].mxu1 %v5213_v54  ;;  %6076 = vmatmul.mubr.bf16.vlgmr.msra.gmra.mrb[92].mxu0 %v5215_v50  ;;  %v16144_v54 = vld [vmem:[%s18635_s30 + $0x5a8] sm:$0xff]   ;;  %v4645_v50 = vrot.slane %v17439_v27, %v17124_v24 }
0x136e   : > { %v4988_v29 = vadd.f32 %v4987_v39, %v4649_v51  ;;  %v5029_v59 = vadd.f32 %v5028_v5, %v4657_v52  ;;  %14901 = vmatpush3.bf16.msra.mxu1 %v16123_v28  ;;  %14923 = vmatpush3.bf16.msra.mxu0 %v16124_v53  ;;  %v4989_v30 = vpop.f32.mrb[78].mxu1  ;;  %v5030_v60 = vpop.f32.mrb[82].mxu0  ;;  %v16143_v53 = vld [vmem:[%s18635_s30 + $0x528] sm:$0xff]   ;;  %v16145_v5 = vld [vmem:[%s18635_s30 + $0x570] sm:$0xff]  }
0x136f   : > { %v4990_v8 = vpop.f32.mrb[79].mxu1  ;;  %v5031_v10 = vpop.f32.mrb[83].mxu0  ;;  %14902 = vmatprep.subr.bf16.mxu1 %v16125_v55  ;;  %14924 = vmatprep.subr.bf16.mxu0 %v16126_v56  ;;  %v4653_v55 = vrot.slane %v17439_v27, %v17112_v12  ;;  %v4673_v30 = vrot.slane %v17478_v43, %v17069_v4  ;;  %v16147_v60 = vld [vmem:[%s18635_s30 + $0x530] sm:$0xff]  }
0x1370   : > { %v5202_v15 = vmax.f32 %v4988_v29, 0.0  ;;  %v5204_v16 = vmax.f32 %v5029_v59, 0.0  ;;  %v16146_v29 = vld [vmem:[%s18635_s30 + $0x5f0] sm:$0xff]   ;;  %v4665_v59 = vrot.slane %v17478_v43, %v17066_v3  ;;  %v16149_v8 = vld [vmem:[%s18635_s30 + $0x578] sm:$0xff]  }
0x1371   : > { %v16148_v27 = vld [vmem:[%s18635_s30 + $0x5b0] sm:$0xff]   ;;  %v16150_v10 = vld [vmem:[%s18635_s30 + $0x5f8] sm:$0xff]  }
0x1372   : > { %v5218_v17 = vpack.c.bf16 %v5202_v15, %v5202_v15  ;;  %v5220_v13 = vpack.c.bf16 %v5204_v16, %v5204_v16  ;;  %14903 = vmatpush3.bf16.msra.mxu1 %v16127_v6  ;;  %14925 = vmatpush3.bf16.msra.mxu0 %v16128_v7  ;;  %v4986_v6 = vadd.f32 %v17457_v61, %v4645_v50  ;;  %v16151_v15 = vld [vmem:[%s18635_s30 + $0x538] sm:$0xff]   ;;  %v16153_v61 = vld [vmem:[%s18635_s30 + $0x640] sm:$0xff]   ;;  %v16173_v50 = vld [vmem:[%s18635_s30 + $0x668] sm:$0xff]  }
0x1373   : > { %14904 = vmatprep.subr.bf16.mxu1 %v16129_v11  ;;  %14926 = vmatprep.subr.bf16.mxu0 %v16130_v14  ;;  %v5027_v7 = vadd.f32 %v17459_v38, %v4653_v55  ;;  %v16152_v16 = vld [vmem:[%s18635_s30 + $0x5b8] sm:$0xff]   ;;  %v16154_v38 = vld [vmem:[%s18635_s30 + $0x6c0] sm:$0xff]   ;;  %v16174_v55 = vld [vmem:[%s18635_s30 + $0x6e8] sm:$0xff]  }
0x1374   : > { %v17469_v9 = vpop.f32.mrb[80].mxu1  ;;  %v17471_v31 = vpop.f32.mrb[84].mxu0  ;;  %6115 = vmatprep.mubr.bf16.mxu1 %v5218_v17  ;;  %6155 = vmatprep.mubr.bf16.mxu0 %v5220_v13  ;;  %v5201_v17 = vmax.f32 %v4986_v6, 0.0  ;;  %v16179_v6 = vld [vmem:[%s18635_s30 + $0x630] sm:$0xff]  }
0x1375   : > { %v5069_v62 = vpop.f32.mrb[81].mxu1  ;;  %v5110_v58 = vpop.f32.mrb[85].mxu0  ;;  %v5203_v13 = vmax.f32 %v5027_v7, 0.0 }
0x1376   : > { %14905 = vmatpush3.bf16.msra.mxu1 %v16131_v21  ;;  %14927 = vmatpush3.bf16.msra.mxu0 %v16132_v23  ;;  %v5071_v32 = vpop.f32.mrb[82].mxu1  ;;  %v5112_v33 = vpop.f32.mrb[86].mxu0  ;;  %v5070_v11 = vadd.f32 %v5069_v62, %v4665_v59  ;;  %v5111_v14 = vadd.f32 %v5110_v58, %v4673_v30  ;;  %v16156_v58 = vld [vmem:[%s18635_s30 + $0x680] sm:$0xff]   ;;  %v4669_v59 = vrot.slane %v17478_v43, %v17060_v1  ;;  %v16178_v30 = vld [vmem:[%s18635_s30 + $0x6f0] sm:$0xff]  }
0x1377   : > { %v5072_v37 = vpop.f32.mrb[83].mxu1  ;;  %v5113_v40 = vpop.f32.mrb[87].mxu0  ;;  %14906 = vmatprep.subr.bf16.mxu1 %v16133_v25  ;;  %14928 = vmatprep.subr.bf16.mxu0 %v16134_v22  ;;  %v16155_v25 = vld [vmem:[%s18635_s30 + $0x600] sm:$0xff]   ;;  %v5217_v22 = vpack.c.bf16 %v5201_v17, %v5201_v17  ;;  %v5219_v62 = vpack.c.bf16 %v5203_v13, %v5203_v13  ;;  %v16157_v33 = vld [vmem:[%s18635_s30 + $0x648] sm:$0xff]   ;;  %v16183_v17 = vld [vmem:[%s18635_s30 + $0x638] sm:$0xff]  }
0x1378   : > { %v5206_v21 = vmax.f32 %v5070_v11, 0.0  ;;  %v5208_v23 = vmax.f32 %v5111_v14, 0.0  ;;  %v16159_v37 = vld [vmem:[%s18635_s30 + $0x608] sm:$0xff]   ;;  %v5109_v11 = vadd.f32 %v17471_v31, %v4669_v59  ;;  %v16182_v14 = vld [vmem:[%s18635_s30 + $0x6f8] sm:$0xff]   ;;  %v16186_v31 = vld [vmem:[%s18635_s30 + $0x7c0] sm:$0xff]  }
0x1379   : > { %v16160_v40 = vld [vmem:[%s18635_s30 + $0x688] sm:$0xff]  }
0x137a   : > { %14907 = vmatpush3.bf16.msra.mxu1 %v16135_v35  ;;  %14929 = vmatpush3.bf16.msra.mxu0 %v16136_v36  ;;  %v5222_v32 = vpack.c.bf16 %v5206_v21, %v5206_v21  ;;  %v16158_v35 = vld [vmem:[%s18635_s30 + $0x6c8] sm:$0xff]   ;;  %v5224_v36 = vpack.c.bf16 %v5208_v23, %v5208_v23 }
0x137b   : > { %14908 = vmatprep.subr.bf16.mxu1 %v16137_v41  ;;  %14930 = vmatprep.subr.bf16.mxu0 %v16138_v42  ;;  %v16161_v41 = vld [vmem:[%s18635_s30 + $0x650] sm:$0xff]  }
0x137c   : > { %v17486_v47 = vpop.f32.mrb[84].mxu1  ;;  %v5190_v48 = vpop.f32.mrb[88].mxu0  ;;  %v16162_v42 = vld [vmem:[%s18635_s30 + $0x6d0] sm:$0xff]  }
0x137d   : > { %v17488_v49 = vadd.f32 %v5190_v48, %v4685_v44  ;;  %v17490_v26 = vpop.f32.mrb[85].mxu1  ;;  %v17492_v51 = vpop.f32.mrb[89].mxu0  ;;  %v16163_v44 = vld [vmem:[%s18635_s30 + $0x610] sm:$0xff]   ;;  %v16168_v48 = vld [vmem:[%s18635_s30 + $0x698] sm:$0xff]  }
0x137e   : > { %14909 = vmatpush3.bf16.msra.mxu1 %v16139_v45  ;;  %14931 = vmatpush3.bf16.msra.mxu0 %v16140_v2  ;;  %v5153_v52 = vpop.f32.mrb[86].mxu1  ;;  %v5194_v28 = vpop.f32.mrb[90].mxu0  ;;  %v16164_v45 = vld [vmem:[%s18635_s30 + $0x690] sm:$0xff]   ;;  %v16165_v2 = vld [vmem:[%s18635_s30 + $0x658] sm:$0xff]  }
0x137f   : > { %v5154_v56 = vpop.f32.mrb[87].mxu1  ;;  %v5195_v39 = vpop.f32.mrb[91].mxu0  ;;  %14910 = vmatprep.subr.bf16.mxu1 %v16141_v18  ;;  %14932 = vmatprep.subr.bf16.mxu0 %v16142_v46  ;;  %v16166_v18 = vld [vmem:[%s18635_s30 + $0x6d8] sm:$0xff]   ;;  %v16169_v52 = vld [vmem:[%s18635_s30 + $0x660] sm:$0xff]  }
0x1380   : > { %v16167_v46 = vld [vmem:[%s18635_s30 + $0x618] sm:$0xff]   ;;  %v16170_v28 = vld [vmem:[%s18635_s30 + $0x6e0] sm:$0xff]   ;;  %v16175_v56 = vld [vmem:[%s18635_s30 + $0x628] sm:$0xff]   ;;  %v4661_v39 = vrot.slane %v17478_v43, %v17057_v63 }
0x1382   : > { %14911 = vmatpush3.bf16.msra.mxu1 %v16143_v53  ;;  %14933 = vmatpush3.bf16.msra.mxu0 %v16144_v54  ;;  %v16171_v53 = vld [vmem:[%s18635_s30 + $0x620] sm:$0xff]   ;;  %v5068_v7 = vadd.f32 %v17469_v9, %v4661_v39  ;;  %v16184_v9 = vld [vmem:[%s18635_s30 + $0x6b8] sm:$0xff]   ;;  %v16209_v39 = vld [vmem:[%s18635_s30 + $0x770] sm:$0xff]  }
0x1383   : > { %14912 = vmatprep.subr.bf16.mxu1 %v16145_v5  ;;  %14934 = vmatprep.subr.bf16.mxu0 %v16146_v29  ;;  %v16172_v54 = vld [vmem:[%s18635_s30 + $0x6a0] sm:$0xff]   ;;  %v16176_v5 = vld [vmem:[%s18635_s30 + $0x6a8] sm:$0xff]   ;;  %v16177_v29 = vld [vmem:[%s18635_s30 + $0x670] sm:$0xff]  }
0x1384   : > { %v5205_v13 = vmax.f32 %v5068_v7, 0.0  ;;  %v16216_v7 = vld [vmem:[%s18635_s30 + $0x7b8] sm:$0xff]  }
0x1386   : > { %14913 = vmatpush3.bf16.msra.mxu1 %v16147_v60  ;;  %14935 = vmatpush3.bf16.msra.mxu0 %v16148_v27  ;;  %v4681_v60 = vrot.slane %v17478_v43, %v17080_v19  ;;  %v4689_v27 = vrot.slane %v17478_v43, %v17083_v20 }
0x1387   : > { %14914 = vmatprep.subr.bf16.mxu1 %v16149_v8  ;;  %14936 = vmatprep.subr.bf16.mxu0 %v16150_v10  ;;  %v16180_v8 = vld [vmem:[%s18635_s30 + $0x6b0] sm:$0xff]   ;;  %v16181_v10 = vld [vmem:[%s18635_s30 + $0x678] sm:$0xff]  }
0x138a   : > { %14915 = vmatpush3.bf16.msra.mxu1 %v16151_v15  ;;  %14937 = vmatpush3.bf16.msra.mxu0 %v16152_v16  ;;  %v5152_v15 = vadd.f32 %v17490_v26, %v4681_v60  ;;  %v5193_v16 = vadd.f32 %v17492_v51, %v4689_v27  ;;  %v16187_v26 = vld [vmem:[%s18635_s30 + $0x700] sm:$0xff]   ;;  %v16213_v60 = vld [vmem:[%s18635_s30 + $0x778] sm:$0xff]  }
0x138b   : > { %14944 = vmatprep.subr.bf16.mxu1 %v16153_v61  ;;  %14966 = vmatprep.subr.bf16.mxu0 %v16154_v38  ;;  %v16185_v61 = vld [vmem:[%s18635_s30 + $0x740] sm:$0xff]   ;;  %v5207_v38 = vmax.f32 %v5109_v11, 0.0  ;;  %v16214_v27 = vld [vmem:[%s18635_s30 + $0x7f8] sm:$0xff]  }
0x138c   : > { %v5210_v21 = vmax.f32 %v5152_v15, 0.0  ;;  %v5212_v23 = vmax.f32 %v5193_v16, 0.0  ;;  %v16188_v51 = vld [vmem:[%s18635_s30 + $0x780] sm:$0xff]  }
0x138d   : > { %6116 = vmatmul.mubr.bf16.vlgmr.msra.gmra.mrb[92].mxu1 %v5217_v22  ;;  %6156 = vmatmul.mubr.bf16.vlgmr.msra.gmra.mrb[96].mxu0 %v5219_v62  ;;  %v5223_v22 = vpack.c.bf16 %v5207_v38, %v5207_v38  ;;  %v16189_v62 = vld [vmem:[%s18635_s30 + $0x748] sm:$0xff]  }
0x138e   : > { %14945 = vmatpush3.bf16.msra.mxu1 %v16155_v25  ;;  %6195 = vmatprep.mubr.bf16.mxu1 %v5222_v32  ;;  %v5221_v25 = vpack.c.bf16 %v5205_v13, %v5205_v13  ;;  %v16190_v32 = vld [vmem:[%s18635_s30 + $0x7c8] sm:$0xff]  }
0x138f   : > { %14967 = vmatpush3.bf16.msra.mxu0 %v16156_v58  ;;  %6235 = vmatprep.mubr.bf16.mxu0 %v5224_v36  ;;  %v5226_v58 = vpack.c.bf16 %v5210_v21, %v5210_v21  ;;  %v16192_v36 = vld [vmem:[%s18635_s30 + $0x788] sm:$0xff]  }
0x1390   : > { %14946 = vmatprep.subr.bf16.mxu1 %v16157_v33  ;;  %14968 = vmatprep.subr.bf16.mxu0 %v16158_v35  ;;  %v5228_v33 = vpack.c.bf16 %v5212_v23, %v5212_v23  ;;  %v16191_v35 = vld [vmem:[%s18635_s30 + $0x708] sm:$0xff]  }
0x1392   : > { %14947 = vmatpush3.bf16.msra.mxu1 %v16159_v37  ;;  %v16193_v37 = vld [vmem:[%s18635_s30 + $0x750] sm:$0xff]  }
0x1393   : > { %14969 = vmatpush3.bf16.msra.mxu0 %v16160_v40  ;;  %14948 = vmatprep.subr.bf16.mxu1 %v16161_v41  ;;  %v16194_v40 = vld [vmem:[%s18635_s30 + $0x7d0] sm:$0xff]  }
0x1394   : > { %14970 = vmatprep.subr.bf16.mxu0 %v16162_v42  ;;  %v16195_v41 = vld [vmem:[%s18635_s30 + $0x710] sm:$0xff]  }
0x1395   : > { %v16196_v42 = vld [vmem:[%s18635_s30 + $0x790] sm:$0xff]  }
0x1396   : > { %14949 = vmatpush3.bf16.msra.mxu1 %v16163_v44  ;;  %v16197_v44 = vld [vmem:[%s18635_s30 + $0x758] sm:$0xff]  }
0x1397   : > { %14971 = vmatpush3.bf16.msra.mxu0 %v16164_v45  ;;  %14950 = vmatprep.subr.bf16.mxu1 %v16165_v2  ;;  %v16198_v45 = vld [vmem:[%s18635_s30 + $0x7d8] sm:$0xff]  }
0x1398   : > { %14972 = vmatprep.subr.bf16.mxu0 %v16166_v18  ;;  %v16199_v2 = vld [vmem:[%s18635_s30 + $0x718] sm:$0xff]  }
0x1399   : > { %v16200_v18 = vld [vmem:[%s18635_s30 + $0x798] sm:$0xff]  }
0x139a   : > { %14951 = vmatpush3.bf16.msra.mxu1 %v16167_v46  ;;  %v16201_v46 = vld [vmem:[%s18635_s30 + $0x760] sm:$0xff]  }
0x139b   : > { %14973 = vmatpush3.bf16.msra.mxu0 %v16168_v48  ;;  %14952 = vmatprep.subr.bf16.mxu1 %v16169_v52  ;;  %v16202_v48 = vld [vmem:[%s18635_s30 + $0x7e0] sm:$0xff]  }
0x139c   : > { %14974 = vmatprep.subr.bf16.mxu0 %v16170_v28  ;;  %v16203_v52 = vld [vmem:[%s18635_s30 + $0x720] sm:$0xff]  }
0x139d   : > { %v16204_v28 = vld [vmem:[%s18635_s30 + $0x7a0] sm:$0xff]  }
0x139e   : > { %14953 = vmatpush3.bf16.msra.mxu1 %v16171_v53  ;;  %v16205_v53 = vld [vmem:[%s18635_s30 + $0x768] sm:$0xff]  }
0x139f   : > { %14975 = vmatpush3.bf16.msra.mxu0 %v16172_v54  ;;  %14954 = vmatprep.subr.bf16.mxu1 %v16173_v50  ;;  %v16206_v54 = vld [vmem:[%s18635_s30 + $0x7e8] sm:$0xff]  }
0x13a0   : > { %14976 = vmatprep.subr.bf16.mxu0 %v16174_v55  ;;  %v16207_v50 = vld [vmem:[%s18635_s30 + $0x728] sm:$0xff]   ;;  %v4677_v55 = vrot.slane %v17478_v43, %v17124_v24  ;;  %v16215_v43 = vld [vmem:[%s18635_s30 + $0x738] sm:$0xff]  }
0x13a2   : > { %14955 = vmatpush3.bf16.msra.mxu1 %v16175_v56  ;;  %v16208_v56 = vld [vmem:[%s18635_s30 + $0x7a8] sm:$0xff]   ;;  %v5150_v59 = vadd.f32 %v17486_v47, %v4677_v55 }
0x13a3   : > { %14977 = vmatpush3.bf16.msra.mxu0 %v16176_v5  ;;  %14956 = vmatprep.subr.bf16.mxu1 %v16177_v29  ;;  %v16210_v5 = vld [vmem:[%s18635_s30 + $0x7f0] sm:$0xff]  }
0x13a4   : > { %14978 = vmatprep.subr.bf16.mxu0 %v16178_v30  ;;  %v16211_v29 = vld [vmem:[%s18635_s30 + $0x730] sm:$0xff]  }
0x13a5   : > { %v16212_v30 = vld [vmem:[%s18635_s30 + $0x7b0] sm:$0xff]   ;;  %s18675_s30 = sld [smem:[#allocation28_spill]] }
0x13a6   : > { %14957 = vmatpush3.bf16.msra.mxu1 %v16179_v6  ;;  %v5209_v6 = vmax.f32 %v5150_v59, 0.0 }
0x13a7   : > { %14979 = vmatpush3.bf16.msra.mxu0 %v16180_v8  ;;  %14958 = vmatprep.subr.bf16.mxu1 %v16181_v10  ;;  %v5211_v8 = vmax.f32 %v17488_v49, 0.0  ;;  %v13747_v49 = vld [vmem:[%s18643_s6 + $0x1] ss:$0 sm:$0xff]  ;;  %s18664_s6 = smov 24  }
0x13a8   : > { %14980 = vmatprep.subr.bf16.mxu0 %v16182_v14  ;;  %v5225_v10 = vpack.c.bf16 %v5209_v6, %v5209_v6 }
0x13a9   : > { %v5227_v47 = vpack.c.bf16 %v5211_v8, %v5211_v8 }
0x13aa   : > { %14959 = vmatpush3.bf16.msra.mxu1 %v16183_v17 }
0x13ab   : > { %14981 = vmatpush3.bf16.msra.mxu0 %v16184_v9  ;;  %14988 = vmatprep.subr.bf16.mxu1 %v16185_v61 }
0x13ac   : > { %15010 = vmatprep.subr.bf16.mxu0 %v16186_v31 }
0x13ad   : > { %6196 = vmatmul.mubr.bf16.vlgmr.msra.gmra.mrb[96].mxu1 %v5221_v25 }
0x13ae   : > { %6236 = vmatmul.mubr.bf16.vlgmr.msra.gmra.mrb[100].mxu0 %v5223_v22  ;;  %14989 = vmatpush3.bf16.msra.mxu1 %v16187_v26 }
0x13af   : > { %6275 = vmatprep.mubr.bf16.mxu1 %v5226_v58  ;;  %15011 = vmatpush3.bf16.msra.mxu0 %v16188_v51 }
0x13b0   : > { %6315 = vmatprep.mubr.bf16.mxu0 %v5228_v33  ;;  %14990 = vmatprep.subr.bf16.mxu1 %v16189_v62 }
0x13b1   : > { %15012 = vmatprep.subr.bf16.mxu0 %v16190_v32 }
0x13b2   : > { %14991 = vmatpush3.bf16.msra.mxu1 %v16191_v35 }
0x13b3   : > { %15013 = vmatpush3.bf16.msra.mxu0 %v16192_v36  ;;  %14992 = vmatprep.subr.bf16.mxu1 %v16193_v37 }
0x13b4   : > { %15014 = vmatprep.subr.bf16.mxu0 %v16194_v40 }
0x13b6   : > { %14993 = vmatpush3.bf16.msra.mxu1 %v16195_v41 }
0x13b7   : > { %15015 = vmatpush3.bf16.msra.mxu0 %v16196_v42  ;;  %14994 = vmatprep.subr.bf16.mxu1 %v16197_v44 }
0x13b8   : > { %15016 = vmatprep.subr.bf16.mxu0 %v16198_v45 }
0x13ba   : > { %14995 = vmatpush3.bf16.msra.mxu1 %v16199_v2 }
0x13bb   : > { %15017 = vmatpush3.bf16.msra.mxu0 %v16200_v18  ;;  %14996 = vmatprep.subr.bf16.mxu1 %v16201_v46 }
0x13bc   : > { %15018 = vmatprep.subr.bf16.mxu0 %v16202_v48 }
0x13be   : > { %14997 = vmatpush3.bf16.msra.mxu1 %v16203_v52 }
0x13bf   : > { %15019 = vmatpush3.bf16.msra.mxu0 %v16204_v28  ;;  %14998 = vmatprep.subr.bf16.mxu1 %v16205_v53 }
0x13c0   : > { %15020 = vmatprep.subr.bf16.mxu0 %v16206_v54 }
0x13c2   : > { %14999 = vmatpush3.bf16.msra.mxu1 %v16207_v50 }
0x13c3   : > { %15021 = vmatpush3.bf16.msra.mxu0 %v16208_v56  ;;  %15000 = vmatprep.subr.bf16.mxu1 %v16209_v39 }
0x13c4   : > { %15022 = vmatprep.subr.bf16.mxu0 %v16210_v5 }
0x13c6   : > { %15001 = vmatpush3.bf16.msra.mxu1 %v16211_v29 }
0x13c7   : > { %15023 = vmatpush3.bf16.msra.mxu0 %v16212_v30  ;;  %15002 = vmatprep.subr.bf16.mxu1 %v16213_v60 }
0x13c8   : > { %15024 = vmatprep.subr.bf16.mxu0 %v16214_v27 }
0x13ca   : > { %15003 = vmatpush3.bf16.msra.mxu1 %v16215_v43 }
0x13cb   : > { %15025 = vmatpush3.bf16.msra.mxu0 %v16216_v7  ;;  %15615 = vmatprep.subr.bf16.mxu1 %v16651_v0 }
0x13cc   : > { %15623 = vmatprep.subr.bf16.mxu0 %v16651_v0 }
0x13cd   : > { %6276 = vmatmul.mubr.bf16.vlgmr.msra.gmra.mrb[100].mxu1 %v5225_v10 }
0x13ce   : > { %6316 = vmatmul.mubr.bf16.vlgmr.msra.gmra.mrb[104].mxu0 %v5227_v47  ;;  %15619 = vmatprep.mubr.msk.bf16.mxu1 %vm16652_vm1, %v16651_v0 }
0x13cf   : > { %15625 = vmatprep.mubr.msk.bf16.mxu0 %vm16652_vm1, %v16651_v0 }
0x1440   : > { %v14872_v11 = vpop.f32.mrb[88].mxu1  ;;  %v14894_v14 = vpop.f32.mrb[92].mxu0 }
0x1441   : > { %v14873_v15 = vpop.f32.mrb[89].mxu1  ;;  %v14895_v16 = vpop.f32.mrb[93].mxu0 }
0x1442   : > { %v14874_v17 = vadd.f32 %v14873_v15, %v14872_v11  ;;  %v14896_v13 = vadd.f32 %v14895_v16, %v14894_v14  ;;  %v14875_v9 = vpop.f32.mrb[90].mxu1  ;;  %v14897_v61 = vpop.f32.mrb[94].mxu0  ;;  %v16217_v15 = vld [vmem:[%s18654_s26] sm:$0xff]   ;;  %v16218_v16 = vld [vmem:[%s18654_s26 + $0x8] sm:$0xff]  }
0x1443   : > { %v14876_v38 = vpop.f32.mrb[91].mxu1  ;;  %v14898_v31 = vpop.f32.mrb[95].mxu0  ;;  %15616 = vmatpush3.bf16.msra.mxu1 %v16217_v15  ;;  %v13878_v61 = vld [vmem:[%s18641_s12 + $0x3] ss:$0 sm:$0xff]  ;;  %s18667_s12 = sld [smem:[#allocation22_spill]] }
0x1444   : > { %v6038_v21 = vadd.f32 %v14874_v17, %v13747_v49  ;;  %15617 = vmatprep.subr.bf16.mxu1 %v16651_v0  ;;  %v13879_v31 = vld [vmem:[%s18638_s20 + $0x3] ss:$0 sm:$0xff]  ;;  %s18672_s20 = smov 88  }
0x1446   : > { %v6078_v23 = vadd.f32 %v14896_v13, %v6038_v21 }
0x1447   : > { %15618 = vmatpush3.bf16.msra.mxu1 %v16218_v16 }
0x1448   : > { %15629 = vmatprep.subr.bf16.mxu1 %v16651_v0 }
0x1460   : > { %v14916_v26 = vpop.f32.mrb[92].mxu1  ;;  %v14938_v25 = vpop.f32.mrb[96].mxu0 }
0x1461   : > { %v14917_v51 = vpop.f32.mrb[93].mxu1  ;;  %v14939_v22 = vpop.f32.mrb[97].mxu0 }
0x1462   : > { %v14918_v62 = vadd.f32 %v14917_v51, %v14916_v26  ;;  %v14940_v58 = vadd.f32 %v14939_v22, %v14938_v25  ;;  %v14919_v32 = vpop.f32.mrb[94].mxu1  ;;  %v14941_v33 = vpop.f32.mrb[98].mxu0  ;;  %v13880_v25 = vld [vmem:[%s18655_s2] ss:$0 sm:$0xff] }
0x1463   : > { %v14920_v35 = vpop.f32.mrb[95].mxu1  ;;  %v14942_v36 = vpop.f32.mrb[99].mxu0 }
0x1464   : > { %v6118_v37 = vadd.f32 %v14918_v62, %v6078_v23 }
0x1466   : > { %v6158_v40 = vadd.f32 %v14940_v58, %v6118_v37 }
0x1480   : > { %v14960_v41 = vpop.f32.mrb[96].mxu1 }
0x1481   : > { %v14982_v42 = vpop.f32.mrb[100].mxu0  ;;  %v14961_v44 = vpop.f32.mrb[97].mxu1 }
0x1482   : > { %v14962_v45 = vadd.f32 %v14961_v44, %v14960_v41  ;;  %v14983_v2 = vpop.f32.mrb[101].mxu0  ;;  %v14963_v18 = vpop.f32.mrb[98].mxu1 }
0x1483   : > { %v14984_v46 = vadd.f32 %v14983_v2, %v14982_v42  ;;  %v14985_v48 = vpop.f32.mrb[102].mxu0  ;;  %v14964_v52 = vpop.f32.mrb[99].mxu1 }
0x1484   : > { %v6198_v28 = vadd.f32 %v14962_v45, %v6158_v40  ;;  %v14986_v53 = vpop.f32.mrb[103].mxu0 }
0x1486   : > { %v6238_v54 = vadd.f32 %v14984_v46, %v6198_v28 }
0x14a0   : > { %v15004_v50 = vpop.f32.mrb[100].mxu1 }
0x14a1   : > { %v15026_v55 = vpop.f32.mrb[104].mxu0  ;;  %v15005_v56 = vpop.f32.mrb[101].mxu1 }
0x14a2   : > { %v15006_v39 = vadd.f32 %v15005_v56, %v15004_v50  ;;  %v15027_v5 = vpop.f32.mrb[105].mxu0  ;;  %v15007_v29 = vpop.f32.mrb[102].mxu1 }
0x14a3   : > { %v15028_v59 = vadd.f32 %v15027_v5, %v15026_v55  ;;  %v15029_v30 = vpop.f32.mrb[106].mxu0  ;;  %v15008_v60 = vpop.f32.mrb[103].mxu1 }
0x14a4   : > { %v6278_v27 = vadd.f32 %v15006_v39, %v6238_v54  ;;  %v15030_v43 = vpop.f32.mrb[107].mxu0 }
0x14a6   : > { %v6318_v6 = vadd.f32 %v15028_v59, %v6278_v27 }
0x14a8   : > { %v6323_v7 = vadd.f32 %v6318_v6, %v17360_v57 }
0x14aa   : > { %v6328_v8 = vsel %vm1078_vm3, %v6323_v7, 0.0 }
0x14ab   : > { %6329 = vadd.xlane.f32.xlu0 %v6328_v8 }
0x1538   : > { %v6330_v10 = vpop.xlane.xlu0 %6329 }
0x1539   : > { %v6331_v47 = vmul.f32 0.03125, %v6330_v10 }
0x153b   : > { %v6332_v11 = vsub.f32 %v6323_v7, %v6331_v47 }
0x153d   : > { %v6333_v14 = vmul.f32 %v6332_v11, %v6332_v11 }
0x153f   : > { %v6334_v49 = vsel %vm1078_vm3, %v6333_v14, 0.0 }
0x1540   : > { %6335 = vadd.xlane.f32.xlu0 %v6334_v49 }
0x15cd   : > { %v6336_v57 = vpop.xlane.xlu0 %6335 }
0x15ce   : > { %v6337_v17 = vmul.f32 0.03125, %v6336_v57 }
0x15d0   : > { %v6338_v13 = vadd.f32 1e-05, %v6337_v17 }
0x15d2   : > { %16533 = vrsqrt.f32 %v6338_v13 }
0x15dc   : > { %v16534_v9 = vpop.eup %16533 }
0x15dd   : > { %v6340_v38 = vmul.f32 %v16534_v9, %v6332_v11 }
0x15df   : > { %v6347_v21 = vmul.f32 %v13878_v61, %v6340_v38 }
0x15e1   : > { %v17610_v23 = vadd.f32 %v13879_v31, %v6347_v21 }
0x15e3   : > { %v17614_v26 = vpack.c.bf16 %v17610_v23, %v17610_v23 }
0x15e5   : > { %15620 = vmatmul.mubr.msk.bf16.vlgmr.msra.gmra.mrb[104].mxu1 %vm1078_vm3, %v17614_v26 }
0x15e6   : > { %15631 = vmatprep.mubr.msk.bf16.mxu1 %vm16652_vm1, %v16651_v0 }
0x16b8   : > { %v6421_v51 = vpop.f32.mrb[104].mxu1 }
0x16b9   : > { %v6422_v22 = vadd.f32 %v13880_v25, %v6421_v51  ;;  %v15621_v62 = vpop.f32.mrb[105].mxu1 }
0x16ba   : > { %v6424_v58 = vpop.f32.mrb[106].mxu1 }
0x16bb   : > { %v6427_v32 = vmul.f32 0.35355338, %v6422_v22  ;;  %v17621_v33 = vpack.c.bf16 %v6422_v22, %v6422_v22  ;;  %v15622_v35 = vpop.f32.mrb[107].mxu1 }
0x16bd   : > { %6542 = vrot.lane.b32.xlu0 %v17621_v33, %s18586_s11  ;;  %6431 = vrot.lane.b32.xlu1 %v17621_v33, %s18588_s7  ;;  %v6428_v36 = vpack.c.bf16 %v6427_v32, %v6427_v32  ;;  %s18659_s11 = smov 56   ;;  %s18660_s7 = sld [smem:[#allocation20_spill]] }
0x16c1   : > { %6650 = vrot.lane.b32.xlu0 %v6428_v36, %s18590_s16  ;;  %6540 = vrot.lane.b32.xlu1 %v6428_v36, %s18592_s10  ;;  %s18661_s16 = smov 8   ;;  %s18662_s10 = smov 16  }
0x16c5   : > { %6760 = vrot.lane.b32.xlu0 %v6428_v36, %s18656_s0  ;;  %6652 = vrot.lane.b32.xlu1 %v17621_v33, %s18657_s23 }
0x16c9   : > { %6762 = vrot.lane.b32.xlu1 %v17621_v33, %s18658_s3 }
0x172f   : > { %v6432_v37 = vpop.permute.xlu1 %6431  ;;  %v6543_v41 = vpop.permute.xlu0 %6542 }
0x1730   : > { %v6437_v40 = vsel %vm1128_vm4, %v6432_v37, 0  ;;  %v6548_v44 = vsel %vm1128_vm4, %v6543_v41, 0 }
0x1731   : > { %15624 = vmatpush3.bf16.xpose.msra.mxu0 %v6437_v40 }
0x1732   : > { %15635 = vmatprep.subr.bf16.mxu0 %v16651_v0 }
0x1733   : > { %v6541_v42 = vpop.permute.xlu1 %6540  ;;  %v6651_v46 = vpop.permute.xlu0 %6650 }
0x1737   : > { %v6653_v45 = vpop.permute.xlu1 %6652  ;;  %v6761_v52 = vpop.permute.xlu0 %6760 }
0x1738   : > { %15626 = vmatmul.mubr.msk.bf16.vlgmr.msra.gmra.mrb[108].mxu0 %vm1128_vm4, %v6428_v36  ;;  %v6658_v2 = vsel %vm1128_vm4, %v6653_v45, 0 }
0x1739   : > { %15636 = vmatpush3.bf16.xpose.msra.mxu0 %v6548_v44  ;;  %15637 = vmatprep.mubr.msk.bf16.mxu0 %vm16652_vm1, %v16651_v0 }
0x173a   : > { %15647 = vmatprep.subr.bf16.mxu0 %v16651_v0 }
0x173b   : > { %v6763_v18 = vpop.permute.xlu1 %6762 }
0x173c   : > { %v6768_v48 = vsel %vm1128_vm4, %v6763_v18, 0 }
0x1740   : > { %15638 = vmatmul.mubr.msk.bf16.vlgmr.msra.gmra.mrb[112].mxu0 %vm1128_vm4, %v6541_v42 }
0x1741   : > { %15648 = vmatpush3.bf16.xpose.msra.mxu0 %v6658_v2  ;;  %15649 = vmatprep.mubr.msk.bf16.mxu0 %vm16652_vm1, %v16651_v0 }
0x1742   : > { %15659 = vmatprep.subr.bf16.mxu0 %v16651_v0 }
0x1748   : > { %15650 = vmatmul.mubr.msk.bf16.vlgmr.msra.gmra.mrb[116].mxu0 %vm1128_vm4, %v6651_v46 }
0x1749   : > { %15660 = vmatpush3.bf16.xpose.msra.mxu0 %v6768_v48  ;;  %15661 = vmatprep.mubr.msk.bf16.mxu0 %vm16652_vm1, %v16651_v0 }
0x174a   : > { %15671 = vmatprep.subr.bf16.mxu0 %v16651_v0 }
0x1750   : > { %15662 = vmatmul.mubr.msk.bf16.vlgmr.msra.gmra.mrb[120].mxu0 %vm1128_vm4, %v6761_v52 }
0x1751   : > { %15675 = vmatprep.mubr.msk.bf16.mxu0 %vm16652_vm1, %v16651_v0 }
0x180b   : > { %v6473_v28 = vpop.f32.mrb[108].mxu0 }
0x180c   : > { %v15627_v53 = vpop.f32.mrb[109].mxu0  ;;  %v6479_v54 = vsel %vm1128_vm4, %v6473_v28, -inf }
0x180d   : > { %6480 = vmax.xlane.f32.xlu1 %v6479_v54  ;;  %v6476_v50 = vpop.f32.mrb[110].mxu0 }
0x180e   : > { %v15628_v55 = vpop.f32.mrb[111].mxu0 }
0x1813   : > { %v6584_v56 = vpop.f32.mrb[112].mxu0 }
0x1814   : > { %v15639_v39 = vpop.f32.mrb[113].mxu0  ;;  %v6590_v5 = vsel %vm1128_vm4, %v6584_v56, -inf }
0x1815   : > { %6591 = vmax.xlane.f32.xlu0 %v6590_v5  ;;  %v6587_v29 = vpop.f32.mrb[114].mxu0 }
0x1816   : > { %v15640_v59 = vpop.f32.mrb[115].mxu0 }
0x181b   : > { %v6694_v30 = vpop.f32.mrb[116].mxu0 }
0x181c   : > { %v15651_v60 = vpop.f32.mrb[117].mxu0  ;;  %v6700_v27 = vsel %vm1128_vm4, %v6694_v30, -inf }
0x181d   : > { %6701 = vmax.xlane.f32.xlu0 %v6700_v27  ;;  %v6697_v43 = vpop.f32.mrb[118].mxu0 }
0x181e   : > { %v15652_v6 = vpop.f32.mrb[119].mxu0 }
0x1823   : > { %v6804_v7 = vpop.f32.mrb[120].mxu0 }
0x1824   : > { %v15663_v8 = vpop.f32.mrb[121].mxu0  ;;  %v6810_v10 = vsel %vm1128_vm4, %v6804_v7, -inf }
0x1825   : > { %6811 = vmax.xlane.f32.xlu1 %v6810_v10  ;;  %v6807_v47 = vpop.f32.mrb[122].mxu0 }
0x1826   : > { %v15664_v11 = vpop.f32.mrb[123].mxu0 }
0x189a   : > { %v6481_v14 = vpop.xlane.xlu1 %6480 }
0x189b   : > { %v6482_v49 = vsub.f32 %v6473_v28, %v6481_v14  ;;  %v16219_v14 = vld [vmem:[%s18660_s7] sm:$0xff]  }
0x189c   : > { %15672 = vmatpush3.bf16.msra.mxu0 %v16219_v14 }
0x189d   : > { %v6483_v15 = vmul.f32 1.442695, %v6482_v49  ;;  %15673 = vmatprep.subr.bf16.mxu0 %v16651_v0  ;;  %v16220_v49 = vld [vmem:[%s18660_s7 + $0x8] sm:$0xff]  }
0x189f   : > { %16535 = vpow2.f32 %v6483_v15 }
0x18a0   : > { %15674 = vmatpush3.bf16.msra.mxu0 %v16220_v49 }
0x18a1   : > { %15687 = vmatprep.subr.bf16.mxu0 %v16651_v0 }
0x18a2   : > { %v6592_v16 = vpop.xlane.xlu0 %6591 }
0x18a3   : > { %v6593_v57 = vsub.f32 %v6584_v56, %v6592_v16 }
0x18a5   : > { %v6594_v17 = vmul.f32 1.442695, %v6593_v57 }
0x18a7   : > { %16537 = vpow2.f32 %v6594_v17 }
0x18a9   : > { %v16536_v13 = vpop.eup %16535 }
0x18aa   : > { %v6702_v9 = vpop.xlane.xlu0 %6701  ;;  %v6485_v61 = vsel %vm1128_vm4, %v16536_v13, 0.0 }
0x18ab   : > { %v6703_v38 = vsub.f32 %v6694_v30, %v6702_v9  ;;  %6486 = vadd.xlane.f32.xlu0 %v6485_v61 }
0x18ad   : > { %v6704_v31 = vmul.f32 1.442695, %v6703_v38 }
0x18af   : > { %16539 = vpow2.f32 %v6704_v31 }
0x18b1   : > { %v16538_v21 = vpop.eup %16537 }
0x18b2   : > { %v6596_v25 = vsel %vm1128_vm4, %v16538_v21, 0.0  ;;  %v6812_v62 = vpop.xlane.xlu1 %6811 }
0x18b3   : > { %6597 = vadd.xlane.f32.xlu1 %v6596_v25  ;;  %v6813_v58 = vsub.f32 %v6804_v7, %v6812_v62 }
0x18b5   : > { %v6814_v32 = vmul.f32 1.442695, %v6813_v58  ;;  %v16221_v58 = vld [vmem:[%s18663_s5] sm:$0xff]  }
0x18b7   : > { %16541 = vpow2.f32 %v6814_v32 }
0x18b9   : > { %v16540_v51 = vpop.eup %16539 }
0x18ba   : > { %v6706_v22 = vsel %vm1128_vm4, %v16540_v51, 0.0 }
0x18bb   : > { %6707 = vadd.xlane.f32.xlu0 %v6706_v22 }
0x18c1   : > { %v16542_v35 = vpop.eup %16541 }
0x18c2   : > { %v6816_v36 = vsel %vm1128_vm4, %v16542_v35, 0.0 }
0x18c4   : > { %6602 = vrot.lane.b32.xlu1 %v17621_v33, %s18659_s11 }
0x18d1   : > { %6491 = vrot.lane.b32.xlu0 %v17621_v33, %s18651_s18 }
0x18d5   : > { %6822 = vrot.lane.b32.xlu0 %v17621_v33, %s18652_s15 }
0x18e8   : > { %6817 = vadd.xlane.f32.xlu1 %v6816_v36  ;;  %v13892_v36 = vld [vmem:[%s18665_s8] ss:$0 sm:$0xff] }
0x18f9   : > { %6712 = vrot.lane.b32.xlu1 %v17621_v33, %s18653_s22 }
0x1938   : > { %v6487_v37 = vpop.xlane.xlu0 %6486 }
0x1939   : > { %16543 = vrcp.f32 %v6487_v37 }
0x1940   : > { %v6598_v40 = vpop.xlane.xlu1 %6597 }
0x1941   : > { %16545 = vrcp.f32 %v6598_v40 }
0x1943   : > { %v16544_v41 = vpop.eup %16543 }
0x1944   : > { %v6489_v44 = vmul.f32 %v16544_v41, %v16536_v13  ;;  %v6603_v18 = vpop.permute.xlu1 %6602 }
0x1945   : > { %v6608_v52 = vsel %vm1192_vm5, %v6603_v18, 0 }
0x1946   : > { %v6490_v46 = vpack.c.bf16 %v6489_v44, %v6489_v44 }
0x1948   : > { %v6708_v42 = vpop.xlane.xlu0 %6707 }
0x1949   : > { %16547 = vrcp.f32 %v6708_v42 }
0x194b   : > { %v16546_v48 = vpop.eup %16545 }
0x194c   : > { %v6492_v45 = vpop.permute.xlu0 %6491  ;;  %v6600_v33 = vmul.f32 %v16546_v48, %v16538_v21 }
0x194d   : > { %v6497_v2 = vsel %vm1192_vm5, %v6492_v45, 0 }
0x194e   : > { %15630 = vmatpush3.bf16.msra.mxu1 %v6497_v2  ;;  %v6601_v28 = vpack.c.bf16 %v6600_v33, %v6600_v33  ;;  %v13902_v33 = vld [vmem:[%s18666_s9] ss:$0 sm:$0xff] }
0x194f   : > { %15641 = vmatprep.subr.bf16.mxu1 %v16651_v0 }
0x1950   : > { %v6823_v39 = vpop.permute.xlu0 %6822 }
0x1951   : > { %15632 = vmatmul.mubr.msk.bf16.vlgmr.msra.gmra.mrb[108].mxu1 %vm1128_vm4, %v6490_v46  ;;  %v6828_v29 = vsel %vm1192_vm5, %v6823_v39, 0  ;;  %v16223_v39 = vld [vmem:[%s18667_s12] sm:$0xff]  }
0x1952   : > { %15642 = vmatpush3.bf16.msra.mxu1 %v6608_v52  ;;  %15643 = vmatprep.mubr.msk.bf16.mxu1 %vm16652_vm1, %v16651_v0 }
0x1953   : > { %15653 = vmatprep.subr.bf16.mxu1 %v16651_v0  ;;  %v16548_v53 = vpop.eup %16547 }
0x1954   : > { %v6710_v50 = vmul.f32 %v16548_v53, %v16540_v51 }
0x1956   : > { %v6711_v5 = vpack.c.bf16 %v6710_v50, %v6710_v50 }
0x1959   : > { %15644 = vmatmul.mubr.msk.bf16.vlgmr.msra.gmra.mrb[112].mxu1 %vm1128_vm4, %v6601_v28 }
0x195a   : > { %15655 = vmatprep.mubr.msk.bf16.mxu1 %vm16652_vm1, %v16651_v0 }
0x1975   : > { %v6818_v54 = vpop.xlane.xlu1 %6817 }
0x1976   : > { %16549 = vrcp.f32 %v6818_v54 }
0x1979   : > { %v6713_v55 = vpop.permute.xlu1 %6712 }
0x197a   : > { %v6718_v56 = vsel %vm1192_vm5, %v6713_v55, 0 }
0x197b   : > { %15654 = vmatpush3.bf16.msra.mxu1 %v6718_v56 }
0x197c   : > { %15665 = vmatprep.subr.bf16.mxu1 %v16651_v0 }
0x197e   : > { %15656 = vmatmul.mubr.msk.bf16.vlgmr.msra.gmra.mrb[116].mxu1 %vm1128_vm4, %v6711_v5  ;;  %v16224_v5 = vld [vmem:[%s18667_s12 + $0x8] sm:$0xff]  }
0x197f   : > { %15666 = vmatpush3.bf16.msra.mxu1 %v6828_v29  ;;  %15667 = vmatprep.mubr.msk.bf16.mxu1 %vm16652_vm1, %v16651_v0 }
0x1980   : > { %v16550_v59 = vpop.eup %16549  ;;  %15679 = vmatprep.subr.bf16.mxu1 %v16651_v0 }
0x1981   : > { %v6820_v30 = vmul.f32 %v16550_v59, %v16542_v35  ;;  %v16222_v35 = vld [vmem:[%s18663_s5 + $0x8] sm:$0xff]  }
0x1983   : > { %v6821_v60 = vpack.c.bf16 %v6820_v30, %v6820_v30 }
0x1986   : > { %15668 = vmatmul.mubr.msk.bf16.vlgmr.msra.gmra.mrb[120].mxu1 %vm1128_vm4, %v6821_v60 }
0x1987   : > { %15683 = vmatprep.mubr.msk.bf16.mxu1 %vm16652_vm1, %v16651_v0  ;;  %15680 = vmatpush3.bf16.msra.mxu1 %v16223_v39 }
0x1988   : > { %15681 = vmatprep.subr.bf16.mxu1 %v16651_v0 }
0x198b   : > { %15682 = vmatpush3.bf16.msra.mxu1 %v16224_v5 }
0x198c   : > { %15695 = vmatprep.subr.bf16.mxu1 %v16651_v0 }
0x1a24   : > { %v6533_v27 = vpop.f32.mrb[108].mxu1 }
0x1a25   : > { %v15633_v43 = vpop.f32.mrb[109].mxu1 }
0x1a26   : > { %v6536_v6 = vpop.f32.mrb[110].mxu1 }
0x1a27   : > { %v15634_v7 = vpop.f32.mrb[111].mxu1  ;;  %v13897_v6 = vld [vmem:[%s16831_s21] ss:$0 sm:$0xff] }
0x1a2c   : > { %v6644_v8 = vpop.f32.mrb[112].mxu1 }
0x1a2d   : > { %6871 = vrot.lane.b32.xlu1 %v6644_v8, %s18661_s16  ;;  %v15645_v10 = vpop.f32.mrb[113].mxu1 }
0x1a2e   : > { %v6647_v47 = vpop.f32.mrb[114].mxu1 }
0x1a2f   : > { %v15646_v11 = vpop.f32.mrb[115].mxu1 }
0x1a30   : > { %v13898_v11 = vld [vmem:[%s18670_s17] ss:$0 sm:$0xff] }
0x1a51   : > { %v6754_v15 = vpop.f32.mrb[116].mxu1 }
0x1a52   : > { %6875 = vrot.lane.b32.xlu0 %v6754_v15, %s18662_s10  ;;  %v15657_v16 = vpop.f32.mrb[117].mxu1 }
0x1a53   : > { %v6757_v57 = vpop.f32.mrb[118].mxu1 }
0x1a54   : > { %v15658_v17 = vpop.f32.mrb[119].mxu1 }
0x1a59   : > { %v6864_v13 = vpop.f32.mrb[120].mxu1 }
0x1a5a   : > { %6879 = vrot.lane.b32.xlu1 %v6864_v13, %s18664_s6  ;;  %v15669_v9 = vpop.f32.mrb[121].mxu1 }
0x1a5b   : > { %v6867_v61 = vpop.f32.mrb[122].mxu1 }
0x1a5c   : > { %v15670_v38 = vpop.f32.mrb[123].mxu1 }
0x1a9f   : > { %v6872_v31 = vpop.permute.xlu1 %6871 }
0x1aa0   : > { %v6882_v25 = vsel %vm1128_vm4, %v6533_v27, %v6872_v31  ;;  %v13896_v27 = vld [vmem:[%s16826_s25] ss:$0 sm:$0xff] }
0x1ac4   : > { %v6876_v21 = vpop.permute.xlu0 %6875 }
0x1ac5   : > { %v6883_v51 = vsel %vm1580_vm6, %v6882_v25, %v6876_v21 }
0x1acc   : > { %v6880_v22 = vpop.permute.xlu1 %6879 }
0x1acd   : > { %v6884_v62 = vsel %vm1582_vm7, %v6883_v51, %v6880_v22 }
0x1ace   : > { %v6885_v32 = vpack.c.bf16 %v6884_v62, %v6884_v62 }
0x1ad0   : > { %15676 = vmatmul.mubr.msk.bf16.vlgmr.msra.gmra.mrb[124].mxu0 %vm1078_vm3, %v6885_v32 }
0x1ad1   : > { %15688 = vmatpush3.bf16.msra.mxu0 %v16221_v58  ;;  %15691 = vmatprep.mubr.msk.bf16.mxu0 %vm16652_vm1, %v16651_v0 }
0x1ad2   : > { %15689 = vmatprep.subr.bf16.mxu0 %v16651_v0 }
0x1ad5   : > { %15690 = vmatpush3.bf16.msra.mxu0 %v16222_v35 }
0x1ad6   : > { %15701 = vmatprep.subr.bf16.mxu0 %v16651_v0 }
0x1ad8   : > { %15692 = vmatmul.mubr.msk.bf16.vlgmr.msra.gmra.mrb[128].mxu0 %vm1078_vm3, %v17614_v26 }
0x1ad9   : > { %15703 = vmatprep.mubr.msk.bf16.mxu0 %vm16652_vm1, %v16651_v0 }
0x1ba3   : > { %v6941_v37 = vpop.f32.mrb[124].mxu0 }
0x1ba4   : > { %v6942_v40 = vadd.f32 %v13892_v36, %v6941_v37  ;;  %v15677_v41 = vpop.f32.mrb[125].mxu0 }
0x1ba5   : > { %v6944_v42 = vpop.f32.mrb[126].mxu0 }
0x1ba6   : > { %v15678_v44 = vpop.f32.mrb[127].mxu0  ;;  %v6947_v45 = vadd.f32 %v6942_v40, %v17610_v23 }
0x1ba8   : > { %v6950_v2 = vsel %vm1078_vm3, %v6947_v45, 0.0 }
0x1ba9   : > { %6951 = vadd.xlane.f32.xlu0 %v6950_v2 }
0x1bab   : > { %v7107_v18 = vpop.f32.mrb[128].mxu0 }
0x1bac   : > { %v15693_v46 = vpop.f32.mrb[129].mxu0  ;;  %v7108_v28 = vadd.f32 %v13902_v33, %v7107_v18 }
0x1bad   : > { %v7110_v48 = vpop.f32.mrb[130].mxu0 }
0x1bae   : > { %v15694_v52 = vpop.f32.mrb[131].mxu0  ;;  %v17715_v53 = vpack.c.bf16 %v7108_v28, %v7108_v28 }
0x1bb0   : > { %v7119_v47 = vsel %vm1128_vm4, %v17715_v53, 0 }
0x1bbf   : > { %7225 = vrot.lane.b32.xlu0 %v17715_v53, %s18668_s13 }
0x1bc3   : > { %7335 = vrot.lane.b32.xlu0 %v17715_v53, %s18669_s14 }
0x1bc7   : > { %7445 = vrot.lane.b32.xlu0 %v17715_v53, %s18656_s0 }
0x1c36   : > { %v6952_v23 = vpop.xlane.xlu0 %6951 }
0x1c37   : > { %v6953_v54 = vmul.f32 0.03125, %v6952_v23 }
0x1c39   : > { %v6954_v50 = vsub.f32 %v6947_v45, %v6953_v54 }
0x1c3a   : > { %v7226_v13 = vpop.permute.xlu0 %7225 }
0x1c3b   : > { %v6955_v55 = vmul.f32 %v6954_v50, %v6954_v50  ;;  %v7231_v61 = vsel %vm1128_vm4, %v7226_v13, 0 }
0x1c3d   : > { %v6956_v56 = vsel %vm1078_vm3, %v6955_v55, 0.0 }
0x1c3e   : > { %6957 = vadd.xlane.f32.xlu1 %v6956_v56  ;;  %v7336_v38 = vpop.permute.xlu0 %7335 }
0x1c3f   : > { %v7341_v21 = vsel %vm1128_vm4, %v7336_v38, 0 }
0x1c42   : > { %v7446_v25 = vpop.permute.xlu0 %7445 }
0x1c43   : > { %v7451_v22 = vsel %vm1128_vm4, %v7446_v25, 0 }
0x1ccb   : > { %v6958_v29 = vpop.xlane.xlu1 %6957 }
0x1ccc   : > { %v6959_v59 = vmul.f32 0.03125, %v6958_v29 }
0x1cce   : > { %v6960_v30 = vadd.f32 1e-05, %v6959_v59 }
0x1cd0   : > { %16551 = vrsqrt.f32 %v6960_v30 }
0x1cda   : > { %v16552_v60 = vpop.eup %16551 }
0x1cdb   : > { %v6962_v43 = vmul.f32 %v16552_v60, %v6954_v50 }
0x1cdd   : > { %v6969_v7 = vmul.f32 %v13896_v27, %v6962_v43 }
0x1cdf   : > { %v17730_v8 = vadd.f32 %v13897_v6, %v6969_v7 }
0x1ce1   : > { %v6992_v10 = vpack.c.bf16 %v17730_v8, %v17730_v8 }
0x1ce3   : > { %15684 = vmatmul.mubr.msk.bf16.vlgmr.msra.gmra.mrb[124].mxu1 %vm1078_vm3, %v6992_v10 }
0x1ce4   : > { %15696 = vmatpush3.bf16.xpose.msra.mxu1 %v7119_v47  ;;  %15697 = vmatprep.mubr.msk.bf16.mxu1 %vm16652_vm1, %v16651_v0 }
0x1ce5   : > { %15707 = vmatprep.subr.bf16.mxu1 %v16651_v0 }
0x1db6   : > { %v7048_v14 = vpop.f32.mrb[124].mxu1 }
0x1db7   : > { %v7049_v49 = vadd.f32 %v13898_v11, %v7048_v14  ;;  %v15685_v15 = vpop.f32.mrb[125].mxu1 }
0x1db8   : > { %v7051_v16 = vpop.f32.mrb[126].mxu1 }
0x1db9   : > { %v7054_v57 = vmul.f32 0.35355338, %v7049_v49  ;;  %v15686_v17 = vpop.f32.mrb[127].mxu1 }
0x1dbb   : > { %v7113_v9 = vpack.c.bf16 %v7054_v57, %v7054_v57 }
0x1dbd   : > { %7223 = vrot.lane.b32.xlu1 %v7113_v9, %s18668_s13  ;;  %15698 = vmatmul.mubr.msk.bf16.vlgmr.msra.gmra.mrb[128].mxu1 %vm1128_vm4, %v7113_v9 }
0x1dbe   : > { %15708 = vmatpush3.bf16.xpose.msra.mxu1 %v7231_v61  ;;  %15709 = vmatprep.mubr.msk.bf16.mxu1 %vm16652_vm1, %v16651_v0 }
0x1dbf   : > { %15719 = vmatprep.subr.bf16.mxu1 %v16651_v0 }
0x1dc1   : > { %7333 = vrot.lane.b32.xlu1 %v7113_v9, %s18669_s14 }
0x1dc5   : > { %7443 = vrot.lane.b32.xlu1 %v7113_v9, %s18656_s0 }
0x1e2f   : > { %v7224_v31 = vpop.permute.xlu1 %7223 }
0x1e30   : > { %15710 = vmatmul.mubr.msk.bf16.vlgmr.msra.gmra.mrb[132].mxu1 %vm1128_vm4, %v7224_v31 }
0x1e31   : > { %15720 = vmatpush3.bf16.xpose.msra.mxu1 %v7341_v21  ;;  %15721 = vmatprep.mubr.msk.bf16.mxu1 %vm16652_vm1, %v16651_v0 }
0x1e32   : > { %15731 = vmatprep.subr.bf16.mxu1 %v16651_v0 }
0x1e33   : > { %v7334_v51 = vpop.permute.xlu1 %7333 }
0x1e37   : > { %v7444_v62 = vpop.permute.xlu1 %7443 }
0x1e38   : > { %15722 = vmatmul.mubr.msk.bf16.vlgmr.msra.gmra.mrb[136].mxu1 %vm1128_vm4, %v7334_v51 }
0x1e39   : > { %15732 = vmatpush3.bf16.xpose.msra.mxu1 %v7451_v22  ;;  %15733 = vmatprep.mubr.msk.bf16.mxu1 %vm16652_vm1, %v16651_v0 }
0x1e3a   : > { %15743 = vmatprep.subr.bf16.mxu1 %v16651_v0 }
0x1e40   : > { %15734 = vmatmul.mubr.msk.bf16.vlgmr.msra.gmra.mrb[140].mxu1 %vm1128_vm4, %v7444_v62 }
0x1e41   : > { %15747 = vmatprep.mubr.msk.bf16.mxu1 %vm16652_vm1, %v16651_v0 }
0x1e90   : > { %v7155_v58 = vpop.f32.mrb[128].mxu1 }
0x1e91   : > { %v15699_v32 = vpop.f32.mrb[129].mxu1  ;;  %v7161_v35 = vsel %vm1128_vm4, %v7155_v58, -inf }
0x1e92   : > { %7162 = vmax.xlane.f32.xlu0 %v7161_v35  ;;  %v7158_v36 = vpop.f32.mrb[130].mxu1 }
0x1e93   : > { %v15700_v37 = vpop.f32.mrb[131].mxu1 }
0x1f03   : > { %v7267_v40 = vpop.f32.mrb[132].mxu1 }
0x1f04   : > { %v15711_v41 = vpop.f32.mrb[133].mxu1  ;;  %v7273_v42 = vsel %vm1128_vm4, %v7267_v40, -inf }
0x1f05   : > { %7274 = vmax.xlane.f32.xlu1 %v7273_v42  ;;  %v7270_v44 = vpop.f32.mrb[134].mxu1 }
0x1f06   : > { %v15712_v45 = vpop.f32.mrb[135].mxu1 }
0x1f0b   : > { %v7377_v2 = vpop.f32.mrb[136].mxu1 }
0x1f0c   : > { %v15723_v18 = vpop.f32.mrb[137].mxu1  ;;  %v7383_v46 = vsel %vm1128_vm4, %v7377_v2, -inf }
0x1f0d   : > { %7384 = vmax.xlane.f32.xlu0 %v7383_v46  ;;  %v7380_v48 = vpop.f32.mrb[138].mxu1 }
0x1f0e   : > { %v15724_v52 = vpop.f32.mrb[139].mxu1 }
0x1f13   : > { %v7487_v33 = vpop.f32.mrb[140].mxu1 }
0x1f14   : > { %v15735_v28 = vpop.f32.mrb[141].mxu1  ;;  %v7493_v23 = vsel %vm1128_vm4, %v7487_v33, -inf }
0x1f15   : > { %7494 = vmax.xlane.f32.xlu0 %v7493_v23  ;;  %v7490_v54 = vpop.f32.mrb[142].mxu1  ;;  %v16225_v28 = vld [vmem:[%s18673_s24] sm:$0xff]  }
0x1f16   : > { %v15736_v50 = vpop.f32.mrb[143].mxu1  ;;  %15744 = vmatpush3.bf16.msra.mxu1 %v16225_v28 }
0x1f17   : > { %15745 = vmatprep.subr.bf16.mxu1 %v16651_v0 }
0x1f1f   : > { %v7163_v55 = vpop.xlane.xlu0 %7162 }
0x1f20   : > { %v7164_v56 = vsub.f32 %v7155_v58, %v7163_v55 }
0x1f22   : > { %v7165_v39 = vmul.f32 1.442695, %v7164_v56  ;;  %v16226_v56 = vld [vmem:[%s18673_s24 + $0x8] sm:$0xff]  }
0x1f23   : > { %15746 = vmatpush3.bf16.msra.mxu1 %v16226_v56 }
0x1f24   : > { %16553 = vpow2.f32 %v7165_v39 }
0x1f2e   : > { %v16554_v5 = vpop.eup %16553 }
0x1f2f   : > { %v7167_v29 = vsel %vm1128_vm4, %v16554_v5, 0.0 }
0x1f30   : > { %7168 = vadd.xlane.f32.xlu1 %v7167_v29 }
0x1f41   : > { %7174 = vrot.lane.b32.xlu1 %v17715_v53, %s18671_s19 }
0x1f92   : > { %v7275_v59 = vpop.xlane.xlu1 %7274 }
0x1f93   : > { %v7276_v30 = vsub.f32 %v7267_v40, %v7275_v59 }
0x1f95   : > { %v7277_v60 = vmul.f32 1.442695, %v7276_v30 }
0x1f97   : > { %16555 = vpow2.f32 %v7277_v60 }
0x1f9a   : > { %v7385_v27 = vpop.xlane.xlu0 %7384 }
0x1f9b   : > { %v7386_v43 = vsub.f32 %v7377_v2, %v7385_v27 }
0x1f9d   : > { %v7387_v6 = vmul.f32 1.442695, %v7386_v43 }
0x1f9f   : > { %16557 = vpow2.f32 %v7387_v6 }
0x1fa1   : > { %v16556_v7 = vpop.eup %16555 }
0x1fa2   : > { %v7495_v10 = vpop.xlane.xlu0 %7494  ;;  %v7279_v47 = vsel %vm1128_vm4, %v16556_v7, 0.0 }
0x1fa3   : > { %v7496_v11 = vsub.f32 %v7487_v33, %v7495_v10  ;;  %7280 = vadd.xlane.f32.xlu0 %v7279_v47 }
0x1fa5   : > { %v7497_v14 = vmul.f32 1.442695, %v7496_v11 }
0x1fa7   : > { %16559 = vpow2.f32 %v7497_v14 }
0x1fa9   : > { %v16558_v49 = vpop.eup %16557 }
0x1faa   : > { %v7389_v15 = vsel %vm1128_vm4, %v16558_v49, 0.0 }
0x1fab   : > { %7390 = vadd.xlane.f32.xlu1 %v7389_v15  ;;  %v13914_v15 = vld [vmem:[%s18674_s29] ss:$0 sm:$0xff] }
0x1fb1   : > { %v16560_v16 = vpop.eup %16559 }
0x1fb2   : > { %v7499_v57 = vsel %vm1128_vm4, %v16560_v16, 0.0 }
0x1fb3   : > { %7500 = vadd.xlane.f32.xlu0 %v7499_v57 }
0x1fbc   : > { %7395 = vrot.lane.b32.xlu1 %v17715_v53, %s18657_s23 }
0x1fbd   : > { %v7169_v17 = vpop.xlane.xlu1 %7168 }
0x1fbe   : > { %16561 = vrcp.f32 %v7169_v17 }
0x1fc0   : > { %7505 = vrot.lane.b32.xlu1 %v17715_v53, %s18658_s3 }
0x1fc1   : > { %v7175_v13 = vpop.permute.xlu1 %7174 }
0x1fc2   : > { %v7180_v9 = vsel %vm1192_vm5, %v7175_v13, 0 }
0x1fc3   : > { %15702 = vmatpush3.bf16.msra.mxu0 %v7180_v9 }
0x1fc4   : > { %15713 = vmatprep.subr.bf16.mxu0 %v16651_v0 }
0x1fc8   : > { %v16562_v61 = vpop.eup %16561 }
0x1fc9   : > { %v7171_v38 = vmul.f32 %v16562_v61, %v16554_v5  ;;  %7285 = vrot.lane.b32.xlu0 %v17715_v53, %s18672_s20 }
0x1fcb   : > { %v7172_v31 = vpack.c.bf16 %v7171_v38, %v7171_v38 }
0x1fcd   : > { %15704 = vmatmul.mubr.msk.bf16.vlgmr.msra.gmra.mrb[132].mxu0 %vm1128_vm4, %v7172_v31 }
0x1fce   : > { %15715 = vmatprep.mubr.msk.bf16.mxu0 %vm16652_vm1, %v16651_v0 }
0x2030   : > { %v7281_v21 = vpop.xlane.xlu0 %7280 }
0x2031   : > { %16563 = vrcp.f32 %v7281_v21 }
0x2038   : > { %v7391_v25 = vpop.xlane.xlu1 %7390 }
0x2039   : > { %16565 = vrcp.f32 %v7391_v25 }
0x203b   : > { %v16564_v51 = vpop.eup %16563 }
0x203c   : > { %v7283_v62 = vmul.f32 %v16564_v51, %v16556_v7  ;;  %v7396_v35 = vpop.permute.xlu1 %7395 }
0x203d   : > { %v7401_v37 = vsel %vm1192_vm5, %v7396_v35, 0 }
0x203e   : > { %v7284_v53 = vpack.c.bf16 %v7283_v62, %v7283_v62  ;;  %v7662_v62 = vld [vmem:[%s18675_s30] sm:$0xff] }
0x2040   : > { %v7501_v22 = vpop.xlane.xlu0 %7500  ;;  %v7506_v41 = vpop.permute.xlu1 %7505 }
0x2041   : > { %16567 = vrcp.f32 %v7501_v22  ;;  %v7511_v45 = vsel %vm1192_vm5, %v7506_v41, 0  ;;  %v7686_v41 = vld [vmem:[%s18675_s30 + $0xc0] sm:$0xff] }
0x2043   : > { %v16566_v36 = vpop.eup %16565 }
0x2044   : > { %v7286_v58 = vpop.permute.xlu0 %7285  ;;  %v7393_v40 = vmul.f32 %v16566_v36, %v16558_v49 }
0x2045   : > { %v7291_v32 = vsel %vm1192_vm5, %v7286_v58, 0  ;;  %v7670_v58 = vld [vmem:[%s18675_s30 + $0x40] sm:$0xff] }
0x2046   : > { %15714 = vmatpush3.bf16.msra.mxu0 %v7291_v32  ;;  %v7394_v42 = vpack.c.bf16 %v7393_v40, %v7393_v40  ;;  %v7663_v32 = vld [vmem:[%s18675_s30 + $0x8] sm:$0xff]  ;;  %v13923_v35 = vcombine.high %v7662_v62, %v7670_v58  ;;  %v7678_v40 = vld [vmem:[%s18675_s30 + $0x80] sm:$0xff] }
0x2047   : > { %15725 = vmatprep.subr.bf16.mxu0 %v16651_v0 }
0x2049   : > { %15716 = vmatmul.mubr.msk.bf16.vlgmr.msra.gmra.mrb[136].mxu0 %vm1128_vm4, %v7284_v53  ;;  %v7671_v53 = vld [vmem:[%s18675_s30 + $0x48] sm:$0xff] }
0x204a   : > { %15726 = vmatpush3.bf16.msra.mxu0 %v7401_v37  ;;  %15727 = vmatprep.mubr.msk.bf16.mxu0 %vm16652_vm1, %v16651_v0  ;;  %v13924_v36 = vcombine.low %v7663_v32, %v7671_v53  ;;  %v13925_v37 = vcombine.high %v7663_v32, %v7671_v53  ;;  %v7676_v53 = vld [vmem:[%s18675_s30 + $0x70] sm:$0xff] }
0x204b   : > { %15737 = vmatprep.subr.bf16.mxu0 %v16651_v0  ;;  %v16568_v44 = vpop.eup %16567 }
0x204c   : > { %v7503_v2 = vmul.f32 %v16568_v44, %v16560_v16  ;;  %8240 = vmatprep.subr.bf16.mxu1 %v13925_v37  ;;  %v13939_v44 = vcombine.high %v7678_v40, %v7686_v41 }
0x204e   : > { %v7504_v18 = vpack.c.bf16 %v7503_v2, %v7503_v2  ;;  %v13938_v2 = vcombine.low %v7678_v40, %v7686_v41 }
0x2051   : > { %15728 = vmatmul.mubr.msk.bf16.vlgmr.msra.gmra.mrb[140].mxu0 %vm1128_vm4, %v7394_v42  ;;  %v7679_v42 = vld [vmem:[%s18675_s30 + $0x88] sm:$0xff] }
0x2052   : > { %15738 = vmatpush3.bf16.msra.mxu0 %v7511_v45  ;;  %15739 = vmatprep.mubr.msk.bf16.mxu0 %vm16652_vm1, %v16651_v0  ;;  %v7687_v45 = vld [vmem:[%s18675_s30 + $0xc8] sm:$0xff] }
0x2053   : > { %8199 = vmatprep.subr.bf16.mxu0 %v13923_v35  ;;  %v7668_v35 = vld [vmem:[%s18675_s30 + $0x30] sm:$0xff] }
0x2054   : > { %v13935_v41 = vcombine.high %v7668_v35, %v7676_v53 }
0x2059   : > { %15740 = vmatmul.mubr.msk.bf16.vlgmr.msra.gmra.mrb[144].mxu0 %vm1128_vm4, %v7504_v18  ;;  %v13940_v18 = vcombine.low %v7679_v42, %v7687_v45 }
0x205a   : > { %8231 = vmatprep.mubr.bf16.mxu0 %v16667_v34 }
0x20a0   : > { %v7216_v46 = vpop.f32.mrb[132].mxu0 }
0x20a1   : > { %v15705_v48 = vpop.f32.mrb[133].mxu0 }
0x20a2   : > { %v7219_v52 = vpop.f32.mrb[134].mxu0  ;;  %v7664_v48 = vld [vmem:[%s18675_s30 + $0x10] sm:$0xff] }
0x20a3   : > { %v15706_v33 = vpop.f32.mrb[135].mxu0  ;;  %v7672_v52 = vld [vmem:[%s18675_s30 + $0x50] sm:$0xff] }
0x20a4   : > { %v7665_v33 = vld [vmem:[%s18675_s30 + $0x18] sm:$0xff]  ;;  %v13926_v28 = vcombine.low %v7664_v48, %v7672_v52 }
0x211c   : > { %v7327_v23 = vpop.f32.mrb[136].mxu0 }
0x211d   : > { %7554 = vrot.lane.b32.xlu0 %v7327_v23, %s18661_s16  ;;  %v15717_v54 = vpop.f32.mrb[137].mxu0  ;;  %v13927_v23 = vcombine.high %v7664_v48, %v7672_v52 }
0x211e   : > { %v7330_v50 = vpop.f32.mrb[138].mxu0  ;;  %v7673_v54 = vld [vmem:[%s18675_s30 + $0x58] sm:$0xff] }
0x211f   : > { %v15718_v55 = vpop.f32.mrb[139].mxu0  ;;  %v13928_v50 = vcombine.low %v7665_v33, %v7673_v54 }
0x2120   : > { %v13929_v55 = vcombine.high %v7665_v33, %v7673_v54  ;;  %v16227_v54 = vld [vmem:[%s18676_s28 + $0x40] sm:$0xff]   ;;  %s18678_s28 = sld [smem:[#allocation29_spill]] }
0x2124   : > { %v7437_v39 = vpop.f32.mrb[140].mxu0 }
0x2125   : > { %7558 = vrot.lane.b32.xlu1 %v7437_v39, %s18662_s10  ;;  %v15729_v5 = vpop.f32.mrb[141].mxu0 }
0x2126   : > { %v7440_v29 = vpop.f32.mrb[142].mxu0  ;;  %s18679_s1 = smov %s18678_s28 }
0x2127   : > { %v15730_v59 = vpop.f32.mrb[143].mxu0 }
0x2128   : > { %v13920_v59 = vld [vmem:[%s16826_s25 + $0x1] ss:$0 sm:$0xff] }
0x212c   : > { %v7547_v30 = vpop.f32.mrb[144].mxu0 }
0x212d   : > { %7562 = vrot.lane.b32.xlu0 %v7547_v30, %s18664_s6  ;;  %v15741_v60 = vpop.f32.mrb[145].mxu0 }
0x212e   : > { %v7550_v27 = vpop.f32.mrb[146].mxu0  ;;  %v13921_v60 = vld [vmem:[%s16831_s21 + $0x1] ss:$0 sm:$0xff] }
0x212f   : > { %v15742_v43 = vpop.f32.mrb[147].mxu0 }
0x2130   : > { %v7680_v43 = vld [vmem:[%s18675_s30 + $0x90] sm:$0xff] }
0x218f   : > { %v7555_v6 = vpop.permute.xlu0 %7554 }
0x2190   : > { %v7565_v10 = vsel %vm1128_vm4, %v7216_v46, %v7555_v6  ;;  %v13941_v46 = vcombine.high %v7679_v42, %v7687_v45  ;;  %v7688_v6 = vld [vmem:[%s18675_s30 + $0xd0] sm:$0xff] }
0x2191   : > { %v7692_v45 = vld [vmem:[%s18675_s30 + $0xf0] sm:$0xff] }
0x2197   : > { %v7559_v7 = vpop.permute.xlu1 %7558 }
0x2198   : > { %v7566_v47 = vsel %vm1580_vm6, %v7565_v10, %v7559_v7  ;;  %v7681_v7 = vld [vmem:[%s18675_s30 + $0x98] sm:$0xff] }
0x2199   : > { %v7689_v10 = vld [vmem:[%s18675_s30 + $0xd8] sm:$0xff] }
0x219f   : > { %v7563_v11 = vpop.permute.xlu0 %7562 }
0x21a0   : > { %v7567_v14 = vsel %vm1582_vm7, %v7566_v47, %v7563_v11 }
0x21a1   : > { %v7568_v49 = vpack.c.bf16 %v7567_v14, %v7567_v14  ;;  %v13943_v14 = vcombine.high %v7680_v43, %v7688_v6 }
0x21a3   : > { %15748 = vmatmul.mubr.msk.bf16.vlgmr.msra.gmra.mrb[144].mxu1 %vm1078_vm3, %v7568_v49  ;;  %v13945_v49 = vcombine.high %v7681_v7, %v7689_v10 }
0x21a4   : > { %8272 = vmatprep.mubr.bf16.mxu1 %v16667_v34  ;;  %8241 = vmatpush1.bf16.msra.mxu1 %v13924_v36  ;;  %v7677_v36 = vld [vmem:[%s18675_s30 + $0x78] sm:$0xff] }
0x21a5   : > { %8242 = vmatprep.subr.bf16.mxu1 %v13941_v46  ;;  %v13934_v46 = vcombine.low %v7668_v35, %v7676_v53  ;;  %v17908_v35 = vld [vmem:[%s18678_s28] sm:$0xff] }
0x21a6   : > { %v7959_v53 = vrot.slane %v17908_v35, %v17057_v63 }
0x21a8   : > { %8243 = vmatpush1.bf16.msra.mxu1 %v13940_v18  ;;  %v7693_v18 = vld [vmem:[%s18675_s30 + $0xf8] sm:$0xff] }
0x21a9   : > { %8322 = vmatprep.subr.bf16.mxu1 %v13929_v55  ;;  %v16229_v55 = vld [vmem:[%s18677_s27] sm:$0xff]  }
0x2276   : > { %v7624_v16 = vpop.f32.mrb[144].mxu1 }
0x2277   : > { %v7625_v57 = vadd.f32 %v13914_v15, %v7624_v16  ;;  %v15749_v17 = vpop.f32.mrb[145].mxu1  ;;  %v7666_v15 = vld [vmem:[%s18675_s30 + $0x20] sm:$0xff] }
0x2278   : > { %v7627_v13 = vpop.f32.mrb[146].mxu1  ;;  %v7674_v16 = vld [vmem:[%s18675_s30 + $0x60] sm:$0xff]  ;;  %v7675_v17 = vld [vmem:[%s18675_s30 + $0x68] sm:$0xff] }
0x2279   : > { %v15750_v9 = vpop.f32.mrb[147].mxu1  ;;  %v7630_v61 = vadd.f32 %v7625_v57, %v17730_v8  ;;  %v13922_v8 = vcombine.low %v7662_v62, %v7670_v58  ;;  %v7667_v57 = vld [vmem:[%s18675_s30 + $0x28] sm:$0xff]  ;;  %v13942_v13 = vcombine.low %v7680_v43, %v7688_v6  ;;  %v16238_v43 = vld [vmem:[%s18677_s27 + $0x90] sm:$0xff]   ;;  %v16239_v6 = vld [vmem:[%s18677_s27 + $0x58] sm:$0xff]  }
0x227a   : > { %v13944_v9 = vcombine.low %v7681_v7, %v7689_v10  ;;  %v13932_v62 = vcombine.low %v7667_v57, %v7675_v17  ;;  %v16240_v7 = vld [vmem:[%s18677_s27 + $0xd8] sm:$0xff]  }
0x227b   : > { %v7635_v38 = vsel %vm1078_vm3, %v7630_v61, 0.0  ;;  %8200 = vmatpush1.bf16.msra.mxu0 %v13922_v8  ;;  %v7669_v8 = vld [vmem:[%s18675_s30 + $0x38] sm:$0xff] }
0x227c   : > { %7636 = vadd.xlane.f32.xlu1 %v7635_v38  ;;  %8201 = vmatprep.subr.bf16.mxu0 %v13939_v44  ;;  %v13933_v38 = vcombine.high %v7667_v57, %v7675_v17  ;;  %v13937_v42 = vcombine.high %v7669_v8, %v7677_v36  ;;  %v7684_v44 = vld [vmem:[%s18675_s30 + $0xb0] sm:$0xff]  ;;  %v13936_v48 = vcombine.low %v7669_v8, %v7677_v36  ;;  %v16241_v10 = vld [vmem:[%s18677_s27 + $0x18] sm:$0xff]   ;;  %v16247_v57 = vld [vmem:[%s18677_s27 + $0x68] sm:$0xff]  }
0x227d   : > { %v13951_v52 = vcombine.high %v7684_v44, %v7692_v45  ;;  %v16248_v17 = vld [vmem:[%s18677_s27 + $0xe8] sm:$0xff]   ;;  %v7967_v8 = vrot.slane %v17908_v35, %v17060_v1  ;;  %v7963_v36 = vrot.slane %v17908_v35, %v17066_v3 }
0x227f   : > { %8202 = vmatpush1.bf16.msra.mxu0 %v13938_v2  ;;  %v7685_v2 = vld [vmem:[%s18675_s30 + $0xb8] sm:$0xff] }
0x2280   : > { %8281 = vmatprep.subr.bf16.mxu0 %v13927_v23  ;;  %v13953_v33 = vcombine.high %v7685_v2, %v7693_v18  ;;  %v13952_v23 = vcombine.low %v7685_v2, %v7693_v18 }
0x2309   : > { %v7637_v31 = vpop.xlane.xlu1 %7636 }
0x230a   : > { %v7638_v21 = vmul.f32 0.03125, %v7637_v31  ;;  %v7682_v31 = vld [vmem:[%s18675_s30 + $0xa0] sm:$0xff] }
0x230c   : > { %v7639_v25 = vsub.f32 %v7630_v61, %v7638_v21  ;;  %v13931_v61 = vcombine.high %v7666_v15, %v7674_v16  ;;  %v7690_v21 = vld [vmem:[%s18675_s30 + $0xe0] sm:$0xff] }
0x230d   : > { %v13947_v58 = vcombine.high %v7682_v31, %v7690_v21  ;;  %v13946_v37 = vcombine.low %v7682_v31, %v7690_v21  ;;  %v16253_v31 = vld [vmem:[%s18677_s27 + $0x30] sm:$0xff]  }
0x230e   : > { %v7640_v51 = vmul.f32 %v7639_v25, %v7639_v25  ;;  %v16254_v21 = vld [vmem:[%s18677_s27 + $0xb0] sm:$0xff]  }
0x2310   : > { %v7641_v22 = vsel %vm1078_vm3, %v7640_v51, 0.0  ;;  %v7691_v51 = vld [vmem:[%s18675_s30 + $0xe8] sm:$0xff] }
0x2311   : > { %7642 = vadd.xlane.f32.xlu0 %v7641_v22  ;;  %v13930_v22 = vcombine.low %v7666_v15, %v7674_v16  ;;  %v16245_v15 = vld [vmem:[%s18677_s27 + $0x20] sm:$0xff]  }
0x2312   : > { %v16246_v16 = vld [vmem:[%s18677_s27 + $0xa0] sm:$0xff]  }
0x239e   : > { %v7643_v56 = vpop.xlane.xlu0 %7642 }
0x239f   : > { %v7644_v39 = vmul.f32 0.03125, %v7643_v56  ;;  %v16230_v56 = vld [vmem:[%s18677_s27 + $0x80] sm:$0xff]  }
0x23a1   : > { %v7645_v5 = vadd.f32 1e-05, %v7644_v39  ;;  %v16231_v39 = vld [vmem:[%s18677_s27 + $0x48] sm:$0xff]  }
0x23a3   : > { %16569 = vrsqrt.f32 %v7645_v5  ;;  %v16232_v5 = vld [vmem:[%s18677_s27 + $0xc8] sm:$0xff]  }
0x23ad   : > { %v16570_v29 = vpop.eup %16569 }
0x23ae   : > { %v7647_v30 = vmul.f32 %v16570_v29, %v7639_v25  ;;  %v7683_v25 = vld [vmem:[%s18675_s30 + $0xa8] sm:$0xff] }
0x23af   : > { %v13949_v32 = vcombine.high %v7683_v25, %v7691_v51  ;;  %v13948_v40 = vcombine.low %v7683_v25, %v7691_v51  ;;  %v16233_v29 = vld [vmem:[%s18677_s27 + $0x8] sm:$0xff]   ;;  %v16255_v25 = vld [vmem:[%s18677_s27 + $0x78] sm:$0xff]  }
0x23b0   : > { %v7654_v27 = vmul.f32 %v13920_v59, %v7647_v30  ;;  %v16234_v59 = vld [vmem:[%s18677_s27 + $0x88] sm:$0xff]   ;;  %v16235_v30 = vld [vmem:[%s18677_s27 + $0x50] sm:$0xff]   ;;  %v16256_v51 = vld [vmem:[%s18677_s27 + $0xf8] sm:$0xff]  }
0x23b2   : > { %v17829_v47 = vadd.f32 %v13921_v60, %v7654_v27  ;;  %v16236_v60 = vld [vmem:[%s18677_s27 + $0xd0] sm:$0xff]  }
0x23b3   : > { %v16237_v27 = vld [vmem:[%s18677_s27 + $0x10] sm:$0xff]  }
0x23b4   : > { %v17833_v11 = vpack.c.bf16 %v17829_v47, %v17829_v47 }
0x23b6   : > { %13954 = vmatmul.mubr.msk.bf16.vlgmr.msra.gmra.mrb[148].mxu0 %vm1078_vm3, %v17833_v11  ;;  %13955 = vmatmul.mubr.msk.bf16.vlgmr.msra.gmra.mrb[148].mxu1 %vm1078_vm3, %v17833_v11 }
0x23b7   : > { %8282 = vmatpush1.bf16.msra.mxu0 %v13926_v28  ;;  %8323 = vmatpush1.bf16.msra.mxu1 %v13928_v50  ;;  %v13950_v28 = vcombine.low %v7684_v44, %v7692_v45  ;;  %v16228_v50 = vld [vmem:[%s18677_s27 + $0xc0] sm:$0xff]  }
0x23b8   : > { %8283 = vmatprep.subr.bf16.mxu0 %v13943_v14  ;;  %8324 = vmatprep.subr.bf16.mxu1 %v13945_v49  ;;  %v16243_v14 = vld [vmem:[%s18677_s27 + $0x60] sm:$0xff]  }
0x23b9   : > { %8313 = vmatprep.mubr.bf16.mxu0 %v16667_v34  ;;  %8354 = vmatprep.mubr.bf16.mxu1 %v16667_v34  ;;  %v16244_v49 = vld [vmem:[%s18677_s27 + $0xe0] sm:$0xff]  }
0x23bb   : > { %8284 = vmatpush1.bf16.msra.mxu0 %v13942_v13  ;;  %8325 = vmatpush1.bf16.msra.mxu1 %v13944_v9  ;;  %v16249_v13 = vld [vmem:[%s18677_s27 + $0x28] sm:$0xff]  }
0x23bc   : > { %8363 = vmatprep.subr.bf16.mxu0 %v13931_v61  ;;  %8404 = vmatprep.subr.bf16.mxu1 %v13933_v38  ;;  %v16250_v9 = vld [vmem:[%s18677_s27 + $0xa8] sm:$0xff]   ;;  %v16251_v61 = vld [vmem:[%s18677_s27 + $0x70] sm:$0xff]  }
0x23bd   : > { %v16252_v38 = vld [vmem:[%s18677_s27 + $0xf0] sm:$0xff]  }
0x23be   : > { %13956 = vmatmul.mubr.msk.bf16.vlgmr.msra.gmra.mrb[152].mxu0 %vm1078_vm3, %v17833_v11  ;;  %13957 = vmatmul.mubr.msk.bf16.vlgmr.msra.gmra.mrb[152].mxu1 %vm1078_vm3, %v17833_v11 }
0x23bf   : > { %8364 = vmatpush1.bf16.msra.mxu0 %v13930_v22  ;;  %8405 = vmatpush1.bf16.msra.mxu1 %v13932_v62  ;;  %v16257_v22 = vld [vmem:[%s18677_s27 + $0x38] sm:$0xff]  }
0x23c0   : > { %8365 = vmatprep.subr.bf16.mxu0 %v13947_v58  ;;  %8406 = vmatprep.subr.bf16.mxu1 %v13949_v32  ;;  %v16258_v62 = vld [vmem:[%s18677_s27 + $0xb8] sm:$0xff]   ;;  %v16259_v58 = vld [vmem:[%s18677_s27 + $0x140] sm:$0xff]  }
0x23c1   : > { %8395 = vmatprep.mubr.bf16.mxu0 %v16667_v34  ;;  %8436 = vmatprep.mubr.bf16.mxu1 %v16667_v34  ;;  %v16260_v32 = vld [vmem:[%s18677_s27 + $0x1c0] sm:$0xff]  }
0x23c3   : > { %8366 = vmatpush1.bf16.msra.mxu0 %v13946_v37  ;;  %8407 = vmatpush1.bf16.msra.mxu1 %v13948_v40  ;;  %v7971_v37 = vrot.slane %v17908_v35, %v17069_v4 }
0x23c4   : > { %8445 = vmatprep.subr.bf16.mxu0 %v13935_v41  ;;  %8486 = vmatprep.subr.bf16.mxu1 %v13937_v42 }
0x23c6   : > { %13958 = vmatmul.mubr.msk.bf16.vlgmr.msra.gmra.mrb[156].mxu0 %vm1078_vm3, %v17833_v11  ;;  %13959 = vmatmul.mubr.msk.bf16.vlgmr.msra.gmra.mrb[156].mxu1 %vm1078_vm3, %v17833_v11 }
0x23c7   : > { %8446 = vmatpush1.bf16.msra.mxu0 %v13934_v46  ;;  %8487 = vmatpush1.bf16.msra.mxu1 %v13936_v48 }
0x23c8   : > { %8447 = vmatprep.subr.bf16.mxu0 %v13951_v52  ;;  %8488 = vmatprep.subr.bf16.mxu1 %v13953_v33 }
0x23c9   : > { %8477 = vmatprep.mubr.bf16.mxu0 %v16667_v34  ;;  %8518 = vmatprep.mubr.bf16.mxu1 %v16667_v34 }
0x23cb   : > { %8448 = vmatpush1.bf16.msra.mxu0 %v13950_v28  ;;  %8489 = vmatpush1.bf16.msra.mxu1 %v13952_v23 }
0x23cc   : > { %15079 = vmatprep.subr.bf16.mxu0 %v16227_v54  ;;  %15101 = vmatprep.subr.bf16.mxu1 %v16228_v50 }
0x23ce   : > { %13960 = vmatmul.mubr.msk.bf16.vlgmr.msra.gmra.mrb[160].mxu0 %vm1078_vm3, %v17833_v11  ;;  %13961 = vmatmul.mubr.msk.bf16.vlgmr.msra.gmra.mrb[160].mxu1 %vm1078_vm3, %v17833_v11  ;;  %v16242_v11 = vld [vmem:[%s18677_s27 + $0x98] sm:$0xff]  }
0x23cf   : > { %15080 = vmatpush3.bf16.msra.mxu0 %v16229_v55  ;;  %15102 = vmatpush3.bf16.msra.mxu1 %v16230_v56 }
0x23d0   : > { %15081 = vmatprep.subr.bf16.mxu0 %v16231_v39  ;;  %15103 = vmatprep.subr.bf16.mxu1 %v16232_v5  ;;  %v7979_v5 = vrot.slane %v17908_v35, %v17080_v19 }
0x23d3   : > { %15082 = vmatpush3.bf16.msra.mxu0 %v16233_v29  ;;  %15104 = vmatpush3.bf16.msra.mxu1 %v16234_v59  ;;  %v7987_v29 = vrot.slane %v17908_v35, %v17083_v20  ;;  %v16261_v59 = vld [vmem:[%s18677_s27 + $0x100] sm:$0xff]  }
0x23d4   : > { %15083 = vmatprep.subr.bf16.mxu0 %v16235_v30  ;;  %15105 = vmatprep.subr.bf16.mxu1 %v16236_v60  ;;  %v16262_v30 = vld [vmem:[%s18677_s27 + $0x180] sm:$0xff]  }
0x23d7   : > { %15084 = vmatpush3.bf16.msra.mxu0 %v16237_v27  ;;  %15106 = vmatpush3.bf16.msra.mxu1 %v16238_v43  ;;  %v16263_v43 = vld [vmem:[%s18677_s27 + $0x148] sm:$0xff]  }
0x23d8   : > { %15085 = vmatprep.subr.bf16.mxu0 %v16239_v6  ;;  %15107 = vmatprep.subr.bf16.mxu1 %v16240_v7  ;;  %v16264_v6 = vld [vmem:[%s18677_s27 + $0x1c8] sm:$0xff]  }
0x23db   : > { %15086 = vmatpush3.bf16.msra.mxu0 %v16241_v10  ;;  %15108 = vmatpush3.bf16.msra.mxu1 %v16242_v11 }
0x23dc   : > { %15087 = vmatprep.subr.bf16.mxu0 %v16243_v14  ;;  %15109 = vmatprep.subr.bf16.mxu1 %v16244_v49 }
0x23df   : > { %15088 = vmatpush3.bf16.msra.mxu0 %v16245_v15  ;;  %15110 = vmatpush3.bf16.msra.mxu1 %v16246_v16 }
0x23e0   : > { %15089 = vmatprep.subr.bf16.mxu0 %v16247_v57  ;;  %15111 = vmatprep.subr.bf16.mxu1 %v16248_v17  ;;  %v16265_v17 = vld [vmem:[%s18677_s27 + $0x108] sm:$0xff]  }
0x23e3   : > { %15090 = vmatpush3.bf16.msra.mxu0 %v16249_v13  ;;  %15112 = vmatpush3.bf16.msra.mxu1 %v16250_v9  ;;  %v16266_v13 = vld [vmem:[%s18677_s27 + $0x188] sm:$0xff]  }
0x23e4   : > { %15091 = vmatprep.subr.bf16.mxu0 %v16251_v61  ;;  %15113 = vmatprep.subr.bf16.mxu1 %v16252_v38  ;;  %v16267_v38 = vld [vmem:[%s18677_s27 + $0x150] sm:$0xff]  }
0x23e7   : > { %15092 = vmatpush3.bf16.msra.mxu0 %v16253_v31  ;;  %15114 = vmatpush3.bf16.msra.mxu1 %v16254_v21  ;;  %v16268_v31 = vld [vmem:[%s18677_s27 + $0x1d0] sm:$0xff]  }
0x23e8   : > { %15093 = vmatprep.subr.bf16.mxu0 %v16255_v25  ;;  %15115 = vmatprep.subr.bf16.mxu1 %v16256_v51 }
0x23eb   : > { %15094 = vmatpush3.bf16.msra.mxu0 %v16257_v22  ;;  %15116 = vmatpush3.bf16.msra.mxu1 %v16258_v62  ;;  %v16269_v62 = vld [vmem:[%s18677_s27 + $0x110] sm:$0xff]  }
0x23ec   : > { %15123 = vmatprep.subr.bf16.mxu0 %v16259_v58  ;;  %15145 = vmatprep.subr.bf16.mxu1 %v16260_v32  ;;  %v16270_v58 = vld [vmem:[%s18677_s27 + $0x190] sm:$0xff]   ;;  %v16271_v32 = vld [vmem:[%s18677_s27 + $0x158] sm:$0xff]  }
0x2489   : > { %v8233_v40 = vpop.f32.mrb[148].mxu0  ;;  %v8274_v41 = vpop.f32.mrb[148].mxu1 }
0x248a   : > { %v8234_v42 = vadd.f32 %v8233_v40, %v7959_v53  ;;  %v8275_v44 = vadd.f32 %v8274_v41, %v7967_v8  ;;  %v8235_v45 = vpop.f32.mrb[149].mxu0  ;;  %v8276_v2 = vpop.f32.mrb[149].mxu1  ;;  %v16272_v53 = vld [vmem:[%s18677_s27 + $0x1d8] sm:$0xff]  }
0x248b   : > { %v8236_v18 = vadd.f32 %v8235_v45, %v7963_v36  ;;  %v8277_v46 = vadd.f32 %v8276_v2, %v7971_v37  ;;  %v8237_v48 = vpop.f32.mrb[150].mxu0  ;;  %v8278_v52 = vpop.f32.mrb[150].mxu1  ;;  %v16274_v45 = vld [vmem:[%s18677_s27 + $0x198] sm:$0xff]  }
0x248c   : > { %v8527_v33 = vmax.f32 %v8234_v42, 0.0  ;;  %v8529_v28 = vmax.f32 %v8275_v44, 0.0  ;;  %v8238_v23 = vpop.f32.mrb[151].mxu0  ;;  %v8279_v54 = vpop.f32.mrb[151].mxu1  ;;  %v16273_v44 = vld [vmem:[%s18677_s27 + $0x118] sm:$0xff]   ;;  %v16276_v48 = vld [vmem:[%s18677_s27 + $0x1e0] sm:$0xff]  }
0x248d   : > { %v8528_v50 = vmax.f32 %v8236_v18, 0.0  ;;  %v8530_v55 = vmax.f32 %v8277_v46, 0.0  ;;  %v16275_v46 = vld [vmem:[%s18677_s27 + $0x160] sm:$0xff]   ;;  %v17947_v52 = vld [vmem:[%s18679_s1 + $0x8] sm:$0xff] }
0x248e   : > { %v8543_v60 = vpack.c.bf16 %v8527_v33, %v8527_v33  ;;  %v8545_v27 = vpack.c.bf16 %v8529_v28, %v8529_v28  ;;  %v8015_v33 = vrot.slane %v17947_v52, %v17112_v12  ;;  %v16277_v28 = vld [vmem:[%s18677_s27 + $0x120] sm:$0xff]   ;;  %v16279_v54 = vld [vmem:[%s18677_s27 + $0x168] sm:$0xff]  }
0x248f   : > { %v8544_v56 = vpack.c.bf16 %v8528_v50, %v8528_v50  ;;  %v8546_v39 = vpack.c.bf16 %v8530_v55, %v8530_v55  ;;  %v16278_v23 = vld [vmem:[%s18677_s27 + $0x1a0] sm:$0xff]   ;;  %v16280_v50 = vld [vmem:[%s18677_s27 + $0x1e8] sm:$0xff]  }
0x2491   : > { %v17926_v7 = vpop.f32.mrb[152].mxu0  ;;  %v17928_v10 = vpop.f32.mrb[152].mxu1  ;;  %9365 = vmatprep.mubr.bf16.mxu0 %v8544_v56  ;;  %9405 = vmatprep.mubr.bf16.mxu1 %v8546_v39 }
0x2492   : > { %v8317_v11 = vpop.f32.mrb[153].mxu0  ;;  %v8358_v14 = vpop.f32.mrb[153].mxu1  ;;  %9366 = vmatmul.mubr.bf16.vlgmr.msra.gmra.mrb[164].mxu0 %v8543_v60  ;;  %9406 = vmatmul.mubr.bf16.vlgmr.msra.gmra.mrb[164].mxu1 %v8545_v27  ;;  %v16281_v60 = vld [vmem:[%s18677_s27 + $0x128] sm:$0xff]  }
0x2493   : > { %v8318_v49 = vadd.f32 %v8317_v11, %v7979_v5  ;;  %v8359_v15 = vadd.f32 %v8358_v14, %v7987_v29  ;;  %15124 = vmatpush3.bf16.msra.mxu0 %v16261_v59  ;;  %15146 = vmatpush3.bf16.msra.mxu1 %v16262_v30  ;;  %v8319_v16 = vpop.f32.mrb[154].mxu0  ;;  %v8360_v57 = vpop.f32.mrb[154].mxu1  ;;  %v16282_v27 = vld [vmem:[%s18677_s27 + $0x1a8] sm:$0xff]  }
0x2494   : > { %v8320_v9 = vpop.f32.mrb[155].mxu0  ;;  %v8361_v61 = vpop.f32.mrb[155].mxu1  ;;  %15125 = vmatprep.subr.bf16.mxu0 %v16263_v43  ;;  %15147 = vmatprep.subr.bf16.mxu1 %v16264_v6  ;;  %v7975_v43 = vrot.slane %v17908_v35, %v17124_v24  ;;  %v7983_v6 = vrot.slane %v17908_v35, %v17112_v12  ;;  %v7995_v16 = vrot.slane %v17947_v52, %v17066_v3  ;;  %v16286_v35 = vld [vmem:[%s18677_s27 + $0x1b0] sm:$0xff]  }
0x2495   : > { %v8532_v21 = vmax.f32 %v8318_v49, 0.0  ;;  %v8534_v25 = vmax.f32 %v8359_v15, 0.0  ;;  %v16283_v49 = vld [vmem:[%s18677_s27 + $0x170] sm:$0xff]   ;;  %v8003_v57 = vrot.slane %v17947_v52, %v17069_v4  ;;  %v16287_v61 = vld [vmem:[%s18677_s27 + $0x178] sm:$0xff]  }
0x2496   : > { %v16284_v15 = vld [vmem:[%s18677_s27 + $0x1f0] sm:$0xff]   ;;  %v8357_v9 = vadd.f32 %v17928_v10, %v7983_v6  ;;  %v16292_v10 = vld [vmem:[%s18677_s27 + $0x2c0] sm:$0xff]   ;;  %v16311_v6 = vld [vmem:[%s18677_s27 + $0x268] sm:$0xff]  }
0x2497   : > { %v8548_v51 = vpack.c.bf16 %v8532_v21, %v8532_v21  ;;  %v8550_v22 = vpack.c.bf16 %v8534_v25, %v8534_v25  ;;  %15126 = vmatpush3.bf16.msra.mxu0 %v16265_v17  ;;  %15148 = vmatpush3.bf16.msra.mxu1 %v16266_v13  ;;  %v16285_v17 = vld [vmem:[%s18677_s27 + $0x130] sm:$0xff]   ;;  %v8316_v13 = vadd.f32 %v17926_v7, %v7975_v43  ;;  %v16289_v25 = vld [vmem:[%s18677_s27 + $0x138] sm:$0xff]   ;;  %v16291_v7 = vld [vmem:[%s18677_s27 + $0x240] sm:$0xff]  }
0x2498   : > { %15127 = vmatprep.subr.bf16.mxu0 %v16267_v38  ;;  %15149 = vmatprep.subr.bf16.mxu1 %v16268_v31  ;;  %v16288_v38 = vld [vmem:[%s18677_s27 + $0x1f8] sm:$0xff]   ;;  %v16310_v43 = vld [vmem:[%s18677_s27 + $0x2a0] sm:$0xff]  }
0x2499   : > { %v17938_v8 = vpop.f32.mrb[156].mxu0  ;;  %v17940_v36 = vpop.f32.mrb[156].mxu1  ;;  %9445 = vmatprep.mubr.bf16.mxu0 %v8548_v51  ;;  %9485 = vmatprep.mubr.bf16.mxu1 %v8550_v22  ;;  %v16290_v51 = vld [vmem:[%s18677_s27 + $0x1b8] sm:$0xff]   ;;  %v8531_v22 = vmax.f32 %v8316_v13, 0.0  ;;  %v8019_v13 = vrot.slane %v17947_v52, %v17083_v20 }
0x249a   : > { %v8399_v37 = vpop.f32.mrb[157].mxu0  ;;  %v8440_v40 = vpop.f32.mrb[157].mxu1 }
0x249b   : > { %15128 = vmatpush3.bf16.msra.mxu0 %v16269_v62  ;;  %15150 = vmatpush3.bf16.msra.mxu1 %v16270_v58  ;;  %v8401_v41 = vpop.f32.mrb[158].mxu0  ;;  %v8442_v42 = vpop.f32.mrb[158].mxu1  ;;  %v8400_v31 = vadd.f32 %v8399_v37, %v7995_v16  ;;  %v8441_v21 = vadd.f32 %v8440_v40, %v8003_v57  ;;  %v8533_v62 = vmax.f32 %v8357_v9, 0.0  ;;  %v8547_v37 = vpack.c.bf16 %v8531_v22, %v8531_v22  ;;  %v16315_v16 = vld [vmem:[%s18677_s27 + $0x270] sm:$0xff]  }
0x249c   : > { %v8402_v2 = vpop.f32.mrb[159].mxu0  ;;  %v8443_v18 = vpop.f32.mrb[159].mxu1  ;;  %15129 = vmatprep.subr.bf16.mxu0 %v16271_v32  ;;  %15151 = vmatprep.subr.bf16.mxu1 %v16272_v53  ;;  %v16293_v53 = vld [vmem:[%s18677_s27 + $0x200] sm:$0xff]   ;;  %v7999_v57 = vrot.slane %v17947_v52, %v17060_v1  ;;  %v16317_v9 = vld [vmem:[%s18677_s27 + $0x230] sm:$0xff]  }
0x249d   : > { %v8536_v58 = vmax.f32 %v8400_v31, 0.0  ;;  %v8538_v32 = vmax.f32 %v8441_v21, 0.0  ;;  %v8549_v40 = vpack.c.bf16 %v8533_v62, %v8533_v62  ;;  %v16294_v41 = vld [vmem:[%s18677_s27 + $0x280] sm:$0xff]   ;;  %v16297_v18 = vld [vmem:[%s18677_s27 + $0x208] sm:$0xff]   ;;  %v16319_v31 = vld [vmem:[%s18677_s27 + $0x278] sm:$0xff]  }
0x249e   : > { %v8439_v21 = vadd.f32 %v17940_v36, %v7999_v57  ;;  %v16321_v62 = vld [vmem:[%s18677_s27 + $0x238] sm:$0xff]   ;;  %v16324_v36 = vld [vmem:[%s18677_s27 + $0x3c0] sm:$0xff]   ;;  %v16349_v57 = vld [vmem:[%s18677_s27 + $0x330] sm:$0xff]  }
0x249f   : > { %15130 = vmatpush3.bf16.msra.mxu0 %v16273_v44  ;;  %15152 = vmatpush3.bf16.msra.mxu1 %v16274_v45  ;;  %v8552_v42 = vpack.c.bf16 %v8536_v58, %v8536_v58  ;;  %v16295_v44 = vld [vmem:[%s18677_s27 + $0x248] sm:$0xff]   ;;  %v8554_v2 = vpack.c.bf16 %v8538_v32, %v8538_v32 }
0x24a0   : > { %15131 = vmatprep.subr.bf16.mxu0 %v16275_v46  ;;  %15153 = vmatprep.subr.bf16.mxu1 %v16276_v48  ;;  %v16296_v45 = vld [vmem:[%s18677_s27 + $0x2c8] sm:$0xff]   ;;  %v16299_v48 = vld [vmem:[%s18677_s27 + $0x250] sm:$0xff]   ;;  %v8537_v58 = vmax.f32 %v8439_v21, 0.0 }
0x24a1   : > { %v17955_v55 = vpop.f32.mrb[160].mxu0  ;;  %v8520_v56 = vpop.f32.mrb[160].mxu1  ;;  %v16298_v46 = vld [vmem:[%s18677_s27 + $0x288] sm:$0xff]  }
0x24a2   : > { %v17957_v39 = vadd.f32 %v8520_v56, %v8015_v33  ;;  %v17959_v5 = vpop.f32.mrb[161].mxu0  ;;  %v17961_v29 = vpop.f32.mrb[161].mxu1  ;;  %v16300_v33 = vld [vmem:[%s18677_s27 + $0x2d0] sm:$0xff]   ;;  %v16305_v56 = vld [vmem:[%s18677_s27 + $0x218] sm:$0xff]  }
0x24a3   : > { %15132 = vmatpush3.bf16.msra.mxu0 %v16277_v28  ;;  %15154 = vmatpush3.bf16.msra.mxu1 %v16278_v23  ;;  %v8483_v59 = vpop.f32.mrb[162].mxu0  ;;  %v8524_v30 = vpop.f32.mrb[162].mxu1  ;;  %v16301_v28 = vld [vmem:[%s18677_s27 + $0x210] sm:$0xff]   ;;  %v8523_v22 = vadd.f32 %v17961_v29, %v8019_v13  ;;  %v16326_v29 = vld [vmem:[%s18677_s27 + $0x380] sm:$0xff]   ;;  %v16351_v13 = vld [vmem:[%s18677_s27 + $0x378] sm:$0xff]  }
0x24a4   : > { %v8484_v11 = vpop.f32.mrb[163].mxu0  ;;  %v8525_v14 = vpop.f32.mrb[163].mxu1  ;;  %15133 = vmatprep.subr.bf16.mxu0 %v16279_v54  ;;  %15155 = vmatprep.subr.bf16.mxu1 %v16280_v50  ;;  %v16302_v23 = vld [vmem:[%s18677_s27 + $0x290] sm:$0xff]   ;;  %v16303_v54 = vld [vmem:[%s18677_s27 + $0x258] sm:$0xff]   ;;  %v16307_v30 = vld [vmem:[%s18677_s27 + $0x260] sm:$0xff]  }
0x24a5   : > { %v16304_v50 = vld [vmem:[%s18677_s27 + $0x2d8] sm:$0xff]   ;;  %v16312_v11 = vld [vmem:[%s18677_s27 + $0x2e8] sm:$0xff]  }
0x24a6   : > { %v16306_v59 = vld [vmem:[%s18677_s27 + $0x298] sm:$0xff]   ;;  %v16313_v14 = vld [vmem:[%s18677_s27 + $0x228] sm:$0xff]  }
0x24a7   : > { %15134 = vmatpush3.bf16.msra.mxu0 %v16281_v60  ;;  %15156 = vmatpush3.bf16.msra.mxu1 %v16282_v27  ;;  %v16308_v60 = vld [vmem:[%s18677_s27 + $0x2e0] sm:$0xff]  }
0x24a8   : > { %15135 = vmatprep.subr.bf16.mxu0 %v16283_v49  ;;  %15157 = vmatprep.subr.bf16.mxu1 %v16284_v15  ;;  %v16309_v27 = vld [vmem:[%s18677_s27 + $0x220] sm:$0xff]   ;;  %v7991_v49 = vrot.slane %v17947_v52, %v17057_v63  ;;  %v16314_v15 = vld [vmem:[%s18677_s27 + $0x2a8] sm:$0xff]  }
0x24ab   : > { %15136 = vmatpush3.bf16.msra.mxu0 %v16285_v17  ;;  %15158 = vmatpush3.bf16.msra.mxu1 %v16286_v35  ;;  %v16316_v17 = vld [vmem:[%s18677_s27 + $0x2f0] sm:$0xff]   ;;  %v8011_v35 = vrot.slane %v17947_v52, %v17080_v19 }
0x24ac   : > { %15137 = vmatprep.subr.bf16.mxu0 %v16287_v61  ;;  %15159 = vmatprep.subr.bf16.mxu1 %v16288_v38  ;;  %v8398_v61 = vadd.f32 %v17938_v8, %v7991_v49  ;;  %v16318_v38 = vld [vmem:[%s18677_s27 + $0x2b0] sm:$0xff]   ;;  %v16322_v8 = vld [vmem:[%s18677_s27 + $0x2b8] sm:$0xff]   ;;  %v16346_v49 = vld [vmem:[%s18677_s27 + $0x3a8] sm:$0xff]  }
0x24af   : > { %15138 = vmatpush3.bf16.msra.mxu0 %v16289_v25  ;;  %15160 = vmatpush3.bf16.msra.mxu1 %v16290_v51  ;;  %v16320_v25 = vld [vmem:[%s18677_s27 + $0x2f8] sm:$0xff]   ;;  %v8482_v51 = vadd.f32 %v17959_v5, %v8011_v35  ;;  %v16325_v5 = vld [vmem:[%s18677_s27 + $0x300] sm:$0xff]   ;;  %v16350_v35 = vld [vmem:[%s18677_s27 + $0x3b0] sm:$0xff]  }
0x24b0   : > { %15167 = vmatprep.subr.bf16.mxu0 %v16291_v7  ;;  %15189 = vmatprep.subr.bf16.mxu1 %v16292_v10  ;;  %v8535_v7 = vmax.f32 %v8398_v61, 0.0  ;;  %v16323_v10 = vld [vmem:[%s18677_s27 + $0x340] sm:$0xff]  }
0x24b1   : > { %v8540_v32 = vmax.f32 %v8482_v51, 0.0 }
0x24b2   : > { %9446 = vmatmul.mubr.bf16.vlgmr.msra.gmra.mrb[168].mxu0 %v8547_v37  ;;  %9486 = vmatmul.mubr.bf16.vlgmr.msra.gmra.mrb[168].mxu1 %v8549_v40  ;;  %v8551_v37 = vpack.c.bf16 %v8535_v7, %v8535_v7  ;;  %v8553_v40 = vpack.c.bf16 %v8537_v58, %v8537_v58 }
0x24b3   : > { %15168 = vmatpush3.bf16.msra.mxu0 %v16293_v53  ;;  %9525 = vmatprep.mubr.bf16.mxu0 %v8552_v42  ;;  %v8542_v53 = vmax.f32 %v8523_v22, 0.0  ;;  %v8556_v42 = vpack.c.bf16 %v8540_v32, %v8540_v32 }
0x24b4   : > { %15190 = vmatpush3.bf16.msra.mxu1 %v16294_v41  ;;  %9565 = vmatprep.mubr.bf16.mxu1 %v8554_v2  ;;  %v16327_v41 = vld [vmem:[%s18677_s27 + $0x348] sm:$0xff]  }
0x24b5   : > { %15169 = vmatprep.subr.bf16.mxu0 %v16295_v44  ;;  %15191 = vmatprep.subr.bf16.mxu1 %v16296_v45  ;;  %v16328_v44 = vld [vmem:[%s18677_s27 + $0x3c8] sm:$0xff]   ;;  %v8558_v45 = vpack.c.bf16 %v8542_v53, %v8542_v53 }
0x24b6   : > { %v16329_v2 = vld [vmem:[%s18677_s27 + $0x308] sm:$0xff]  }
0x24b7   : > { %15170 = vmatpush3.bf16.msra.mxu0 %v16297_v18  ;;  %v16330_v18 = vld [vmem:[%s18677_s27 + $0x388] sm:$0xff]  }
0x24b8   : > { %15192 = vmatpush3.bf16.msra.mxu1 %v16298_v46  ;;  %15171 = vmatprep.subr.bf16.mxu0 %v16299_v48  ;;  %v16331_v46 = vld [vmem:[%s18677_s27 + $0x350] sm:$0xff]  }
0x24b9   : > { %15193 = vmatprep.subr.bf16.mxu1 %v16300_v33  ;;  %v16332_v48 = vld [vmem:[%s18677_s27 + $0x3d0] sm:$0xff]  }
0x24ba   : > { %v16333_v33 = vld [vmem:[%s18677_s27 + $0x310] sm:$0xff]  }
0x24bb   : > { %15172 = vmatpush3.bf16.msra.mxu0 %v16301_v28  ;;  %v16334_v28 = vld [vmem:[%s18677_s27 + $0x390] sm:$0xff]  }
0x24bc   : > { %15194 = vmatpush3.bf16.msra.mxu1 %v16302_v23  ;;  %15173 = vmatprep.subr.bf16.mxu0 %v16303_v54  ;;  %v16335_v23 = vld [vmem:[%s18677_s27 + $0x358] sm:$0xff]  }
0x24bd   : > { %15195 = vmatprep.subr.bf16.mxu1 %v16304_v50  ;;  %v16336_v54 = vld [vmem:[%s18677_s27 + $0x3d8] sm:$0xff]  }
0x24be   : > { %v16337_v50 = vld [vmem:[%s18677_s27 + $0x318] sm:$0xff]  }
0x24bf   : > { %15174 = vmatpush3.bf16.msra.mxu0 %v16305_v56  ;;  %v16338_v56 = vld [vmem:[%s18677_s27 + $0x398] sm:$0xff]  }
0x24c0   : > { %15196 = vmatpush3.bf16.msra.mxu1 %v16306_v59  ;;  %15175 = vmatprep.subr.bf16.mxu0 %v16307_v30  ;;  %v16339_v59 = vld [vmem:[%s18677_s27 + $0x360] sm:$0xff]  }
0x24c1   : > { %15197 = vmatprep.subr.bf16.mxu1 %v16308_v60  ;;  %v16340_v30 = vld [vmem:[%s18677_s27 + $0x3e0] sm:$0xff]  }
0x24c2   : > { %v16341_v60 = vld [vmem:[%s18677_s27 + $0x320] sm:$0xff]  }
0x24c3   : > { %15176 = vmatpush3.bf16.msra.mxu0 %v16309_v27  ;;  %v16342_v27 = vld [vmem:[%s18677_s27 + $0x3a0] sm:$0xff]  }
0x24c4   : > { %15198 = vmatpush3.bf16.msra.mxu1 %v16310_v43  ;;  %15177 = vmatprep.subr.bf16.mxu0 %v16311_v6  ;;  %v16343_v43 = vld [vmem:[%s18677_s27 + $0x368] sm:$0xff]  }
0x24c5   : > { %15199 = vmatprep.subr.bf16.mxu1 %v16312_v11  ;;  %v16344_v6 = vld [vmem:[%s18677_s27 + $0x3e8] sm:$0xff]  }
0x24c6   : > { %v16345_v11 = vld [vmem:[%s18677_s27 + $0x328] sm:$0xff]  }
0x24c7   : > { %15178 = vmatpush3.bf16.msra.mxu0 %v16313_v14  ;;  %v8007_v14 = vrot.slane %v17947_v52, %v17124_v24  ;;  %v16353_v52 = vld [vmem:[%s18677_s27 + $0x338] sm:$0xff]  }
0x24c8   : > { %15200 = vmatpush3.bf16.msra.mxu1 %v16314_v15  ;;  %15179 = vmatprep.subr.bf16.mxu0 %v16315_v16  ;;  %v16347_v15 = vld [vmem:[%s18677_s27 + $0x370] sm:$0xff]  }
0x24c9   : > { %15201 = vmatprep.subr.bf16.mxu1 %v16316_v17  ;;  %v16348_v16 = vld [vmem:[%s18677_s27 + $0x3f0] sm:$0xff]   ;;  %v8480_v17 = vadd.f32 %v17955_v55, %v8007_v14 }
0x24cb   : > { %15180 = vmatpush3.bf16.msra.mxu0 %v16317_v9  ;;  %v16352_v9 = vld [vmem:[%s18677_s27 + $0x3f8] sm:$0xff]   ;;  %v8539_v61 = vmax.f32 %v8480_v17, 0.0 }
0x24cc   : > { %15202 = vmatpush3.bf16.msra.mxu1 %v16318_v38  ;;  %15181 = vmatprep.subr.bf16.mxu0 %v16319_v31  ;;  %v16354_v38 = vld [vmem:[%s18677_s27 + $0x3b8] sm:$0xff]   ;;  %v8541_v31 = vmax.f32 %v17957_v39, 0.0  ;;  %v13962_v39 = vld [vmem:[%s16821_s4] ss:$0 sm:$0xff] }
0x24cd   : > { %15203 = vmatprep.subr.bf16.mxu1 %v16320_v25  ;;  %v8555_v21 = vpack.c.bf16 %v8539_v61, %v8539_v61 }
0x24ce   : > { %v8557_v55 = vpack.c.bf16 %v8541_v31, %v8541_v31 }
0x24cf   : > { %15182 = vmatpush3.bf16.msra.mxu0 %v16321_v62 }
0x24d0   : > { %15204 = vmatpush3.bf16.msra.mxu1 %v16322_v8  ;;  %15211 = vmatprep.subr.bf16.mxu0 %v16323_v10 }
0x24d1   : > { %15233 = vmatprep.subr.bf16.mxu1 %v16324_v36 }
0x24d2   : > { %9526 = vmatmul.mubr.bf16.vlgmr.msra.gmra.mrb[172].mxu0 %v8551_v37 }
0x24d3   : > { %9566 = vmatmul.mubr.bf16.vlgmr.msra.gmra.mrb[172].mxu1 %v8553_v40  ;;  %15212 = vmatpush3.bf16.msra.mxu0 %v16325_v5 }
0x24d4   : > { %9605 = vmatprep.mubr.bf16.mxu0 %v8556_v42  ;;  %15234 = vmatpush3.bf16.msra.mxu1 %v16326_v29 }
0x24d5   : > { %9645 = vmatprep.mubr.bf16.mxu1 %v8558_v45  ;;  %15213 = vmatprep.subr.bf16.mxu0 %v16327_v41 }
0x24d6   : > { %15235 = vmatprep.subr.bf16.mxu1 %v16328_v44 }
0x24d7   : > { %15214 = vmatpush3.bf16.msra.mxu0 %v16329_v2 }
0x24d8   : > { %15236 = vmatpush3.bf16.msra.mxu1 %v16330_v18  ;;  %15215 = vmatprep.subr.bf16.mxu0 %v16331_v46 }
0x24d9   : > { %15237 = vmatprep.subr.bf16.mxu1 %v16332_v48 }
0x24db   : > { %15216 = vmatpush3.bf16.msra.mxu0 %v16333_v33 }
0x24dc   : > { %15238 = vmatpush3.bf16.msra.mxu1 %v16334_v28  ;;  %15217 = vmatprep.subr.bf16.mxu0 %v16335_v23 }
0x24dd   : > { %15239 = vmatprep.subr.bf16.mxu1 %v16336_v54 }
0x24df   : > { %15218 = vmatpush3.bf16.msra.mxu0 %v16337_v50 }
0x24e0   : > { %15240 = vmatpush3.bf16.msra.mxu1 %v16338_v56  ;;  %15219 = vmatprep.subr.bf16.mxu0 %v16339_v59 }
0x24e1   : > { %15241 = vmatprep.subr.bf16.mxu1 %v16340_v30 }
0x24e3   : > { %15220 = vmatpush3.bf16.msra.mxu0 %v16341_v60 }
0x24e4   : > { %15242 = vmatpush3.bf16.msra.mxu1 %v16342_v27  ;;  %15221 = vmatprep.subr.bf16.mxu0 %v16343_v43 }
0x24e5   : > { %15243 = vmatprep.subr.bf16.mxu1 %v16344_v6 }
0x24e7   : > { %15222 = vmatpush3.bf16.msra.mxu0 %v16345_v11 }
0x24e8   : > { %15244 = vmatpush3.bf16.msra.mxu1 %v16346_v49  ;;  %15223 = vmatprep.subr.bf16.mxu0 %v16347_v15 }
0x24e9   : > { %15245 = vmatprep.subr.bf16.mxu1 %v16348_v16 }
0x24eb   : > { %15224 = vmatpush3.bf16.msra.mxu0 %v16349_v57 }
0x24ec   : > { %15246 = vmatpush3.bf16.msra.mxu1 %v16350_v35  ;;  %15225 = vmatprep.subr.bf16.mxu0 %v16351_v13 }
0x24ed   : > { %15247 = vmatprep.subr.bf16.mxu1 %v16352_v9 }
0x24ef   : > { %15226 = vmatpush3.bf16.msra.mxu0 %v16353_v52 }
0x24f0   : > { %15248 = vmatpush3.bf16.msra.mxu1 %v16354_v38  ;;  %15751 = vmatprep.subr.bf16.mxu0 %v16651_v0 }
0x24f1   : > { %15759 = vmatprep.subr.bf16.mxu1 %v16651_v0 }
0x24f2   : > { %9606 = vmatmul.mubr.bf16.vlgmr.msra.gmra.mrb[176].mxu0 %v8555_v21 }
0x24f3   : > { %9646 = vmatmul.mubr.bf16.vlgmr.msra.gmra.mrb[176].mxu1 %v8557_v55  ;;  %15755 = vmatprep.mubr.msk.bf16.mxu0 %vm16652_vm1, %v16651_v0 }
0x24f4   : > { %15761 = vmatprep.mubr.msk.bf16.mxu1 %vm16652_vm1, %v16651_v0 }
0x2565   : > { %v15095_v25 = vpop.f32.mrb[164].mxu0  ;;  %v15117_v51 = vpop.f32.mrb[164].mxu1 }
0x2566   : > { %v15096_v22 = vpop.f32.mrb[165].mxu0  ;;  %v15118_v62 = vpop.f32.mrb[165].mxu1 }
0x2567   : > { %v15097_v7 = vadd.f32 %v15096_v22, %v15095_v25  ;;  %v15119_v8 = vadd.f32 %v15118_v62, %v15117_v51  ;;  %v15098_v10 = vpop.f32.mrb[166].mxu0  ;;  %v15120_v58 = vpop.f32.mrb[166].mxu1  ;;  %v16355_v62 = vld [vmem:[%s18654_s26 + $0x10] sm:$0xff]  }
0x2568   : > { %v15099_v36 = vpop.f32.mrb[167].mxu0  ;;  %v15121_v32 = vpop.f32.mrb[167].mxu1  ;;  %15752 = vmatpush3.bf16.msra.mxu0 %v16355_v62 }
0x2569   : > { %v9368_v53 = vadd.f32 %v15097_v7, %v13962_v39  ;;  %v16356_v7 = vld [vmem:[%s18654_s26 + $0x18] sm:$0xff]   ;;  %15753 = vmatprep.subr.bf16.mxu0 %v16651_v0  ;;  %v14093_v36 = vld [vmem:[%s16826_s25 + $0x2] ss:$0 sm:$0xff] }
0x256b   : > { %v9408_v5 = vadd.f32 %v15119_v8, %v9368_v53  ;;  %v14094_v53 = vld [vmem:[%s16831_s21 + $0x2] ss:$0 sm:$0xff] }
0x256c   : > { %15754 = vmatpush3.bf16.msra.mxu0 %v16356_v7 }
0x256d   : > { %15765 = vmatprep.subr.bf16.mxu0 %v16651_v0 }
0x2585   : > { %v15139_v37 = vpop.f32.mrb[168].mxu0  ;;  %v15161_v29 = vpop.f32.mrb[168].mxu1 }
0x2586   : > { %v15140_v40 = vpop.f32.mrb[169].mxu0  ;;  %v15162_v41 = vpop.f32.mrb[169].mxu1 }
0x2587   : > { %v15141_v42 = vadd.f32 %v15140_v40, %v15139_v37  ;;  %v15163_v44 = vadd.f32 %v15162_v41, %v15161_v29  ;;  %v15142_v45 = vpop.f32.mrb[170].mxu0  ;;  %v15164_v2 = vpop.f32.mrb[170].mxu1  ;;  %v14105_v40 = vld [vmem:[%s18655_s2 + $0x1] ss:$0 sm:$0xff] }
0x2588   : > { %v15143_v18 = vpop.f32.mrb[171].mxu0  ;;  %v15165_v46 = vpop.f32.mrb[171].mxu1 }
0x2589   : > { %v9448_v48 = vadd.f32 %v15141_v42, %v9408_v5 }
0x258b   : > { %v9488_v33 = vadd.f32 %v15163_v44, %v9448_v48 }
0x25a5   : > { %v15183_v28 = vpop.f32.mrb[172].mxu0 }
0x25a6   : > { %v15205_v23 = vpop.f32.mrb[172].mxu1  ;;  %v15184_v54 = vpop.f32.mrb[173].mxu0 }
0x25a7   : > { %v15185_v50 = vadd.f32 %v15184_v54, %v15183_v28  ;;  %v15206_v56 = vpop.f32.mrb[173].mxu1  ;;  %v15186_v59 = vpop.f32.mrb[174].mxu0 }
0x25a8   : > { %v15207_v30 = vadd.f32 %v15206_v56, %v15205_v23  ;;  %v15208_v60 = vpop.f32.mrb[174].mxu1  ;;  %v15187_v27 = vpop.f32.mrb[175].mxu0 }
0x25a9   : > { %v9528_v43 = vadd.f32 %v15185_v50, %v9488_v33  ;;  %v15209_v6 = vpop.f32.mrb[175].mxu1 }
0x25ab   : > { %v9568_v11 = vadd.f32 %v15207_v30, %v9528_v43 }
0x25c5   : > { %v15227_v14 = vpop.f32.mrb[176].mxu0 }
0x25c6   : > { %v15249_v49 = vpop.f32.mrb[176].mxu1  ;;  %v15228_v15 = vpop.f32.mrb[177].mxu0 }
0x25c7   : > { %v15229_v16 = vadd.f32 %v15228_v15, %v15227_v14  ;;  %v15250_v57 = vpop.f32.mrb[177].mxu1  ;;  %v15230_v17 = vpop.f32.mrb[178].mxu0 }
0x25c8   : > { %v15251_v35 = vadd.f32 %v15250_v57, %v15249_v49  ;;  %v15252_v13 = vpop.f32.mrb[178].mxu1  ;;  %v15231_v9 = vpop.f32.mrb[179].mxu0 }
0x25c9   : > { %v9608_v52 = vadd.f32 %v15229_v16, %v9568_v11  ;;  %v15253_v61 = vpop.f32.mrb[179].mxu1 }
0x25cb   : > { %v9648_v38 = vadd.f32 %v15251_v35, %v9608_v52 }
0x25cd   : > { %v9653_v31 = vadd.f32 %v9648_v38, %v17829_v47 }
0x25cf   : > { %v9658_v21 = vsel %vm1078_vm3, %v9653_v31, 0.0 }
0x25d0   : > { %9659 = vadd.xlane.f32.xlu0 %v9658_v21 }
0x265d   : > { %v9660_v55 = vpop.xlane.xlu0 %9659 }
0x265e   : > { %v9661_v25 = vmul.f32 0.03125, %v9660_v55 }
0x2660   : > { %v9662_v51 = vsub.f32 %v9653_v31, %v9661_v25 }
0x2662   : > { %v9663_v39 = vmul.f32 %v9662_v51, %v9662_v51 }
0x2664   : > { %v9664_v22 = vsel %vm1078_vm3, %v9663_v39, 0.0 }
0x2665   : > { %9665 = vadd.xlane.f32.xlu1 %v9664_v22 }
0x26f2   : > { %v9666_v47 = vpop.xlane.xlu1 %9665 }
0x26f3   : > { %v9667_v8 = vmul.f32 0.03125, %v9666_v47 }
0x26f5   : > { %v9668_v10 = vadd.f32 1e-05, %v9667_v8 }
0x26f7   : > { %16571 = vrsqrt.f32 %v9668_v10 }
0x2701   : > { %v16572_v58 = vpop.eup %16571 }
0x2702   : > { %v9670_v32 = vmul.f32 %v16572_v58, %v9662_v51 }
0x2704   : > { %v9677_v5 = vmul.f32 %v14093_v36, %v9670_v32 }
0x2706   : > { %v18079_v37 = vadd.f32 %v14094_v53, %v9677_v5 }
0x2708   : > { %v9699_v29 = vpack.c.bf16 %v18079_v37, %v18079_v37 }
0x270a   : > { %15756 = vmatmul.mubr.msk.bf16.vlgmr.msra.gmra.mrb[180].mxu0 %vm1078_vm3, %v9699_v29 }
0x270b   : > { %15767 = vmatprep.mubr.msk.bf16.mxu0 %vm16652_vm1, %v16651_v0 }
0x27dd   : > { %v9755_v41 = vpop.f32.mrb[180].mxu0 }
0x27de   : > { %v9756_v42 = vadd.f32 %v14105_v40, %v9755_v41  ;;  %v15757_v44 = vpop.f32.mrb[181].mxu0 }
0x27df   : > { %v9758_v45 = vpop.f32.mrb[182].mxu0 }
0x27e0   : > { %v9761_v2 = vmul.f32 0.35355338, %v9756_v42  ;;  %v18087_v18 = vpack.c.bf16 %v9756_v42, %v9756_v42  ;;  %v15758_v46 = vpop.f32.mrb[183].mxu0 }
0x27e2   : > { %9876 = vrot.lane.b32.xlu1 %v18087_v18, %s18672_s20  ;;  %9765 = vrot.lane.b32.xlu0 %v18087_v18, %s18671_s19  ;;  %v9762_v48 = vpack.c.bf16 %v9761_v2, %v9761_v2 }
0x27e6   : > { %9986 = vrot.lane.b32.xlu0 %v18087_v18, %s18657_s23  ;;  %9874 = vrot.lane.b32.xlu1 %v9762_v48, %s18668_s13 }
0x27ea   : > { %10096 = vrot.lane.b32.xlu0 %v18087_v18, %s18658_s3  ;;  %9984 = vrot.lane.b32.xlu1 %v9762_v48, %s18669_s14 }
0x27ee   : > { %10094 = vrot.lane.b32.xlu1 %v9762_v48, %s18656_s0 }
0x2854   : > { %v9766_v33 = vpop.permute.xlu0 %9765  ;;  %v9877_v23 = vpop.permute.xlu1 %9876 }
0x2855   : > { %v9771_v28 = vsel %vm1128_vm4, %v9766_v33, 0  ;;  %v9882_v54 = vsel %vm1128_vm4, %v9877_v23, 0 }
0x2856   : > { %15760 = vmatpush3.bf16.xpose.msra.mxu1 %v9771_v28 }
0x2857   : > { %15771 = vmatprep.subr.bf16.mxu1 %v16651_v0 }
0x2858   : > { %v9987_v50 = vpop.permute.xlu0 %9986  ;;  %v9875_v56 = vpop.permute.xlu1 %9874 }
0x2859   : > { %v9992_v59 = vsel %vm1128_vm4, %v9987_v50, 0 }
0x285c   : > { %v10097_v30 = vpop.permute.xlu0 %10096  ;;  %v9985_v60 = vpop.permute.xlu1 %9984 }
0x285d   : > { %15762 = vmatmul.mubr.msk.bf16.vlgmr.msra.gmra.mrb[180].mxu1 %vm1128_vm4, %v9762_v48  ;;  %v10102_v27 = vsel %vm1128_vm4, %v10097_v30, 0 }
0x285e   : > { %15772 = vmatpush3.bf16.xpose.msra.mxu1 %v9882_v54  ;;  %15773 = vmatprep.mubr.msk.bf16.mxu1 %vm16652_vm1, %v16651_v0 }
0x285f   : > { %15783 = vmatprep.subr.bf16.mxu1 %v16651_v0 }
0x2860   : > { %v10095_v43 = vpop.permute.xlu1 %10094 }
0x2865   : > { %15774 = vmatmul.mubr.msk.bf16.vlgmr.msra.gmra.mrb[184].mxu1 %vm1128_vm4, %v9875_v56 }
0x2866   : > { %15784 = vmatpush3.bf16.xpose.msra.mxu1 %v9992_v59  ;;  %15785 = vmatprep.mubr.msk.bf16.mxu1 %vm16652_vm1, %v16651_v0 }
0x2867   : > { %15795 = vmatprep.subr.bf16.mxu1 %v16651_v0 }
0x286d   : > { %15786 = vmatmul.mubr.msk.bf16.vlgmr.msra.gmra.mrb[188].mxu1 %vm1128_vm4, %v9985_v60 }
0x286e   : > { %15796 = vmatpush3.bf16.xpose.msra.mxu1 %v10102_v27  ;;  %15797 = vmatprep.mubr.msk.bf16.mxu1 %vm16652_vm1, %v16651_v0 }
0x286f   : > { %15807 = vmatprep.subr.bf16.mxu1 %v16651_v0 }
0x2875   : > { %15798 = vmatmul.mubr.msk.bf16.vlgmr.msra.gmra.mrb[192].mxu1 %vm1128_vm4, %v10095_v43 }
0x2876   : > { %15811 = vmatprep.mubr.msk.bf16.mxu1 %vm16652_vm1, %v16651_v0 }
0x2930   : > { %v9807_v6 = vpop.f32.mrb[180].mxu1 }
0x2931   : > { %v15763_v11 = vpop.f32.mrb[181].mxu1  ;;  %v9813_v14 = vsel %vm1128_vm4, %v9807_v6, -inf }
0x2932   : > { %9814 = vmax.xlane.f32.xlu0 %v9813_v14  ;;  %v9810_v49 = vpop.f32.mrb[182].mxu1 }
0x2933   : > { %v15764_v15 = vpop.f32.mrb[183].mxu1 }
0x2938   : > { %v9918_v16 = vpop.f32.mrb[184].mxu1 }
0x2939   : > { %v15775_v57 = vpop.f32.mrb[185].mxu1  ;;  %v9924_v17 = vsel %vm1128_vm4, %v9918_v16, -inf }
0x293a   : > { %9925 = vmax.xlane.f32.xlu1 %v9924_v17  ;;  %v9921_v35 = vpop.f32.mrb[186].mxu1 }
0x293b   : > { %v15776_v13 = vpop.f32.mrb[187].mxu1 }
0x2940   : > { %v10028_v9 = vpop.f32.mrb[188].mxu1 }
0x2941   : > { %v15787_v52 = vpop.f32.mrb[189].mxu1  ;;  %v10034_v61 = vsel %vm1128_vm4, %v10028_v9, -inf }
0x2942   : > { %10035 = vmax.xlane.f32.xlu0 %v10034_v61  ;;  %v10031_v38 = vpop.f32.mrb[190].mxu1 }
0x2943   : > { %v15788_v31 = vpop.f32.mrb[191].mxu1 }
0x2948   : > { %v10138_v21 = vpop.f32.mrb[192].mxu1 }
0x2949   : > { %v15799_v55 = vpop.f32.mrb[193].mxu1  ;;  %v10144_v25 = vsel %vm1128_vm4, %v10138_v21, -inf }
0x294a   : > { %10145 = vmax.xlane.f32.xlu0 %v10144_v25  ;;  %v10141_v51 = vpop.f32.mrb[194].mxu1 }
0x294b   : > { %v15800_v39 = vpop.f32.mrb[195].mxu1 }
0x29bf   : > { %v9815_v22 = vpop.xlane.xlu0 %9814 }
0x29c0   : > { %v9816_v62 = vsub.f32 %v9807_v6, %v9815_v22  ;;  %v16357_v22 = vld [vmem:[%s18660_s7 + $0x10] sm:$0xff]  }
0x29c1   : > { %15808 = vmatpush3.bf16.msra.mxu1 %v16357_v22 }
0x29c2   : > { %v9817_v7 = vmul.f32 1.442695, %v9816_v62  ;;  %15809 = vmatprep.subr.bf16.mxu1 %v16651_v0  ;;  %v16358_v62 = vld [vmem:[%s18660_s7 + $0x18] sm:$0xff]  }
0x29c4   : > { %16573 = vpow2.f32 %v9817_v7 }
0x29c5   : > { %15810 = vmatpush3.bf16.msra.mxu1 %v16358_v62 }
0x29c6   : > { %15823 = vmatprep.subr.bf16.mxu1 %v16651_v0 }
0x29c7   : > { %v9926_v47 = vpop.xlane.xlu1 %9925 }
0x29c8   : > { %v9927_v8 = vsub.f32 %v9918_v16, %v9926_v47 }
0x29ca   : > { %v9928_v10 = vmul.f32 1.442695, %v9927_v8 }
0x29cc   : > { %16575 = vpow2.f32 %v9928_v10 }
0x29ce   : > { %v16574_v58 = vpop.eup %16573 }
0x29cf   : > { %v9819_v36 = vsel %vm1128_vm4, %v16574_v58, 0.0  ;;  %v10036_v32 = vpop.xlane.xlu0 %10035 }
0x29d0   : > { %9820 = vadd.xlane.f32.xlu1 %v9819_v36  ;;  %v10037_v45 = vsub.f32 %v10028_v9, %v10036_v32 }
0x29d2   : > { %v10038_v2 = vmul.f32 1.442695, %v10037_v45  ;;  %v16359_v45 = vld [vmem:[%s18663_s5 + $0x10] sm:$0xff]  }
0x29d6   : > { %v16576_v53 = vpop.eup %16575 }
0x29d7   : > { %v10146_v5 = vpop.xlane.xlu0 %10145  ;;  %v9930_v29 = vsel %vm1128_vm4, %v16576_v53, 0.0 }
0x29d8   : > { %v10147_v40 = vsub.f32 %v10138_v21, %v10146_v5  ;;  %9931 = vadd.xlane.f32.xlu0 %v9930_v29 }
0x29da   : > { %v10148_v41 = vmul.f32 1.442695, %v10147_v40 }
0x29dc   : > { %16577 = vpow2.f32 %v10148_v41 }
0x29dd   : > { %16579 = vpow2.f32 %v10038_v2 }
0x29e1   : > { %9825 = vrot.lane.b32.xlu1 %v18087_v18, %s18651_s18 }
0x29e6   : > { %v16578_v42 = vpop.eup %16577 }
0x29e7   : > { %v10150_v44 = vsel %vm1128_vm4, %v16578_v42, 0.0  ;;  %v16580_v46 = vpop.eup %16579 }
0x29e8   : > { %10151 = vadd.xlane.f32.xlu0 %v10150_v44  ;;  %v10040_v48 = vsel %vm1128_vm4, %v16580_v46, 0.0 }
0x29fe   : > { %9936 = vrot.lane.b32.xlu0 %v18087_v18, %s18659_s11 }
0x2a05   : > { %10041 = vadd.xlane.f32.xlu1 %v10040_v48  ;;  %v14117_v48 = vld [vmem:[%s18665_s8 + $0x1] ss:$0 sm:$0xff] }
0x2a16   : > { %10046 = vrot.lane.b32.xlu1 %v18087_v18, %s18653_s22 }
0x2a1a   : > { %10156 = vrot.lane.b32.xlu1 %v18087_v18, %s18652_s15 }
0x2a5d   : > { %v9821_v33 = vpop.xlane.xlu1 %9820 }
0x2a5e   : > { %16581 = vrcp.f32 %v9821_v33 }
0x2a61   : > { %v9826_v28 = vpop.permute.xlu1 %9825 }
0x2a62   : > { %v9831_v23 = vsel %vm1192_vm5, %v9826_v28, 0 }
0x2a63   : > { %15766 = vmatpush3.bf16.msra.mxu0 %v9831_v23 }
0x2a64   : > { %15777 = vmatprep.subr.bf16.mxu0 %v16651_v0 }
0x2a65   : > { %v9932_v50 = vpop.xlane.xlu0 %9931 }
0x2a66   : > { %16583 = vrcp.f32 %v9932_v50 }
0x2a68   : > { %v16582_v54 = vpop.eup %16581 }
0x2a69   : > { %v9823_v56 = vmul.f32 %v16582_v54, %v16574_v58 }
0x2a6b   : > { %v9824_v59 = vpack.c.bf16 %v9823_v56, %v9823_v56 }
0x2a6d   : > { %15768 = vmatmul.mubr.msk.bf16.vlgmr.msra.gmra.mrb[184].mxu0 %vm1128_vm4, %v9824_v59 }
0x2a6e   : > { %15779 = vmatprep.mubr.msk.bf16.mxu0 %vm16652_vm1, %v16651_v0 }
0x2a70   : > { %v16584_v30 = vpop.eup %16583 }
0x2a71   : > { %v9934_v60 = vmul.f32 %v16584_v30, %v16576_v53 }
0x2a73   : > { %v9935_v6 = vpack.c.bf16 %v9934_v60, %v9934_v60 }
0x2a75   : > { %v10152_v18 = vpop.xlane.xlu0 %10151 }
0x2a79   : > { %v9937_v27 = vpop.permute.xlu0 %9936 }
0x2a7a   : > { %v9942_v43 = vsel %vm1192_vm5, %v9937_v27, 0 }
0x2a7b   : > { %15778 = vmatpush3.bf16.msra.mxu0 %v9942_v43 }
0x2a7c   : > { %15789 = vmatprep.subr.bf16.mxu0 %v16651_v0 }
0x2a7e   : > { %15780 = vmatmul.mubr.msk.bf16.vlgmr.msra.gmra.mrb[188].mxu0 %vm1128_vm4, %v9935_v6 }
0x2a7f   : > { %15791 = vmatprep.mubr.msk.bf16.mxu0 %vm16652_vm1, %v16651_v0 }
0x2a92   : > { %v10042_v11 = vpop.xlane.xlu1 %10041 }
0x2a93   : > { %16585 = vrcp.f32 %v10042_v11 }
0x2a94   : > { %16587 = vrcp.f32 %v10152_v18 }
0x2a96   : > { %v10047_v14 = vpop.permute.xlu1 %10046 }
0x2a97   : > { %v10052_v49 = vsel %vm1192_vm5, %v10047_v14, 0 }
0x2a98   : > { %15790 = vmatpush3.bf16.msra.mxu0 %v10052_v49  ;;  %v14144_v49 = vld [vmem:[%s18666_s9 + $0x1] ss:$0 sm:$0xff] }
0x2a99   : > { %15801 = vmatprep.subr.bf16.mxu0 %v16651_v0 }
0x2a9a   : > { %v10157_v57 = vpop.permute.xlu1 %10156 }
0x2a9b   : > { %v10162_v13 = vsel %vm1192_vm5, %v10157_v57, 0  ;;  %v16362_v57 = vld [vmem:[%s18667_s12 + $0x18] sm:$0xff]  }
0x2a9d   : > { %v16586_v15 = vpop.eup %16585 }
0x2a9e   : > { %v10044_v16 = vmul.f32 %v16586_v15, %v16580_v46  ;;  %v16588_v35 = vpop.eup %16587  ;;  %v16360_v46 = vld [vmem:[%s18663_s5 + $0x18] sm:$0xff]  }
0x2a9f   : > { %v10154_v9 = vmul.f32 %v16588_v35, %v16578_v42 }
0x2aa0   : > { %v10045_v17 = vpack.c.bf16 %v10044_v16, %v10044_v16  ;;  %v16361_v16 = vld [vmem:[%s18667_s12 + $0x10] sm:$0xff]  }
0x2aa1   : > { %v10155_v52 = vpack.c.bf16 %v10154_v9, %v10154_v9 }
0x2aa2   : > { %15792 = vmatmul.mubr.msk.bf16.vlgmr.msra.gmra.mrb[192].mxu0 %vm1128_vm4, %v10045_v17 }
0x2aa3   : > { %15802 = vmatpush3.bf16.msra.mxu0 %v10162_v13  ;;  %15803 = vmatprep.mubr.msk.bf16.mxu0 %vm16652_vm1, %v16651_v0 }
0x2aa4   : > { %15815 = vmatprep.subr.bf16.mxu0 %v16651_v0 }
0x2aaa   : > { %15804 = vmatmul.mubr.msk.bf16.vlgmr.msra.gmra.mrb[196].mxu0 %vm1128_vm4, %v10155_v52  ;;  %v14123_v52 = vld [vmem:[%s16826_s25 + $0x3] ss:$0 sm:$0xff] }
0x2aab   : > { %15819 = vmatprep.mubr.msk.bf16.mxu0 %vm16652_vm1, %v16651_v0  ;;  %15816 = vmatpush3.bf16.msra.mxu0 %v16361_v16 }
0x2aac   : > { %15817 = vmatprep.subr.bf16.mxu0 %v16651_v0 }
0x2aaf   : > { %15818 = vmatpush3.bf16.msra.mxu0 %v16362_v57 }
0x2ab0   : > { %15831 = vmatprep.subr.bf16.mxu0 %v16651_v0 }
0x2b40   : > { %v9867_v61 = vpop.f32.mrb[184].mxu0 }
0x2b41   : > { %v15769_v38 = vpop.f32.mrb[185].mxu0 }
0x2b42   : > { %v9870_v31 = vpop.f32.mrb[186].mxu0  ;;  %v14124_v38 = vld [vmem:[%s16831_s21 + $0x3] ss:$0 sm:$0xff] }
0x2b43   : > { %v15770_v21 = vpop.f32.mrb[187].mxu0 }
0x2b51   : > { %v9978_v55 = vpop.f32.mrb[188].mxu0 }
0x2b52   : > { %10205 = vrot.lane.b32.xlu0 %v9978_v55, %s18661_s16  ;;  %v15781_v25 = vpop.f32.mrb[189].mxu0 }
0x2b53   : > { %v9981_v51 = vpop.f32.mrb[190].mxu0 }
0x2b54   : > { %v15782_v39 = vpop.f32.mrb[191].mxu0  ;;  %v14140_v51 = vld [vmem:[%s18670_s17 + $0x1] ss:$0 sm:$0xff] }
0x2b75   : > { %v10088_v7 = vpop.f32.mrb[192].mxu0 }
0x2b76   : > { %10209 = vrot.lane.b32.xlu1 %v10088_v7, %s18662_s10  ;;  %v15793_v47 = vpop.f32.mrb[193].mxu0 }
0x2b77   : > { %v10091_v8 = vpop.f32.mrb[194].mxu0 }
0x2b78   : > { %v15794_v10 = vpop.f32.mrb[195].mxu0 }
0x2b7d   : > { %v10198_v58 = vpop.f32.mrb[196].mxu0 }
0x2b7e   : > { %10213 = vrot.lane.b32.xlu0 %v10198_v58, %s18664_s6  ;;  %v15805_v36 = vpop.f32.mrb[197].mxu0 }
0x2b7f   : > { %v10201_v32 = vpop.f32.mrb[198].mxu0 }
0x2b80   : > { %v15806_v53 = vpop.f32.mrb[199].mxu0 }
0x2bc4   : > { %v10206_v5 = vpop.permute.xlu0 %10205 }
0x2bc5   : > { %v10216_v40 = vsel %vm1128_vm4, %v9867_v61, %v10206_v5 }
0x2be8   : > { %v10210_v29 = vpop.permute.xlu1 %10209 }
0x2be9   : > { %v10217_v41 = vsel %vm1580_vm6, %v10216_v40, %v10210_v29 }
0x2bf0   : > { %v10214_v42 = vpop.permute.xlu0 %10213 }
0x2bf1   : > { %v10218_v44 = vsel %vm1582_vm7, %v10217_v41, %v10214_v42 }
0x2bf2   : > { %v10219_v2 = vpack.c.bf16 %v10218_v44, %v10218_v44 }
0x2bf4   : > { %15812 = vmatmul.mubr.msk.bf16.vlgmr.msra.gmra.mrb[196].mxu1 %vm1078_vm3, %v10219_v2 }
0x2bf5   : > { %15824 = vmatpush3.bf16.msra.mxu1 %v16359_v45  ;;  %15827 = vmatprep.mubr.msk.bf16.mxu1 %vm16652_vm1, %v16651_v0 }
0x2bf6   : > { %15825 = vmatprep.subr.bf16.mxu1 %v16651_v0 }
0x2bf9   : > { %15826 = vmatpush3.bf16.msra.mxu1 %v16360_v46 }
0x2bfa   : > { %15837 = vmatprep.subr.bf16.mxu1 %v16651_v0 }
0x2bfc   : > { %15828 = vmatmul.mubr.msk.bf16.vlgmr.msra.gmra.mrb[200].mxu1 %vm1078_vm3, %v17614_v26 }
0x2bfd   : > { %15839 = vmatprep.mubr.msk.bf16.mxu1 %vm16652_vm1, %v16651_v0 }
0x2cc7   : > { %v10275_v33 = vpop.f32.mrb[196].mxu1 }
0x2cc8   : > { %v10276_v28 = vadd.f32 %v14117_v48, %v10275_v33  ;;  %v15813_v23 = vpop.f32.mrb[197].mxu1 }
0x2cc9   : > { %v10278_v54 = vpop.f32.mrb[198].mxu1 }
0x2cca   : > { %v10281_v50 = vadd.f32 %v10276_v28, %v18079_v37  ;;  %v15814_v56 = vpop.f32.mrb[199].mxu1 }
0x2ccc   : > { %v10286_v59 = vsel %vm1078_vm3, %v10281_v50, 0.0 }
0x2ccd   : > { %10287 = vadd.xlane.f32.xlu1 %v10286_v59 }
0x2ccf   : > { %v10449_v30 = vpop.f32.mrb[200].mxu1 }
0x2cd0   : > { %v15829_v18 = vpop.f32.mrb[201].mxu1  ;;  %v10450_v37 = vadd.f32 %v14144_v49, %v10449_v30 }
0x2cd1   : > { %v10452_v26 = vpop.f32.mrb[202].mxu1 }
0x2cd2   : > { %v15830_v60 = vpop.f32.mrb[203].mxu1  ;;  %v18182_v15 = vpack.c.bf16 %v10450_v37, %v10450_v37 }
0x2cd4   : > { %v10461_v25 = vsel %vm1128_vm4, %v18182_v15, 0 }
0x2d5a   : > { %v10288_v27 = vpop.xlane.xlu1 %10287 }
0x2d5b   : > { %v10289_v43 = vmul.f32 0.03125, %v10288_v27 }
0x2d5d   : > { %v10290_v6 = vsub.f32 %v10281_v50, %v10289_v43 }
0x2d5f   : > { %v10291_v11 = vmul.f32 %v10290_v6, %v10290_v6 }
0x2d61   : > { %v10292_v14 = vsel %vm1078_vm3, %v10291_v11, 0.0 }
0x2d62   : > { %10293 = vadd.xlane.f32.xlu0 %v10292_v14 }
0x2d78   : > { %10567 = vrot.lane.b32.xlu0 %v18182_v15, %s18668_s13 }
0x2def   : > { %v10294_v17 = vpop.xlane.xlu0 %10293 }
0x2df0   : > { %v10295_v35 = vmul.f32 0.03125, %v10294_v17 }
0x2df2   : > { %v10296_v13 = vadd.f32 1e-05, %v10295_v35 }
0x2df3   : > { %v10568_v10 = vpop.permute.xlu0 %10567 }
0x2df4   : > { %16589 = vrsqrt.f32 %v10296_v13  ;;  %v10573_v36 = vsel %vm1128_vm4, %v10568_v10, 0 }
0x2dfe   : > { %v16590_v9 = vpop.eup %16589 }
0x2dff   : > { %v10298_v61 = vmul.f32 %v16590_v9, %v10290_v6 }
0x2e01   : > { %v10305_v31 = vmul.f32 %v14123_v52, %v10298_v61 }
0x2e03   : > { %v18192_v21 = vadd.f32 %v14124_v38, %v10305_v31 }
0x2e05   : > { %v10334_v55 = vpack.c.bf16 %v18192_v21, %v18192_v21 }
0x2e07   : > { %15820 = vmatmul.mubr.msk.bf16.vlgmr.msra.gmra.mrb[200].mxu0 %vm1078_vm3, %v10334_v55 }
0x2e08   : > { %15832 = vmatpush3.bf16.xpose.msra.mxu0 %v10461_v25  ;;  %15833 = vmatprep.mubr.msk.bf16.mxu0 %vm16652_vm1, %v16651_v0 }
0x2e09   : > { %15843 = vmatprep.subr.bf16.mxu0 %v16651_v0 }
0x2eda   : > { %v10390_v39 = vpop.f32.mrb[200].mxu0 }
0x2edb   : > { %v10391_v22 = vadd.f32 %v14140_v51, %v10390_v39  ;;  %v15821_v62 = vpop.f32.mrb[201].mxu0 }
0x2edc   : > { %v10393_v7 = vpop.f32.mrb[202].mxu0 }
0x2edd   : > { %v10396_v47 = vmul.f32 0.35355338, %v10391_v22  ;;  %v15822_v8 = vpop.f32.mrb[203].mxu0 }
0x2edf   : > { %v10455_v58 = vpack.c.bf16 %v10396_v47, %v10396_v47 }
0x2ee1   : > { %10675 = vrot.lane.b32.xlu0 %v10455_v58, %s18669_s14  ;;  %10565 = vrot.lane.b32.xlu1 %v10455_v58, %s18668_s13  ;;  %s18680_s13 = sld [smem:[#allocation6_spill]] }
0x2ee2   : > { %15834 = vmatmul.mubr.msk.bf16.vlgmr.msra.gmra.mrb[204].mxu0 %vm1128_vm4, %v10455_v58 }
0x2ee3   : > { %15844 = vmatpush3.bf16.xpose.msra.mxu0 %v10573_v36  ;;  %15845 = vmatprep.mubr.msk.bf16.mxu0 %vm16652_vm1, %v16651_v0 }
0x2ee4   : > { %15855 = vmatprep.subr.bf16.mxu0 %v16651_v0 }
0x2ee5   : > { %10785 = vrot.lane.b32.xlu0 %v10455_v58, %s18656_s0  ;;  %10677 = vrot.lane.b32.xlu1 %v18182_v15, %s18669_s14  ;;  %s18682_s14 = sld [smem:[#allocation33_spill]] }
0x2ee9   : > { %10787 = vrot.lane.b32.xlu1 %v18182_v15, %s18656_s0 }
0x2f53   : > { %v10566_v32 = vpop.permute.xlu1 %10565  ;;  %v10676_v40 = vpop.permute.xlu0 %10675 }
0x2f54   : > { %15846 = vmatmul.mubr.msk.bf16.vlgmr.msra.gmra.mrb[208].mxu0 %vm1128_vm4, %v10566_v32 }
0x2f55   : > { %15857 = vmatprep.mubr.msk.bf16.mxu0 %vm16652_vm1, %v16651_v0 }
0x2f57   : > { %v10678_v53 = vpop.permute.xlu1 %10677  ;;  %v10786_v42 = vpop.permute.xlu0 %10785 }
0x2f58   : > { %v10683_v5 = vsel %vm1128_vm4, %v10678_v53, 0 }
0x2f59   : > { %15856 = vmatpush3.bf16.xpose.msra.mxu0 %v10683_v5 }
0x2f5a   : > { %15867 = vmatprep.subr.bf16.mxu0 %v16651_v0 }
0x2f5b   : > { %v10788_v29 = vpop.permute.xlu1 %10787 }
0x2f5c   : > { %v10793_v41 = vsel %vm1128_vm4, %v10788_v29, 0 }
0x2f60   : > { %15858 = vmatmul.mubr.msk.bf16.vlgmr.msra.gmra.mrb[212].mxu0 %vm1128_vm4, %v10676_v40 }
0x2f61   : > { %15868 = vmatpush3.bf16.xpose.msra.mxu0 %v10793_v41  ;;  %15869 = vmatprep.mubr.msk.bf16.mxu0 %vm16652_vm1, %v16651_v0 }
0x2f62   : > { %15879 = vmatprep.subr.bf16.mxu0 %v16651_v0 }
0x2f68   : > { %15870 = vmatmul.mubr.msk.bf16.vlgmr.msra.gmra.mrb[216].mxu0 %vm1128_vm4, %v10786_v42 }
0x2f69   : > { %15883 = vmatprep.mubr.msk.bf16.mxu0 %vm16652_vm1, %v16651_v0 }
0x2fb5   : > { %v10497_v44 = vpop.f32.mrb[204].mxu0 }
0x2fb6   : > { %v15835_v45 = vpop.f32.mrb[205].mxu0  ;;  %v10503_v2 = vsel %vm1128_vm4, %v10497_v44, -inf }
0x2fb7   : > { %10504 = vmax.xlane.f32.xlu1 %v10503_v2  ;;  %v10500_v46 = vpop.f32.mrb[206].mxu0 }
0x2fb8   : > { %v15836_v48 = vpop.f32.mrb[207].mxu0 }
0x3027   : > { %v10609_v33 = vpop.f32.mrb[208].mxu0 }
0x3028   : > { %v15847_v28 = vpop.f32.mrb[209].mxu0  ;;  %v10615_v23 = vsel %vm1128_vm4, %v10609_v33, -inf }
0x3029   : > { %10616 = vmax.xlane.f32.xlu0 %v10615_v23  ;;  %v10612_v54 = vpop.f32.mrb[210].mxu0 }
0x302a   : > { %v15848_v50 = vpop.f32.mrb[211].mxu0 }
0x3033   : > { %v10719_v56 = vpop.f32.mrb[212].mxu0 }
0x3034   : > { %v15859_v59 = vpop.f32.mrb[213].mxu0  ;;  %v10725_v30 = vsel %vm1128_vm4, %v10719_v56, -inf }
0x3035   : > { %10726 = vmax.xlane.f32.xlu0 %v10725_v30  ;;  %v10722_v18 = vpop.f32.mrb[214].mxu0 }
0x3036   : > { %v15860_v26 = vpop.f32.mrb[215].mxu0 }
0x303b   : > { %v10829_v60 = vpop.f32.mrb[216].mxu0 }
0x303c   : > { %v15871_v27 = vpop.f32.mrb[217].mxu0  ;;  %v10835_v43 = vsel %vm1128_vm4, %v10829_v60, -inf }
0x303d   : > { %10836 = vmax.xlane.f32.xlu1 %v10835_v43  ;;  %v10832_v6 = vpop.f32.mrb[218].mxu0 }
0x303e   : > { %v15872_v11 = vpop.f32.mrb[219].mxu0 }
0x303f   : > { %v16363_v11 = vld [vmem:[%s18673_s24 + $0x10] sm:$0xff]  }
0x3040   : > { %15880 = vmatpush3.bf16.msra.mxu0 %v16363_v11 }
0x3041   : > { %15881 = vmatprep.subr.bf16.mxu0 %v16651_v0 }
0x3044   : > { %v10505_v14 = vpop.xlane.xlu1 %10504 }
0x3045   : > { %v10506_v49 = vsub.f32 %v10497_v44, %v10505_v14  ;;  %v16364_v14 = vld [vmem:[%s18673_s24 + $0x18] sm:$0xff]  }
0x3046   : > { %15882 = vmatpush3.bf16.msra.mxu0 %v16364_v14 }
0x3047   : > { %v10507_v37 = vmul.f32 1.442695, %v10506_v49 }
0x3049   : > { %16591 = vpow2.f32 %v10507_v37 }
0x3053   : > { %v16592_v16 = vpop.eup %16591 }
0x3054   : > { %v10509_v57 = vsel %vm1128_vm4, %v16592_v16, 0.0 }
0x3055   : > { %10510 = vadd.xlane.f32.xlu0 %v10509_v57 }
0x30b6   : > { %v10617_v17 = vpop.xlane.xlu0 %10616 }
0x30b7   : > { %v10618_v35 = vsub.f32 %v10609_v33, %v10617_v17 }
0x30b9   : > { %v10619_v13 = vmul.f32 1.442695, %v10618_v35 }
0x30bb   : > { %16593 = vpow2.f32 %v10619_v13 }
0x30c2   : > { %v10727_v9 = vpop.xlane.xlu0 %10726 }
0x30c3   : > { %v10728_v52 = vsub.f32 %v10719_v56, %v10727_v9 }
0x30c5   : > { %v16594_v61 = vpop.eup %16593  ;;  %v10729_v38 = vmul.f32 1.442695, %v10728_v52 }
0x30c6   : > { %v10621_v31 = vsel %vm1128_vm4, %v16594_v61, 0.0 }
0x30c7   : > { %16595 = vpow2.f32 %v10729_v38  ;;  %10622 = vadd.xlane.f32.xlu1 %v10621_v31 }
0x30ca   : > { %v10837_v51 = vpop.xlane.xlu1 %10836 }
0x30cb   : > { %v10838_v39 = vsub.f32 %v10829_v60, %v10837_v51 }
0x30cd   : > { %v10839_v22 = vmul.f32 1.442695, %v10838_v39  ;;  %v14156_v39 = vld [vmem:[%s18674_s29 + $0x1] ss:$0 sm:$0xff] }
0x30cf   : > { %16597 = vpow2.f32 %v10839_v22 }
0x30d1   : > { %v16596_v55 = vpop.eup %16595 }
0x30d2   : > { %v10731_v25 = vsel %vm1128_vm4, %v16596_v55, 0.0 }
0x30d3   : > { %10732 = vadd.xlane.f32.xlu0 %v10731_v25 }
0x30d8   : > { %10627 = vrot.lane.b32.xlu1 %v18182_v15, %s18672_s20 }
0x30d9   : > { %v16598_v62 = vpop.eup %16597 }
0x30da   : > { %v10841_v7 = vsel %vm1128_vm4, %v16598_v62, 0.0 }
0x30e2   : > { %v10511_v47 = vpop.xlane.xlu0 %10510 }
0x30e3   : > { %16599 = vrcp.f32 %v10511_v47 }
0x30e9   : > { %10516 = vrot.lane.b32.xlu0 %v18182_v15, %s18671_s19  ;;  %s18683_s19 = sld [smem:[#allocation31_spill]] }
0x30ed   : > { %10847 = vrot.lane.b32.xlu0 %v18182_v15, %s18658_s3  ;;  %v16600_v10 = vpop.eup %16599  ;;  %s18681_s3 = sld [smem:[#allocation7_spill]] }
0x30ee   : > { %v10513_v36 = vmul.f32 %v16600_v10, %v16592_v16 }
0x30f0   : > { %v10514_v29 = vpack.c.bf16 %v10513_v36, %v10513_v36 }
0x30fc   : > { %10842 = vadd.xlane.f32.xlu1 %v10841_v7 }
0x310d   : > { %10737 = vrot.lane.b32.xlu1 %v18182_v15, %s18657_s23 }
0x3154   : > { %v10623_v8 = vpop.xlane.xlu1 %10622 }
0x3155   : > { %16601 = vrcp.f32 %v10623_v8 }
0x3158   : > { %v10628_v5 = vpop.permute.xlu1 %10627 }
0x3159   : > { %v10633_v41 = vsel %vm1192_vm5, %v10628_v5, 0 }
0x315f   : > { %v16602_v40 = vpop.eup %16601 }
0x3160   : > { %v10733_v58 = vpop.xlane.xlu0 %10732  ;;  %v10625_v15 = vmul.f32 %v16602_v40, %v16594_v61  ;;  %v14164_v40 = vld [vmem:[%s18675_s30 + $0x100] sm:$0xff] }
0x3161   : > { %16603 = vrcp.f32 %v10733_v58 }
0x3162   : > { %v10626_v42 = vpack.c.bf16 %v10625_v15, %v10625_v15  ;;  %v14165_v15 = vld [vmem:[%s18675_s30 + $0x108] sm:$0xff] }
0x3164   : > { %v10517_v32 = vpop.permute.xlu0 %10516 }
0x3165   : > { %v10522_v53 = vsel %vm1192_vm5, %v10517_v32, 0 }
0x3166   : > { %15838 = vmatpush3.bf16.msra.mxu1 %v10522_v53 }
0x3167   : > { %15849 = vmatprep.subr.bf16.mxu1 %v16651_v0 }
0x3168   : > { %v10848_v33 = vpop.permute.xlu0 %10847 }
0x3169   : > { %15840 = vmatmul.mubr.msk.bf16.vlgmr.msra.gmra.mrb[204].mxu1 %vm1128_vm4, %v10514_v29  ;;  %v10853_v23 = vsel %vm1192_vm5, %v10848_v33, 0  ;;  %v14181_v33 = vld [vmem:[%s18675_s30 + $0x188] sm:$0xff] }
0x316a   : > { %15850 = vmatpush3.bf16.msra.mxu1 %v10633_v41  ;;  %15851 = vmatprep.mubr.msk.bf16.mxu1 %vm16652_vm1, %v16651_v0  ;;  %v14172_v41 = vld [vmem:[%s18675_s30 + $0x140] sm:$0xff] }
0x316b   : > { %15861 = vmatprep.subr.bf16.mxu1 %v16651_v0  ;;  %v16604_v44 = vpop.eup %16603 }
0x316c   : > { %v10735_v2 = vmul.f32 %v16604_v44, %v16596_v55  ;;  %v14455_v44 = vcombine.low %v14164_v40, %v14172_v41 }
0x316e   : > { %v10736_v28 = vpack.c.bf16 %v10735_v2, %v10735_v2 }
0x3171   : > { %15852 = vmatmul.mubr.msk.bf16.vlgmr.msra.gmra.mrb[208].mxu1 %vm1128_vm4, %v10626_v42  ;;  %v14456_v42 = vcombine.high %v14164_v40, %v14172_v41 }
0x3172   : > { %15863 = vmatprep.mubr.msk.bf16.mxu1 %vm16652_vm1, %v16651_v0 }
0x3189   : > { %v10843_v45 = vpop.xlane.xlu1 %10842 }
0x318a   : > { %16605 = vrcp.f32 %v10843_v45 }
0x318d   : > { %v10738_v46 = vpop.permute.xlu1 %10737 }
0x318e   : > { %v10743_v48 = vsel %vm1192_vm5, %v10738_v46, 0  ;;  %v14180_v46 = vld [vmem:[%s18675_s30 + $0x180] sm:$0xff] }
0x318f   : > { %15862 = vmatpush3.bf16.msra.mxu1 %v10743_v48  ;;  %v14188_v48 = vld [vmem:[%s18675_s30 + $0x1c0] sm:$0xff] }
0x3190   : > { %15873 = vmatprep.subr.bf16.mxu1 %v16651_v0 }
0x3192   : > { %15864 = vmatmul.mubr.msk.bf16.vlgmr.msra.gmra.mrb[212].mxu1 %vm1128_vm4, %v10736_v28  ;;  %v14472_v28 = vcombine.high %v14180_v46, %v14188_v48 }
0x3193   : > { %15874 = vmatpush3.bf16.msra.mxu1 %v10853_v23  ;;  %15875 = vmatprep.mubr.msk.bf16.mxu1 %vm16652_vm1, %v16651_v0  ;;  %v14189_v23 = vld [vmem:[%s18675_s30 + $0x1c8] sm:$0xff] }
0x3194   : > { %v16606_v54 = vpop.eup %16605  ;;  %11545 = vmatprep.subr.bf16.mxu1 %v14456_v42  ;;  %v14178_v42 = vld [vmem:[%s18675_s30 + $0x170] sm:$0xff] }
0x3195   : > { %v10845_v50 = vmul.f32 %v16606_v54, %v16598_v62  ;;  %v14471_v54 = vcombine.low %v14180_v46, %v14188_v48 }
0x3197   : > { %v10846_v56 = vpack.c.bf16 %v10845_v50, %v10845_v50  ;;  %v14473_v50 = vcombine.low %v14181_v33, %v14189_v23 }
0x319a   : > { %15876 = vmatmul.mubr.msk.bf16.vlgmr.msra.gmra.mrb[216].mxu1 %vm1128_vm4, %v10846_v56  ;;  %v14474_v56 = vcombine.high %v14181_v33, %v14189_v23  ;;  %v14186_v33 = vld [vmem:[%s18675_s30 + $0x1b0] sm:$0xff]  ;;  %v14187_v23 = vld [vmem:[%s18675_s30 + $0x1b8] sm:$0xff] }
0x319b   : > { %11577 = vmatprep.mubr.bf16.mxu1 %v16667_v34  ;;  %11546 = vmatpush1.bf16.msra.mxu1 %v14455_v44  ;;  %v14179_v44 = vld [vmem:[%s18675_s30 + $0x178] sm:$0xff] }
0x319c   : > { %11547 = vmatprep.subr.bf16.mxu1 %v14472_v28  ;;  %v14194_v28 = vld [vmem:[%s18675_s30 + $0x1f0] sm:$0xff] }
0x319f   : > { %11548 = vmatpush1.bf16.msra.mxu1 %v14471_v54  ;;  %v14195_v54 = vld [vmem:[%s18675_s30 + $0x1f8] sm:$0xff] }
0x323c   : > { %v10558_v59 = vpop.f32.mrb[204].mxu1 }
0x323d   : > { %v15841_v30 = vpop.f32.mrb[205].mxu1 }
0x323e   : > { %v10561_v18 = vpop.f32.mrb[206].mxu1  ;;  %v14174_v30 = vld [vmem:[%s18675_s30 + $0x150] sm:$0xff] }
0x323f   : > { %v15842_v26 = vpop.f32.mrb[207].mxu1  ;;  %v14167_v18 = vld [vmem:[%s18675_s30 + $0x118] sm:$0xff] }
0x3244   : > { %v10669_v60 = vpop.f32.mrb[208].mxu1 }
0x3245   : > { %10896 = vrot.lane.b32.xlu1 %v10669_v60, %s18661_s16  ;;  %v15853_v27 = vpop.f32.mrb[209].mxu1 }
0x3246   : > { %v10672_v43 = vpop.f32.mrb[210].mxu1  ;;  %v14175_v27 = vld [vmem:[%s18675_s30 + $0x158] sm:$0xff] }
0x3247   : > { %v15854_v6 = vpop.f32.mrb[211].mxu1  ;;  %v14461_v43 = vcombine.low %v14167_v18, %v14175_v27 }
0x3248   : > { %v14462_v6 = vcombine.high %v14167_v18, %v14175_v27  ;;  %v14483_v18 = vcombine.low %v14186_v33, %v14194_v28  ;;  %v16366_v27 = vld [vmem:[%s18677_s27 + $0x4c0] sm:$0xff]  }
0x3265   : > { %v10779_v49 = vpop.f32.mrb[212].mxu1 }
0x3266   : > { %10900 = vrot.lane.b32.xlu0 %v10779_v49, %s18662_s10  ;;  %v15865_v37 = vpop.f32.mrb[213].mxu1 }
0x3267   : > { %v10782_v16 = vpop.f32.mrb[214].mxu1 }
0x3268   : > { %v15866_v57 = vpop.f32.mrb[215].mxu1  ;;  %v14162_v16 = vld [vmem:[%s16826_s25 + $0x4] ss:$0 sm:$0xff] }
0x326d   : > { %v10889_v17 = vpop.f32.mrb[216].mxu1 }
0x326e   : > { %10904 = vrot.lane.b32.xlu1 %v10889_v17, %s18664_s6  ;;  %v15877_v35 = vpop.f32.mrb[217].mxu1  ;;  %v14163_v17 = vld [vmem:[%s16831_s21 + $0x4] ss:$0 sm:$0xff]  ;;  %s18684_s6 = sshll.u32 %s18682_s14, 3 }
0x326f   : > { %v10892_v13 = vpop.f32.mrb[218].mxu1  ;;  %s981_s20 = scalar_lea.vmem %s18683_s19, %s18684_s6 }
0x3270   : > { %v15878_v9 = vpop.f32.mrb[219].mxu1  ;;  %v14182_v13 = vld [vmem:[%s18675_s30 + $0x190] sm:$0xff] }
0x3271   : > { %v14190_v9 = vld [vmem:[%s18675_s30 + $0x1d0] sm:$0xff] }
0x32b7   : > { %v10897_v52 = vpop.permute.xlu1 %10896 }
0x32b8   : > { %v10907_v38 = vsel %vm1128_vm4, %v10558_v59, %v10897_v52  ;;  %v14166_v59 = vld [vmem:[%s18675_s30 + $0x110] sm:$0xff]  ;;  %v14183_v52 = vld [vmem:[%s18675_s30 + $0x198] sm:$0xff] }
0x32b9   : > { %v14459_v26 = vcombine.low %v14166_v59, %v14174_v30  ;;  %v14460_v60 = vcombine.high %v14166_v59, %v14174_v30  ;;  %v14484_v59 = vcombine.high %v14186_v33, %v14194_v28  ;;  %v14486_v30 = vcombine.high %v14187_v23, %v14195_v54 }
0x32bb   : > { %11627 = vmatprep.subr.bf16.mxu1 %v14460_v60  ;;  %v16365_v60 = vld [vmem:[%s18677_s27 + $0x440] sm:$0xff]  }
0x32d8   : > { %v10901_v61 = vpop.permute.xlu0 %10900 }
0x32d9   : > { %v10908_v31 = vsel %vm1580_vm6, %v10907_v38, %v10901_v61  ;;  %v14191_v61 = vld [vmem:[%s18675_s30 + $0x1d8] sm:$0xff] }
0x32e0   : > { %v10905_v55 = vpop.permute.xlu1 %10904 }
0x32e1   : > { %v10909_v25 = vsel %vm1582_vm7, %v10908_v31, %v10905_v55  ;;  %v14476_v55 = vcombine.high %v14182_v13, %v14190_v9 }
0x32e2   : > { %v10910_v51 = vpack.c.bf16 %v10909_v25, %v10909_v25  ;;  %v14478_v25 = vcombine.high %v14183_v52, %v14191_v61 }
0x32e4   : > { %15884 = vmatmul.mubr.msk.bf16.vlgmr.msra.gmra.mrb[220].mxu0 %vm1078_vm3, %v10910_v51  ;;  %v14168_v51 = vld [vmem:[%s18675_s30 + $0x120] sm:$0xff] }
0x32e5   : > { %11618 = vmatprep.mubr.bf16.mxu0 %v16667_v34 }
0x33b7   : > { %v10966_v22 = vpop.f32.mrb[220].mxu0 }
0x33b8   : > { %v10967_v62 = vadd.f32 %v14156_v39, %v10966_v22  ;;  %v15885_v7 = vpop.f32.mrb[221].mxu0  ;;  %v14176_v39 = vld [vmem:[%s18675_s30 + $0x160] sm:$0xff]  ;;  %v14169_v22 = vld [vmem:[%s18675_s30 + $0x128] sm:$0xff] }
0x33b9   : > { %v10969_v47 = vpop.f32.mrb[222].mxu0  ;;  %v14475_v7 = vcombine.low %v14182_v13, %v14190_v9  ;;  %v16378_v13 = vld [vmem:[%s18677_s27 + $0x4d8] sm:$0xff]  }
0x33ba   : > { %v10972_v8 = vadd.f32 %v10967_v62, %v18192_v21  ;;  %v15886_v10 = vpop.f32.mrb[223].mxu0  ;;  %v14173_v21 = vld [vmem:[%s18675_s30 + $0x148] sm:$0xff]  ;;  %v14477_v47 = vcombine.low %v14183_v52, %v14191_v61  ;;  %v16379_v9 = vld [vmem:[%s18677_s27 + $0x418] sm:$0xff]   ;;  %v16381_v61 = vld [vmem:[%s18677_s27 + $0x460] sm:$0xff]  }
0x33bb   : > { %v14457_v45 = vcombine.low %v14165_v15, %v14173_v21  ;;  %v14458_v2 = vcombine.high %v14165_v15, %v14173_v21  ;;  %v14177_v62 = vld [vmem:[%s18675_s30 + $0x168] sm:$0xff]  ;;  %v14170_v15 = vld [vmem:[%s18675_s30 + $0x130] sm:$0xff]  ;;  %v14171_v21 = vld [vmem:[%s18675_s30 + $0x138] sm:$0xff] }
0x33bc   : > { %v10977_v58 = vsel %vm1078_vm3, %v10972_v8, 0.0  ;;  %v14466_v10 = vcombine.high %v14169_v22, %v14177_v62  ;;  %v14468_v46 = vcombine.high %v14170_v15, %v14178_v42  ;;  %v14470_v48 = vcombine.high %v14171_v21, %v14179_v44  ;;  %v16380_v52 = vld [vmem:[%s18677_s27 + $0x498] sm:$0xff]  }
0x33bd   : > { %10978 = vadd.xlane.f32.xlu0 %v10977_v58  ;;  %11586 = vmatprep.subr.bf16.mxu0 %v14458_v2  ;;  %v14184_v58 = vld [vmem:[%s18675_s30 + $0x1a0] sm:$0xff] }
0x33be   : > { %11587 = vmatpush1.bf16.msra.mxu0 %v14457_v45 }
0x33bf   : > { %11588 = vmatprep.subr.bf16.mxu0 %v14474_v56  ;;  %v14469_v56 = vcombine.low %v14171_v21, %v14179_v44 }
0x33c2   : > { %11589 = vmatpush1.bf16.msra.mxu0 %v14473_v50  ;;  %v14467_v50 = vcombine.low %v14170_v15, %v14178_v42 }
0x33c3   : > { %11668 = vmatprep.subr.bf16.mxu0 %v14462_v6  ;;  %v16368_v6 = vld [vmem:[%s18677_s27 + $0x480] sm:$0xff]  }
0x344a   : > { %v10979_v36 = vpop.xlane.xlu0 %10978 }
0x344b   : > { %v10980_v32 = vmul.f32 0.03125, %v10979_v36  ;;  %v14192_v36 = vld [vmem:[%s18675_s30 + $0x1e0] sm:$0xff] }
0x344c   : > { %v14480_v40 = vcombine.high %v14184_v58, %v14192_v36  ;;  %v14479_v45 = vcombine.low %v14184_v58, %v14192_v36  ;;  %v16393_v58 = vld [vmem:[%s18677_s27 + $0x478] sm:$0xff]  }
0x344d   : > { %v10981_v53 = vsub.f32 %v10972_v8, %v10980_v32  ;;  %v14464_v8 = vcombine.high %v14168_v51, %v14176_v39  ;;  %v14185_v32 = vld [vmem:[%s18675_s30 + $0x1a8] sm:$0xff]  ;;  %v16394_v36 = vld [vmem:[%s18677_s27 + $0x4f8] sm:$0xff]  }
0x344f   : > { %v10982_v5 = vmul.f32 %v10981_v53, %v10981_v53 }
0x3451   : > { %v10983_v29 = vsel %vm1078_vm3, %v10982_v5, 0.0  ;;  %v14463_v5 = vcombine.low %v14168_v51, %v14176_v39  ;;  %v16385_v51 = vld [vmem:[%s18677_s27 + $0x468] sm:$0xff]  }
0x3452   : > { %10984 = vadd.xlane.f32.xlu1 %v10983_v29  ;;  %v14465_v29 = vcombine.low %v14169_v22, %v14177_v62  ;;  %v16386_v39 = vld [vmem:[%s18677_s27 + $0x4e8] sm:$0xff]  }
0x3453   : > { %v16387_v22 = vld [vmem:[%s18677_s27 + $0x428] sm:$0xff]  }
0x3454   : > { %v16388_v62 = vld [vmem:[%s18677_s27 + $0x4a8] sm:$0xff]  }
0x34df   : > { %v10985_v11 = vpop.xlane.xlu1 %10984 }
0x34e0   : > { %v10986_v14 = vmul.f32 0.03125, %v10985_v11  ;;  %v16369_v11 = vld [vmem:[%s18677_s27 + $0x448] sm:$0xff]  }
0x34e2   : > { %v10987_v49 = vadd.f32 1e-05, %v10986_v14  ;;  %v16370_v14 = vld [vmem:[%s18677_s27 + $0x4c8] sm:$0xff]  }
0x34e4   : > { %16607 = vrsqrt.f32 %v10987_v49  ;;  %v16372_v49 = vld [vmem:[%s18677_s27 + $0x488] sm:$0xff]  }
0x34ee   : > { %v16608_v37 = vpop.eup %16607 }
0x34ef   : > { %v10989_v57 = vmul.f32 %v16608_v37, %v10981_v53  ;;  %v14193_v53 = vld [vmem:[%s18675_s30 + $0x1e8] sm:$0xff]  ;;  %v16373_v37 = vld [vmem:[%s18677_s27 + $0x450] sm:$0xff]  }
0x34f0   : > { %v14482_v41 = vcombine.high %v14185_v32, %v14193_v53  ;;  %v14481_v2 = vcombine.low %v14185_v32, %v14193_v53  ;;  %v16395_v32 = vld [vmem:[%s18677_s27 + $0x438] sm:$0xff]  }
0x34f1   : > { %v10996_v35 = vmul.f32 %v14162_v16, %v10989_v57  ;;  %v16374_v16 = vld [vmem:[%s18677_s27 + $0x4d0] sm:$0xff]   ;;  %v16396_v53 = vld [vmem:[%s18677_s27 + $0x4b8] sm:$0xff]  }
0x34f2   : > { %v16375_v57 = vld [vmem:[%s18677_s27 + $0x410] sm:$0xff]  }
0x34f3   : > { %v18295_v38 = vadd.f32 %v14163_v17, %v10996_v35  ;;  %v16376_v17 = vld [vmem:[%s18677_s27 + $0x490] sm:$0xff]   ;;  %v16377_v35 = vld [vmem:[%s18677_s27 + $0x458] sm:$0xff]  }
0x34f5   : > { %v18299_v31 = vpack.c.bf16 %v18295_v38, %v18295_v38 }
0x34f7   : > { %14487 = vmatmul.mubr.msk.bf16.vlgmr.msra.gmra.mrb[220].mxu1 %vm1078_vm3, %v18299_v31  ;;  %14488 = vmatmul.mubr.msk.bf16.vlgmr.msra.gmra.mrb[224].mxu0 %vm1078_vm3, %v18299_v31 }
0x34f8   : > { %11628 = vmatpush1.bf16.msra.mxu1 %v14459_v26  ;;  %11669 = vmatpush1.bf16.msra.mxu0 %v14461_v43  ;;  %v14485_v26 = vcombine.low %v14187_v23, %v14195_v54  ;;  %v16367_v43 = vld [vmem:[%s18677_s27 + $0x400] sm:$0xff]  }
0x34f9   : > { %11629 = vmatprep.subr.bf16.mxu1 %v14476_v55  ;;  %11670 = vmatprep.subr.bf16.mxu0 %v14478_v25  ;;  %v16383_v55 = vld [vmem:[%s18677_s27 + $0x420] sm:$0xff]  }
0x34fa   : > { %11659 = vmatprep.mubr.bf16.mxu1 %v16667_v34  ;;  %11700 = vmatprep.mubr.bf16.mxu0 %v16667_v34  ;;  %v16384_v25 = vld [vmem:[%s18677_s27 + $0x4a0] sm:$0xff]  }
0x34fc   : > { %11630 = vmatpush1.bf16.msra.mxu1 %v14475_v7  ;;  %11671 = vmatpush1.bf16.msra.mxu0 %v14477_v47  ;;  %v16389_v7 = vld [vmem:[%s18677_s27 + $0x470] sm:$0xff]  }
0x34fd   : > { %11709 = vmatprep.subr.bf16.mxu1 %v14464_v8  ;;  %11750 = vmatprep.subr.bf16.mxu0 %v14466_v10  ;;  %v16390_v47 = vld [vmem:[%s18677_s27 + $0x4f0] sm:$0xff]  }
0x34fe   : > { %v16391_v8 = vld [vmem:[%s18677_s27 + $0x430] sm:$0xff]  }
0x34ff   : > { %14489 = vmatmul.mubr.msk.bf16.vlgmr.msra.gmra.mrb[224].mxu1 %vm1078_vm3, %v18299_v31  ;;  %14490 = vmatmul.mubr.msk.bf16.vlgmr.msra.gmra.mrb[228].mxu0 %vm1078_vm3, %v18299_v31  ;;  %v16392_v10 = vld [vmem:[%s18677_s27 + $0x4b0] sm:$0xff]  }
0x3500   : > { %11710 = vmatpush1.bf16.msra.mxu1 %v14463_v5  ;;  %11751 = vmatpush1.bf16.msra.mxu0 %v14465_v29  ;;  %v16397_v5 = vld [vmem:[%s18677_s27 + $0x540] sm:$0xff]  }
0x3501   : > { %11711 = vmatprep.subr.bf16.mxu1 %v14480_v40  ;;  %11752 = vmatprep.subr.bf16.mxu0 %v14482_v41  ;;  %v16398_v29 = vld [vmem:[%s18677_s27 + $0x5c0] sm:$0xff]   ;;  %v18374_v40 = vld [vmem:[%s18679_s1 + $0x10] sm:$0xff] }
0x3502   : > { %11741 = vmatprep.mubr.bf16.mxu1 %v16667_v34  ;;  %11782 = vmatprep.mubr.bf16.mxu0 %v16667_v34  ;;  %v11305_v41 = vrot.slane %v18374_v40, %v17057_v63  ;;  %v11313_v15 = vrot.slane %v18374_v40, %v17060_v1  ;;  %v11309_v42 = vrot.slane %v18374_v40, %v17066_v3 }
0x3503   : > { %v11317_v21 = vrot.slane %v18374_v40, %v17069_v4 }
0x3504   : > { %11712 = vmatpush1.bf16.msra.mxu1 %v14479_v45  ;;  %11753 = vmatpush1.bf16.msra.mxu0 %v14481_v2 }
0x3505   : > { %11791 = vmatprep.subr.bf16.mxu1 %v14468_v46  ;;  %11832 = vmatprep.subr.bf16.mxu0 %v14470_v48 }
0x3507   : > { %14491 = vmatmul.mubr.msk.bf16.vlgmr.msra.gmra.mrb[228].mxu1 %vm1078_vm3, %v18299_v31  ;;  %14492 = vmatmul.mubr.msk.bf16.vlgmr.msra.gmra.mrb[232].mxu0 %vm1078_vm3, %v18299_v31 }
0x3508   : > { %11792 = vmatpush1.bf16.msra.mxu1 %v14467_v50  ;;  %11833 = vmatpush1.bf16.msra.mxu0 %v14469_v56 }
0x3509   : > { %11793 = vmatprep.subr.bf16.mxu1 %v14484_v59  ;;  %11834 = vmatprep.subr.bf16.mxu0 %v14486_v30 }
0x350a   : > { %11823 = vmatprep.mubr.bf16.mxu1 %v16667_v34  ;;  %11864 = vmatprep.mubr.bf16.mxu0 %v16667_v34  ;;  %v16371_v34 = vld [vmem:[%s18677_s27 + $0x408] sm:$0xff]  }
0x350c   : > { %11794 = vmatpush1.bf16.msra.mxu1 %v14483_v18  ;;  %11835 = vmatpush1.bf16.msra.mxu0 %v14485_v26 }
0x350d   : > { %15302 = vmatprep.subr.bf16.mxu1 %v16365_v60  ;;  %15324 = vmatprep.subr.bf16.mxu0 %v16366_v27 }
0x350f   : > { %14493 = vmatmul.mubr.msk.bf16.vlgmr.msra.gmra.mrb[232].mxu1 %vm1078_vm3, %v18299_v31  ;;  %14494 = vmatmul.mubr.msk.bf16.vlgmr.msra.gmra.mrb[236].mxu0 %vm1078_vm3, %v18299_v31  ;;  %v16382_v31 = vld [vmem:[%s18677_s27 + $0x4e0] sm:$0xff]  }
0x3510   : > { %15303 = vmatpush3.bf16.msra.mxu1 %v16367_v43  ;;  %15325 = vmatpush3.bf16.msra.mxu0 %v16368_v6  ;;  %v11325_v6 = vrot.slane %v18374_v40, %v17080_v19 }
0x3511   : > { %15304 = vmatprep.subr.bf16.mxu1 %v16369_v11  ;;  %15326 = vmatprep.subr.bf16.mxu0 %v16370_v14  ;;  %v11333_v11 = vrot.slane %v18374_v40, %v17083_v20  ;;  %v16399_v14 = vld [vmem:[%s18677_s27 + $0x500] sm:$0xff]  }
0x3514   : > { %15305 = vmatpush3.bf16.msra.mxu1 %v16371_v34  ;;  %15327 = vmatpush3.bf16.msra.mxu0 %v16372_v49  ;;  %v16400_v34 = vld [vmem:[%s18677_s27 + $0x580] sm:$0xff]  }
0x3515   : > { %15306 = vmatprep.subr.bf16.mxu1 %v16373_v37  ;;  %15328 = vmatprep.subr.bf16.mxu0 %v16374_v16  ;;  %v16401_v16 = vld [vmem:[%s18677_s27 + $0x548] sm:$0xff]  }
0x3518   : > { %15307 = vmatpush3.bf16.msra.mxu1 %v16375_v57  ;;  %15329 = vmatpush3.bf16.msra.mxu0 %v16376_v17  ;;  %v16402_v57 = vld [vmem:[%s18677_s27 + $0x5c8] sm:$0xff]  }
0x3519   : > { %15308 = vmatprep.subr.bf16.mxu1 %v16377_v35  ;;  %15330 = vmatprep.subr.bf16.mxu0 %v16378_v13 }
0x351c   : > { %15309 = vmatpush3.bf16.msra.mxu1 %v16379_v9  ;;  %15331 = vmatpush3.bf16.msra.mxu0 %v16380_v52 }
0x351d   : > { %15310 = vmatprep.subr.bf16.mxu1 %v16381_v61  ;;  %15332 = vmatprep.subr.bf16.mxu0 %v16382_v31 }
0x3520   : > { %15311 = vmatpush3.bf16.msra.mxu1 %v16383_v55  ;;  %15333 = vmatpush3.bf16.msra.mxu0 %v16384_v25  ;;  %v16403_v25 = vld [vmem:[%s18677_s27 + $0x508] sm:$0xff]  }
0x3521   : > { %15312 = vmatprep.subr.bf16.mxu1 %v16385_v51  ;;  %15334 = vmatprep.subr.bf16.mxu0 %v16386_v39  ;;  %v16404_v51 = vld [vmem:[%s18677_s27 + $0x588] sm:$0xff]  }
0x3524   : > { %15313 = vmatpush3.bf16.msra.mxu1 %v16387_v22  ;;  %15335 = vmatpush3.bf16.msra.mxu0 %v16388_v62  ;;  %v16405_v62 = vld [vmem:[%s18677_s27 + $0x550] sm:$0xff]  }
0x3525   : > { %15314 = vmatprep.subr.bf16.mxu1 %v16389_v7  ;;  %15336 = vmatprep.subr.bf16.mxu0 %v16390_v47  ;;  %v16406_v7 = vld [vmem:[%s18677_s27 + $0x5d0] sm:$0xff]  }
0x3528   : > { %15315 = vmatpush3.bf16.msra.mxu1 %v16391_v8  ;;  %15337 = vmatpush3.bf16.msra.mxu0 %v16392_v10 }
0x3529   : > { %15316 = vmatprep.subr.bf16.mxu1 %v16393_v58  ;;  %15338 = vmatprep.subr.bf16.mxu0 %v16394_v36  ;;  %v16407_v36 = vld [vmem:[%s18677_s27 + $0x510] sm:$0xff]  }
0x352c   : > { %15317 = vmatpush3.bf16.msra.mxu1 %v16395_v32  ;;  %15339 = vmatpush3.bf16.msra.mxu0 %v16396_v53  ;;  %v16408_v32 = vld [vmem:[%s18677_s27 + $0x590] sm:$0xff]   ;;  %v16409_v53 = vld [vmem:[%s18677_s27 + $0x558] sm:$0xff]  }
0x352d   : > { %15346 = vmatprep.subr.bf16.mxu1 %v16397_v5  ;;  %15368 = vmatprep.subr.bf16.mxu0 %v16398_v29  ;;  %v16410_v5 = vld [vmem:[%s18677_s27 + $0x5d8] sm:$0xff]  }
0x35ca   : > { %v11579_v44 = vpop.f32.mrb[220].mxu1  ;;  %v11620_v45 = vpop.f32.mrb[224].mxu0 }
0x35cb   : > { %v11580_v2 = vadd.f32 %v11579_v44, %v11305_v41  ;;  %v11621_v46 = vadd.f32 %v11620_v45, %v11313_v15  ;;  %v11581_v48 = vpop.f32.mrb[221].mxu1  ;;  %v11622_v33 = vpop.f32.mrb[225].mxu0  ;;  %v16411_v45 = vld [vmem:[%s18677_s27 + $0x518] sm:$0xff]  }
0x35cc   : > { %v11582_v28 = vadd.f32 %v11581_v48, %v11309_v42  ;;  %v11623_v23 = vadd.f32 %v11622_v33, %v11317_v21  ;;  %v11583_v54 = vpop.f32.mrb[222].mxu1  ;;  %v11624_v50 = vpop.f32.mrb[226].mxu0  ;;  %v16413_v33 = vld [vmem:[%s18677_s27 + $0x560] sm:$0xff]  }
0x35cd   : > { %v11873_v56 = vmax.f32 %v11580_v2, 0.0  ;;  %v11875_v59 = vmax.f32 %v11621_v46, 0.0  ;;  %v11584_v30 = vpop.f32.mrb[223].mxu1  ;;  %v11625_v18 = vpop.f32.mrb[227].mxu0  ;;  %v16412_v2 = vld [vmem:[%s18677_s27 + $0x598] sm:$0xff]   ;;  %v16415_v50 = vld [vmem:[%s18677_s27 + $0x520] sm:$0xff]  }
0x35ce   : > { %v11874_v26 = vmax.f32 %v11582_v28, 0.0  ;;  %v11876_v60 = vmax.f32 %v11623_v23, 0.0  ;;  %v16414_v28 = vld [vmem:[%s18677_s27 + $0x5e0] sm:$0xff]   ;;  %v18413_v23 = vld [vmem:[%s18679_s1 + $0x18] sm:$0xff]  ;;  %v16418_v30 = vld [vmem:[%s18677_s27 + $0x5e8] sm:$0xff]  }
0x35cf   : > { %v11889_v49 = vpack.c.bf16 %v11873_v56, %v11873_v56  ;;  %v11891_v37 = vpack.c.bf16 %v11875_v59, %v11875_v59  ;;  %v11361_v54 = vrot.slane %v18413_v23, %v17112_v12  ;;  %v16416_v56 = vld [vmem:[%s18677_s27 + $0x5a0] sm:$0xff]   ;;  %v16417_v59 = vld [vmem:[%s18677_s27 + $0x568] sm:$0xff]  }
0x35d0   : > { %v11890_v27 = vpack.c.bf16 %v11874_v26, %v11874_v26  ;;  %v11892_v43 = vpack.c.bf16 %v11876_v60, %v11876_v60 }
0x35d2   : > { %v18392_v17 = vpop.f32.mrb[224].mxu1  ;;  %v18394_v35 = vpop.f32.mrb[228].mxu0  ;;  %12711 = vmatprep.mubr.bf16.mxu1 %v11890_v27  ;;  %12751 = vmatprep.mubr.bf16.mxu0 %v11892_v43 }
0x35d3   : > { %v11663_v13 = vpop.f32.mrb[225].mxu1  ;;  %v11704_v9 = vpop.f32.mrb[229].mxu0  ;;  %12712 = vmatmul.mubr.bf16.vlgmr.msra.gmra.mrb[236].mxu1 %v11889_v49  ;;  %12752 = vmatmul.mubr.bf16.vlgmr.msra.gmra.mrb[240].mxu0 %v11891_v37  ;;  %v11321_v49 = vrot.slane %v18374_v40, %v17124_v24  ;;  %v11329_v37 = vrot.slane %v18374_v40, %v17112_v12  ;;  %v16424_v12 = vld [vmem:[%s18677_s27 + $0x5b0] sm:$0xff]  }
0x35d4   : > { %v11664_v52 = vadd.f32 %v11663_v13, %v11325_v6  ;;  %v11705_v61 = vadd.f32 %v11704_v9, %v11333_v11  ;;  %15347 = vmatpush3.bf16.msra.mxu1 %v16399_v14  ;;  %15369 = vmatpush3.bf16.msra.mxu0 %v16400_v34  ;;  %v11665_v31 = vpop.f32.mrb[226].mxu1  ;;  %v11706_v55 = vpop.f32.mrb[230].mxu0  ;;  %v16419_v14 = vld [vmem:[%s18677_s27 + $0x528] sm:$0xff]   ;;  %v16421_v13 = vld [vmem:[%s18677_s27 + $0x570] sm:$0xff]  }
0x35d5   : > { %v11666_v39 = vpop.f32.mrb[227].mxu1  ;;  %v11707_v22 = vpop.f32.mrb[231].mxu0  ;;  %15348 = vmatprep.subr.bf16.mxu1 %v16401_v16  ;;  %15370 = vmatprep.subr.bf16.mxu0 %v16402_v57  ;;  %v16420_v34 = vld [vmem:[%s18677_s27 + $0x5a8] sm:$0xff]   ;;  %v16422_v9 = vld [vmem:[%s18677_s27 + $0x5f0] sm:$0xff]   ;;  %v11662_v40 = vadd.f32 %v18392_v17, %v11321_v49  ;;  %v11703_v55 = vadd.f32 %v18394_v35, %v11329_v37  ;;  %v16429_v17 = vld [vmem:[%s18677_s27 + $0x640] sm:$0xff]  }
0x35d6   : > { %v11878_v47 = vmax.f32 %v11664_v52, 0.0  ;;  %v11880_v8 = vmax.f32 %v11705_v61, 0.0  ;;  %v11341_v52 = vrot.slane %v18413_v23, %v17066_v3  ;;  %v11349_v61 = vrot.slane %v18413_v23, %v17069_v4  ;;  %v16423_v31 = vld [vmem:[%s18677_s27 + $0x530] sm:$0xff]   ;;  %v16427_v4 = vld [vmem:[%s18677_s27 + $0x538] sm:$0xff]   ;;  %v16430_v35 = vld [vmem:[%s18677_s27 + $0x6c0] sm:$0xff]  }
0x35d7   : > { %v16428_v22 = vld [vmem:[%s18677_s27 + $0x5b8] sm:$0xff]   ;;  %v16452_v49 = vld [vmem:[%s18677_s27 + $0x6a8] sm:$0xff]   ;;  %v16453_v37 = vld [vmem:[%s18677_s27 + $0x670] sm:$0xff]  }
0x35d8   : > { %v11894_v10 = vpack.c.bf16 %v11878_v47, %v11878_v47  ;;  %v11896_v58 = vpack.c.bf16 %v11880_v8, %v11880_v8  ;;  %15349 = vmatpush3.bf16.msra.mxu1 %v16403_v25  ;;  %15371 = vmatpush3.bf16.msra.mxu0 %v16404_v51  ;;  %v16425_v25 = vld [vmem:[%s18677_s27 + $0x578] sm:$0xff]  }
0x35d9   : > { %15350 = vmatprep.subr.bf16.mxu1 %v16405_v62  ;;  %15372 = vmatprep.subr.bf16.mxu0 %v16406_v7  ;;  %v16426_v51 = vld [vmem:[%s18677_s27 + $0x5f8] sm:$0xff]   ;;  %v11877_v62 = vmax.f32 %v11662_v40, 0.0  ;;  %v11879_v7 = vmax.f32 %v11703_v55, 0.0 }
0x35da   : > { %v18404_v29 = vpop.f32.mrb[228].mxu1  ;;  %v18406_v41 = vpop.f32.mrb[232].mxu0  ;;  %12791 = vmatprep.mubr.bf16.mxu1 %v11894_v10  ;;  %12831 = vmatprep.mubr.bf16.mxu0 %v11896_v58  ;;  %v16431_v10 = vld [vmem:[%s18677_s27 + $0x600] sm:$0xff]   ;;  %v16459_v40 = vld [vmem:[%s18677_s27 + $0x638] sm:$0xff]  }
0x35db   : > { %v11745_v15 = vpop.f32.mrb[229].mxu1  ;;  %v11786_v42 = vpop.f32.mrb[233].mxu0  ;;  %v11893_v58 = vpack.c.bf16 %v11877_v62, %v11877_v62  ;;  %v16465_v62 = vld [vmem:[%s18677_s27 + $0x748] sm:$0xff]  }
0x35dc   : > { %15351 = vmatpush3.bf16.msra.mxu1 %v16407_v36  ;;  %15373 = vmatpush3.bf16.msra.mxu0 %v16408_v32  ;;  %v11747_v21 = vpop.f32.mrb[230].mxu1  ;;  %v11788_v44 = vpop.f32.mrb[234].mxu0  ;;  %v11746_v3 = vadd.f32 %v11745_v15, %v11341_v52  ;;  %v11787_v39 = vadd.f32 %v11786_v42, %v11349_v61  ;;  %v11895_v36 = vpack.c.bf16 %v11879_v7, %v11879_v7  ;;  %v16432_v32 = vld [vmem:[%s18677_s27 + $0x680] sm:$0xff]   ;;  %v16434_v15 = vld [vmem:[%s18677_s27 + $0x6c8] sm:$0xff]   ;;  %v16456_v61 = vld [vmem:[%s18677_s27 + $0x6b0] sm:$0xff]  }
0x35dd   : > { %v11748_v46 = vpop.f32.mrb[231].mxu1  ;;  %v11789_v48 = vpop.f32.mrb[235].mxu0  ;;  %15352 = vmatprep.subr.bf16.mxu1 %v16409_v53  ;;  %15374 = vmatprep.subr.bf16.mxu0 %v16410_v5  ;;  %v16433_v5 = vld [vmem:[%s18677_s27 + $0x648] sm:$0xff]  }
0x35de   : > { %v11882_v47 = vmax.f32 %v11746_v3, 0.0  ;;  %v11884_v8 = vmax.f32 %v11787_v39, 0.0  ;;  %v16435_v21 = vld [vmem:[%s18677_s27 + $0x608] sm:$0xff]   ;;  %v16439_v46 = vld [vmem:[%s18677_s27 + $0x610] sm:$0xff]  }
0x35df   : > { %v16436_v44 = vld [vmem:[%s18677_s27 + $0x688] sm:$0xff]   ;;  %v16440_v48 = vld [vmem:[%s18677_s27 + $0x690] sm:$0xff]  }
0x35e0   : > { %15353 = vmatpush3.bf16.msra.mxu1 %v16411_v45  ;;  %15375 = vmatpush3.bf16.msra.mxu0 %v16412_v2  ;;  %v11898_v53 = vpack.c.bf16 %v11882_v47, %v11882_v47  ;;  %v11900_v42 = vpack.c.bf16 %v11884_v8, %v11884_v8  ;;  %v16437_v45 = vld [vmem:[%s18677_s27 + $0x650] sm:$0xff]   ;;  %v16467_v47 = vld [vmem:[%s18677_s27 + $0x708] sm:$0xff]  }
0x35e1   : > { %15354 = vmatprep.subr.bf16.mxu1 %v16413_v33  ;;  %15376 = vmatprep.subr.bf16.mxu0 %v16414_v28  ;;  %v16438_v2 = vld [vmem:[%s18677_s27 + $0x6d0] sm:$0xff]   ;;  %v16441_v33 = vld [vmem:[%s18677_s27 + $0x658] sm:$0xff]   ;;  %v16468_v8 = vld [vmem:[%s18677_s27 + $0x788] sm:$0xff]  }
0x35e2   : > { %v18421_v18 = vpop.f32.mrb[232].mxu1  ;;  %v11866_v26 = vpop.f32.mrb[236].mxu0  ;;  %v16442_v28 = vld [vmem:[%s18677_s27 + $0x6d8] sm:$0xff]  }
0x35e3   : > { %v18423_v60 = vadd.f32 %v11866_v26, %v11361_v54  ;;  %v18425_v27 = vpop.f32.mrb[233].mxu1  ;;  %v18427_v43 = vpop.f32.mrb[237].mxu0  ;;  %v16443_v54 = vld [vmem:[%s18677_s27 + $0x618] sm:$0xff]   ;;  %v16448_v26 = vld [vmem:[%s18677_s27 + $0x6a0] sm:$0xff]  }
0x35e4   : > { %15355 = vmatpush3.bf16.msra.mxu1 %v16415_v50  ;;  %15377 = vmatpush3.bf16.msra.mxu0 %v16416_v56  ;;  %v11829_v6 = vpop.f32.mrb[234].mxu1  ;;  %v11870_v11 = vpop.f32.mrb[238].mxu0  ;;  %v16444_v50 = vld [vmem:[%s18677_s27 + $0x698] sm:$0xff]   ;;  %v16445_v56 = vld [vmem:[%s18677_s27 + $0x660] sm:$0xff]  }
0x35e5   : > { %v11830_v16 = vpop.f32.mrb[235].mxu1  ;;  %v11871_v57 = vpop.f32.mrb[239].mxu0  ;;  %15356 = vmatprep.subr.bf16.mxu1 %v16417_v59  ;;  %15378 = vmatprep.subr.bf16.mxu0 %v16418_v30  ;;  %v16446_v59 = vld [vmem:[%s18677_s27 + $0x6e0] sm:$0xff]   ;;  %v16449_v6 = vld [vmem:[%s18677_s27 + $0x668] sm:$0xff]  }
0x35e6   : > { %v16447_v30 = vld [vmem:[%s18677_s27 + $0x620] sm:$0xff]   ;;  %v16450_v11 = vld [vmem:[%s18677_s27 + $0x6e8] sm:$0xff]   ;;  %v11345_v16 = vrot.slane %v18413_v23, %v17060_v1  ;;  %v16454_v57 = vld [vmem:[%s18677_s27 + $0x6f0] sm:$0xff]  }
0x35e7   : > { %v16457_v1 = vld [vmem:[%s18677_s27 + $0x678] sm:$0xff]  }
0x35e8   : > { %15357 = vmatpush3.bf16.msra.mxu1 %v16419_v14  ;;  %15379 = vmatpush3.bf16.msra.mxu0 %v16420_v34  ;;  %v16451_v14 = vld [vmem:[%s18677_s27 + $0x628] sm:$0xff]   ;;  %v11337_v34 = vrot.slane %v18413_v23, %v17057_v63  ;;  %v16455_v63 = vld [vmem:[%s18677_s27 + $0x630] sm:$0xff]  }
0x35e9   : > { %15358 = vmatprep.subr.bf16.mxu1 %v16421_v13  ;;  %15380 = vmatprep.subr.bf16.mxu0 %v16422_v9  ;;  %v11357_v13 = vrot.slane %v18413_v23, %v17080_v19  ;;  %v11365_v9 = vrot.slane %v18413_v23, %v17083_v20 }
0x35ea   : > { %v11744_v52 = vadd.f32 %v18404_v29, %v11337_v34  ;;  %v16460_v29 = vld [vmem:[%s18677_s27 + $0x6b8] sm:$0xff]   ;;  %v11887_v34 = vmax.f32 %v18423_v60, 0.0 }
0x35eb   : > { %v11828_v19 = vadd.f32 %v18425_v27, %v11357_v13  ;;  %v11869_v20 = vadd.f32 %v18427_v43, %v11365_v9  ;;  %v16463_v27 = vld [vmem:[%s18677_s27 + $0x700] sm:$0xff]  }
0x35ec   : > { %15359 = vmatpush3.bf16.msra.mxu1 %v16423_v31  ;;  %15381 = vmatpush3.bf16.msra.mxu0 %v16424_v12  ;;  %v11785_v31 = vadd.f32 %v18406_v41, %v11345_v16  ;;  %v16458_v12 = vld [vmem:[%s18677_s27 + $0x6f8] sm:$0xff]   ;;  %v11881_v55 = vmax.f32 %v11744_v52, 0.0  ;;  %v16462_v41 = vld [vmem:[%s18677_s27 + $0x7c0] sm:$0xff]  }
0x35ed   : > { %15360 = vmatprep.subr.bf16.mxu1 %v16425_v25  ;;  %15382 = vmatprep.subr.bf16.mxu0 %v16426_v51  ;;  %v16461_v25 = vld [vmem:[%s18677_s27 + $0x740] sm:$0xff]   ;;  %v11886_v3 = vmax.f32 %v11828_v19, 0.0  ;;  %v11888_v39 = vmax.f32 %v11869_v20, 0.0 }
0x35ee   : > { %v11883_v51 = vmax.f32 %v11785_v31, 0.0  ;;  %v16464_v43 = vld [vmem:[%s18677_s27 + $0x780] sm:$0xff]  }
0x35ef   : > { %v11902_v7 = vpack.c.bf16 %v11886_v3, %v11886_v3 }
0x35f0   : > { %15361 = vmatpush3.bf16.msra.mxu1 %v16427_v4  ;;  %15383 = vmatpush3.bf16.msra.mxu0 %v16428_v22  ;;  %v11897_v4 = vpack.c.bf16 %v11881_v55, %v11881_v55  ;;  %v11899_v22 = vpack.c.bf16 %v11883_v51, %v11883_v51 }
0x35f1   : > { %15390 = vmatprep.subr.bf16.mxu1 %v16429_v17  ;;  %15412 = vmatprep.subr.bf16.mxu0 %v16430_v35  ;;  %v16466_v17 = vld [vmem:[%s18677_s27 + $0x7c8] sm:$0xff]   ;;  %v11904_v35 = vpack.c.bf16 %v11888_v39, %v11888_v39 }
0x35f3   : > { %12792 = vmatmul.mubr.bf16.vlgmr.msra.gmra.mrb[240].mxu1 %v11893_v58  ;;  %12832 = vmatmul.mubr.bf16.vlgmr.msra.gmra.mrb[244].mxu0 %v11895_v36  ;;  %v16470_v58 = vld [vmem:[%s18677_s27 + $0x7d0] sm:$0xff]  }
0x35f4   : > { %15391 = vmatpush3.bf16.msra.mxu1 %v16431_v10  ;;  %12871 = vmatprep.mubr.bf16.mxu1 %v11898_v53  ;;  %v16469_v10 = vld [vmem:[%s18677_s27 + $0x750] sm:$0xff]   ;;  %v16473_v53 = vld [vmem:[%s18677_s27 + $0x758] sm:$0xff]  }
0x35f5   : > { %15413 = vmatpush3.bf16.msra.mxu0 %v16432_v32  ;;  %12911 = vmatprep.mubr.bf16.mxu0 %v11900_v42  ;;  %v16471_v36 = vld [vmem:[%s18677_s27 + $0x710] sm:$0xff]   ;;  %v16476_v42 = vld [vmem:[%s18677_s27 + $0x798] sm:$0xff]  }
0x35f6   : > { %15392 = vmatprep.subr.bf16.mxu1 %v16433_v5  ;;  %15414 = vmatprep.subr.bf16.mxu0 %v16434_v15  ;;  %v16472_v32 = vld [vmem:[%s18677_s27 + $0x790] sm:$0xff]   ;;  %v16474_v5 = vld [vmem:[%s18677_s27 + $0x7d8] sm:$0xff]  }
0x35f7   : > { %v16475_v15 = vld [vmem:[%s18677_s27 + $0x718] sm:$0xff]  }
0x35f8   : > { %15393 = vmatpush3.bf16.msra.mxu1 %v16435_v21  ;;  %v16477_v21 = vld [vmem:[%s18677_s27 + $0x760] sm:$0xff]  }
0x35f9   : > { %15415 = vmatpush3.bf16.msra.mxu0 %v16436_v44  ;;  %15394 = vmatprep.subr.bf16.mxu1 %v16437_v45  ;;  %v16478_v44 = vld [vmem:[%s18677_s27 + $0x7e0] sm:$0xff]  }
0x35fa   : > { %15416 = vmatprep.subr.bf16.mxu0 %v16438_v2  ;;  %v16479_v45 = vld [vmem:[%s18677_s27 + $0x720] sm:$0xff]  }
0x35fb   : > { %v16480_v2 = vld [vmem:[%s18677_s27 + $0x7a0] sm:$0xff]  }
0x35fc   : > { %15395 = vmatpush3.bf16.msra.mxu1 %v16439_v46  ;;  %v16481_v46 = vld [vmem:[%s18677_s27 + $0x768] sm:$0xff]  }
0x35fd   : > { %15417 = vmatpush3.bf16.msra.mxu0 %v16440_v48  ;;  %15396 = vmatprep.subr.bf16.mxu1 %v16441_v33  ;;  %v16482_v48 = vld [vmem:[%s18677_s27 + $0x7e8] sm:$0xff]  }
0x35fe   : > { %15418 = vmatprep.subr.bf16.mxu0 %v16442_v28  ;;  %v16483_v33 = vld [vmem:[%s18677_s27 + $0x728] sm:$0xff]   ;;  %v11353_v28 = vrot.slane %v18413_v23, %v17124_v24  ;;  %v16491_v24 = vld [vmem:[%s18677_s27 + $0x738] sm:$0xff]  }
0x3600   : > { %15397 = vmatpush3.bf16.msra.mxu1 %v16443_v54  ;;  %v16484_v54 = vld [vmem:[%s18677_s27 + $0x7a8] sm:$0xff]  }
0x3601   : > { %15419 = vmatpush3.bf16.msra.mxu0 %v16444_v50  ;;  %15398 = vmatprep.subr.bf16.mxu1 %v16445_v56  ;;  %v16485_v50 = vld [vmem:[%s18677_s27 + $0x770] sm:$0xff]  }
0x3602   : > { %15420 = vmatprep.subr.bf16.mxu0 %v16446_v59  ;;  %v16486_v56 = vld [vmem:[%s18677_s27 + $0x7f0] sm:$0xff]  }
0x3603   : > { %v16487_v59 = vld [vmem:[%s18677_s27 + $0x730] sm:$0xff]  }
0x3604   : > { %15399 = vmatpush3.bf16.msra.mxu1 %v16447_v30  ;;  %v11826_v30 = vadd.f32 %v18421_v18, %v11353_v28  ;;  %v11903_v18 = vpack.c.bf16 %v11887_v34, %v11887_v34 }
0x3605   : > { %15421 = vmatpush3.bf16.msra.mxu0 %v16448_v26  ;;  %15400 = vmatprep.subr.bf16.mxu1 %v16449_v6  ;;  %v16488_v26 = vld [vmem:[%s18677_s27 + $0x7b0] sm:$0xff]   ;;  %v16489_v6 = vld [vmem:[%s18677_s27 + $0x778] sm:$0xff]  }
0x3606   : > { %15422 = vmatprep.subr.bf16.mxu0 %v16450_v11  ;;  %v16490_v11 = vld [vmem:[%s18677_s27 + $0x7f8] sm:$0xff]   ;;  %v11885_v23 = vmax.f32 %v11826_v30, 0.0 }
0x3608   : > { %15401 = vmatpush3.bf16.msra.mxu1 %v16451_v14  ;;  %v16492_v14 = vld [vmem:[%s18677_s27 + $0x7b8] sm:$0xff]  }
0x3609   : > { %15423 = vmatpush3.bf16.msra.mxu0 %v16452_v49  ;;  %15402 = vmatprep.subr.bf16.mxu1 %v16453_v37  ;;  %v11901_v49 = vpack.c.bf16 %v11885_v23, %v11885_v23  ;;  %v16494_v23 = vld [vmem:[%s18680_s13 + $0x8] sm:$0xff]  }
0x360a   : > { %15424 = vmatprep.subr.bf16.mxu0 %v16454_v57  ;;  %v14495_v57 = vld [vmem:[%s16821_s4 + $0x1] ss:$0 sm:$0xff] }
0x360c   : > { %15403 = vmatpush3.bf16.msra.mxu1 %v16455_v63 }
0x360d   : > { %15425 = vmatpush3.bf16.msra.mxu0 %v16456_v61  ;;  %15404 = vmatprep.subr.bf16.mxu1 %v16457_v1 }
0x360e   : > { %15426 = vmatprep.subr.bf16.mxu0 %v16458_v12 }
0x3610   : > { %15405 = vmatpush3.bf16.msra.mxu1 %v16459_v40 }
0x3611   : > { %15427 = vmatpush3.bf16.msra.mxu0 %v16460_v29  ;;  %15434 = vmatprep.subr.bf16.mxu1 %v16461_v25 }
0x3612   : > { %15456 = vmatprep.subr.bf16.mxu0 %v16462_v41 }
0x3613   : > { %12872 = vmatmul.mubr.bf16.vlgmr.msra.gmra.mrb[244].mxu1 %v11897_v4 }
0x3614   : > { %12912 = vmatmul.mubr.bf16.vlgmr.msra.gmra.mrb[248].mxu0 %v11899_v22  ;;  %15435 = vmatpush3.bf16.msra.mxu1 %v16463_v27 }
0x3615   : > { %12951 = vmatprep.mubr.bf16.mxu1 %v11902_v7  ;;  %15457 = vmatpush3.bf16.msra.mxu0 %v16464_v43 }
0x3616   : > { %12991 = vmatprep.mubr.bf16.mxu0 %v11904_v35  ;;  %15436 = vmatprep.subr.bf16.mxu1 %v16465_v62 }
0x3617   : > { %15458 = vmatprep.subr.bf16.mxu0 %v16466_v17 }
0x3618   : > { %15437 = vmatpush3.bf16.msra.mxu1 %v16467_v47 }
0x3619   : > { %15459 = vmatpush3.bf16.msra.mxu0 %v16468_v8  ;;  %15438 = vmatprep.subr.bf16.mxu1 %v16469_v10 }
0x361a   : > { %15460 = vmatprep.subr.bf16.mxu0 %v16470_v58 }
0x361c   : > { %15439 = vmatpush3.bf16.msra.mxu1 %v16471_v36 }
0x361d   : > { %15461 = vmatpush3.bf16.msra.mxu0 %v16472_v32  ;;  %15440 = vmatprep.subr.bf16.mxu1 %v16473_v53 }
0x361e   : > { %15462 = vmatprep.subr.bf16.mxu0 %v16474_v5 }
0x3620   : > { %15441 = vmatpush3.bf16.msra.mxu1 %v16475_v15 }
0x3621   : > { %15463 = vmatpush3.bf16.msra.mxu0 %v16476_v42  ;;  %15442 = vmatprep.subr.bf16.mxu1 %v16477_v21 }
0x3622   : > { %15464 = vmatprep.subr.bf16.mxu0 %v16478_v44 }
0x3624   : > { %15443 = vmatpush3.bf16.msra.mxu1 %v16479_v45 }
0x3625   : > { %15465 = vmatpush3.bf16.msra.mxu0 %v16480_v2  ;;  %15444 = vmatprep.subr.bf16.mxu1 %v16481_v46 }
0x3626   : > { %15466 = vmatprep.subr.bf16.mxu0 %v16482_v48 }
0x3628   : > { %15445 = vmatpush3.bf16.msra.mxu1 %v16483_v33 }
0x3629   : > { %15467 = vmatpush3.bf16.msra.mxu0 %v16484_v54  ;;  %15446 = vmatprep.subr.bf16.mxu1 %v16485_v50 }
0x362a   : > { %15468 = vmatprep.subr.bf16.mxu0 %v16486_v56 }
0x362c   : > { %15447 = vmatpush3.bf16.msra.mxu1 %v16487_v59 }
0x362d   : > { %15469 = vmatpush3.bf16.msra.mxu0 %v16488_v26  ;;  %15448 = vmatprep.subr.bf16.mxu1 %v16489_v6 }
0x362e   : > { %15470 = vmatprep.subr.bf16.mxu0 %v16490_v11 }
0x3630   : > { %15449 = vmatpush3.bf16.msra.mxu1 %v16491_v24  ;;  %v16493_v24 = vld [vmem:[%s18680_s13] sm:$0xff]  }
0x3631   : > { %15471 = vmatpush3.bf16.msra.mxu0 %v16492_v14  ;;  %15887 = vmatprep.subr.bf16.mxu1 %v16651_v0 }
0x3633   : > { %12952 = vmatmul.mubr.bf16.vlgmr.msra.gmra.mrb[248].mxu1 %v11901_v49 }
0x3634   : > { %12992 = vmatmul.mubr.bf16.vlgmr.msra.gmra.mrb[252].mxu0 %v11903_v18  ;;  %15891 = vmatprep.mubr.msk.bf16.mxu1 %vm16652_vm1, %v16651_v0  ;;  %v14626_v18 = vld [vmem:[%s16826_s25 + $0x5] ss:$0 sm:$0xff] }
0x3635   : > { %15888 = vmatpush3.bf16.msra.mxu1 %v16493_v24 }
0x3636   : > { %15889 = vmatprep.subr.bf16.mxu1 %v16651_v0 }
0x3639   : > { %15890 = vmatpush3.bf16.msra.mxu1 %v16494_v23 }
0x36a6   : > { %v15318_v37 = vpop.f32.mrb[236].mxu1  ;;  %v15340_v16 = vpop.f32.mrb[240].mxu0 }
0x36a7   : > { %v15319_v13 = vpop.f32.mrb[237].mxu1  ;;  %v15341_v9 = vpop.f32.mrb[241].mxu0 }
0x36a8   : > { %v15320_v63 = vadd.f32 %v15319_v13, %v15318_v37  ;;  %v15342_v52 = vadd.f32 %v15341_v9, %v15340_v16  ;;  %v15321_v60 = vpop.f32.mrb[238].mxu1  ;;  %v15343_v61 = vpop.f32.mrb[242].mxu0  ;;  %v14627_v16 = vld [vmem:[%s16831_s21 + $0x5] ss:$0 sm:$0xff] }
0x36a9   : > { %v15322_v1 = vpop.f32.mrb[239].mxu1  ;;  %v15344_v31 = vpop.f32.mrb[243].mxu0 }
0x36aa   : > { %v12714_v12 = vadd.f32 %v15320_v63, %v14495_v57  ;;  %v14628_v63 = vld [vmem:[%s18681_s3] ss:$0 sm:$0xff] }
0x36ac   : > { %v12754_v19 = vadd.f32 %v15342_v52, %v12714_v12 }
0x36c6   : > { %v15362_v20 = vpop.f32.mrb[240].mxu1  ;;  %v15384_v40 = vpop.f32.mrb[244].mxu0 }
0x36c7   : > { %v15363_v55 = vpop.f32.mrb[241].mxu1  ;;  %v15385_v29 = vpop.f32.mrb[245].mxu0 }
0x36c8   : > { %v15364_v25 = vadd.f32 %v15363_v55, %v15362_v20  ;;  %v15386_v51 = vadd.f32 %v15385_v29, %v15384_v40  ;;  %v15365_v41 = vpop.f32.mrb[242].mxu1  ;;  %v15387_v3 = vpop.f32.mrb[246].mxu0 }
0x36c9   : > { %v15366_v39 = vpop.f32.mrb[243].mxu1  ;;  %v15388_v27 = vpop.f32.mrb[247].mxu0 }
0x36ca   : > { %v12794_v4 = vadd.f32 %v15364_v25, %v12754_v19 }
0x36cc   : > { %v12834_v43 = vadd.f32 %v15386_v51, %v12794_v4 }
0x36e6   : > { %v15406_v22 = vpop.f32.mrb[244].mxu1 }
0x36e7   : > { %v15428_v62 = vpop.f32.mrb[248].mxu0  ;;  %v15407_v7 = vpop.f32.mrb[245].mxu1 }
0x36e8   : > { %v15408_v17 = vadd.f32 %v15407_v7, %v15406_v22  ;;  %v15429_v35 = vpop.f32.mrb[249].mxu0  ;;  %v15409_v47 = vpop.f32.mrb[246].mxu1 }
0x36e9   : > { %v15430_v8 = vadd.f32 %v15429_v35, %v15428_v62  ;;  %v15431_v10 = vpop.f32.mrb[250].mxu0  ;;  %v15410_v58 = vpop.f32.mrb[247].mxu1 }
0x36ea   : > { %v12874_v36 = vadd.f32 %v15408_v17, %v12834_v43  ;;  %v15432_v32 = vpop.f32.mrb[251].mxu0 }
0x36ec   : > { %v12914_v53 = vadd.f32 %v15430_v8, %v12874_v36 }
0x3706   : > { %v15450_v5 = vpop.f32.mrb[248].mxu1 }
0x3707   : > { %v15472_v15 = vpop.f32.mrb[252].mxu0  ;;  %v15451_v42 = vpop.f32.mrb[249].mxu1 }
0x3708   : > { %v15452_v21 = vadd.f32 %v15451_v42, %v15450_v5  ;;  %v15473_v44 = vpop.f32.mrb[253].mxu0  ;;  %v15453_v45 = vpop.f32.mrb[250].mxu1 }
0x3709   : > { %v15474_v2 = vadd.f32 %v15473_v44, %v15472_v15  ;;  %v15475_v46 = vpop.f32.mrb[254].mxu0  ;;  %v15454_v48 = vpop.f32.mrb[251].mxu1 }
0x370a   : > { %v12954_v33 = vadd.f32 %v15452_v21, %v12914_v53  ;;  %v15476_v28 = vpop.f32.mrb[255].mxu0 }
0x370c   : > { %v12994_v54 = vadd.f32 %v15474_v2, %v12954_v33 }
0x370e   : > { %v12999_v50 = vadd.f32 %v12994_v54, %v18295_v38 }
0x3710   : > { %v13004_v56 = vsel %vm1078_vm3, %v12999_v50, 0.0 }
0x3711   : > { %13005 = vadd.xlane.f32.xlu0 %v13004_v56 }
0x379e   : > { %v13006_v59 = vpop.xlane.xlu0 %13005 }
0x379f   : > { %v13007_v30 = vmul.f32 0.03125, %v13006_v59 }
0x37a1   : > { %v13008_v26 = vsub.f32 %v12999_v50, %v13007_v30 }
0x37a3   : > { %v13009_v6 = vmul.f32 %v13008_v26, %v13008_v26 }
0x37a5   : > { %v13010_v11 = vsel %vm1078_vm3, %v13009_v6, 0.0 }
0x37a6   : > { %13011 = vadd.xlane.f32.xlu0 %v13010_v11 }
0x3833   : > { %v13012_v38 = vpop.xlane.xlu0 %13011 }
0x3834   : > { %v13013_v14 = vmul.f32 0.03125, %v13012_v38 }
0x3836   : > { %v13014_v34 = vadd.f32 1e-05, %v13013_v14 }
0x3838   : > { %16609 = vrsqrt.f32 %v13014_v34 }
0x3842   : > { %v16610_v49 = vpop.eup %16609 }
0x3843   : > { %v13016_v37 = vmul.f32 %v16610_v49, %v13008_v26 }
0x3845   : > { %v13023_v57 = vmul.f32 %v14626_v18, %v13016_v37 }
0x3847   : > { %v13030_v13 = vadd.f32 %v14627_v16, %v13023_v57 }
0x3849   : > { %v13031_v9 = vpack.c.bf16 %v13030_v13, %v13030_v13 }
0x384b   : > { %15892 = vmatmul.mubr.msk.bf16.vlgmr.msra.gmra.mrb[252].mxu1 %vm1078_vm3, %v13031_v9 }
0x391e   : > { %v13092_v52 = vpop.f32.mrb[252].mxu1 }
0x391f   : > { %v13093_v0 = vadd.f32 %v14628_v63, %v13092_v52  ;;  %v15893_v60 = vpop.f32.mrb[253].mxu1 }
0x3920   : > { %v13095_v61 = vpop.f32.mrb[254].mxu1 }
0x3921   : > { %13099 = vst.msk [vmem:[%s981_s20] sm:$0xff] %vm13098_vm8, %v13093_v0  ;;  %v15894_v1 = vpop.f32.mrb[255].mxu1 }
0x3922 PF: > { %s18685_s0 = sld [smem:[#allocation32_spill]] }
0x3928   : > { %s75_s28 = sadd.s32 1, %s18685_s0  }
0x3929   : > { %p72_p4 = scmp.ge.s32.totalorder %s75_s28, 4  }
0x392b   :  { %74 = sbr.rel (!%p72_p4) target bundleno = 75 (0x4b), region = 248 }

</bundles_post_ra>
